<compile_context>
chip_gen: v7x
topology: tpu7x:2x2x1
jax: 0.10.0
libtpu: 0.0.40
codegen_flags: <defaults>
</compile_context>

<pallas_src>
import functools

import jax
import jax.numpy as jnp
import numpy as np
from jax import lax
from jax.experimental import pallas as pl
from jax.experimental.pallas import tpu as pltpu

KERNEL_SIZE = 5
PAD = 2
NUM_LAYERS = 5
LANE = 128


def _round_up(v, m):
    return (v + m - 1) // m * m


def _cdiv(a, b):
    return -(-a // b)


def _vmem_capacity_bytes():
    """Physical VMEM per TensorCore (generation-aware); conservative fallback."""
    try:
        info = pltpu.get_tpu_info()
        for name in ("vmem_capacity_bytes", "vmem_bytes", "vmem_size_bytes"):
            cap = getattr(info, name, None)
            if cap:
                return int(cap)
    except Exception:
        pass
    return 128 * (1 << 20)


# --------------------------------------------------------------------------------------
# Fused kernel
# --------------------------------------------------------------------------------------
def _postnet_fused_kernel(x_ref, *args, seq_len, tile_t, num_layers):
    """Fused 5-layer Conv1d+BN(+tanh) over one (batch, time-tile) grid cell.

    x_ref : (1, T_pad + 2*HALO, Cin0_pad)  full padded input for this batch element
    args  : w_0..w_4 (K, Cin_pad, Cout_pad) folded weights,
            s_0..s_4 (1, Cout_pad) folded BN shifts (f32),
            o_ref    (1, tile_t, Cout_last_pad)
    """
    w_refs = args[:num_layers]
    s_refs = args[num_layers:2 * num_layers]
    o_ref = args[2 * num_layers]

    halo = PAD * num_layers
    j = pl.program_id(1)
    start = pl.multiple_of(j * tile_t, 8)

    # Layer-0 input window: tile rows plus a 2*num_layers halo on each side.
    w_cur = tile_t + 2 * halo
    x_mm = x_ref[0, pl.ds(start, w_cur), :]                    # (w_cur, Cin0_pad), matmul dtype

    # Global row index of every layer-0 output row, hoisted once; per-layer masks
    # just take a static slice of this.
    w0_out = tile_t + 2 * PAD * (num_layers - 1)
    base_rows = (lax.broadcasted_iota(jnp.int32, (w0_out, 1), 0)
                 + (j * tile_t - PAD * (num_layers - 1)))

    for l in range(num_layers):
        w_next = w_cur - 2 * PAD                               # window shrinks by PAD per side
        wl = w_refs[l]
        # 5-tap matmul accumulation: no im2col patch materialization, same MXU work.
        acc = jnp.dot(x_mm[0:w_next, :], wl[0], preferred_element_type=jnp.float32)
        for k in range(1, KERNEL_SIZE):
            acc = acc + jnp.dot(x_mm[k:k + w_next, :], wl[k],
                                preferred_element_type=jnp.float32)
        y = acc + s_refs[l][...]                               # folded BN shift (scale in weights)

        if l == num_layers - 1:
            # Final layer: no activation, lane-dense (Cout padded to 128) store.
            o_ref[0] = y.astype(o_ref.dtype)
        else:
            y = jnp.tanh(y)
            # Zero rows outside the true sequence [0, seq_len): this reproduces the
            # NEXT conv layer's own zero padding at the sequence (and tile) boundary.
            rows = base_rows[PAD * l: PAD * l + w_next]
            valid = jnp.logical_and(rows >= 0, rows < seq_len)
            y = jnp.where(valid, y, 0.0)
            x_mm = y.astype(x_ref.dtype)                       # cast matmul LHS only
        w_cur = w_next


# --------------------------------------------------------------------------------------
# Parameter preparation (host-side, once): fold BN into conv, pad channels.
# --------------------------------------------------------------------------------------
def prepare_postnet_params(params, n_mel_channels, postnet_embedding_dim,
                           *, dtype=jnp.bfloat16, eps=1e-5):
    """Returns [(w_l, shift_l)] with w_l: (K, Cin_pad, Cout_pad) in `dtype`, shift_l f32."""
    n_mel_pad = _round_up(n_mel_channels, LANE)
    dim_pad = _round_up(postnet_embedding_dim, LANE)
    prepared = []
    for i, p in enumerate(params):
        in_ch = n_mel_channels if i == 0 else postnet_embedding_dim
        out_ch = n_mel_channels if i == NUM_LAYERS - 1 else postnet_embedding_dim
        cin_p = n_mel_pad if i == 0 else dim_pad
        cout_p = n_mel_pad if i == NUM_LAYERS - 1 else dim_pad

        inv_std = 1.0 / jnp.sqrt(p["var"] + eps)
        scale = p["gamma"] * inv_std                                   # (out_ch,)
        shift = (p["conv_bias"] - p["mean"]) * scale + p["beta"]       # (out_ch,)

        # PyTorch weight (out, in, K) -> (K, in, out), fold BN scale into Cout.
        w = jnp.transpose(p["w_torch"], (2, 1, 0)) * scale[None, None, :]
        w = jnp.pad(w, ((0, 0), (0, cin_p - in_ch), (0, cout_p - out_ch))).astype(dtype)

        shift = jnp.pad(shift, (0, cout_p - out_ch)).reshape(1, cout_p).astype(jnp.float32)
        prepared.append((w, shift))
    return prepared


# --------------------------------------------------------------------------------------
# Forward wrapper
# --------------------------------------------------------------------------------------
def postnet_forward(x_ncw, prepared, *, n_mel_channels, tile_t=None):
    """Fused Pallas Postnet forward. x_ncw: (B, n_mel, T) -> (B, n_mel, T)."""
    B, C, T = x_ncw.shape
    assert C == n_mel_channels
    halo = PAD * NUM_LAYERS

    w_list = [w for w, _ in prepared]
    s_list = [s for _, s in prepared]
    mm_dtype = w_list[0].dtype
    out_dtype = x_ncw.dtype
    n_mel_pad = w_list[0].shape[1]
    cout_last_pad = w_list[-1].shape[2]
    itemsize = jnp.dtype(mm_dtype).itemsize
    out_itemsize = jnp.dtype(out_dtype).itemsize

    vmem_cap = _vmem_capacity_bytes()
    small_vmem = vmem_cap <= 80 * (1 << 20)          # v7x-class (64 MiB per TC)

    if tile_t is None:
        # Generation-aware target tile, then choose a divisor-friendly tile that
        # minimizes t_pad - T waste; for B==1 make sure both v7x TCs get tiles.
        target = (384 if itemsize < 4 else 256) if small_vmem else 512
        n_tiles = max(1, _cdiv(T, target))
        if B == 1:
            n_tiles = max(n_tiles, 2)
        tile_t = _cdiv(T, n_tiles)
    tile_t = max(8, _round_up(tile_t, 8))
    t_pad = _round_up(T, tile_t)
    n_t = t_pad // tile_t
    t_in = t_pad + 2 * halo

    # Single cheap pad of the small (n_mel-channel) input; no per-layer padding anywhere.
    x = jnp.transpose(x_ncw, (0, 2, 1)).astype(mm_dtype)               # NCW -> NTC
    x = jnp.pad(x, ((0, 0), (halo, halo + (t_pad - T)), (0, n_mel_pad - C)))

    kernel = functools.partial(_postnet_fused_kernel,
                               seq_len=T, tile_t=tile_t, num_layers=NUM_LAYERS)

    flops = 2 * B * t_pad * sum(int(w.size) for w in w_list)
    transcendentals = B * t_pad * sum(int(w.shape[2]) for w in w_list[:-1])
    bytes_accessed = (int(x.size) * itemsize
                      + B * t_pad * cout_last_pad * out_itemsize
                      + sum(int(w.size) * itemsize for w in w_list)
                      + sum(int(s.size) * 4 for s in s_list))

    # VMEM budget: weights counted double-buffered for headroom (actual request is
    # single-buffered below), double-buffered input/output, plus f32 working windows.
    max_cpad = max(w.shape[2] for w in w_list)
    vmem_est = (2 * sum(int(w.size) * itemsize for w in w_list)
                + 2 * sum(int(s.size) * 4 for s in s_list)
                + 2 * t_in * n_mel_pad * itemsize
                + 2 * tile_t * cout_last_pad * out_itemsize
                + 6 * (tile_t + 2 * halo) * max_cpad * 4)
    vmem_budget = int(vmem_cap * 3 // 4)                               # never oversubscribe v7x
    vmem_limit = int(min(max(vmem_est, 32 * 1024 * 1024), vmem_budget))

    def build_call(single_buffer_consts):
        # Constant-index weights/shifts gain nothing from double-buffering.
        const_kw = {"pipeline_mode": pl.Buffered(1)} if single_buffer_consts else {}
        in_specs = [pl.BlockSpec((1, t_in, n_mel_pad), lambda b, j: (b, 0, 0))]
        in_specs += [pl.BlockSpec(w.shape, lambda b, j: (0, 0, 0), **const_kw)
                     for w in w_list]
        in_specs += [pl.BlockSpec(s.shape, lambda b, j: (0, 0), **const_kw)
                     for s in s_list]
        return pl.pallas_call(
            kernel,
            out_shape=jax.ShapeDtypeStruct((B, t_pad, cout_last_pad), out_dtype),
            grid_spec=pltpu.PrefetchScalarGridSpec(
                num_scalar_prefetch=0,
                grid=(B, n_t),
                in_specs=in_specs,
                out_specs=pl.BlockSpec((1, tile_t, cout_last_pad), lambda b, j: (b, j, 0)),
            ),
            compiler_params=pltpu.CompilerParams(
                dimension_semantics=("parallel", "parallel"),
                vmem_limit_bytes=vmem_limit,
            ),
            cost_estimate=pl.CostEstimate(flops=flops, transcendentals=transcendentals,
                                          bytes_accessed=bytes_accessed),
        )

    try:
        out = build_call(True)(x, *w_list, *s_list)
    except Exception:
        # Fallback for jax versions without single-buffer pipeline_mode support.
        out = build_call(False)(x, *w_list, *s_list)

    out = out[:, :T, :n_mel_channels]
    return jnp.transpose(out, (0, 2, 1))                               # NTC -> NCW


# --------------------------------------------------------------------------------------
# Synthetic parameters + pure-JAX reference
# --------------------------------------------------------------------------------------
def make_postnet_params(n_mel_channels, postnet_embedding_dim, key):
    """Deterministic synthetic parameters matching Postnet.__init__ shapes (raw, unfolded)."""
    params = []
    for i in range(NUM_LAYERS):
        in_ch = n_mel_channels if i == 0 else postnet_embedding_dim
        out_ch = n_mel_channels if i == NUM_LAYERS - 1 else postnet_embedding_dim
        key, k_w, k_b, k_g, k_be, k_m, k_v = jax.random.split(key, 7)
        w_torch = 0.1 * jax.random.normal(k_w, (out_ch, in_ch, KERNEL_SIZE), jnp.float32)
        conv_bias = 0.1 * jax.random.normal(k_b, (out_ch,), jnp.float32)
        gamma = 1.0 + 0.1 * jax.random.normal(k_g, (out_ch,), jnp.float32)
        beta = 0.1 * jax.random.normal(k_be, (out_ch,), jnp.float32)
        running_mean = 0.1 * jax.random.normal(k_m, (out_ch,), jnp.float32)
        running_var = 1.0 + 0.1 * jax.random.uniform(k_v, (out_ch,), jnp.float32)
        params.append(dict(w_torch=w_torch, conv_bias=conv_bias, gamma=gamma,
                           beta=beta, mean=running_mean, var=running_var))
    return params


def postnet_reference(x_ncw, params):
    """Pure-JAX reference (lax conv, eval-mode BN) for correctness checking."""
    eps = 1e-5
    x = x_ncw
    for i, p in enumerate(params):
        y = lax.conv_general_dilated(
            x, p["w_torch"], window_strides=(1,), padding=[(PAD, PAD)],
            dimension_numbers=("NCH", "OIH", "NCH"),
        ) + p["conv_bias"][None, :, None]
        y = (y - p["mean"][None, :, None]) / jnp.sqrt(p["var"][None, :, None] + eps)
        y = y * p["gamma"][None, :, None] + p["beta"][None, :, None]
        if i < NUM_LAYERS - 1:
            y = jnp.tanh(y)
        x = y
    return x


if __name__ == "__main__":
    N_MEL = 8
    POSTNET_DIM = 32

    key = jax.random.PRNGKey(0)
    key, kp = jax.random.split(key)
    params = make_postnet_params(N_MEL, POSTNET_DIM, kp)

    configs = [
        # multi T-tile path (exercises halo + boundary masking across tiles), f32 weights
        dict(B=2, T=24, tile_t=8, dtype=jnp.float32, rtol=5e-5, atol=5e-5),
        # ragged T (not a multiple of 8), default tile heuristic, f32 weights
        dict(B=2, T=21, tile_t=None, dtype=jnp.float32, rtol=5e-5, atol=5e-5),
        # B=1 path: heuristic must split time into >=2 tiles (megacore balance)
        dict(B=1, T=40, tile_t=None, dtype=jnp.float32, rtol=5e-5, atol=5e-5),
        # default bf16 matmul/weight path (f32 accumulation / epilogue) — v6e/v7x oriented
        dict(B=2, T=24, tile_t=8, dtype=jnp.bfloat16, rtol=1e-1, atol=1e-1),
    ]

    for cfg in configs:
        key, kx = jax.random.split(key)
        x = jax.random.normal(kx, (cfg["B"], N_MEL, cfg["T"]), jnp.float32)  # PyTorch NCW layout
        prepared = prepare_postnet_params(params, N_MEL, POSTNET_DIM, dtype=cfg["dtype"])
        out = jax.block_until_ready(
            postnet_forward(x, prepared, n_mel_channels=N_MEL, tile_t=cfg["tile_t"]))
        ref = jax.block_until_ready(postnet_reference(x, params))
        assert out.shape == (cfg["B"], N_MEL, cfg["T"]), out.shape
        np.testing.assert_allclose(np.asarray(out, np.float32), np.asarray(ref),
                                   rtol=cfg["rtol"], atol=cfg["atol"])

    print("KERNEL_OK")
</pallas_src>

<mosaic_0001>
module attributes {stable_mosaic.version = 11 : i64} {
  func.func @_postnet_fused_kernel(%arg0: i32, %arg1: i32, %arg2: memref<1x44x128xf32, #tpu.memory_space<vmem>>, %arg3: memref<5x128x128xf32, #tpu.memory_space<vmem>>, %arg4: memref<5x128x128xf32, #tpu.memory_space<vmem>>, %arg5: memref<5x128x128xf32, #tpu.memory_space<vmem>>, %arg6: memref<5x128x128xf32, #tpu.memory_space<vmem>>, %arg7: memref<5x128x128xf32, #tpu.memory_space<vmem>>, %arg8: memref<1x128xf32, #tpu.memory_space<vmem>>, %arg9: memref<1x128xf32, #tpu.memory_space<vmem>>, %arg10: memref<1x128xf32, #tpu.memory_space<vmem>>, %arg11: memref<1x128xf32, #tpu.memory_space<vmem>>, %arg12: memref<1x128xf32, #tpu.memory_space<vmem>>, %arg13: memref<1x8x128xf32, #tpu.memory_space<vmem>>) attributes {dimension_semantics = [#tpu.dimension_semantics<parallel>, #tpu.dimension_semantics<parallel>], iteration_bounds = array<i64: 2, 3>, scalar_prefetch = 0 : i64, scratch_operands = 0 : i64, tpu.core_type = #tpu.core_type<tc>, window_params = [{transform_indices = @transform_0, window_bounds = array<i64: 1, 44, 128>}, {pipeline_mode = #tpu.pipeline_mode<synchronous>, transform_indices = @transform_1, window_bounds = array<i64: 5, 128, 128>}, {pipeline_mode = #tpu.pipeline_mode<synchronous>, transform_indices = @transform_2, window_bounds = array<i64: 5, 128, 128>}, {pipeline_mode = #tpu.pipeline_mode<synchronous>, transform_indices = @transform_3, window_bounds = array<i64: 5, 128, 128>}, {pipeline_mode = #tpu.pipeline_mode<synchronous>, transform_indices = @transform_4, window_bounds = array<i64: 5, 128, 128>}, {pipeline_mode = #tpu.pipeline_mode<synchronous>, transform_indices = @transform_5, window_bounds = array<i64: 5, 128, 128>}, {pipeline_mode = #tpu.pipeline_mode<synchronous>, transform_indices = @transform_6, window_bounds = array<i64: 1, 128>}, {pipeline_mode = #tpu.pipeline_mode<synchronous>, transform_indices = @transform_7, window_bounds = array<i64: 1, 128>}, {pipeline_mode = #tpu.pipeline_mode<synchronous>, transform_indices = @transform_8, window_bounds = array<i64: 1, 128>}, {pipeline_mode = #tpu.pipeline_mode<synchronous>, transform_indices = @transform_9, window_bounds = array<i64: 1, 128>}, {pipeline_mode = #tpu.pipeline_mode<synchronous>, transform_indices = @transform_10, window_bounds = array<i64: 1, 128>}, {transform_indices = @transform_11, window_bounds = array<i64: 1, 8, 128>}]} {
    %c8_i32 = arith.constant 8 : i32
    %0 = arith.muli %arg1, %c8_i32 : i32
    %1 = tpu.assume_multiple %0, 8 : i32
    %c0 = arith.constant 0 : index
    %2 = arith.index_cast %1 : i32 to index
    %c0_0 = arith.constant 0 : index
    %3 = vector.load %arg2[%c0, %2, %c0_0] : memref<1x44x128xf32, #tpu.memory_space<vmem>>, vector<1x28x128xf32>
    %4 = vector.shape_cast %3 : vector<1x28x128xf32> to vector<28x128xf32>
    %5 = tpu.iota {dimensions = array<i32: 0>} : vector<24x1xi32>
    %c8_i32_1 = arith.constant 8 : i32
    %6 = arith.muli %arg1, %c8_i32_1 : i32
    %c8_i32_2 = arith.constant 8 : i32
    %7 = arith.subi %6, %c8_i32_2 : i32
    %8 = vector.broadcast %7 : i32 to vector<24x1xi32>
    %9 = arith.addi %5, %8 : vector<24x1xi32>
    %10 = vector.extract_strided_slice %4 {offsets = [0, 0], sizes = [24, 128], strides = [1, 1]} : vector<28x128xf32> to vector<24x128xf32>
    %c0_3 = arith.constant 0 : index
    %c0_4 = arith.constant 0 : index
    %c0_5 = arith.constant 0 : index
    %11 = vector.load %arg3[%c0_3, %c0_4, %c0_5] : memref<5x128x128xf32, #tpu.memory_space<vmem>>, vector<1x128x128xf32>
    %12 = vector.shape_cast %11 : vector<1x128x128xf32> to vector<128x128xf32>
    %cst = arith.constant dense<0.000000e+00> : vector<24x128xf32>
    %13 = tpu.matmul %10, %12, %cst {dimension_numbers = #tpu.dot_dimension_numbers<[1], [0], [0], [1], [0, 0, 1, 1], [], []>} : vector<24x128xf32>, vector<128x128xf32>, vector<24x128xf32> -> vector<24x128xf32>
    %14 = vector.extract_strided_slice %4 {offsets = [1, 0], sizes = [24, 128], strides = [1, 1]} : vector<28x128xf32> to vector<24x128xf32>
    %c1 = arith.constant 1 : index
    %c0_6 = arith.constant 0 : index
    %c0_7 = arith.constant 0 : index
    %15 = vector.load %arg3[%c1, %c0_6, %c0_7] : memref<5x128x128xf32, #tpu.memory_space<vmem>>, vector<1x128x128xf32>
    %16 = vector.shape_cast %15 : vector<1x128x128xf32> to vector<128x128xf32>
    %cst_8 = arith.constant dense<0.000000e+00> : vector<24x128xf32>
    %17 = tpu.matmul %14, %16, %cst_8 {dimension_numbers = #tpu.dot_dimension_numbers<[1], [0], [0], [1], [0, 0, 1, 1], [], []>} : vector<24x128xf32>, vector<128x128xf32>, vector<24x128xf32> -> vector<24x128xf32>
    %18 = arith.addf %13, %17 : vector<24x128xf32>
    %19 = vector.extract_strided_slice %4 {offsets = [2, 0], sizes = [24, 128], strides = [1, 1]} : vector<28x128xf32> to vector<24x128xf32>
    %c2 = arith.constant 2 : index
    %c0_9 = arith.constant 0 : index
    %c0_10 = arith.constant 0 : index
    %20 = vector.load %arg3[%c2, %c0_9, %c0_10] : memref<5x128x128xf32, #tpu.memory_space<vmem>>, vector<1x128x128xf32>
    %21 = vector.shape_cast %20 : vector<1x128x128xf32> to vector<128x128xf32>
    %cst_11 = arith.constant dense<0.000000e+00> : vector<24x128xf32>
    %22 = tpu.matmul %19, %21, %cst_11 {dimension_numbers = #tpu.dot_dimension_numbers<[1], [0], [0], [1], [0, 0, 1, 1], [], []>} : vector<24x128xf32>, vector<128x128xf32>, vector<24x128xf32> -> vector<24x128xf32>
    %23 = arith.addf %18, %22 : vector<24x128xf32>
    %24 = vector.extract_strided_slice %4 {offsets = [3, 0], sizes = [24, 128], strides = [1, 1]} : vector<28x128xf32> to vector<24x128xf32>
    %c3 = arith.constant 3 : index
    %c0_12 = arith.constant 0 : index
    %c0_13 = arith.constant 0 : index
    %25 = vector.load %arg3[%c3, %c0_12, %c0_13] : memref<5x128x128xf32, #tpu.memory_space<vmem>>, vector<1x128x128xf32>
    %26 = vector.shape_cast %25 : vector<1x128x128xf32> to vector<128x128xf32>
    %cst_14 = arith.constant dense<0.000000e+00> : vector<24x128xf32>
    %27 = tpu.matmul %24, %26, %cst_14 {dimension_numbers = #tpu.dot_dimension_numbers<[1], [0], [0], [1], [0, 0, 1, 1], [], []>} : vector<24x128xf32>, vector<128x128xf32>, vector<24x128xf32> -> vector<24x128xf32>
    %28 = arith.addf %23, %27 : vector<24x128xf32>
    %29 = vector.extract_strided_slice %4 {offsets = [4, 0], sizes = [24, 128], strides = [1, 1]} : vector<28x128xf32> to vector<24x128xf32>
    %c4 = arith.constant 4 : index
    %c0_15 = arith.constant 0 : index
    %c0_16 = arith.constant 0 : index
    %30 = vector.load %arg3[%c4, %c0_15, %c0_16] : memref<5x128x128xf32, #tpu.memory_space<vmem>>, vector<1x128x128xf32>
    %31 = vector.shape_cast %30 : vector<1x128x128xf32> to vector<128x128xf32>
    %cst_17 = arith.constant dense<0.000000e+00> : vector<24x128xf32>
    %32 = tpu.matmul %29, %31, %cst_17 {dimension_numbers = #tpu.dot_dimension_numbers<[1], [0], [0], [1], [0, 0, 1, 1], [], []>} : vector<24x128xf32>, vector<128x128xf32>, vector<24x128xf32> -> vector<24x128xf32>
    %33 = arith.addf %28, %32 : vector<24x128xf32>
    %c0_18 = arith.constant 0 : index
    %c0_19 = arith.constant 0 : index
    %34 = vector.load %arg8[%c0_18, %c0_19] : memref<1x128xf32, #tpu.memory_space<vmem>>, vector<1x128xf32>
    %35 = vector.broadcast %34 : vector<1x128xf32> to vector<24x128xf32>
    %36 = arith.addf %33, %35 : vector<24x128xf32>
    %37 = math.tanh %36 : vector<24x128xf32>
    %c0_i32 = arith.constant 0 : i32
    %38 = vector.broadcast %c0_i32 : i32 to vector<24x1xi32>
    %39 = arith.cmpi sge, %9, %38 : vector<24x1xi32>
    %c24_i32 = arith.constant 24 : i32
    %40 = vector.broadcast %c24_i32 : i32 to vector<24x1xi32>
    %41 = arith.cmpi slt, %9, %40 : vector<24x1xi32>
    %42 = arith.andi %39, %41 : vector<24x1xi1>
    %cst_20 = arith.constant 0.000000e+00 : f32
    %43 = vector.shape_cast %42 : vector<24x1xi1> to vector<24x1xi1>
    %44 = vector.broadcast %43 : vector<24x1xi1> to vector<24x128xi1>
    %45 = vector.broadcast %cst_20 : f32 to vector<24x128xf32>
    %46 = arith.select %44, %37, %45 : vector<24x128xi1>, vector<24x128xf32>
    %47 = vector.extract_strided_slice %46 {offsets = [0, 0], sizes = [20, 128], strides = [1, 1]} : vector<24x128xf32> to vector<20x128xf32>
    %c0_21 = arith.constant 0 : index
    %c0_22 = arith.constant 0 : index
    %c0_23 = arith.constant 0 : index
    %48 = vector.load %arg4[%c0_21, %c0_22, %c0_23] : memref<5x128x128xf32, #tpu.memory_space<vmem>>, vector<1x128x128xf32>
    %49 = vector.shape_cast %48 : vector<1x128x128xf32> to vector<128x128xf32>
    %cst_24 = arith.constant dense<0.000000e+00> : vector<20x128xf32>
    %50 = tpu.matmul %47, %49, %cst_24 {dimension_numbers = #tpu.dot_dimension_numbers<[1], [0], [0], [1], [0, 0, 1, 1], [], []>} : vector<20x128xf32>, vector<128x128xf32>, vector<20x128xf32> -> vector<20x128xf32>
    %51 = vector.extract_strided_slice %46 {offsets = [1, 0], sizes = [20, 128], strides = [1, 1]} : vector<24x128xf32> to vector<20x128xf32>
    %c1_25 = arith.constant 1 : index
    %c0_26 = arith.constant 0 : index
    %c0_27 = arith.constant 0 : index
    %52 = vector.load %arg4[%c1_25, %c0_26, %c0_27] : memref<5x128x128xf32, #tpu.memory_space<vmem>>, vector<1x128x128xf32>
    %53 = vector.shape_cast %52 : vector<1x128x128xf32> to vector<128x128xf32>
    %cst_28 = arith.constant dense<0.000000e+00> : vector<20x128xf32>
    %54 = tpu.matmul %51, %53, %cst_28 {dimension_numbers = #tpu.dot_dimension_numbers<[1], [0], [0], [1], [0, 0, 1, 1], [], []>} : vector<20x128xf32>, vector<128x128xf32>, vector<20x128xf32> -> vector<20x128xf32>
    %55 = arith.addf %50, %54 : vector<20x128xf32>
    %56 = vector.extract_strided_slice %46 {offsets = [2, 0], sizes = [20, 128], strides = [1, 1]} : vector<24x128xf32> to vector<20x128xf32>
    %c2_29 = arith.constant 2 : index
    %c0_30 = arith.constant 0 : index
    %c0_31 = arith.constant 0 : index
    %57 = vector.load %arg4[%c2_29, %c0_30, %c0_31] : memref<5x128x128xf32, #tpu.memory_space<vmem>>, vector<1x128x128xf32>
    %58 = vector.shape_cast %57 : vector<1x128x128xf32> to vector<128x128xf32>
    %cst_32 = arith.constant dense<0.000000e+00> : vector<20x128xf32>
    %59 = tpu.matmul %56, %58, %cst_32 {dimension_numbers = #tpu.dot_dimension_numbers<[1], [0], [0], [1], [0, 0, 1, 1], [], []>} : vector<20x128xf32>, vector<128x128xf32>, vector<20x128xf32> -> vector<20x128xf32>
    %60 = arith.addf %55, %59 : vector<20x128xf32>
    %61 = vector.extract_strided_slice %46 {offsets = [3, 0], sizes = [20, 128], strides = [1, 1]} : vector<24x128xf32> to vector<20x128xf32>
    %c3_33 = arith.constant 3 : index
    %c0_34 = arith.constant 0 : index
    %c0_35 = arith.constant 0 : index
    %62 = vector.load %arg4[%c3_33, %c0_34, %c0_35] : memref<5x128x128xf32, #tpu.memory_space<vmem>>, vector<1x128x128xf32>
    %63 = vector.shape_cast %62 : vector<1x128x128xf32> to vector<128x128xf32>
    %cst_36 = arith.constant dense<0.000000e+00> : vector<20x128xf32>
    %64 = tpu.matmul %61, %63, %cst_36 {dimension_numbers = #tpu.dot_dimension_numbers<[1], [0], [0], [1], [0, 0, 1, 1], [], []>} : vector<20x128xf32>, vector<128x128xf32>, vector<20x128xf32> -> vector<20x128xf32>
    %65 = arith.addf %60, %64 : vector<20x128xf32>
    %66 = vector.extract_strided_slice %46 {offsets = [4, 0], sizes = [20, 128], strides = [1, 1]} : vector<24x128xf32> to vector<20x128xf32>
    %c4_37 = arith.constant 4 : index
    %c0_38 = arith.constant 0 : index
    %c0_39 = arith.constant 0 : index
    %67 = vector.load %arg4[%c4_37, %c0_38, %c0_39] : memref<5x128x128xf32, #tpu.memory_space<vmem>>, vector<1x128x128xf32>
    %68 = vector.shape_cast %67 : vector<1x128x128xf32> to vector<128x128xf32>
    %cst_40 = arith.constant dense<0.000000e+00> : vector<20x128xf32>
    %69 = tpu.matmul %66, %68, %cst_40 {dimension_numbers = #tpu.dot_dimension_numbers<[1], [0], [0], [1], [0, 0, 1, 1], [], []>} : vector<20x128xf32>, vector<128x128xf32>, vector<20x128xf32> -> vector<20x128xf32>
    %70 = arith.addf %65, %69 : vector<20x128xf32>
    %c0_41 = arith.constant 0 : index
    %c0_42 = arith.constant 0 : index
    %71 = vector.load %arg9[%c0_41, %c0_42] : memref<1x128xf32, #tpu.memory_space<vmem>>, vector<1x128xf32>
    %72 = vector.broadcast %71 : vector<1x128xf32> to vector<20x128xf32>
    %73 = arith.addf %70, %72 : vector<20x128xf32>
    %74 = math.tanh %73 : vector<20x128xf32>
    %75 = vector.extract_strided_slice %9 {offsets = [2, 0], sizes = [20, 1], strides = [1, 1]} : vector<24x1xi32> to vector<20x1xi32>
    %c0_i32_43 = arith.constant 0 : i32
    %76 = vector.broadcast %c0_i32_43 : i32 to vector<20x1xi32>
    %77 = arith.cmpi sge, %75, %76 : vector<20x1xi32>
    %c24_i32_44 = arith.constant 24 : i32
    %78 = vector.broadcast %c24_i32_44 : i32 to vector<20x1xi32>
    %79 = arith.cmpi slt, %75, %78 : vector<20x1xi32>
    %80 = arith.andi %77, %79 : vector<20x1xi1>
    %cst_45 = arith.constant 0.000000e+00 : f32
    %81 = vector.shape_cast %80 : vector<20x1xi1> to vector<20x1xi1>
    %82 = vector.broadcast %81 : vector<20x1xi1> to vector<20x128xi1>
    %83 = vector.broadcast %cst_45 : f32 to vector<20x128xf32>
    %84 = arith.select %82, %74, %83 : vector<20x128xi1>, vector<20x128xf32>
    %85 = vector.extract_strided_slice %84 {offsets = [0, 0], sizes = [16, 128], strides = [1, 1]} : vector<20x128xf32> to vector<16x128xf32>
    %c0_46 = arith.constant 0 : index
    %c0_47 = arith.constant 0 : index
    %c0_48 = arith.constant 0 : index
    %86 = vector.load %arg5[%c0_46, %c0_47, %c0_48] : memref<5x128x128xf32, #tpu.memory_space<vmem>>, vector<1x128x128xf32>
    %87 = vector.shape_cast %86 : vector<1x128x128xf32> to vector<128x128xf32>
    %cst_49 = arith.constant dense<0.000000e+00> : vector<16x128xf32>
    %88 = tpu.matmul %85, %87, %cst_49 {dimension_numbers = #tpu.dot_dimension_numbers<[1], [0], [0], [1], [0, 0, 1, 1], [], []>} : vector<16x128xf32>, vector<128x128xf32>, vector<16x128xf32> -> vector<16x128xf32>
    %89 = vector.extract_strided_slice %84 {offsets = [1, 0], sizes = [16, 128], strides = [1, 1]} : vector<20x128xf32> to vector<16x128xf32>
    %c1_50 = arith.constant 1 : index
    %c0_51 = arith.constant 0 : index
    %c0_52 = arith.constant 0 : index
    %90 = vector.load %arg5[%c1_50, %c0_51, %c0_52] : memref<5x128x128xf32, #tpu.memory_space<vmem>>, vector<1x128x128xf32>
    %91 = vector.shape_cast %90 : vector<1x128x128xf32> to vector<128x128xf32>
    %cst_53 = arith.constant dense<0.000000e+00> : vector<16x128xf32>
    %92 = tpu.matmul %89, %91, %cst_53 {dimension_numbers = #tpu.dot_dimension_numbers<[1], [0], [0], [1], [0, 0, 1, 1], [], []>} : vector<16x128xf32>, vector<128x128xf32>, vector<16x128xf32> -> vector<16x128xf32>
    %93 = arith.addf %88, %92 : vector<16x128xf32>
    %94 = vector.extract_strided_slice %84 {offsets = [2, 0], sizes = [16, 128], strides = [1, 1]} : vector<20x128xf32> to vector<16x128xf32>
    %c2_54 = arith.constant 2 : index
    %c0_55 = arith.constant 0 : index
    %c0_56 = arith.constant 0 : index
    %95 = vector.load %arg5[%c2_54, %c0_55, %c0_56] : memref<5x128x128xf32, #tpu.memory_space<vmem>>, vector<1x128x128xf32>
    %96 = vector.shape_cast %95 : vector<1x128x128xf32> to vector<128x128xf32>
    %cst_57 = arith.constant dense<0.000000e+00> : vector<16x128xf32>
    %97 = tpu.matmul %94, %96, %cst_57 {dimension_numbers = #tpu.dot_dimension_numbers<[1], [0], [0], [1], [0, 0, 1, 1], [], []>} : vector<16x128xf32>, vector<128x128xf32>, vector<16x128xf32> -> vector<16x128xf32>
    %98 = arith.addf %93, %97 : vector<16x128xf32>
    %99 = vector.extract_strided_slice %84 {offsets = [3, 0], sizes = [16, 128], strides = [1, 1]} : vector<20x128xf32> to vector<16x128xf32>
    %c3_58 = arith.constant 3 : index
    %c0_59 = arith.constant 0 : index
    %c0_60 = arith.constant 0 : index
    %100 = vector.load %arg5[%c3_58, %c0_59, %c0_60] : memref<5x128x128xf32, #tpu.memory_space<vmem>>, vector<1x128x128xf32>
    %101 = vector.shape_cast %100 : vector<1x128x128xf32> to vector<128x128xf32>
    %cst_61 = arith.constant dense<0.000000e+00> : vector<16x128xf32>
    %102 = tpu.matmul %99, %101, %cst_61 {dimension_numbers = #tpu.dot_dimension_numbers<[1], [0], [0], [1], [0, 0, 1, 1], [], []>} : vector<16x128xf32>, vector<128x128xf32>, vector<16x128xf32> -> vector<16x128xf32>
    %103 = arith.addf %98, %102 : vector<16x128xf32>
    %104 = vector.extract_strided_slice %84 {offsets = [4, 0], sizes = [16, 128], strides = [1, 1]} : vector<20x128xf32> to vector<16x128xf32>
    %c4_62 = arith.constant 4 : index
    %c0_63 = arith.constant 0 : index
    %c0_64 = arith.constant 0 : index
    %105 = vector.load %arg5[%c4_62, %c0_63, %c0_64] : memref<5x128x128xf32, #tpu.memory_space<vmem>>, vector<1x128x128xf32>
    %106 = vector.shape_cast %105 : vector<1x128x128xf32> to vector<128x128xf32>
    %cst_65 = arith.constant dense<0.000000e+00> : vector<16x128xf32>
    %107 = tpu.matmul %104, %106, %cst_65 {dimension_numbers = #tpu.dot_dimension_numbers<[1], [0], [0], [1], [0, 0, 1, 1], [], []>} : vector<16x128xf32>, vector<128x128xf32>, vector<16x128xf32> -> vector<16x128xf32>
    %108 = arith.addf %103, %107 : vector<16x128xf32>
    %c0_66 = arith.constant 0 : index
    %c0_67 = arith.constant 0 : index
    %109 = vector.load %arg10[%c0_66, %c0_67] : memref<1x128xf32, #tpu.memory_space<vmem>>, vector<1x128xf32>
    %110 = vector.broadcast %109 : vector<1x128xf32> to vector<16x128xf32>
    %111 = arith.addf %108, %110 : vector<16x128xf32>
    %112 = math.tanh %111 : vector<16x128xf32>
    %113 = vector.extract_strided_slice %9 {offsets = [4, 0], sizes = [16, 1], strides = [1, 1]} : vector<24x1xi32> to vector<16x1xi32>
    %c0_i32_68 = arith.constant 0 : i32
    %114 = vector.broadcast %c0_i32_68 : i32 to vector<16x1xi32>
    %115 = arith.cmpi sge, %113, %114 : vector<16x1xi32>
    %c24_i32_69 = arith.constant 24 : i32
    %116 = vector.broadcast %c24_i32_69 : i32 to vector<16x1xi32>
    %117 = arith.cmpi slt, %113, %116 : vector<16x1xi32>
    %118 = arith.andi %115, %117 : vector<16x1xi1>
    %cst_70 = arith.constant 0.000000e+00 : f32
    %119 = vector.shape_cast %118 : vector<16x1xi1> to vector<16x1xi1>
    %120 = vector.broadcast %119 : vector<16x1xi1> to vector<16x128xi1>
    %121 = vector.broadcast %cst_70 : f32 to vector<16x128xf32>
    %122 = arith.select %120, %112, %121 : vector<16x128xi1>, vector<16x128xf32>
    %123 = vector.extract_strided_slice %122 {offsets = [0, 0], sizes = [12, 128], strides = [1, 1]} : vector<16x128xf32> to vector<12x128xf32>
    %c0_71 = arith.constant 0 : index
    %c0_72 = arith.constant 0 : index
    %c0_73 = arith.constant 0 : index
    %124 = vector.load %arg6[%c0_71, %c0_72, %c0_73] : memref<5x128x128xf32, #tpu.memory_space<vmem>>, vector<1x128x128xf32>
    %125 = vector.shape_cast %124 : vector<1x128x128xf32> to vector<128x128xf32>
    %cst_74 = arith.constant dense<0.000000e+00> : vector<12x128xf32>
    %126 = tpu.matmul %123, %125, %cst_74 {dimension_numbers = #tpu.dot_dimension_numbers<[1], [0], [0], [1], [0, 0, 1, 1], [], []>} : vector<12x128xf32>, vector<128x128xf32>, vector<12x128xf32> -> vector<12x128xf32>
    %127 = vector.extract_strided_slice %122 {offsets = [1, 0], sizes = [12, 128], strides = [1, 1]} : vector<16x128xf32> to vector<12x128xf32>
    %c1_75 = arith.constant 1 : index
    %c0_76 = arith.constant 0 : index
    %c0_77 = arith.constant 0 : index
    %128 = vector.load %arg6[%c1_75, %c0_76, %c0_77] : memref<5x128x128xf32, #tpu.memory_space<vmem>>, vector<1x128x128xf32>
    %129 = vector.shape_cast %128 : vector<1x128x128xf32> to vector<128x128xf32>
    %cst_78 = arith.constant dense<0.000000e+00> : vector<12x128xf32>
    %130 = tpu.matmul %127, %129, %cst_78 {dimension_numbers = #tpu.dot_dimension_numbers<[1], [0], [0], [1], [0, 0, 1, 1], [], []>} : vector<12x128xf32>, vector<128x128xf32>, vector<12x128xf32> -> vector<12x128xf32>
    %131 = arith.addf %126, %130 : vector<12x128xf32>
    %132 = vector.extract_strided_slice %122 {offsets = [2, 0], sizes = [12, 128], strides = [1, 1]} : vector<16x128xf32> to vector<12x128xf32>
    %c2_79 = arith.constant 2 : index
    %c0_80 = arith.constant 0 : index
    %c0_81 = arith.constant 0 : index
    %133 = vector.load %arg6[%c2_79, %c0_80, %c0_81] : memref<5x128x128xf32, #tpu.memory_space<vmem>>, vector<1x128x128xf32>
    %134 = vector.shape_cast %133 : vector<1x128x128xf32> to vector<128x128xf32>
    %cst_82 = arith.constant dense<0.000000e+00> : vector<12x128xf32>
    %135 = tpu.matmul %132, %134, %cst_82 {dimension_numbers = #tpu.dot_dimension_numbers<[1], [0], [0], [1], [0, 0, 1, 1], [], []>} : vector<12x128xf32>, vector<128x128xf32>, vector<12x128xf32> -> vector<12x128xf32>
    %136 = arith.addf %131, %135 : vector<12x128xf32>
    %137 = vector.extract_strided_slice %122 {offsets = [3, 0], sizes = [12, 128], strides = [1, 1]} : vector<16x128xf32> to vector<12x128xf32>
    %c3_83 = arith.constant 3 : index
    %c0_84 = arith.constant 0 : index
    %c0_85 = arith.constant 0 : index
    %138 = vector.load %arg6[%c3_83, %c0_84, %c0_85] : memref<5x128x128xf32, #tpu.memory_space<vmem>>, vector<1x128x128xf32>
    %139 = vector.shape_cast %138 : vector<1x128x128xf32> to vector<128x128xf32>
    %cst_86 = arith.constant dense<0.000000e+00> : vector<12x128xf32>
    %140 = tpu.matmul %137, %139, %cst_86 {dimension_numbers = #tpu.dot_dimension_numbers<[1], [0], [0], [1], [0, 0, 1, 1], [], []>} : vector<12x128xf32>, vector<128x128xf32>, vector<12x128xf32> -> vector<12x128xf32>
    %141 = arith.addf %136, %140 : vector<12x128xf32>
    %142 = vector.extract_strided_slice %122 {offsets = [4, 0], sizes = [12, 128], strides = [1, 1]} : vector<16x128xf32> to vector<12x128xf32>
    %c4_87 = arith.constant 4 : index
    %c0_88 = arith.constant 0 : index
    %c0_89 = arith.constant 0 : index
    %143 = vector.load %arg6[%c4_87, %c0_88, %c0_89] : memref<5x128x128xf32, #tpu.memory_space<vmem>>, vector<1x128x128xf32>
    %144 = vector.shape_cast %143 : vector<1x128x128xf32> to vector<128x128xf32>
    %cst_90 = arith.constant dense<0.000000e+00> : vector<12x128xf32>
    %145 = tpu.matmul %142, %144, %cst_90 {dimension_numbers = #tpu.dot_dimension_numbers<[1], [0], [0], [1], [0, 0, 1, 1], [], []>} : vector<12x128xf32>, vector<128x128xf32>, vector<12x128xf32> -> vector<12x128xf32>
    %146 = arith.addf %141, %145 : vector<12x128xf32>
    %c0_91 = arith.constant 0 : index
    %c0_92 = arith.constant 0 : index
    %147 = vector.load %arg11[%c0_91, %c0_92] : memref<1x128xf32, #tpu.memory_space<vmem>>, vector<1x128xf32>
    %148 = vector.broadcast %147 : vector<1x128xf32> to vector<12x128xf32>
    %149 = arith.addf %146, %148 : vector<12x128xf32>
    %150 = math.tanh %149 : vector<12x128xf32>
    %151 = vector.extract_strided_slice %9 {offsets = [6, 0], sizes = [12, 1], strides = [1, 1]} : vector<24x1xi32> to vector<12x1xi32>
    %c0_i32_93 = arith.constant 0 : i32
    %152 = vector.broadcast %c0_i32_93 : i32 to vector<12x1xi32>
    %153 = arith.cmpi sge, %151, %152 : vector<12x1xi32>
    %c24_i32_94 = arith.constant 24 : i32
    %154 = vector.broadcast %c24_i32_94 : i32 to vector<12x1xi32>
    %155 = arith.cmpi slt, %151, %154 : vector<12x1xi32>
    %156 = arith.andi %153, %155 : vector<12x1xi1>
    %cst_95 = arith.constant 0.000000e+00 : f32
    %157 = vector.shape_cast %156 : vector<12x1xi1> to vector<12x1xi1>
    %158 = vector.broadcast %157 : vector<12x1xi1> to vector<12x128xi1>
    %159 = vector.broadcast %cst_95 : f32 to vector<12x128xf32>
    %160 = arith.select %158, %150, %159 : vector<12x128xi1>, vector<12x128xf32>
    %161 = vector.extract_strided_slice %160 {offsets = [0, 0], sizes = [8, 128], strides = [1, 1]} : vector<12x128xf32> to vector<8x128xf32>
    %c0_96 = arith.constant 0 : index
    %c0_97 = arith.constant 0 : index
    %c0_98 = arith.constant 0 : index
    %162 = vector.load %arg7[%c0_96, %c0_97, %c0_98] : memref<5x128x128xf32, #tpu.memory_space<vmem>>, vector<1x128x128xf32>
    %163 = vector.shape_cast %162 : vector<1x128x128xf32> to vector<128x128xf32>
    %cst_99 = arith.constant dense<0.000000e+00> : vector<8x128xf32>
    %164 = tpu.matmul %161, %163, %cst_99 {dimension_numbers = #tpu.dot_dimension_numbers<[1], [0], [0], [1], [0, 0, 1, 1], [], []>} : vector<8x128xf32>, vector<128x128xf32>, vector<8x128xf32> -> vector<8x128xf32>
    %165 = vector.extract_strided_slice %160 {offsets = [1, 0], sizes = [8, 128], strides = [1, 1]} : vector<12x128xf32> to vector<8x128xf32>
    %c1_100 = arith.constant 1 : index
    %c0_101 = arith.constant 0 : index
    %c0_102 = arith.constant 0 : index
    %166 = vector.load %arg7[%c1_100, %c0_101, %c0_102] : memref<5x128x128xf32, #tpu.memory_space<vmem>>, vector<1x128x128xf32>
    %167 = vector.shape_cast %166 : vector<1x128x128xf32> to vector<128x128xf32>
    %cst_103 = arith.constant dense<0.000000e+00> : vector<8x128xf32>
    %168 = tpu.matmul %165, %167, %cst_103 {dimension_numbers = #tpu.dot_dimension_numbers<[1], [0], [0], [1], [0, 0, 1, 1], [], []>} : vector<8x128xf32>, vector<128x128xf32>, vector<8x128xf32> -> vector<8x128xf32>
    %169 = arith.addf %164, %168 : vector<8x128xf32>
    %170 = vector.extract_strided_slice %160 {offsets = [2, 0], sizes = [8, 128], strides = [1, 1]} : vector<12x128xf32> to vector<8x128xf32>
    %c2_104 = arith.constant 2 : index
    %c0_105 = arith.constant 0 : index
    %c0_106 = arith.constant 0 : index
    %171 = vector.load %arg7[%c2_104, %c0_105, %c0_106] : memref<5x128x128xf32, #tpu.memory_space<vmem>>, vector<1x128x128xf32>
    %172 = vector.shape_cast %171 : vector<1x128x128xf32> to vector<128x128xf32>
    %cst_107 = arith.constant dense<0.000000e+00> : vector<8x128xf32>
    %173 = tpu.matmul %170, %172, %cst_107 {dimension_numbers = #tpu.dot_dimension_numbers<[1], [0], [0], [1], [0, 0, 1, 1], [], []>} : vector<8x128xf32>, vector<128x128xf32>, vector<8x128xf32> -> vector<8x128xf32>
    %174 = arith.addf %169, %173 : vector<8x128xf32>
    %175 = vector.extract_strided_slice %160 {offsets = [3, 0], sizes = [8, 128], strides = [1, 1]} : vector<12x128xf32> to vector<8x128xf32>
    %c3_108 = arith.constant 3 : index
    %c0_109 = arith.constant 0 : index
    %c0_110 = arith.constant 0 : index
    %176 = vector.load %arg7[%c3_108, %c0_109, %c0_110] : memref<5x128x128xf32, #tpu.memory_space<vmem>>, vector<1x128x128xf32>
    %177 = vector.shape_cast %176 : vector<1x128x128xf32> to vector<128x128xf32>
    %cst_111 = arith.constant dense<0.000000e+00> : vector<8x128xf32>
    %178 = tpu.matmul %175, %177, %cst_111 {dimension_numbers = #tpu.dot_dimension_numbers<[1], [0], [0], [1], [0, 0, 1, 1], [], []>} : vector<8x128xf32>, vector<128x128xf32>, vector<8x128xf32> -> vector<8x128xf32>
    %179 = arith.addf %174, %178 : vector<8x128xf32>
    %180 = vector.extract_strided_slice %160 {offsets = [4, 0], sizes = [8, 128], strides = [1, 1]} : vector<12x128xf32> to vector<8x128xf32>
    %c4_112 = arith.constant 4 : index
    %c0_113 = arith.constant 0 : index
    %c0_114 = arith.constant 0 : index
    %181 = vector.load %arg7[%c4_112, %c0_113, %c0_114] : memref<5x128x128xf32, #tpu.memory_space<vmem>>, vector<1x128x128xf32>
    %182 = vector.shape_cast %181 : vector<1x128x128xf32> to vector<128x128xf32>
    %cst_115 = arith.constant dense<0.000000e+00> : vector<8x128xf32>
    %183 = tpu.matmul %180, %182, %cst_115 {dimension_numbers = #tpu.dot_dimension_numbers<[1], [0], [0], [1], [0, 0, 1, 1], [], []>} : vector<8x128xf32>, vector<128x128xf32>, vector<8x128xf32> -> vector<8x128xf32>
    %184 = arith.addf %179, %183 : vector<8x128xf32>
    %c0_116 = arith.constant 0 : index
    %c0_117 = arith.constant 0 : index
    %185 = vector.load %arg12[%c0_116, %c0_117] : memref<1x128xf32, #tpu.memory_space<vmem>>, vector<1x128xf32>
    %186 = vector.broadcast %185 : vector<1x128xf32> to vector<8x128xf32>
    %187 = arith.addf %184, %186 : vector<8x128xf32>
    %c0_118 = arith.constant 0 : index
    %c0_119 = arith.constant 0 : index
    %c0_120 = arith.constant 0 : index
    %188 = vector.load %arg13[%c0_118, %c0_119, %c0_120] : memref<1x8x128xf32, #tpu.memory_space<vmem>>, vector<1x8x128xf32>
    %189 = vector.shape_cast %188 : vector<1x8x128xf32> to vector<8x128xf32>
    %190 = vector.shape_cast %187 : vector<8x128xf32> to vector<1x8x128xf32>
    tpu.vector_store %arg13[%c0_118, %c0_119, %c0_120], %190 {strides = array<i32>} : memref<1x8x128xf32, #tpu.memory_space<vmem>>, vector<1x8x128xf32>,
    return
  }
  func.func @transform_0(%arg0: i32, %arg1: i32) -> (i32, i32, i32) {
    %c0_i32 = arith.constant 0 : i32
    %c0_i32_0 = arith.constant 0 : i32
    %c0_i32_1 = arith.constant 0 : i32
    return %arg0, %c0_i32, %c0_i32_0 : i32, i32, i32
  }
  func.func @transform_1(%arg0: i32, %arg1: i32) -> (i32, i32, i32) {
    %c0_i32 = arith.constant 0 : i32
    %c0_i32_0 = arith.constant 0 : i32
    %c0_i32_1 = arith.constant 0 : i32
    %c0_i32_2 = arith.constant 0 : i32
    return %c0_i32, %c0_i32_0, %c0_i32_1 : i32, i32, i32
  }
  func.func @transform_2(%arg0: i32, %arg1: i32) -> (i32, i32, i32) {
    %c0_i32 = arith.constant 0 : i32
    %c0_i32_0 = arith.constant 0 : i32
    %c0_i32_1 = arith.constant 0 : i32
    %c0_i32_2 = arith.constant 0 : i32
    return %c0_i32, %c0_i32_0, %c0_i32_1 : i32, i32, i32
  }
  func.func @transform_3(%arg0: i32, %arg1: i32) -> (i32, i32, i32) {
    %c0_i32 = arith.constant 0 : i32
    %c0_i32_0 = arith.constant 0 : i32
    %c0_i32_1 = arith.constant 0 : i32
    %c0_i32_2 = arith.constant 0 : i32
    return %c0_i32, %c0_i32_0, %c0_i32_1 : i32, i32, i32
  }
  func.func @transform_4(%arg0: i32, %arg1: i32) -> (i32, i32, i32) {
    %c0_i32 = arith.constant 0 : i32
    %c0_i32_0 = arith.constant 0 : i32
    %c0_i32_1 = arith.constant 0 : i32
    %c0_i32_2 = arith.constant 0 : i32
    return %c0_i32, %c0_i32_0, %c0_i32_1 : i32, i32, i32
  }
  func.func @transform_5(%arg0: i32, %arg1: i32) -> (i32, i32, i32) {
    %c0_i32 = arith.constant 0 : i32
    %c0_i32_0 = arith.constant 0 : i32
    %c0_i32_1 = arith.constant 0 : i32
    %c0_i32_2 = arith.constant 0 : i32
    return %c0_i32, %c0_i32_0, %c0_i32_1 : i32, i32, i32
  }
  func.func @transform_6(%arg0: i32, %arg1: i32) -> (i32, i32) {
    %c0_i32 = arith.constant 0 : i32
    %c0_i32_0 = arith.constant 0 : i32
    %c0_i32_1 = arith.constant 0 : i32
    return %c0_i32, %c0_i32_0 : i32, i32
  }
  func.func @transform_7(%arg0: i32, %arg1: i32) -> (i32, i32) {
    %c0_i32 = arith.constant 0 : i32
    %c0_i32_0 = arith.constant 0 : i32
    %c0_i32_1 = arith.constant 0 : i32
    return %c0_i32, %c0_i32_0 : i32, i32
  }
  func.func @transform_8(%arg0: i32, %arg1: i32) -> (i32, i32) {
    %c0_i32 = arith.constant 0 : i32
    %c0_i32_0 = arith.constant 0 : i32
    %c0_i32_1 = arith.constant 0 : i32
    return %c0_i32, %c0_i32_0 : i32, i32
  }
  func.func @transform_9(%arg0: i32, %arg1: i32) -> (i32, i32) {
    %c0_i32 = arith.constant 0 : i32
    %c0_i32_0 = arith.constant 0 : i32
    %c0_i32_1 = arith.constant 0 : i32
    return %c0_i32, %c0_i32_0 : i32, i32
  }
  func.func @transform_10(%arg0: i32, %arg1: i32) -> (i32, i32) {
    %c0_i32 = arith.constant 0 : i32
    %c0_i32_0 = arith.constant 0 : i32
    %c0_i32_1 = arith.constant 0 : i32
    return %c0_i32, %c0_i32_0 : i32, i32
  }
  func.func @transform_11(%arg0: i32, %arg1: i32) -> (i32, i32, i32) {
    %c0_i32 = arith.constant 0 : i32
    %c0_i32_0 = arith.constant 0 : i32
    return %arg0, %arg1, %c0_i32 : i32, i32, i32
  }
}

module attributes {stable_mosaic.version = 11 : i64} {
  func.func @_postnet_fused_kernel(%arg0: i32, %arg1: i32, %arg2: memref<1x44x128xf32, #tpu.memory_space<vmem>>, %arg3: memref<5x128x128xf32, #tpu.memory_space<vmem>>, %arg4: memref<5x128x128xf32, #tpu.memory_space<vmem>>, %arg5: memref<5x128x128xf32, #tpu.memory_space<vmem>>, %arg6: memref<5x128x128xf32, #tpu.memory_space<vmem>>, %arg7: memref<5x128x128xf32, #tpu.memory_space<vmem>>, %arg8: memref<1x128xf32, #tpu.memory_space<vmem>>, %arg9: memref<1x128xf32, #tpu.memory_space<vmem>>, %arg10: memref<1x128xf32, #tpu.memory_space<vmem>>, %arg11: memref<1x128xf32, #tpu.memory_space<vmem>>, %arg12: memref<1x128xf32, #tpu.memory_space<vmem>>, %arg13: memref<1x8x128xf32, #tpu.memory_space<vmem>>) attributes {dimension_semantics = [#tpu.dimension_semantics<parallel>, #tpu.dimension_semantics<parallel>], iteration_bounds = array<i64: 2, 3>, scalar_prefetch = 0 : i64, scratch_operands = 0 : i64, tpu.core_type = #tpu.core_type<tc>, window_params = [{transform_indices = @transform_0, window_bounds = array<i64: 1, 44, 128>}, {pipeline_mode = #tpu.pipeline_mode<synchronous>, transform_indices = @transform_1, window_bounds = array<i64: 5, 128, 128>}, {pipeline_mode = #tpu.pipeline_mode<synchronous>, transform_indices = @transform_2, window_bounds = array<i64: 5, 128, 128>}, {pipeline_mode = #tpu.pipeline_mode<synchronous>, transform_indices = @transform_3, window_bounds = array<i64: 5, 128, 128>}, {pipeline_mode = #tpu.pipeline_mode<synchronous>, transform_indices = @transform_4, window_bounds = array<i64: 5, 128, 128>}, {pipeline_mode = #tpu.pipeline_mode<synchronous>, transform_indices = @transform_5, window_bounds = array<i64: 5, 128, 128>}, {pipeline_mode = #tpu.pipeline_mode<synchronous>, transform_indices = @transform_6, window_bounds = array<i64: 1, 128>}, {pipeline_mode = #tpu.pipeline_mode<synchronous>, transform_indices = @transform_7, window_bounds = array<i64: 1, 128>}, {pipeline_mode = #tpu.pipeline_mode<synchronous>, transform_indices = @transform_8, window_bounds = array<i64: 1, 128>}, {pipeline_mode = #tpu.pipeline_mode<synchronous>, transform_indices = @transform_9, window_bounds = array<i64: 1, 128>}, {pipeline_mode = #tpu.pipeline_mode<synchronous>, transform_indices = @transform_10, window_bounds = array<i64: 1, 128>}, {transform_indices = @transform_11, window_bounds = array<i64: 1, 8, 128>}]} {
    %c8_i32 = arith.constant 8 : i32
    %0 = arith.muli %arg1, %c8_i32 : i32
    %1 = tpu.assume_multiple %0, 8 : i32
    %c0 = arith.constant 0 : index
    %2 = arith.index_cast %1 : i32 to index
    %c0_0 = arith.constant 0 : index
    %3 = vector.load %arg2[%c0, %2, %c0_0] : memref<1x44x128xf32, #tpu.memory_space<vmem>>, vector<1x28x128xf32>
    %4 = vector.shape_cast %3 : vector<1x28x128xf32> to vector<28x128xf32>
    %5 = tpu.iota {dimensions = array<i32: 0>} : vector<24x1xi32>
    %c8_i32_1 = arith.constant 8 : i32
    %6 = arith.muli %arg1, %c8_i32_1 : i32
    %c8_i32_2 = arith.constant 8 : i32
    %7 = arith.subi %6, %c8_i32_2 : i32
    %8 = vector.broadcast %7 : i32 to vector<24x1xi32>
    %9 = arith.addi %5, %8 : vector<24x1xi32>
    %10 = vector.extract_strided_slice %4 {offsets = [0, 0], sizes = [24, 128], strides = [1, 1]} : vector<28x128xf32> to vector<24x128xf32>
    %c0_3 = arith.constant 0 : index
    %c0_4 = arith.constant 0 : index
    %c0_5 = arith.constant 0 : index
    %11 = vector.load %arg3[%c0_3, %c0_4, %c0_5] : memref<5x128x128xf32, #tpu.memory_space<vmem>>, vector<1x128x128xf32>
    %12 = vector.shape_cast %11 : vector<1x128x128xf32> to vector<128x128xf32>
    %cst = arith.constant dense<0.000000e+00> : vector<24x128xf32>
    %13 = tpu.matmul %10, %12, %cst {dimension_numbers = #tpu.dot_dimension_numbers<[1], [0], [0], [1], [0, 0, 1, 1], [], []>} : vector<24x128xf32>, vector<128x128xf32>, vector<24x128xf32> -> vector<24x128xf32>
    %14 = vector.extract_strided_slice %4 {offsets = [1, 0], sizes = [24, 128], strides = [1, 1]} : vector<28x128xf32> to vector<24x128xf32>
    %c1 = arith.constant 1 : index
    %c0_6 = arith.constant 0 : index
    %c0_7 = arith.constant 0 : index
    %15 = vector.load %arg3[%c1, %c0_6, %c0_7] : memref<5x128x128xf32, #tpu.memory_space<vmem>>, vector<1x128x128xf32>
    %16 = vector.shape_cast %15 : vector<1x128x128xf32> to vector<128x128xf32>
    %cst_8 = arith.constant dense<0.000000e+00> : vector<24x128xf32>
    %17 = tpu.matmul %14, %16, %cst_8 {dimension_numbers = #tpu.dot_dimension_numbers<[1], [0], [0], [1], [0, 0, 1, 1], [], []>} : vector<24x128xf32>, vector<128x128xf32>, vector<24x128xf32> -> vector<24x128xf32>
    %18 = arith.addf %13, %17 : vector<24x128xf32>
    %19 = vector.extract_strided_slice %4 {offsets = [2, 0], sizes = [24, 128], strides = [1, 1]} : vector<28x128xf32> to vector<24x128xf32>
    %c2 = arith.constant 2 : index
    %c0_9 = arith.constant 0 : index
    %c0_10 = arith.constant 0 : index
    %20 = vector.load %arg3[%c2, %c0_9, %c0_10] : memref<5x128x128xf32, #tpu.memory_space<vmem>>, vector<1x128x128xf32>
    %21 = vector.shape_cast %20 : vector<1x128x128xf32> to vector<128x128xf32>
    %cst_11 = arith.constant dense<0.000000e+00> : vector<24x128xf32>
    %22 = tpu.matmul %19, %21, %cst_11 {dimension_numbers = #tpu.dot_dimension_numbers<[1], [0], [0], [1], [0, 0, 1, 1], [], []>} : vector<24x128xf32>, vector<128x128xf32>, vector<24x128xf32> -> vector<24x128xf32>
    %23 = arith.addf %18, %22 : vector<24x128xf32>
    %24 = vector.extract_strided_slice %4 {offsets = [3, 0], sizes = [24, 128], strides = [1, 1]} : vector<28x128xf32> to vector<24x128xf32>
    %c3 = arith.constant 3 : index
    %c0_12 = arith.constant 0 : index
    %c0_13 = arith.constant 0 : index
    %25 = vector.load %arg3[%c3, %c0_12, %c0_13] : memref<5x128x128xf32, #tpu.memory_space<vmem>>, vector<1x128x128xf32>
    %26 = vector.shape_cast %25 : vector<1x128x128xf32> to vector<128x128xf32>
    %cst_14 = arith.constant dense<0.000000e+00> : vector<24x128xf32>
    %27 = tpu.matmul %24, %26, %cst_14 {dimension_numbers = #tpu.dot_dimension_numbers<[1], [0], [0], [1], [0, 0, 1, 1], [], []>} : vector<24x128xf32>, vector<128x128xf32>, vector<24x128xf32> -> vector<24x128xf32>
    %28 = arith.addf %23, %27 : vector<24x128xf32>
    %29 = vector.extract_strided_slice %4 {offsets = [4, 0], sizes = [24, 128], strides = [1, 1]} : vector<28x128xf32> to vector<24x128xf32>
    %c4 = arith.constant 4 : index
    %c0_15 = arith.constant 0 : index
    %c0_16 = arith.constant 0 : index
    %30 = vector.load %arg3[%c4, %c0_15, %c0_16] : memref<5x128x128xf32, #tpu.memory_space<vmem>>, vector<1x128x128xf32>
    %31 = vector.shape_cast %30 : vector<1x128x128xf32> to vector<128x128xf32>
    %cst_17 = arith.constant dense<0.000000e+00> : vector<24x128xf32>
    %32 = tpu.matmul %29, %31, %cst_17 {dimension_numbers = #tpu.dot_dimension_numbers<[1], [0], [0], [1], [0, 0, 1, 1], [], []>} : vector<24x128xf32>, vector<128x128xf32>, vector<24x128xf32> -> vector<24x128xf32>
    %33 = arith.addf %28, %32 : vector<24x128xf32>
    %c0_18 = arith.constant 0 : index
    %c0_19 = arith.constant 0 : index
    %34 = vector.load %arg8[%c0_18, %c0_19] : memref<1x128xf32, #tpu.memory_space<vmem>>, vector<1x128xf32>
    %35 = vector.broadcast %34 : vector<1x128xf32> to vector<24x128xf32>
    %36 = arith.addf %33, %35 : vector<24x128xf32>
    %37 = math.tanh %36 : vector<24x128xf32>
    %c0_i32 = arith.constant 0 : i32
    %38 = vector.broadcast %c0_i32 : i32 to vector<24x1xi32>
    %39 = arith.cmpi sge, %9, %38 : vector<24x1xi32>
    %c24_i32 = arith.constant 24 : i32
    %40 = vector.broadcast %c24_i32 : i32 to vector<24x1xi32>
    %41 = arith.cmpi slt, %9, %40 : vector<24x1xi32>
    %42 = arith.andi %39, %41 : vector<24x1xi1>
    %cst_20 = arith.constant 0.000000e+00 : f32
    %43 = vector.shape_cast %42 : vector<24x1xi1> to vector<24x1xi1>
    %44 = vector.broadcast %43 : vector<24x1xi1> to vector<24x128xi1>
    %45 = vector.broadcast %cst_20 : f32 to vector<24x128xf32>
    %46 = arith.select %44, %37, %45 : vector<24x128xi1>, vector<24x128xf32>
    %47 = vector.extract_strided_slice %46 {offsets = [0, 0], sizes = [20, 128], strides = [1, 1]} : vector<24x128xf32> to vector<20x128xf32>
    %c0_21 = arith.constant 0 : index
    %c0_22 = arith.constant 0 : index
    %c0_23 = arith.constant 0 : index
    %48 = vector.load %arg4[%c0_21, %c0_22, %c0_23] : memref<5x128x128xf32, #tpu.memory_space<vmem>>, vector<1x128x128xf32>
    %49 = vector.shape_cast %48 : vector<1x128x128xf32> to vector<128x128xf32>
    %cst_24 = arith.constant dense<0.000000e+00> : vector<20x128xf32>
    %50 = tpu.matmul %47, %49, %cst_24 {dimension_numbers = #tpu.dot_dimension_numbers<[1], [0], [0], [1], [0, 0, 1, 1], [], []>} : vector<20x128xf32>, vector<128x128xf32>, vector<20x128xf32> -> vector<20x128xf32>
    %51 = vector.extract_strided_slice %46 {offsets = [1, 0], sizes = [20, 128], strides = [1, 1]} : vector<24x128xf32> to vector<20x128xf32>
    %c1_25 = arith.constant 1 : index
    %c0_26 = arith.constant 0 : index
    %c0_27 = arith.constant 0 : index
    %52 = vector.load %arg4[%c1_25, %c0_26, %c0_27] : memref<5x128x128xf32, #tpu.memory_space<vmem>>, vector<1x128x128xf32>
    %53 = vector.shape_cast %52 : vector<1x128x128xf32> to vector<128x128xf32>
    %cst_28 = arith.constant dense<0.000000e+00> : vector<20x128xf32>
    %54 = tpu.matmul %51, %53, %cst_28 {dimension_numbers = #tpu.dot_dimension_numbers<[1], [0], [0], [1], [0, 0, 1, 1], [], []>} : vector<20x128xf32>, vector<128x128xf32>, vector<20x128xf32> -> vector<20x128xf32>
    %55 = arith.addf %50, %54 : vector<20x128xf32>
    %56 = vector.extract_strided_slice %46 {offsets = [2, 0], sizes = [20, 128], strides = [1, 1]} : vector<24x128xf32> to vector<20x128xf32>
    %c2_29 = arith.constant 2 : index
    %c0_30 = arith.constant 0 : index
    %c0_31 = arith.constant 0 : index
    %57 = vector.load %arg4[%c2_29, %c0_30, %c0_31] : memref<5x128x128xf32, #tpu.memory_space<vmem>>, vector<1x128x128xf32>
    %58 = vector.shape_cast %57 : vector<1x128x128xf32> to vector<128x128xf32>
    %cst_32 = arith.constant dense<0.000000e+00> : vector<20x128xf32>
    %59 = tpu.matmul %56, %58, %cst_32 {dimension_numbers = #tpu.dot_dimension_numbers<[1], [0], [0], [1], [0, 0, 1, 1], [], []>} : vector<20x128xf32>, vector<128x128xf32>, vector<20x128xf32> -> vector<20x128xf32>
    %60 = arith.addf %55, %59 : vector<20x128xf32>
    %61 = vector.extract_strided_slice %46 {offsets = [3, 0], sizes = [20, 128], strides = [1, 1]} : vector<24x128xf32> to vector<20x128xf32>
    %c3_33 = arith.constant 3 : index
    %c0_34 = arith.constant 0 : index
    %c0_35 = arith.constant 0 : index
    %62 = vector.load %arg4[%c3_33, %c0_34, %c0_35] : memref<5x128x128xf32, #tpu.memory_space<vmem>>, vector<1x128x128xf32>
    %63 = vector.shape_cast %62 : vector<1x128x128xf32> to vector<128x128xf32>
    %cst_36 = arith.constant dense<0.000000e+00> : vector<20x128xf32>
    %64 = tpu.matmul %61, %63, %cst_36 {dimension_numbers = #tpu.dot_dimension_numbers<[1], [0], [0], [1], [0, 0, 1, 1], [], []>} : vector<20x128xf32>, vector<128x128xf32>, vector<20x128xf32> -> vector<20x128xf32>
    %65 = arith.addf %60, %64 : vector<20x128xf32>
    %66 = vector.extract_strided_slice %46 {offsets = [4, 0], sizes = [20, 128], strides = [1, 1]} : vector<24x128xf32> to vector<20x128xf32>
    %c4_37 = arith.constant 4 : index
    %c0_38 = arith.constant 0 : index
    %c0_39 = arith.constant 0 : index
    %67 = vector.load %arg4[%c4_37, %c0_38, %c0_39] : memref<5x128x128xf32, #tpu.memory_space<vmem>>, vector<1x128x128xf32>
    %68 = vector.shape_cast %67 : vector<1x128x128xf32> to vector<128x128xf32>
    %cst_40 = arith.constant dense<0.000000e+00> : vector<20x128xf32>
    %69 = tpu.matmul %66, %68, %cst_40 {dimension_numbers = #tpu.dot_dimension_numbers<[1], [0], [0], [1], [0, 0, 1, 1], [], []>} : vector<20x128xf32>, vector<128x128xf32>, vector<20x128xf32> -> vector<20x128xf32>
    %70 = arith.addf %65, %69 : vector<20x128xf32>
    %c0_41 = arith.constant 0 : index
    %c0_42 = arith.constant 0 : index
    %71 = vector.load %arg9[%c0_41, %c0_42] : memref<1x128xf32, #tpu.memory_space<vmem>>, vector<1x128xf32>
    %72 = vector.broadcast %71 : vector<1x128xf32> to vector<20x128xf32>
    %73 = arith.addf %70, %72 : vector<20x128xf32>
    %74 = math.tanh %73 : vector<20x128xf32>
    %75 = vector.extract_strided_slice %9 {offsets = [2, 0], sizes = [20, 1], strides = [1, 1]} : vector<24x1xi32> to vector<20x1xi32>
    %c0_i32_43 = arith.constant 0 : i32
    %76 = vector.broadcast %c0_i32_43 : i32 to vector<20x1xi32>
    %77 = arith.cmpi sge, %75, %76 : vector<20x1xi32>
    %c24_i32_44 = arith.constant 24 : i32
    %78 = vector.broadcast %c24_i32_44 : i32 to vector<20x1xi32>
    %79 = arith.cmpi slt, %75, %78 : vector<20x1xi32>
    %80 = arith.andi %77, %79 : vector<20x1xi1>
    %cst_45 = arith.constant 0.000000e+00 : f32
    %81 = vector.shape_cast %80 : vector<20x1xi1> to vector<20x1xi1>
    %82 = vector.broadcast %81 : vector<20x1xi1> to vector<20x128xi1>
    %83 = vector.broadcast %cst_45 : f32 to vector<20x128xf32>
    %84 = arith.select %82, %74, %83 : vector<20x128xi1>, vector<20x128xf32>
    %85 = vector.extract_strided_slice %84 {offsets = [0, 0], sizes = [16, 128], strides = [1, 1]} : vector<20x128xf32> to vector<16x128xf32>
    %c0_46 = arith.constant 0 : index
    %c0_47 = arith.constant 0 : index
    %c0_48 = arith.constant 0 : index
    %86 = vector.load %arg5[%c0_46, %c0_47, %c0_48] : memref<5x128x128xf32, #tpu.memory_space<vmem>>, vector<1x128x128xf32>
    %87 = vector.shape_cast %86 : vector<1x128x128xf32> to vector<128x128xf32>
    %cst_49 = arith.constant dense<0.000000e+00> : vector<16x128xf32>
    %88 = tpu.matmul %85, %87, %cst_49 {dimension_numbers = #tpu.dot_dimension_numbers<[1], [0], [0], [1], [0, 0, 1, 1], [], []>} : vector<16x128xf32>, vector<128x128xf32>, vector<16x128xf32> -> vector<16x128xf32>
    %89 = vector.extract_strided_slice %84 {offsets = [1, 0], sizes = [16, 128], strides = [1, 1]} : vector<20x128xf32> to vector<16x128xf32>
    %c1_50 = arith.constant 1 : index
    %c0_51 = arith.constant 0 : index
    %c0_52 = arith.constant 0 : index
    %90 = vector.load %arg5[%c1_50, %c0_51, %c0_52] : memref<5x128x128xf32, #tpu.memory_space<vmem>>, vector<1x128x128xf32>
    %91 = vector.shape_cast %90 : vector<1x128x128xf32> to vector<128x128xf32>
    %cst_53 = arith.constant dense<0.000000e+00> : vector<16x128xf32>
    %92 = tpu.matmul %89, %91, %cst_53 {dimension_numbers = #tpu.dot_dimension_numbers<[1], [0], [0], [1], [0, 0, 1, 1], [], []>} : vector<16x128xf32>, vector<128x128xf32>, vector<16x128xf32> -> vector<16x128xf32>
    %93 = arith.addf %88, %92 : vector<16x128xf32>
    %94 = vector.extract_strided_slice %84 {offsets = [2, 0], sizes = [16, 128], strides = [1, 1]} : vector<20x128xf32> to vector<16x128xf32>
    %c2_54 = arith.constant 2 : index
    %c0_55 = arith.constant 0 : index
    %c0_56 = arith.constant 0 : index
    %95 = vector.load %arg5[%c2_54, %c0_55, %c0_56] : memref<5x128x128xf32, #tpu.memory_space<vmem>>, vector<1x128x128xf32>
    %96 = vector.shape_cast %95 : vector<1x128x128xf32> to vector<128x128xf32>
    %cst_57 = arith.constant dense<0.000000e+00> : vector<16x128xf32>
    %97 = tpu.matmul %94, %96, %cst_57 {dimension_numbers = #tpu.dot_dimension_numbers<[1], [0], [0], [1], [0, 0, 1, 1], [], []>} : vector<16x128xf32>, vector<128x128xf32>, vector<16x128xf32> -> vector<16x128xf32>
    %98 = arith.addf %93, %97 : vector<16x128xf32>
    %99 = vector.extract_strided_slice %84 {offsets = [3, 0], sizes = [16, 128], strides = [1, 1]} : vector<20x128xf32> to vector<16x128xf32>
    %c3_58 = arith.constant 3 : index
    %c0_59 = arith.constant 0 : index
    %c0_60 = arith.constant 0 : index
    %100 = vector.load %arg5[%c3_58, %c0_59, %c0_60] : memref<5x128x128xf32, #tpu.memory_space<vmem>>, vector<1x128x128xf32>
    %101 = vector.shape_cast %100 : vector<1x128x128xf32> to vector<128x128xf32>
    %cst_61 = arith.constant dense<0.000000e+00> : vector<16x128xf32>
    %102 = tpu.matmul %99, %101, %cst_61 {dimension_numbers = #tpu.dot_dimension_numbers<[1], [0], [0], [1], [0, 0, 1, 1], [], []>} : vector<16x128xf32>, vector<128x128xf32>, vector<16x128xf32> -> vector<16x128xf32>
    %103 = arith.addf %98, %102 : vector<16x128xf32>
    %104 = vector.extract_strided_slice %84 {offsets = [4, 0], sizes = [16, 128], strides = [1, 1]} : vector<20x128xf32> to vector<16x128xf32>
    %c4_62 = arith.constant 4 : index
    %c0_63 = arith.constant 0 : index
    %c0_64 = arith.constant 0 : index
    %105 = vector.load %arg5[%c4_62, %c0_63, %c0_64] : memref<5x128x128xf32, #tpu.memory_space<vmem>>, vector<1x128x128xf32>
    %106 = vector.shape_cast %105 : vector<1x128x128xf32> to vector<128x128xf32>
    %cst_65 = arith.constant dense<0.000000e+00> : vector<16x128xf32>
    %107 = tpu.matmul %104, %106, %cst_65 {dimension_numbers = #tpu.dot_dimension_numbers<[1], [0], [0], [1], [0, 0, 1, 1], [], []>} : vector<16x128xf32>, vector<128x128xf32>, vector<16x128xf32> -> vector<16x128xf32>
    %108 = arith.addf %103, %107 : vector<16x128xf32>
    %c0_66 = arith.constant 0 : index
    %c0_67 = arith.constant 0 : index
    %109 = vector.load %arg10[%c0_66, %c0_67] : memref<1x128xf32, #tpu.memory_space<vmem>>, vector<1x128xf32>
    %110 = vector.broadcast %109 : vector<1x128xf32> to vector<16x128xf32>
    %111 = arith.addf %108, %110 : vector<16x128xf32>
    %112 = math.tanh %111 : vector<16x128xf32>
    %113 = vector.extract_strided_slice %9 {offsets = [4, 0], sizes = [16, 1], strides = [1, 1]} : vector<24x1xi32> to vector<16x1xi32>
    %c0_i32_68 = arith.constant 0 : i32
    %114 = vector.broadcast %c0_i32_68 : i32 to vector<16x1xi32>
    %115 = arith.cmpi sge, %113, %114 : vector<16x1xi32>
    %c24_i32_69 = arith.constant 24 : i32
    %116 = vector.broadcast %c24_i32_69 : i32 to vector<16x1xi32>
    %117 = arith.cmpi slt, %113, %116 : vector<16x1xi32>
    %118 = arith.andi %115, %117 : vector<16x1xi1>
    %cst_70 = arith.constant 0.000000e+00 : f32
    %119 = vector.shape_cast %118 : vector<16x1xi1> to vector<16x1xi1>
    %120 = vector.broadcast %119 : vector<16x1xi1> to vector<16x128xi1>
    %121 = vector.broadcast %cst_70 : f32 to vector<16x128xf32>
    %122 = arith.select %120, %112, %121 : vector<16x128xi1>, vector<16x128xf32>
    %123 = vector.extract_strided_slice %122 {offsets = [0, 0], sizes = [12, 128], strides = [1, 1]} : vector<16x128xf32> to vector<12x128xf32>
    %c0_71 = arith.constant 0 : index
    %c0_72 = arith.constant 0 : index
    %c0_73 = arith.constant 0 : index
    %124 = vector.load %arg6[%c0_71, %c0_72, %c0_73] : memref<5x128x128xf32, #tpu.memory_space<vmem>>, vector<1x128x128xf32>
    %125 = vector.shape_cast %124 : vector<1x128x128xf32> to vector<128x128xf32>
    %cst_74 = arith.constant dense<0.000000e+00> : vector<12x128xf32>
    %126 = tpu.matmul %123, %125, %cst_74 {dimension_numbers = #tpu.dot_dimension_numbers<[1], [0], [0], [1], [0, 0, 1, 1], [], []>} : vector<12x128xf32>, vector<128x128xf32>, vector<12x128xf32> -> vector<12x128xf32>
    %127 = vector.extract_strided_slice %122 {offsets = [1, 0], sizes = [12, 128], strides = [1, 1]} : vector<16x128xf32> to vector<12x128xf32>
    %c1_75 = arith.constant 1 : index
    %c0_76 = arith.constant 0 : index
    %c0_77 = arith.constant 0 : index
    %128 = vector.load %arg6[%c1_75, %c0_76, %c0_77] : memref<5x128x128xf32, #tpu.memory_space<vmem>>, vector<1x128x128xf32>
    %129 = vector.shape_cast %128 : vector<1x128x128xf32> to vector<128x128xf32>
    %cst_78 = arith.constant dense<0.000000e+00> : vector<12x128xf32>
    %130 = tpu.matmul %127, %129, %cst_78 {dimension_numbers = #tpu.dot_dimension_numbers<[1], [0], [0], [1], [0, 0, 1, 1], [], []>} : vector<12x128xf32>, vector<128x128xf32>, vector<12x128xf32> -> vector<12x128xf32>
    %131 = arith.addf %126, %130 : vector<12x128xf32>
    %132 = vector.extract_strided_slice %122 {offsets = [2, 0], sizes = [12, 128], strides = [1, 1]} : vector<16x128xf32> to vector<12x128xf32>
    %c2_79 = arith.constant 2 : index
    %c0_80 = arith.constant 0 : index
    %c0_81 = arith.constant 0 : index
    %133 = vector.load %arg6[%c2_79, %c0_80, %c0_81] : memref<5x128x128xf32, #tpu.memory_space<vmem>>, vector<1x128x128xf32>
    %134 = vector.shape_cast %133 : vector<1x128x128xf32> to vector<128x128xf32>
    %cst_82 = arith.constant dense<0.000000e+00> : vector<12x128xf32>
    %135 = tpu.matmul %132, %134, %cst_82 {dimension_numbers = #tpu.dot_dimension_numbers<[1], [0], [0], [1], [0, 0, 1, 1], [], []>} : vector<12x128xf32>, vector<128x128xf32>, vector<12x128xf32> -> vector<12x128xf32>
    %136 = arith.addf %131, %135 : vector<12x128xf32>
    %137 = vector.extract_strided_slice %122 {offsets = [3, 0], sizes = [12, 128], strides = [1, 1]} : vector<16x128xf32> to vector<12x128xf32>
    %c3_83 = arith.constant 3 : index
    %c0_84 = arith.constant 0 : index
    %c0_85 = arith.constant 0 : index
    %138 = vector.load %arg6[%c3_83, %c0_84, %c0_85] : memref<5x128x128xf32, #tpu.memory_space<vmem>>, vector<1x128x128xf32>
    %139 = vector.shape_cast %138 : vector<1x128x128xf32> to vector<128x128xf32>
    %cst_86 = arith.constant dense<0.000000e+00> : vector<12x128xf32>
    %140 = tpu.matmul %137, %139, %cst_86 {dimension_numbers = #tpu.dot_dimension_numbers<[1], [0], [0], [1], [0, 0, 1, 1], [], []>} : vector<12x128xf32>, vector<128x128xf32>, vector<12x128xf32> -> vector<12x128xf32>
    %141 = arith.addf %136, %140 : vector<12x128xf32>
    %142 = vector.extract_strided_slice %122 {offsets = [4, 0], sizes = [12, 128], strides = [1, 1]} : vector<16x128xf32> to vector<12x128xf32>
    %c4_87 = arith.constant 4 : index
    %c0_88 = arith.constant 0 : index
    %c0_89 = arith.constant 0 : index
    %143 = vector.load %arg6[%c4_87, %c0_88, %c0_89] : memref<5x128x128xf32, #tpu.memory_space<vmem>>, vector<1x128x128xf32>
    %144 = vector.shape_cast %143 : vector<1x128x128xf32> to vector<128x128xf32>
    %cst_90 = arith.constant dense<0.000000e+00> : vector<12x128xf32>
    %145 = tpu.matmul %142, %144, %cst_90 {dimension_numbers = #tpu.dot_dimension_numbers<[1], [0], [0], [1], [0, 0, 1, 1], [], []>} : vector<12x128xf32>, vector<128x128xf32>, vector<12x128xf32> -> vector<12x128xf32>
    %146 = arith.addf %141, %145 : vector<12x128xf32>
    %c0_91 = arith.constant 0 : index
    %c0_92 = arith.constant 0 : index
    %147 = vector.load %arg11[%c0_91, %c0_92] : memref<1x128xf32, #tpu.memory_space<vmem>>, vector<1x128xf32>
    %148 = vector.broadcast %147 : vector<1x128xf32> to vector<12x128xf32>
    %149 = arith.addf %146, %148 : vector<12x128xf32>
    %150 = math.tanh %149 : vector<12x128xf32>
    %151 = vector.extract_strided_slice %9 {offsets = [6, 0], sizes = [12, 1], strides = [1, 1]} : vector<24x1xi32> to vector<12x1xi32>
    %c0_i32_93 = arith.constant 0 : i32
    %152 = vector.broadcast %c0_i32_93 : i32 to vector<12x1xi32>
    %153 = arith.cmpi sge, %151, %152 : vector<12x1xi32>
    %c24_i32_94 = arith.constant 24 : i32
    %154 = vector.broadcast %c24_i32_94 : i32 to vector<12x1xi32>
    %155 = arith.cmpi slt, %151, %154 : vector<12x1xi32>
    %156 = arith.andi %153, %155 : vector<12x1xi1>
    %cst_95 = arith.constant 0.000000e+00 : f32
    %157 = vector.shape_cast %156 : vector<12x1xi1> to vector<12x1xi1>
    %158 = vector.broadcast %157 : vector<12x1xi1> to vector<12x128xi1>
    %159 = vector.broadcast %cst_95 : f32 to vector<12x128xf32>
    %160 = arith.select %158, %150, %159 : vector<12x128xi1>, vector<12x128xf32>
    %161 = vector.extract_strided_slice %160 {offsets = [0, 0], sizes = [8, 128], strides = [1, 1]} : vector<12x128xf32> to vector<8x128xf32>
    %c0_96 = arith.constant 0 : index
    %c0_97 = arith.constant 0 : index
    %c0_98 = arith.constant 0 : index
    %162 = vector.load %arg7[%c0_96, %c0_97, %c0_98] : memref<5x128x128xf32, #tpu.memory_space<vmem>>, vector<1x128x128xf32>
    %163 = vector.shape_cast %162 : vector<1x128x128xf32> to vector<128x128xf32>
    %cst_99 = arith.constant dense<0.000000e+00> : vector<8x128xf32>
    %164 = tpu.matmul %161, %163, %cst_99 {dimension_numbers = #tpu.dot_dimension_numbers<[1], [0], [0], [1], [0, 0, 1, 1], [], []>} : vector<8x128xf32>, vector<128x128xf32>, vector<8x128xf32> -> vector<8x128xf32>
    %165 = vector.extract_strided_slice %160 {offsets = [1, 0], sizes = [8, 128], strides = [1, 1]} : vector<12x128xf32> to vector<8x128xf32>
    %c1_100 = arith.constant 1 : index
    %c0_101 = arith.constant 0 : index
    %c0_102 = arith.constant 0 : index
    %166 = vector.load %arg7[%c1_100, %c0_101, %c0_102] : memref<5x128x128xf32, #tpu.memory_space<vmem>>, vector<1x128x128xf32>
    %167 = vector.shape_cast %166 : vector<1x128x128xf32> to vector<128x128xf32>
    %cst_103 = arith.constant dense<0.000000e+00> : vector<8x128xf32>
    %168 = tpu.matmul %165, %167, %cst_103 {dimension_numbers = #tpu.dot_dimension_numbers<[1], [0], [0], [1], [0, 0, 1, 1], [], []>} : vector<8x128xf32>, vector<128x128xf32>, vector<8x128xf32> -> vector<8x128xf32>
    %169 = arith.addf %164, %168 : vector<8x128xf32>
    %170 = vector.extract_strided_slice %160 {offsets = [2, 0], sizes = [8, 128], strides = [1, 1]} : vector<12x128xf32> to vector<8x128xf32>
    %c2_104 = arith.constant 2 : index
    %c0_105 = arith.constant 0 : index
    %c0_106 = arith.constant 0 : index
    %171 = vector.load %arg7[%c2_104, %c0_105, %c0_106] : memref<5x128x128xf32, #tpu.memory_space<vmem>>, vector<1x128x128xf32>
    %172 = vector.shape_cast %171 : vector<1x128x128xf32> to vector<128x128xf32>
    %cst_107 = arith.constant dense<0.000000e+00> : vector<8x128xf32>
    %173 = tpu.matmul %170, %172, %cst_107 {dimension_numbers = #tpu.dot_dimension_numbers<[1], [0], [0], [1], [0, 0, 1, 1], [], []>} : vector<8x128xf32>, vector<128x128xf32>, vector<8x128xf32> -> vector<8x128xf32>
    %174 = arith.addf %169, %173 : vector<8x128xf32>
    %175 = vector.extract_strided_slice %160 {offsets = [3, 0], sizes = [8, 128], strides = [1, 1]} : vector<12x128xf32> to vector<8x128xf32>
    %c3_108 = arith.constant 3 : index
    %c0_109 = arith.constant 0 : index
    %c0_110 = arith.constant 0 : index
    %176 = vector.load %arg7[%c3_108, %c0_109, %c0_110] : memref<5x128x128xf32, #tpu.memory_space<vmem>>, vector<1x128x128xf32>
    %177 = vector.shape_cast %176 : vector<1x128x128xf32> to vector<128x128xf32>
    %cst_111 = arith.constant dense<0.000000e+00> : vector<8x128xf32>
    %178 = tpu.matmul %175, %177, %cst_111 {dimension_numbers = #tpu.dot_dimension_numbers<[1], [0], [0], [1], [0, 0, 1, 1], [], []>} : vector<8x128xf32>, vector<128x128xf32>, vector<8x128xf32> -> vector<8x128xf32>
    %179 = arith.addf %174, %178 : vector<8x128xf32>
    %180 = vector.extract_strided_slice %160 {offsets = [4, 0], sizes = [8, 128], strides = [1, 1]} : vector<12x128xf32> to vector<8x128xf32>
    %c4_112 = arith.constant 4 : index
    %c0_113 = arith.constant 0 : index
    %c0_114 = arith.constant 0 : index
    %181 = vector.load %arg7[%c4_112, %c0_113, %c0_114] : memref<5x128x128xf32, #tpu.memory_space<vmem>>, vector<1x128x128xf32>
    %182 = vector.shape_cast %181 : vector<1x128x128xf32> to vector<128x128xf32>
    %cst_115 = arith.constant dense<0.000000e+00> : vector<8x128xf32>
    %183 = tpu.matmul %180, %182, %cst_115 {dimension_numbers = #tpu.dot_dimension_numbers<[1], [0], [0], [1], [0, 0, 1, 1], [], []>} : vector<8x128xf32>, vector<128x128xf32>, vector<8x128xf32> -> vector<8x128xf32>
    %184 = arith.addf %179, %183 : vector<8x128xf32>
    %c0_116 = arith.constant 0 : index
    %c0_117 = arith.constant 0 : index
    %185 = vector.load %arg12[%c0_116, %c0_117] : memref<1x128xf32, #tpu.memory_space<vmem>>, vector<1x128xf32>
    %186 = vector.broadcast %185 : vector<1x128xf32> to vector<8x128xf32>
    %187 = arith.addf %184, %186 : vector<8x128xf32>
    %c0_118 = arith.constant 0 : index
    %c0_119 = arith.constant 0 : index
    %c0_120 = arith.constant 0 : index
    %188 = vector.load %arg13[%c0_118, %c0_119, %c0_120] : memref<1x8x128xf32, #tpu.memory_space<vmem>>, vector<1x8x128xf32>
    %189 = vector.shape_cast %188 : vector<1x8x128xf32> to vector<8x128xf32>
    %190 = vector.shape_cast %187 : vector<8x128xf32> to vector<1x8x128xf32>
    tpu.vector_store %arg13[%c0_118, %c0_119, %c0_120], %190 {strides = array<i32>} : memref<1x8x128xf32, #tpu.memory_space<vmem>>, vector<1x8x128xf32>,
    return
  }
  func.func @transform_0(%arg0: i32, %arg1: i32) -> (i32, i32, i32) {
    %c0_i32 = arith.constant 0 : i32
    %c0_i32_0 = arith.constant 0 : i32
    %c0_i32_1 = arith.constant 0 : i32
    return %arg0, %c0_i32, %c0_i32_0 : i32, i32, i32
  }
  func.func @transform_1(%arg0: i32, %arg1: i32) -> (i32, i32, i32) {
    %c0_i32 = arith.constant 0 : i32
    %c0_i32_0 = arith.constant 0 : i32
    %c0_i32_1 = arith.constant 0 : i32
    %c0_i32_2 = arith.constant 0 : i32
    return %c0_i32, %c0_i32_0, %c0_i32_1 : i32, i32, i32
  }
  func.func @transform_2(%arg0: i32, %arg1: i32) -> (i32, i32, i32) {
    %c0_i32 = arith.constant 0 : i32
    %c0_i32_0 = arith.constant 0 : i32
    %c0_i32_1 = arith.constant 0 : i32
    %c0_i32_2 = arith.constant 0 : i32
    return %c0_i32, %c0_i32_0, %c0_i32_1 : i32, i32, i32
  }
  func.func @transform_3(%arg0: i32, %arg1: i32) -> (i32, i32, i32) {
    %c0_i32 = arith.constant 0 : i32
    %c0_i32_0 = arith.constant 0 : i32
    %c0_i32_1 = arith.constant 0 : i32
    %c0_i32_2 = arith.constant 0 : i32
    return %c0_i32, %c0_i32_0, %c0_i32_1 : i32, i32, i32
  }
  func.func @transform_4(%arg0: i32, %arg1: i32) -> (i32, i32, i32) {
    %c0_i32 = arith.constant 0 : i32
    %c0_i32_0 = arith.constant 0 : i32
    %c0_i32_1 = arith.constant 0 : i32
    %c0_i32_2 = arith.constant 0 : i32
    return %c0_i32, %c0_i32_0, %c0_i32_1 : i32, i32, i32
  }
  func.func @transform_5(%arg0: i32, %arg1: i32) -> (i32, i32, i32) {
    %c0_i32 = arith.constant 0 : i32
    %c0_i32_0 = arith.constant 0 : i32
    %c0_i32_1 = arith.constant 0 : i32
    %c0_i32_2 = arith.constant 0 : i32
    return %c0_i32, %c0_i32_0, %c0_i32_1 : i32, i32, i32
  }
  func.func @transform_6(%arg0: i32, %arg1: i32) -> (i32, i32) {
    %c0_i32 = arith.constant 0 : i32
    %c0_i32_0 = arith.constant 0 : i32
    %c0_i32_1 = arith.constant 0 : i32
    return %c0_i32, %c0_i32_0 : i32, i32
  }
  func.func @transform_7(%arg0: i32, %arg1: i32) -> (i32, i32) {
    %c0_i32 = arith.constant 0 : i32
    %c0_i32_0 = arith.constant 0 : i32
    %c0_i32_1 = arith.constant 0 : i32
    return %c0_i32, %c0_i32_0 : i32, i32
  }
  func.func @transform_8(%arg0: i32, %arg1: i32) -> (i32, i32) {
    %c0_i32 = arith.constant 0 : i32
    %c0_i32_0 = arith.constant 0 : i32
    %c0_i32_1 = arith.constant 0 : i32
    return %c0_i32, %c0_i32_0 : i32, i32
  }
  func.func @transform_9(%arg0: i32, %arg1: i32) -> (i32, i32) {
    %c0_i32 = arith.constant 0 : i32
    %c0_i32_0 = arith.constant 0 : i32
    %c0_i32_1 = arith.constant 0 : i32
    return %c0_i32, %c0_i32_0 : i32, i32
  }
  func.func @transform_10(%arg0: i32, %arg1: i32) -> (i32, i32) {
    %c0_i32 = arith.constant 0 : i32
    %c0_i32_0 = arith.constant 0 : i32
    %c0_i32_1 = arith.constant 0 : i32
    return %c0_i32, %c0_i32_0 : i32, i32
  }
  func.func @transform_11(%arg0: i32, %arg1: i32) -> (i32, i32, i32) {
    %c0_i32 = arith.constant 0 : i32
    %c0_i32_0 = arith.constant 0 : i32
    return %arg0, %arg1, %c0_i32 : i32, i32, i32
  }
}

</mosaic_0001>

<bundles_post_ra>
// kernel: tpu_custom_call.1
= control target key start
LH: loop header
LB: loop body
LE: loop exit
PB: predicated region body
PF: predicated region fallthrough
CT: control target
= control target key end

     0   :  { %s6575_s0 = inlined_call_operand.vmem [shape: f32[2,44,128], index: 0, kind: input, shape index: {}]   ;;  %s6576_s1 = inlined_call_operand.hbm [shape: f32[5,128,128], index: 1, kind: input, shape index: {}]   ;;  %s6577_s2 = inlined_call_operand.hbm [shape: f32[5,128,128], index: 2, kind: input, shape index: {}]   ;;  %s6578_s3 = inlined_call_operand.hbm [shape: f32[5,128,128], index: 3, kind: input, shape index: {}]   ;;  %s6579_s4 = inlined_call_operand.hbm [shape: f32[5,128,128], index: 4, kind: input, shape index: {}]   ;;  %s6580_s5 = inlined_call_operand.hbm [shape: f32[5,128,128], index: 5, kind: input, shape index: {}]   ;;  %s6581_s6 = inlined_call_operand.vmem [shape: f32[1,128], index: 6, kind: input, shape index: {}]   ;;  %s6582_s7 = inlined_call_operand.vmem [shape: f32[1,128], index: 7, kind: input, shape index: {}]   ;;  %s6583_s8 = inlined_call_operand.vmem [shape: f32[1,128], index: 8, kind: input, shape index: {}]   ;;  %s6584_s9 = inlined_call_operand.vmem [shape: f32[1,128], index: 9, kind: input, shape index: {}]   ;;  %s6585_s10 = inlined_call_operand.vmem [shape: f32[1,128], index: 10, kind: input, shape index: {}]   ;;  %s6586_s11 = inlined_call_operand.hbm [shape: f32[2,24,128], index: 11, kind: output, shape index: {}]  }
   0x1   :  { %6603 = sst [smem:[#allocation26_spill]] %s6577_s2 }
   0x2   :  { %6604 = sst [smem:[#allocation27_spill]] %s6585_s10 }
   0x3   :  { %6605 = sst [smem:[#allocation28_spill]] %s6586_s11 }
   0x4   :  { %16 = vsyncpa [#allocation3], 0 }
   0x5   :  { %17 = vsyncpa [#allocation6], 0 }
   0x6   :  { %18 = vsyncpa [#allocation9], 0 }
   0x7   :  { %19 = vsyncpa [#allocation4], 0 }
   0x8   :  { %21 = vsyncpa [#allocation4 + $0x1], 0  ;;  %s5851_s17 = smov 0   ;;  %s5853_s18 = smov 0  }
   0x9   :  { %s5855_s19 = smov 0   ;;  %s5857_s20 = smov 0  }
   0xa   :  { %s5859_s21 = smov 0   ;;  %s5861_s22 = smov 0  }
   0xb   :  { %s5863_s23 = smov 0   ;;  %s5865_s24 = smov 0  }
   0xc LB: > { %6606 = sst [smem:[#allocation16_spill]] %s5750_s17  ;;  %s3263_s25 = sadd.s32 4294967295, %s5778_s24   ;;  %s5778_s24 = sphi %s5865_s24, %s27_s24   ;;  %s5774_s23 = sphi %s5863_s23, %s6645_s23   ;;  %s5770_s22 = sphi %s5861_s22, %s6649_s22   ;;  %s5766_s21 = sphi %s5859_s21, %s6643_s21   ;;  %s5762_s20 = sphi %s5857_s20, %s6642_s20   ;;  %s5758_s19 = sphi %s5855_s19, %s6648_s19   ;;  %s5754_s18 = sphi %s5853_s18, %s6647_s18   ;;  %s5750_s17 = sphi %s5851_s17, %s6646_s17  }
   0xd   : > { %6607 = sst [smem:[#allocation17_spill]] %s5758_s19  ;;  %s3264_s26 = sadd.s32 4294967294, %s5778_s24  }
   0xe   : > { %6608 = sst [smem:[#allocation18_spill]] %s5770_s22  ;;  %s36_s27 = sadd.s32 1, %s5770_s22 }
   0xf   : > { %6609 = sst [smem:[#allocation19_spill]] %s5774_s23  ;;  %s39_s28 = sadd.s32 1, %s5774_s23 }
  0x10   : > { %6610 = sst [smem:[#allocation20_spill]] %s5778_s24  ;;  %p37_p0 = scmp.ge.s32.totalorder %s36_s27, 3 }
  0x11   : > { %s284_s29 = sadd.s32 1, %s5758_s19  ;;  %p294_p1 = scmp.ne.s32.totalorder %s5758_s19, %s5754_s18 }
  0x12   : > { %p295_p2 = scmp.eq.s32.totalorder %s3263_s25, 5  ;;  %s6651_s27 = smov (%p37_p0, %s36_s27), 0 }
  0x13   : > { %6611 = sst [smem:[#allocation21_spill]] %s6651_s27  ;;  %s6653_s28 = smov (!%p37_p0, %s39_s28), %s5774_s23 }
  0x14   : > { %s280_s30 = ssub.s32 %s5770_s22, %s6651_s27  ;;  %p5903_p3 = por %p295_p2, %p294_p1 }
  0x15   : > { %p41_p4 = scmp.ge.s32.totalorder %s6653_s28, 2  ;;  %p300_p5 = scmp.ne.s32.totalorder %s5754_s18, %s5750_s17 }
  0x16   : > { %s6612_s12 = scalar_select %p5903_p3, 1, 0 }
  0x17   : > { %p301_p6 = scmp.eq.s32.totalorder %s3264_s26, 5  ;;  %p3265_p7 = scmp.ge.s32.totalorder %s5778_s24, 1 }
  0x18   : > { %6613 = sst [smem:[#allocation22_spill]] %s6612_s12  ;;  %s6655_s28 = smov (%p41_p4, %s6653_s28), 0 }
  0x19   : > { %6614 = sst [smem:[#allocation23_spill]] %s6655_s28  ;;  %p5912_p8 = por %p301_p6, %p300_p5 }
  0x1a   : > { %p308_p9 = scmp.lt.s32.totalorder %s5778_s24, 7  ;;  %s279_s14 = ssub.s32 %s5774_s23, %s6655_s28 }
  0x1b   : > { %s6615_s13 = scalar_select %p5912_p8, 1, 0 }
  0x1c   : > { %s281_s15 = sor.u32 %s280_s30, %s279_s14  ;;  %p5919_p10 = pnand %p3265_p7, %p308_p9 }
  0x1d   : > { %6616 = sst [smem:[#allocation24_spill]] %s6615_s13  ;;  %p282_p11 = scmp.eq.s32.totalorder %s281_s15, 0 }
  0x1e   : > { %s6617_s16 = scalar_select %p5919_p10, 1, 0 }
  0x1f   : > { %p5923_p12 = scmp.eq.s32.totalorder %s3263_s25, 0  ;;  %p5407_p13 = pneg %p5919_p10 }
  0x20   : > { %s5930_s26 = scalar_select %p282_p11, %s5758_s19, %s284_s29  }
  0x21   : > { %s6618_s27 = scalar_select %p5923_p12, 1, 0 }
  0x22   : > { %6619 = sst [smem:[#allocation25_spill]] %s5930_s26  ;;  %p5934_p0 = pnand %p5923_p12, %p5407_p13 }
  0x23   : > { %s5780_s30 = smov [#allocation5]   ;;  %s5781_s28 = smov [#allocation8]  }
  0x24   : > { %s333_s14 = sshll.u32 %s5780_s30, 4  ;;  %s359_s15 = sshll.u32 %s5781_s28, 4  ;;  %s334_s14 = int_to_ptr.vmem [resolvable:$true] %s333_s14  ;;  %s360_s15 = int_to_ptr.vmem [resolvable:$true] %s359_s15 }
  0x25   : > { %s6621_s2 = sld [smem:[#allocation26_spill]]  ;;  %p5946_p2 = pneg %p5934_p0 }
  0x2b   : > { %s5532_s13 = scalar_lea.hbm %s6621_s2, 10240 }
  0x2c   : > { %p5533_p1 = scmp.ne.s32.totalorder %s6621_s2, %s5532_s13  ;;  %p5539_p6 = scmp.lt.u32.totalorder %s5532_s13, %s6621_s2 }
  0x2e   : > { %p5535_p4 = pnand %p5946_p2, %p5533_p1 }
  0x30   : > { %p5536_p5 = pneg %p5535_p4 }
  0x32   : > { %p5541_p7 = pnand %p5539_p6, %p5536_p5 }
  0x34   : > { %5544 = shalt.err (!%p5541_p7)
}
  0x35   : > { %s5545_s23 = scalar_lea.vmem %s334_s14, 10240  ;;  %p5553_p8 = scmp.lt.s32.totalorder %s334_s14, %s334_s14 }
  0x36   : > { %p5546_p9 = scmp.ne.s32.totalorder %s334_s14, %s5545_s23  ;;  %p5554_p3 = scmp.lt.s32.totalorder %s5545_s23, %s5545_s23 }
  0x38   : > { %p5548_p11 = pnand %p5546_p9, %p5946_p2  ;;  %p5555_p12 = por %p5554_p3, %p5553_p8 }
  0x3a   : > { %p5549_p13 = pneg %p5548_p11 }
  0x3c   : > { %p5556_p10 = pnand %p5555_p12, %p5549_p13 }
  0x3e   : > { %5559 = shalt.err (!%p5556_p10)
}
  0x3f   : > { %s5782_s17 = smov 128   ;;  %s5783_s24 = smov 8  }
  0x40   : > { %5413 = dma.hbm_to_vmem [thread:$0]  (!%p5934_p0), %s6621_s2, 10240, %s334_s14, [#allocation6], %s5782_s17, %s5782_s17, %s5783_s24  }
  0x41   : > { %s5560_s30 = scalar_lea.hbm %s6579_s4, 10240 }
  0x42   : > { %p5561_p3 = scmp.ne.s32.totalorder %s6579_s4, %s5560_s30  ;;  %p5567_p12 = scmp.lt.u32.totalorder %s5560_s30, %s6579_s4 }
  0x44   : > { %p5563_p8 = pnand %p5561_p3, %p5946_p2 }
  0x46   : > { %p5564_p10 = pneg %p5563_p8 }
  0x48   : > { %p5569_p1 = pnand %p5567_p12, %p5564_p10 }
  0x4a   : > { %5572 = shalt.err (!%p5569_p1)
}
  0x4b   : > { %s5573_s28 = scalar_lea.vmem %s360_s15, 10240  ;;  %p5581_p7 = scmp.lt.s32.totalorder %s360_s15, %s360_s15 }
  0x4c   : > { %p5574_p4 = scmp.ne.s32.totalorder %s360_s15, %s5573_s28  ;;  %p5582_p9 = scmp.lt.s32.totalorder %s5573_s28, %s5573_s28 }
  0x4e   : > { %p5576_p5 = pnand %p5574_p4, %p5946_p2  ;;  %p5583_p11 = por %p5582_p9, %p5581_p7 }
  0x50   : > { %p5577_p6 = pneg %p5576_p5 }
  0x52   : > { %p5584_p13 = pnand %p5583_p11, %p5577_p6 }
  0x54   : > { %5587 = shalt.err (!%p5584_p13)
}
  0x55   : > { %5419 = dma.hbm_to_vmem [thread:$0]  (!%p5934_p0), %s6579_s4, 10240, %s360_s15, [#allocation9], %s5782_s17, %s5782_s17, %s5783_s24  }
  0x56   : > { %s5784_s19 = smov [#allocation2]   ;;  %s5785_s13 = smov [#allocation7]  }
  0x57   : > { %s320_s14 = sshll.u32 %s5784_s19, 4  ;;  %s346_s26 = sshll.u32 %s5785_s13, 4  ;;  %s321_s14 = int_to_ptr.vmem [resolvable:$true] %s320_s14  ;;  %s347_s26 = int_to_ptr.vmem [resolvable:$true] %s346_s26 }
  0x58   : > { %s5588_s23 = scalar_lea.hbm %s6576_s1, 10240 }
  0x59   : > { %p5589_p3 = scmp.ne.s32.totalorder %s6576_s1, %s5588_s23  ;;  %p5595_p12 = scmp.lt.u32.totalorder %s5588_s23, %s6576_s1 }
  0x5b   : > { %p5591_p8 = pnand %p5589_p3, %p5946_p2 }
  0x5d   : > { %p5592_p10 = pneg %p5591_p8 }
  0x5f   : > { %p5597_p1 = pnand %p5595_p12, %p5592_p10 }
  0x61   : > { %5600 = shalt.err (!%p5597_p1)
}
  0x62   : > { %s5601_s15 = scalar_lea.vmem %s321_s14, 10240  ;;  %p5609_p7 = scmp.lt.s32.totalorder %s321_s14, %s321_s14 }
  0x63   : > { %p5602_p4 = scmp.ne.s32.totalorder %s321_s14, %s5601_s15  ;;  %p5610_p9 = scmp.lt.s32.totalorder %s5601_s15, %s5601_s15 }
  0x65   : > { %p5604_p5 = pnand %p5602_p4, %p5946_p2  ;;  %p5611_p11 = por %p5610_p9, %p5609_p7 }
  0x67   : > { %p5605_p6 = pneg %p5604_p5 }
  0x69   : > { %p5612_p13 = pnand %p5611_p11, %p5605_p6 }
  0x6b   : > { %5615 = shalt.err (!%p5612_p13)
}
  0x6c   : > { %5410 = dma.hbm_to_vmem [thread:$0]  (!%p5934_p0), %s6576_s1, 10240, %s321_s14, [#allocation3], %s5782_s17, %s5782_s17, %s5783_s24  }
  0x6d   : > { %s5616_s13 = scalar_lea.hbm %s6578_s3, 10240 }
  0x6e   : > { %p5617_p3 = scmp.ne.s32.totalorder %s6578_s3, %s5616_s13  ;;  %p5623_p12 = scmp.lt.u32.totalorder %s5616_s13, %s6578_s3 }
  0x70   : > { %p5619_p8 = pnand %p5617_p3, %p5946_p2 }
  0x72   : > { %p5620_p10 = pneg %p5619_p8 }
  0x74   : > { %p5625_p1 = pnand %p5623_p12, %p5620_p10 }
  0x76   : > { %5628 = shalt.err (!%p5625_p1)
}
  0x77   : > { %s5629_s10 = scalar_lea.vmem %s347_s26, 10240  ;;  %p5637_p7 = scmp.lt.s32.totalorder %s347_s26, %s347_s26 }
  0x78   : > { %p5630_p4 = scmp.ne.s32.totalorder %s347_s26, %s5629_s10  ;;  %p5638_p9 = scmp.lt.s32.totalorder %s5629_s10, %s5629_s10 }
  0x7a   : > { %p5632_p5 = pnand %p5630_p4, %p5946_p2  ;;  %p5639_p11 = por %p5638_p9, %p5637_p7 }
  0x7c   : > { %p5633_p6 = pneg %p5632_p5 }
  0x7e   : > { %p5640_p13 = pnand %p5639_p11, %p5633_p6 }
  0x80   : > { %5643 = shalt.err (!%p5640_p13)
}
  0x81   : > { %5416 = dma.hbm_to_vmem [thread:$0]  (!%p5934_p0), %s6578_s3, 10240, %s347_s26, [#allocation6], %s5782_s17, %s5782_s17, %s5783_s24  }
  0x82   : > { %s5786_s2 = smov [#allocation10]   ;;  %s5644_s13 = scalar_lea.hbm %s6580_s5, 10240 }
  0x83   : > { %s372_s12 = sshll.u32 %s5786_s2, 4  ;;  %p5645_p3 = scmp.ne.s32.totalorder %s6580_s5, %s5644_s13  ;;  %s373_s12 = int_to_ptr.vmem [resolvable:$true] %s372_s12 }
  0x84   : > { %p5651_p12 = scmp.lt.u32.totalorder %s5644_s13, %s6580_s5 }
  0x85   : > { %p5647_p8 = pnand %p5645_p3, %p5946_p2 }
  0x87   : > { %p5648_p10 = pneg %p5647_p8 }
  0x89   : > { %p5653_p1 = pnand %p5651_p12, %p5648_p10 }
  0x8b   : > { %5656 = shalt.err (!%p5653_p1)
}
  0x8c   : > { %s5657_s26 = scalar_lea.vmem %s373_s12, 10240  ;;  %p5665_p7 = scmp.lt.s32.totalorder %s373_s12, %s373_s12 }
  0x8d   : > { %p5658_p4 = scmp.ne.s32.totalorder %s373_s12, %s5657_s26  ;;  %p5666_p9 = scmp.lt.s32.totalorder %s5657_s26, %s5657_s26 }
  0x8f   : > { %p5660_p5 = pnand %p5658_p4, %p5946_p2  ;;  %p5667_p11 = por %p5666_p9, %p5665_p7 }
  0x91   : > { %p5661_p6 = pneg %p5660_p5 }
  0x93   : > { %p5668_p13 = pnand %p5667_p11, %p5661_p6 }
  0x95   : > { %5671 = shalt.err (!%p5668_p13)
}
  0x96   : > { %5422 = dma.hbm_to_vmem [thread:$0]  (!%p5934_p0), %s6580_s5, 10240, %s373_s12, [#allocation9], %s5782_s17, %s5782_s17, %s5783_s24  }
  0x97   : > { %p6623_p3 = scmp.ne.s32.totalorder %s6617_s16, 0 }
  0x98   : > { %p6624_p2 = scmp.ne.s32.totalorder (!%p6623_p3), %s6618_s27, 0 }
  0x99   : > { %411 = sbr.rel (%p6623_p3) target bundleno = 1822 (0x71e), region = 64 }
  0xa0   : > { %5733 = dma.done.wait (%p6624_p2), [#allocation3], 10240  }
  0xa1   : > { %5735 = vsyncadd (%p6624_p2), [#allocation3], 4294957056 }
  0xa2   : > { %5737 = dma.done.wait (%p6624_p2), [#allocation6], 20480  }
  0xa3   : > { %5739 = vsyncadd (%p6624_p2), [#allocation6], 4294946816 }
  0xa4   : > { %5741 = dma.done.wait (%p6624_p2), [#allocation9], 20480  }
  0xa5   : > { %5743 = vsyncadd (%p6624_p2), [#allocation9], 4294946816  ;;  %v5787_v0 = vmov 0.0|0.0   ;;  %p467_p0 = scmp.lt.s32.totalorder %s5766_s21, 1  ;;  %vm5788_vm0 = vmmov 0   ;;  %v5789_v1 = vmov 0.0  }
  0xa6   : > { %4687 = vmatprep.subr.bf16.mxu0 %v5787_v0  ;;  %4711 = vmatprep.subr.bf16.mxu1 %v5787_v0  ;;  %v504_v2 = vld [vmem:[#allocation2 + $0x80] sm:$0xff]  ;;  %v505_v3 = vld [vmem:[#allocation2 + $0x88] sm:$0xff]  ;;  %v506_v7 = vld [vmem:[#allocation2 + $0x90] sm:$0xff]  ;;  %s3280_s24 = sshll.u32 %s5762_s20, 3  ;;  %vm934_vm1 = vcmask 1043456   ;;  %vm524_vm2 = vcmask 1046528  }
  0xa7   : > { %3784 = vmatprep.mubr.msk.f32.mxu0 %vm5788_vm0, %v5789_v1  ;;  %3825 = vmatprep.mubr.msk.f32.mxu1 %vm5788_vm0, %v5789_v1  ;;  %s468_s22 = scalar_select %p467_p0, %s5766_s21, 1  ;;  %v487_v4 = vld [vmem:[#allocation2] sm:$0xff]  ;;  %v4688_v5 = vpack.c.bf16 %v505_v3, %v504_v2  ;;  %v488_v6 = vld [vmem:[#allocation2 + $0x8] sm:$0xff]  ;;  %v507_v8 = vld [vmem:[#allocation2 + $0x98] sm:$0xff]  ;;  %vm712_vm3 = vcmask 1045504   ;;  %vm823_vm4 = vcmask 1044480  }
  0xa8   : > { %v4712_v9 = vpack.c.bf16 %v488_v6, %v487_v4  ;;  %v489_v10 = vld [vmem:[#allocation2 + $0x10] sm:$0xff]  ;;  %v490_v11 = vld [vmem:[#allocation2 + $0x18] sm:$0xff]  ;;  %v4691_v12 = vpack.c.bf16 %v507_v8, %v506_v7  ;;  %v508_v14 = vld [vmem:[#allocation2 + $0xa0] sm:$0xff]  ;;  %s3281_s11 = sadd.s32 4294967288, %s3280_s24  ;;  %vm1603_vm14 = vcmask 1041408   ;;  %vm1933_vm15 = vcmask 1042432  }
  0xa9   : > { %s5383_s27 = smul.u32 48, %s468_s22  ;;  %4689 = vmatpush3.bf16.msra.mxu0 %v4688_v5  ;;  %v4715_v13 = vpack.c.bf16 %v490_v11, %v489_v10  ;;  %v509_v15 = vld [vmem:[#allocation2 + $0xa8] sm:$0xff]  ;;  %v491_v16 = vld [vmem:[#allocation2 + $0x20] sm:$0xff]  ;;  %v510_v20 = vld [vmem:[#allocation2 + $0xb0] sm:$0xff]  ;;  %s464_s26 = sand.u32 1, %s5754_s18  }
  0xaa   : > { %4713 = vmatpush3.bf16.msra.mxu1 %v4712_v9  ;;  %4690 = vmatprep.subr.bf16.mxu0 %v5787_v0  ;;  %v492_v17 = vld [vmem:[#allocation2 + $0x28] sm:$0xff]  ;;  %v4694_v18 = vpack.c.bf16 %v509_v15, %v508_v14  ;;  %v511_v21 = vld [vmem:[#allocation2 + $0xb8] sm:$0xff]  ;;  %v493_v22 = vld [vmem:[#allocation2 + $0x30] sm:$0xff]  ;;  %s5384_s10 = smul.u32 3, %s5766_s21  ;;  %s3278_s14 = sshll.u32 %s464_s26, 3 }
  0xab   : > { %4714 = vmatprep.subr.bf16.mxu1 %v5787_v0  ;;  %s471_s17 = scalar_lea.vmem %s6575_s0, %s5383_s27  ;;  %v4718_v19 = vpack.c.bf16 %v492_v17, %v491_v16  ;;  %v494_v23 = vld [vmem:[#allocation2 + $0x38] sm:$0xff]  ;;  %v4697_v24 = vpack.c.bf16 %v511_v21, %v510_v20  ;;  %v512_v25 = vld [vmem:[#allocation2 + $0xc0] sm:$0xff]  ;;  %v513_v27 = vld [vmem:[#allocation2 + $0xc8] sm:$0xff]  ;;  %s6631_s22 = sld [smem:[#allocation22_spill]] }
  0xac   : > { %s6081_s15 = scalar_lea.vmem %s471_s17, %s3280_s24  ;;  %v4721_v26 = vpack.c.bf16 %v494_v23, %v493_v22  ;;  %v495_v30 = vld [vmem:[#allocation2 + $0x40] sm:$0xff]  ;;  %v496_v31 = vld [vmem:[#allocation2 + $0x48] sm:$0xff]  ;;  %v4700_v34 = vpack.c.bf16 %v513_v27, %v512_v25  ;;  %v514_v37 = vld [vmem:[#allocation2 + $0xd0] sm:$0xff]  ;;  %s3135_s27 = sadd.s32 %s5762_s20, %s5384_s10 }
  0xad   : > { %4692 = vmatpush3.bf16.msra.mxu0 %v4691_v12  ;;  %v6085_v28 = vld [vmem:[%s6081_s15] sm:$0xff]  ;;  %v6088_v29 = vld [vmem:[%s6081_s15 + $0x8] sm:$0xff]  ;;  %v4724_v36 = vpack.c.bf16 %v496_v31, %v495_v30  ;;  %v515_v38 = vld [vmem:[#allocation2 + $0xd8] sm:$0xff]  ;;  %s6632_s17 = sld [smem:[#allocation27_spill]]  ;;  %s3294_s24 = sshll.u32 %s3135_s27, 7 }
  0xae   : > { %4716 = vmatpush3.bf16.msra.mxu1 %v4715_v13  ;;  %4693 = vmatprep.subr.bf16.mxu0 %v5787_v0  ;;  %v935_v32 = vrot.slane %v6085_v28, 4  ;;  %v936_v33 = vrot.slane %v6088_v29, 4  ;;  %v497_v39 = vld [vmem:[#allocation2 + $0x50] sm:$0xff]  ;;  %v498_v40 = vld [vmem:[#allocation2 + $0x58] sm:$0xff]  ;;  %v4703_v41 = vpack.c.bf16 %v515_v38, %v514_v37  ;;  %v516_v43 = vld [vmem:[#allocation2 + $0xe0] sm:$0xff]  ;;  %v525_v60 = vrot.slane %v6085_v28, 1 }
  0xaf   : > { %4717 = vmatprep.subr.bf16.mxu1 %v5787_v0  ;;  %v4727_v42 = vpack.c.bf16 %v498_v40, %v497_v39  ;;  %v517_v44 = vld [vmem:[#allocation2 + $0xe8] sm:$0xff]  ;;  %v6100_v45 = vld [vmem:[%s6081_s15 + $0x10] sm:$0xff]  ;;  %v499_v46 = vld [vmem:[#allocation2 + $0x60] sm:$0xff]  ;;  %v526_v61 = vrot.slane %v6088_v29, 1  ;;  %s6633_s19 = sld [smem:[#allocation28_spill]]  ;;  %s3124_s20 = scalar_lea.sflag [#allocation4], %s464_s26 }
  0xb0   : > { %v6094_v35 = vsel %vm934_vm1, %v935_v32, %v936_v33  ;;  %v500_v47 = vld [vmem:[#allocation2 + $0x68] sm:$0xff]  ;;  %v938_v48 = vrot.slane %v6100_v45, 4  ;;  %v4706_v49 = vpack.c.bf16 %v517_v44, %v516_v43  ;;  %v6105_v50 = vld [vmem:[%s6081_s15 + $0x18] sm:$0xf]  ;;  %v518_v52 = vld [vmem:[#allocation2 + $0xf0] sm:$0xff]  ;;  %v528_v7 = vrot.slane %v6100_v45, 1 }
  0xb1   : > { %4695 = vmatpush3.bf16.msra.mxu0 %v4694_v18  ;;  %v4730_v51 = vpack.c.bf16 %v500_v47, %v499_v46  ;;  %v519_v53 = vld [vmem:[#allocation2 + $0xf8] sm:$0xff]  ;;  %v940_v54 = vrot.slane %v6105_v50, 4  ;;  %v501_v55 = vld [vmem:[#allocation2 + $0x70] sm:$0xff]  ;;  %v696_v63 = vld [vmem:[#allocation2 + $0x100] sm:$0xff]  ;;  %v527_v5 = vsel %vm524_vm2, %v525_v60, %v526_v61  ;;  %v530_v15 = vrot.slane %v6105_v50, 1  ;;  %s466_s15 = scalar_lea.vmem [#allocation11], %s3278_s14 }
  0xb2   : > { %4719 = vmatpush3.bf16.msra.mxu1 %v4718_v19  ;;  %4696 = vmatprep.subr.bf16.mxu0 %v5787_v0  ;;  %v502_v56 = vld [vmem:[#allocation2 + $0x78] sm:$0xff]  ;;  %v6111_v57 = vsel %vm934_vm1, %v936_v33, %v938_v48  ;;  %v4709_v59 = vpack.c.bf16 %v519_v53, %v518_v52  ;;  %v697_v2 = vld [vmem:[#allocation2 + $0x108] sm:$0xff]  ;;  %v807_v3 = vld [vmem:[#allocation2 + $0x180] sm:$0xff]  ;;  %v529_v14 = vsel %vm524_vm2, %v526_v61, %v528_v7  ;;  %v713_v60 = vrot.slane %v6085_v28, 2  ;;  %s3139_s2 = sshll.u32 %s466_s15, 4  ;;  %p6635_p10 = scmp.ne.s32.totalorder %s6631_s22, 0  ;;  %s6524_s2 = int_to_ptr.vmem [resolvable:$true] %s3139_s2 }
  0xb3   : > { %4720 = vmatprep.subr.bf16.mxu1 %v5787_v0  ;;  %v6114_v58 = vsel %vm934_vm1, %v938_v48, %v940_v54  ;;  %v4733_v62 = vpack.c.bf16 %v502_v56, %v501_v55  ;;  %v808_v4 = vld [vmem:[#allocation2 + $0x188] sm:$0xff]  ;;  %v4736_v6 = vpack.c.bf16 %v697_v2, %v696_v63  ;;  %v698_v9 = vld [vmem:[#allocation2 + $0x110] sm:$0xff]  ;;  %v699_v10 = vld [vmem:[#allocation2 + $0x118] sm:$0xff]  ;;  %v531_v22 = vsel %vm524_vm2, %v528_v7, %v530_v15  ;;  %s5672_s21 = scalar_lea.vmem %s6524_s2, 128  ;;  %s5790_s30 = smov [#allocation11]  }
  0xb4   : > { %v4760_v8 = vpack.c.bf16 %v808_v4, %v807_v3  ;;  %v809_v11 = vld [vmem:[#allocation2 + $0x190] sm:$0xff]  ;;  %v810_v12 = vld [vmem:[#allocation2 + $0x198] sm:$0xff]  ;;  %v4739_v13 = vpack.c.bf16 %v699_v10, %v698_v9  ;;  %v700_v17 = vld [vmem:[#allocation2 + $0x120] sm:$0xff]  ;;  %v714_v61 = vrot.slane %v6088_v29, 2  ;;  %v824_v3 = vrot.slane %v6085_v28, 3  ;;  %p5673_p8 = scmp.ne.s32.totalorder %s6524_s2, %s5672_s21  ;;  %s5676_s23 = sshll.u32 %s5790_s30, 4  ;;  %s5677_s23 = int_to_ptr.vmem [resolvable:$false] %s5676_s23 }
  0xb5   : > { %4698 = vmatpush3.bf16.msra.mxu0 %v4697_v24  ;;  %v4763_v16 = vpack.c.bf16 %v810_v12, %v809_v11  ;;  %v701_v18 = vld [vmem:[#allocation2 + $0x128] sm:$0xff]  ;;  %v811_v19 = vld [vmem:[#allocation2 + $0x1a0] sm:$0xff]  ;;  %v702_v24 = vld [vmem:[#allocation2 + $0x130] sm:$0xff]  ;;  %v825_v4 = vrot.slane %v6088_v29, 3  ;;  %v716_v7 = vrot.slane %v6100_v45, 2  ;;  %v718_v12 = vrot.slane %v6105_v50, 2  ;;  %s6634_s13 = smov %s6633_s19  ;;  %s6522_s25 = scalar_lea.hbm %s6633_s19, %s3294_s24 }
  0xb6   : > { %4722 = vmatpush3.bf16.msra.mxu1 %v4721_v26  ;;  %4699 = vmatprep.subr.bf16.mxu0 %v5787_v0  ;;  %v812_v20 = vld [vmem:[#allocation2 + $0x1a8] sm:$0xff]  ;;  %v4742_v21 = vpack.c.bf16 %v701_v18, %v700_v17  ;;  %v703_v25 = vld [vmem:[#allocation2 + $0x138] sm:$0xff]  ;;  %v813_v26 = vld [vmem:[#allocation2 + $0x1b0] sm:$0xff]  ;;  %p5674_p12 = pnand %p5673_p8, %p6635_p10  ;;  %s5678_s28 = scalar_lea.vmem %s5677_s23, 256 }
  0xb7   : > { %4723 = vmatprep.subr.bf16.mxu1 %v5787_v0  ;;  %v4766_v23 = vpack.c.bf16 %v812_v20, %v811_v19  ;;  %v814_v27 = vld [vmem:[#allocation2 + $0x1b8] sm:$0xff]  ;;  %v4745_v30 = vpack.c.bf16 %v703_v25, %v702_v24  ;;  %v704_v32 = vld [vmem:[#allocation2 + $0x140] sm:$0xff]  ;;  %v705_v33 = vld [vmem:[#allocation2 + $0x148] sm:$0xff]  ;;  %p5679_p4 = scmp.lt.s32.totalorder %s6524_s2, %s5677_s23  ;;  %p5680_p5 = scmp.lt.s32.totalorder %s5678_s28, %s5672_s21 }
  0xb8   : > { %v4769_v31 = vpack.c.bf16 %v814_v27, %v813_v26  ;;  %v4748_v37 = vpack.c.bf16 %v705_v33, %v704_v32  ;;  %v706_v39 = vld [vmem:[#allocation2 + $0x150] sm:$0xff]  ;;  %v707_v40 = vld [vmem:[#allocation2 + $0x158] sm:$0xff]  ;;  %v708_v46 = vld [vmem:[#allocation2 + $0x160] sm:$0xff]  ;;  %p5675_p1 = pneg %p5674_p12 }
  0xb9   : > { %4701 = vmatpush3.bf16.msra.mxu0 %v4700_v34  ;;  %v815_v34 = vld [vmem:[#allocation2 + $0x1c0] sm:$0xff]  ;;  %v4751_v43 = vpack.c.bf16 %v707_v40, %v706_v39  ;;  %v709_v47 = vld [vmem:[#allocation2 + $0x168] sm:$0xff]  ;;  %v710_v53 = vld [vmem:[#allocation2 + $0x170] sm:$0xff]  ;;  %p5681_p6 = por %p5680_p5, %p5679_p4 }
  0xba   : > { %4725 = vmatpush3.bf16.msra.mxu1 %v4724_v36  ;;  %4702 = vmatprep.subr.bf16.mxu0 %v5787_v0  ;;  %v816_v36 = vld [vmem:[#allocation2 + $0x1c8] sm:$0xff]  ;;  %v819_v48 = vld [vmem:[#allocation2 + $0x1e0] sm:$0xff]  ;;  %v711_v54 = vld [vmem:[#allocation2 + $0x178] sm:$0xff] }
  0xbb   : > { %4726 = vmatprep.subr.bf16.mxu1 %v5787_v0  ;;  %v4772_v38 = vpack.c.bf16 %v816_v36, %v815_v34  ;;  %v821_v55 = vld [vmem:[#allocation2 + $0x1f0] sm:$0xff]  ;;  %v822_v56 = vld [vmem:[#allocation2 + $0x1f8] sm:$0xff]  ;;  %v918_v63 = vld [vmem:[#allocation2 + $0x200] sm:$0xff]  ;;  %p5682_p7 = pnand %p5681_p6, %p5675_p1 }
  0xbc   : > { %v919_v2 = vld [vmem:[#allocation2 + $0x208] sm:$0xff]  ;;  %v920_v9 = vld [vmem:[#allocation2 + $0x210] sm:$0xff]  ;;  %v921_v10 = vld [vmem:[#allocation2 + $0x218] sm:$0xff] }
  0xbd   : > { %4704 = vmatpush3.bf16.msra.mxu0 %v4703_v41  ;;  %v817_v41 = vld [vmem:[#allocation2 + $0x1d0] sm:$0xff]  ;;  %v4787_v11 = vpack.c.bf16 %v921_v10, %v920_v9  ;;  %v923_v15 = vld [vmem:[#allocation2 + $0x228] sm:$0xff]  ;;  %v925_v20 = vld [vmem:[#allocation2 + $0x238] sm:$0xff] }
  0xbe   : > { %4728 = vmatpush3.bf16.msra.mxu1 %v4727_v42  ;;  %4705 = vmatprep.subr.bf16.mxu0 %v5787_v0  ;;  %v818_v42 = vld [vmem:[#allocation2 + $0x1d8] sm:$0xff]  ;;  %v924_v19 = vld [vmem:[#allocation2 + $0x230] sm:$0xff]  ;;  %v930_v27 = vld [vmem:[#allocation2 + $0x260] sm:$0xff] }
  0xbf   : > { %4729 = vmatprep.subr.bf16.mxu1 %v5787_v0  ;;  %v4775_v44 = vpack.c.bf16 %v818_v42, %v817_v41  ;;  %v928_v24 = vld [vmem:[#allocation2 + $0x250] sm:$0xff]  ;;  %v929_v25 = vld [vmem:[#allocation2 + $0x258] sm:$0xff]  ;;  %v1059_v36 = vld [vmem:[#allocation5] sm:$0xff] }
  0xc0   : > { %v4799_v26 = vpack.c.bf16 %v929_v25, %v928_v24  ;;  %v932_v32 = vld [vmem:[#allocation2 + $0x270] sm:$0xff]  ;;  %v933_v33 = vld [vmem:[#allocation2 + $0x278] sm:$0xff]  ;;  %v1076_v41 = vld [vmem:[#allocation5 + $0x80] sm:$0xff] }
  0xc1   : > { %4707 = vmatpush3.bf16.msra.mxu0 %v4706_v49  ;;  %v820_v49 = vld [vmem:[#allocation2 + $0x1e8] sm:$0xff]  ;;  %v4805_v34 = vpack.c.bf16 %v933_v33, %v932_v32  ;;  %v1062_v40 = vld [vmem:[#allocation5 + $0x18] sm:$0xff] }
  0xc2   : > { %4731 = vmatpush3.bf16.msra.mxu1 %v4730_v51  ;;  %4708 = vmatprep.subr.bf16.mxu0 %v5787_v0  ;;  %v4754_v51 = vpack.c.bf16 %v709_v47, %v708_v46  ;;  %v4778_v52 = vpack.c.bf16 %v820_v49, %v819_v48  ;;  %v1063_v46 = vld [vmem:[#allocation5 + $0x20] sm:$0xff]  ;;  %v1065_v49 = vld [vmem:[#allocation5 + $0x30] sm:$0xff]  ;;  %v1072_v9 = vld [vmem:[#allocation5 + $0x68] sm:$0xff] }
  0xc3   : > { %4732 = vmatprep.subr.bf16.mxu1 %v5787_v0 }
  0xc5   : > { %4710 = vmatpush3.bf16.msra.mxu0 %v4709_v59  ;;  %v4757_v59 = vpack.c.bf16 %v711_v54, %v710_v53  ;;  %v1080_v53 = vld [vmem:[#allocation5 + $0xa0] sm:$0xff]  ;;  %v1081_v54 = vld [vmem:[#allocation5 + $0xa8] sm:$0xff] }
  0xc6   : > { %4734 = vmatpush3.bf16.msra.mxu1 %v4733_v62  ;;  %4735 = vmatprep.subr.bf16.mxu0 %v5787_v0  ;;  %v4781_v62 = vpack.c.bf16 %v822_v56, %v821_v55  ;;  %v1067_v55 = vld [vmem:[#allocation5 + $0x40] sm:$0xff]  ;;  %v4814_v56 = vpack.c.bf16 %v1081_v54, %v1080_v53  ;;  %v478_v54 = vlaneseq }
  0xc7   : > { %4759 = vmatprep.subr.bf16.mxu1 %v5787_v0 }
  0xc8   : > { %3785 = vmatmul.mubr.f32.vlgmr.msra.gmra.mrb[0].mxu0 %v527_v5  ;;  %v715_v5 = vsel %vm712_vm3, %v713_v60, %v714_v61 }
  0xc9   : > { %3826 = vmatmul.mubr.f32.vlgmr.msra.gmra.mrb[0].mxu1 %v6085_v28  ;;  %4737 = vmatpush3.bf16.msra.mxu0 %v4736_v6  ;;  %v4784_v6 = vpack.c.bf16 %v919_v2, %v918_v63  ;;  %v827_v28 = vrot.slane %v6100_v45, 3  ;;  %v1069_v2 = vld [vmem:[#allocation5 + $0x50] sm:$0xff] }
  0xca   : > { %4761 = vmatpush3.bf16.msra.mxu1 %v4760_v8  ;;  %4738 = vmatprep.subr.bf16.mxu0 %v5787_v0  ;;  %v826_v8 = vsel %vm823_vm4, %v824_v3, %v825_v4  ;;  %v1070_v3 = vld [vmem:[#allocation5 + $0x58] sm:$0xff] }
  0xcb   : > { %4762 = vmatprep.subr.bf16.mxu1 %v5787_v0  ;;  %3787 = vmatprep.mubr.msk.f32.mxu0 %vm5788_vm0, %v5789_v1 }
  0xcc   : > { %3788 = vmatmul.mubr.f32.gmra.mrb[2].mxu0 %v529_v14  ;;  %3828 = vmatprep.mubr.msk.f32.mxu1 %vm5788_vm0, %v5789_v1  ;;  %v922_v14 = vld [vmem:[#allocation2 + $0x220] sm:$0xff] }
  0xcd   : > { %4740 = vmatpush3.bf16.msra.mxu0 %v4739_v13  ;;  %3829 = vmatmul.mubr.f32.gmra.mrb[2].mxu1 %v6088_v29  ;;  %v717_v29 = vsel %vm712_vm3, %v714_v61, %v716_v7  ;;  %v828_v13 = vsel %vm823_vm4, %v825_v4, %v827_v28  ;;  %v4790_v17 = vpack.c.bf16 %v923_v15, %v922_v14  ;;  %v1082_v61 = vld [vmem:[#allocation5 + $0xb0] sm:$0xff]  ;;  %v1088_v15 = vld [vmem:[#allocation5 + $0xe0] sm:$0xff] }
  0xce   : > { %4764 = vmatpush3.bf16.msra.mxu1 %v4763_v16  ;;  %4741 = vmatprep.subr.bf16.mxu0 %v5787_v0  ;;  %v719_v16 = vsel %vm712_vm3, %v716_v7, %v718_v12  ;;  %v4847_v4 = vpack.c.bf16 %v1070_v3, %v1069_v2  ;;  %v1071_v7 = vld [vmem:[#allocation5 + $0x60] sm:$0xff] }
  0xcf   : > { %4765 = vmatprep.subr.bf16.mxu1 %v5787_v0  ;;  %3790 = vmatprep.mubr.msk.f32.mxu0 %vm5788_vm0, %v5789_v1  ;;  %v4850_v10 = vpack.c.bf16 %v1072_v9, %v1071_v7 }
  0xd0   : > { %3791 = vmatmul.mubr.f32.gmra.mrb[4].mxu0 %v531_v22  ;;  %3831 = vmatprep.mubr.msk.f32.mxu1 %vm5788_vm0, %v5789_v1  ;;  %v927_v22 = vld [vmem:[#allocation2 + $0x248] sm:$0xff] }
  0xd1   : > { %4743 = vmatpush3.bf16.msra.mxu0 %v4742_v21  ;;  %3832 = vmatmul.mubr.f32.gmra.mrb[4].mxu1 %v6100_v45  ;;  %v829_v45 = vrot.slane %v6105_v50, 3  ;;  %v4793_v50 = vpack.c.bf16 %v925_v20, %v924_v19  ;;  %v926_v21 = vld [vmem:[#allocation2 + $0x240] sm:$0xff] }
  0xd2   : > { %4767 = vmatpush3.bf16.msra.mxu1 %v4766_v23  ;;  %4744 = vmatprep.subr.bf16.mxu0 %v5787_v0  ;;  %v4796_v23 = vpack.c.bf16 %v927_v22, %v926_v21 }
  0xd3   : > { %4768 = vmatprep.subr.bf16.mxu1 %v5787_v0  ;;  %3866 = vmatprep.mubr.msk.f32.mxu0 %vm5788_vm0, %v5789_v1  ;;  %v830_v18 = vsel %vm823_vm4, %v827_v28, %v829_v45  ;;  %v1086_v28 = vld [vmem:[#allocation5 + $0xd0] sm:$0xff]  ;;  %v1089_v45 = vld [vmem:[#allocation5 + $0xe8] sm:$0xff] }
  0xd4   : > { %3907 = vmatprep.mubr.msk.f32.mxu1 %vm5788_vm0, %v5789_v1 }
  0xd5   : > { %4746 = vmatpush3.bf16.msra.mxu0 %v4745_v30  ;;  %v931_v30 = vld [vmem:[#allocation2 + $0x268] sm:$0xff] }
  0xd6   : > { %4770 = vmatpush3.bf16.msra.mxu1 %v4769_v31  ;;  %4747 = vmatprep.subr.bf16.mxu0 %v5787_v0  ;;  %v4802_v31 = vpack.c.bf16 %v931_v30, %v930_v27 }
  0xd7   : > { %4771 = vmatprep.subr.bf16.mxu1 %v5787_v0 }
  0xd9   : > { %4749 = vmatpush3.bf16.msra.mxu0 %v4748_v37  ;;  %v1060_v37 = vld [vmem:[#allocation5 + $0x8] sm:$0xff] }
  0xda   : > { %4773 = vmatpush3.bf16.msra.mxu1 %v4772_v38  ;;  %4750 = vmatprep.subr.bf16.mxu0 %v5787_v0  ;;  %v1061_v38 = vld [vmem:[#allocation5 + $0x10] sm:$0xff]  ;;  %v4832_v39 = vpack.c.bf16 %v1060_v37, %v1059_v36 }
  0xdb   : > { %4774 = vmatprep.subr.bf16.mxu1 %v5787_v0 }
  0xdd   : > { %4752 = vmatpush3.bf16.msra.mxu0 %v4751_v43  ;;  %v1078_v43 = vld [vmem:[#allocation5 + $0x90] sm:$0xff] }
  0xde   : > { %4776 = vmatpush3.bf16.msra.mxu1 %v4775_v44  ;;  %4753 = vmatprep.subr.bf16.mxu0 %v5787_v0  ;;  %v4835_v44 = vpack.c.bf16 %v1062_v40, %v1061_v38 }
  0xdf   : > { %4777 = vmatprep.subr.bf16.mxu1 %v5787_v0 }
  0xe1   : > { %4755 = vmatpush3.bf16.msra.mxu0 %v4754_v51  ;;  %v1066_v51 = vld [vmem:[#allocation5 + $0x38] sm:$0xff] }
  0xe2   : > { %4779 = vmatpush3.bf16.msra.mxu1 %v4778_v52  ;;  %4756 = vmatprep.subr.bf16.mxu0 %v5787_v0  ;;  %v4841_v52 = vpack.c.bf16 %v1066_v51, %v1065_v49 }
  0xe3   : > { %4780 = vmatprep.subr.bf16.mxu1 %v5787_v0 }
  0xe5   : > { %4758 = vmatpush3.bf16.msra.mxu0 %v4757_v59  ;;  %v1068_v59 = vld [vmem:[#allocation5 + $0x48] sm:$0xff] }
  0xe6   : > { %4782 = vmatpush3.bf16.msra.mxu1 %v4781_v62  ;;  %4783 = vmatprep.subr.bf16.mxu0 %v5787_v0  ;;  %v4844_v60 = vpack.c.bf16 %v1068_v59, %v1067_v55  ;;  %v1083_v62 = vld [vmem:[#allocation5 + $0xb8] sm:$0xff] }
  0xe7   : > { %4807 = vmatprep.subr.bf16.mxu1 %v5787_v0  ;;  %v4817_v63 = vpack.c.bf16 %v1083_v62, %v1082_v61  ;;  %v479_v61 = vshrl.u32 %v478_v54, 7 }
  0xe8   : > { %3867 = vmatmul.mubr.f32.vlgmr.msra.gmra.mrb[6].mxu0 %v715_v5  ;;  %v1084_v5 = vld [vmem:[#allocation5 + $0xc0] sm:$0xff] }
  0xe9   : > { %4785 = vmatpush3.bf16.msra.mxu0 %v4784_v6  ;;  %3908 = vmatmul.mubr.f32.vlgmr.msra.gmra.mrb[6].mxu1 %v826_v8  ;;  %v1085_v6 = vld [vmem:[#allocation5 + $0xc8] sm:$0xff] }
  0xea   : > { %3869 = vmatprep.mubr.msk.f32.mxu0 %vm5788_vm0, %v5789_v1  ;;  %4786 = vmatprep.subr.bf16.mxu0 %v5787_v0  ;;  %v4820_v8 = vpack.c.bf16 %v1085_v6, %v1084_v5  ;;  %v480_v6 = vadd.s32 8, %v479_v61 }
  0xeb   : > { %3910 = vmatprep.mubr.msk.f32.mxu1 %vm5788_vm0, %v5789_v1 }
  0xec   : > { %3870 = vmatmul.mubr.f32.gmra.mrb[8].mxu0 %v717_v29  ;;  %v1087_v29 = vld [vmem:[#allocation5 + $0xd8] sm:$0xff] }
  0xed   : > { %4788 = vmatpush3.bf16.msra.mxu0 %v4787_v11  ;;  %3911 = vmatmul.mubr.f32.gmra.mrb[8].mxu1 %v828_v13  ;;  %v1073_v11 = vld [vmem:[#allocation5 + $0x70] sm:$0xff]  ;;  %v4823_v12 = vpack.c.bf16 %v1087_v29, %v1086_v28  ;;  %v1074_v13 = vld [vmem:[#allocation5 + $0x78] sm:$0xff]  ;;  %v1372_v28 = vld [vmem:[#allocation5 + $0x180] sm:$0xff] }
  0xee   : > { %3872 = vmatprep.mubr.msk.f32.mxu0 %vm5788_vm0, %v5789_v1  ;;  %4789 = vmatprep.subr.bf16.mxu0 %v5787_v0  ;;  %v4853_v14 = vpack.c.bf16 %v1074_v13, %v1073_v11  ;;  %v1373_v29 = vld [vmem:[#allocation5 + $0x188] sm:$0xff] }
  0xef   : > { %3913 = vmatprep.mubr.msk.f32.mxu1 %vm5788_vm0, %v5789_v1 }
  0xf0   : > { %3873 = vmatmul.mubr.f32.gmra.mrb[10].mxu0 %v719_v16  ;;  %v4826_v16 = vpack.c.bf16 %v1089_v45, %v1088_v15  ;;  %v4880_v15 = vpack.c.bf16 %v1373_v29, %v1372_v28  ;;  %v1374_v45 = vld [vmem:[#allocation5 + $0x190] sm:$0xff]  ;;  %v1272_v29 = vld [vmem:[#allocation5 + $0x140] sm:$0xff] }
  0xf1   : > { %4791 = vmatpush3.bf16.msra.mxu0 %v4790_v17  ;;  %3914 = vmatmul.mubr.f32.gmra.mrb[10].mxu1 %v830_v18  ;;  %v1090_v17 = vld [vmem:[#allocation5 + $0xf0] sm:$0xff]  ;;  %v1091_v18 = vld [vmem:[#allocation5 + $0xf8] sm:$0xff] }
  0xf2   : > { %4792 = vmatprep.subr.bf16.mxu0 %v5787_v0  ;;  %3948 = vmatprep.mubr.msk.f32.mxu0 %vm5788_vm0, %v5789_v1  ;;  %v4829_v19 = vpack.c.bf16 %v1091_v18, %v1090_v17 }
  0xf3   : > { %3989 = vmatprep.mubr.msk.f32.mxu1 %vm5788_vm0, %v5789_v1 }
  0xf5   : > { %4794 = vmatpush3.bf16.msra.mxu0 %v4793_v50 }
  0xf6   : > { %4795 = vmatprep.subr.bf16.mxu0 %v5787_v0 }
  0xf9   : > { %4797 = vmatpush3.bf16.msra.mxu0 %v4796_v23 }
  0xfa   : > { %4798 = vmatprep.subr.bf16.mxu0 %v5787_v0 }
  0xfd   : > { %4800 = vmatpush3.bf16.msra.mxu0 %v4799_v26 }
  0xfe   : > { %4801 = vmatprep.subr.bf16.mxu0 %v5787_v0 }
 0x101   : > { %4803 = vmatpush3.bf16.msra.mxu0 %v4802_v31 }
 0x102   : > { %4804 = vmatprep.subr.bf16.mxu0 %v5787_v0 }
 0x105   : > { %4806 = vmatpush3.bf16.msra.mxu0 %v4805_v34 }
 0x106   : > { %4831 = vmatprep.subr.bf16.mxu0 %v5787_v0 }
 0x108   : > { %3949 = vmatmul.mubr.f32.vlgmr.msra.gmra.mrb[12].mxu0 %v6094_v35  ;;  %v1077_v35 = vld [vmem:[#allocation5 + $0x88] sm:$0xff] }
 0x109   : > { %3951 = vmatprep.mubr.msk.f32.mxu0 %vm5788_vm0, %v5789_v1  ;;  %v4808_v42 = vpack.c.bf16 %v1077_v35, %v1076_v41  ;;  %4833 = vmatpush3.bf16.msra.mxu0 %v4832_v39 }
 0x10a   : > { %4834 = vmatprep.subr.bf16.mxu0 %v5787_v0 }
 0x10b   : > { %4809 = vmatpush3.bf16.msra.mxu1 %v4808_v42 }
 0x10c   : > { %3952 = vmatmul.mubr.f32.gmra.mrb[14].mxu0 %v6111_v57  ;;  %v1079_v57 = vld [vmem:[#allocation5 + $0x98] sm:$0xff]  ;;  %4810 = vmatprep.subr.bf16.mxu1 %v5787_v0 }
 0x10d   : > { %3954 = vmatprep.mubr.msk.f32.mxu0 %vm5788_vm0, %v5789_v1  ;;  %v4811_v47 = vpack.c.bf16 %v1079_v57, %v1078_v43  ;;  %4836 = vmatpush3.bf16.msra.mxu0 %v4835_v44 }
 0x10e   : > { %4837 = vmatprep.subr.bf16.mxu0 %v5787_v0 }
 0x10f   : > { %4812 = vmatpush3.bf16.msra.mxu1 %v4811_v47 }
 0x110   : > { %3955 = vmatmul.mubr.f32.gmra.mrb[16].mxu0 %v6114_v58  ;;  %v1064_v58 = vld [vmem:[#allocation5 + $0x28] sm:$0xff]  ;;  %4813 = vmatprep.subr.bf16.mxu1 %v5787_v0 }
 0x111   : > { %4030 = vmatprep.mubr.msk.f32.mxu0 %vm5788_vm0, %v5789_v1  ;;  %v4838_v48 = vpack.c.bf16 %v1064_v58, %v1063_v46 }
 0x113   : > { %4839 = vmatpush3.bf16.msra.mxu0 %v4838_v48  ;;  %4815 = vmatpush3.bf16.msra.mxu1 %v4814_v56  ;;  %v3282_v56 = vld [vmem:[%s6581_s6] ss:$0 sm:$0xff] }
 0x114   : > { %4840 = vmatprep.subr.bf16.mxu0 %v5787_v0  ;;  %4816 = vmatprep.subr.bf16.mxu1 %v5787_v0 }
 0x117   : > { %4842 = vmatpush3.bf16.msra.mxu0 %v4841_v52  ;;  %4818 = vmatpush3.bf16.msra.mxu1 %v4817_v63  ;;  %v483_v63 = vstv %s3281_s11 }
 0x118   : > { %4843 = vmatprep.subr.bf16.mxu0 %v5787_v0  ;;  %4819 = vmatprep.subr.bf16.mxu1 %v5787_v0  ;;  %v484_v5 = vadd.s32 %v483_v63, %v479_v61  ;;  %v485_v11 = vadd.s32 %v483_v63, %v480_v6  ;;  %v1270_v6 = vld [vmem:[#allocation5 + $0x130] sm:$0xff] }
 0x11a   : > { %vm1041_vm5 = vcmp.ge.s32.totalorder %v484_v5, 0  ;;  %vm1044_vm6 = vcmp.lt.s32.totalorder %v484_v5, 24  ;;  %vm1042_vm8 = vcmp.ge.s32.totalorder %v485_v11, 0  ;;  %vm1045_vm9 = vcmp.lt.s32.totalorder %v485_v11, 24  ;;  %v1273_v11 = vld [vmem:[#allocation5 + $0x148] sm:$0xff] }
 0x11b   : > { %4845 = vmatpush3.bf16.msra.mxu0 %v4844_v60  ;;  %4821 = vmatpush3.bf16.msra.mxu1 %v4820_v8  ;;  %vm6222_vm7 = vmand %vm1041_vm5, %vm1044_vm6 }
 0x11c   : > { %4846 = vmatprep.subr.bf16.mxu0 %v5787_v0  ;;  %4822 = vmatprep.subr.bf16.mxu1 %v5787_v0  ;;  %vm6232_vm10 = vmand %vm1042_vm8, %vm1045_vm9 }
 0x11f   : > { %4848 = vmatpush3.bf16.msra.mxu0 %v4847_v4  ;;  %4824 = vmatpush3.bf16.msra.mxu1 %v4823_v12  ;;  %v481_v12 = vadd.s32 16, %v479_v61  ;;  %v1381_v61 = vld [vmem:[#allocation5 + $0x1c8] sm:$0xff] }
 0x120   : > { %4849 = vmatprep.subr.bf16.mxu0 %v5787_v0  ;;  %4825 = vmatprep.subr.bf16.mxu1 %v5787_v0 }
 0x121   : > { %v486_v17 = vadd.s32 %v483_v63, %v481_v12  ;;  %v1384_v12 = vld [vmem:[#allocation5 + $0x1e0] sm:$0xff] }
 0x123   : > { %4851 = vmatpush3.bf16.msra.mxu0 %v4850_v10  ;;  %4827 = vmatpush3.bf16.msra.mxu1 %v4826_v16  ;;  %v1375_v16 = vld [vmem:[#allocation5 + $0x198] sm:$0xff]  ;;  %vm1043_vm11 = vcmp.ge.s32.totalorder %v486_v17, 0  ;;  %vm1046_vm12 = vcmp.lt.s32.totalorder %v486_v17, 24 }
 0x124   : > { %4852 = vmatprep.subr.bf16.mxu0 %v5787_v0  ;;  %4828 = vmatprep.subr.bf16.mxu1 %v5787_v0  ;;  %vm6245_vm13 = vmand %vm1043_vm11, %vm1046_vm12  ;;  %v1275_v17 = vld [vmem:[#allocation5 + $0x158] sm:$0xff] }
 0x127   : > { %4854 = vmatpush3.bf16.msra.mxu0 %v4853_v14  ;;  %4830 = vmatpush3.bf16.msra.mxu1 %v4829_v19  ;;  %v1264_v19 = vld [vmem:[#allocation5 + $0x100] sm:$0xff] }
 0x128   : > { %4879 = vmatprep.subr.bf16.mxu0 %v5787_v0  ;;  %4855 = vmatprep.subr.bf16.mxu1 %v5787_v0 }
 0x19b   : > { %v601_v20 = vpop.f32.mrb[0].mxu0 }
 0x19c   : > { %v3786_v50 = vpop.f32.mrb[1].mxu0  ;;  %v681_v21 = vpop.f32.mrb[0].mxu1 }
 0x19d   : > { %v682_v22 = vadd.f32 %v681_v21, %v601_v20  ;;  %v3827_v23 = vpop.f32.mrb[1].mxu1  ;;  %v1265_v50 = vld [vmem:[#allocation5 + $0x108] sm:$0xff]  ;;  %v1376_v21 = vld [vmem:[#allocation5 + $0x1a0] sm:$0xff] }
 0x19f   : > { %v606_v24 = vpop.f32.mrb[2].mxu0 }
 0x1a0   : > { %v3789_v25 = vpop.f32.mrb[3].mxu0  ;;  %v686_v26 = vpop.f32.mrb[2].mxu1 }
 0x1a1   : > { %v687_v27 = vadd.f32 %v686_v26, %v606_v24  ;;  %v3830_v30 = vpop.f32.mrb[3].mxu1  ;;  %v4883_v24 = vpack.c.bf16 %v1375_v16, %v1374_v45  ;;  %v1274_v16 = vld [vmem:[#allocation5 + $0x150] sm:$0xff] }
 0x1a3   : > { %v611_v31 = vpop.f32.mrb[4].mxu0 }
 0x1a4   : > { %v3792_v32 = vpop.f32.mrb[5].mxu0  ;;  %v691_v33 = vpop.f32.mrb[4].mxu1 }
 0x1a5   : > { %v692_v34 = vadd.f32 %v691_v33, %v611_v31  ;;  %v3833_v36 = vpop.f32.mrb[5].mxu1  ;;  %v1266_v32 = vld [vmem:[#allocation5 + $0x110] sm:$0xff]  ;;  %v1267_v33 = vld [vmem:[#allocation5 + $0x118] sm:$0xff] }
 0x1bb   : > { %v789_v37 = vpop.f32.mrb[6].mxu0 }
 0x1bc   : > { %v803_v38 = vadd.f32 %v789_v37, %v682_v22  ;;  %v3868_v39 = vpop.f32.mrb[7].mxu0  ;;  %v900_v40 = vpop.f32.mrb[6].mxu1  ;;  %v1377_v22 = vld [vmem:[#allocation5 + $0x1a8] sm:$0xff] }
 0x1bd   : > { %v3909_v41 = vpop.f32.mrb[7].mxu1  ;;  %v4886_v30 = vpack.c.bf16 %v1377_v22, %v1376_v21  ;;  %v1276_v21 = vld [vmem:[#allocation5 + $0x160] sm:$0xff]  ;;  %v1277_v22 = vld [vmem:[#allocation5 + $0x168] sm:$0xff]  ;;  %v2844_v39 = vld [vmem:[#allocation10 + $0x110] sm:$0xff] }
 0x1be   : > { %v914_v35 = vadd.f32 %v900_v40, %v803_v38  ;;  %v1378_v40 = vld [vmem:[#allocation5 + $0x1b0] sm:$0xff]  ;;  %v1379_v41 = vld [vmem:[#allocation5 + $0x1b8] sm:$0xff] }
 0x1bf   : > { %v794_v42 = vpop.f32.mrb[8].mxu0 }
 0x1c0   : > { %v804_v43 = vadd.f32 %v794_v42, %v687_v27  ;;  %v905_v44 = vpop.f32.mrb[8].mxu1  ;;  %v3871_v57 = vpop.f32.mrb[9].mxu0  ;;  %v4856_v27 = vpack.c.bf16 %v1265_v50, %v1264_v19  ;;  %v1387_v19 = vld [vmem:[#allocation5 + $0x1f8] sm:$0xff] }
 0x1c1   : > { %v3912_v46 = vpop.f32.mrb[9].mxu1 }
 0x1c2   : > { %v915_v58 = vadd.f32 %v905_v44, %v804_v43 }
 0x1c3   : > { %v799_v47 = vpop.f32.mrb[10].mxu0 }
 0x1c4   : > { %v805_v48 = vadd.f32 %v799_v47, %v692_v34  ;;  %v910_v49 = vpop.f32.mrb[10].mxu1  ;;  %v3874_v51 = vpop.f32.mrb[11].mxu0 }
 0x1c5   : > { %v3915_v52 = vpop.f32.mrb[11].mxu1  ;;  %v4889_v51 = vpack.c.bf16 %v1379_v41, %v1378_v40  ;;  %v1486_v41 = vld [vmem:[#allocation5 + $0x230] sm:$0xff] }
 0x1c6   : > { %v916_v53 = vadd.f32 %v910_v49, %v805_v48  ;;  %v4859_v49 = vpack.c.bf16 %v1267_v33, %v1266_v32  ;;  %v1482_v33 = vld [vmem:[#allocation5 + $0x210] sm:$0xff] }
 0x1db   : > { %v1011_v55 = vpop.f32.mrb[12].mxu0 }
 0x1dc   : > { %v1025_v59 = vadd.f32 %v1011_v55, %v914_v35  ;;  %v3950_v60 = vpop.f32.mrb[13].mxu0 }
 0x1dd   : > { %v1380_v60 = vld [vmem:[#allocation5 + $0x1c0] sm:$0xff] }
 0x1de   : > { %v1035_v62 = vadd.f32 %v3282_v56, %v1025_v59  ;;  %v1269_v59 = vld [vmem:[#allocation5 + $0x128] sm:$0xff]  ;;  %v4892_v5 = vpack.c.bf16 %v1381_v61, %v1380_v60  ;;  %v1632_v60 = vld [vmem:[#allocation7 + $0x80] sm:$0xff] }
 0x1df   : > { %v1016_v2 = vpop.f32.mrb[14].mxu0  ;;  %v1633_v61 = vld [vmem:[#allocation7 + $0x88] sm:$0xff] }
 0x1e0   : > { %5512 = vtanh.f32 %v1035_v62  ;;  %v1026_v3 = vadd.f32 %v1016_v2, %v915_v58  ;;  %v3953_v4 = vpop.f32.mrb[15].mxu0 }
 0x1e2   : > { %v1036_v7 = vadd.f32 %v3282_v56, %v1026_v3 }
 0x1e3   : > { %v1021_v8 = vpop.f32.mrb[16].mxu0 }
 0x1e4   : > { %5514 = vtanh.f32 %v1036_v7  ;;  %v1027_v9 = vadd.f32 %v1021_v8, %v916_v53  ;;  %v3956_v10 = vpop.f32.mrb[17].mxu0  ;;  %v1268_v53 = vld [vmem:[#allocation5 + $0x120] sm:$0xff]  ;;  %v1271_v7 = vld [vmem:[#allocation5 + $0x138] sm:$0xff]  ;;  %v1382_v8 = vld [vmem:[#allocation5 + $0x1d0] sm:$0xff] }
 0x1e5   : > { %v4862_v4 = vpack.c.bf16 %v1269_v59, %v1268_v53  ;;  %v4865_v10 = vpack.c.bf16 %v1271_v7, %v1270_v6  ;;  %v1639_v7 = vld [vmem:[#allocation7 + $0xb8] sm:$0xff] }
 0x1e6   : > { %v1037_v13 = vadd.f32 %v3282_v56, %v1027_v9  ;;  %v1383_v9 = vld [vmem:[#allocation5 + $0x1d8] sm:$0xff] }
 0x1e7   : > { %v4895_v28 = vpack.c.bf16 %v1383_v9, %v1382_v8 }
 0x1e8   : > { %5516 = vtanh.f32 %v1037_v13  ;;  %v1385_v13 = vld [vmem:[#allocation5 + $0x1e8] sm:$0xff] }
 0x1e9   : > { %v4898_v45 = vpack.c.bf16 %v1385_v13, %v1384_v12  ;;  %v1645_v12 = vld [vmem:[#allocation7 + $0xe8] sm:$0xff] }
 0x1ea   : > { %v5513_v18 = vpop.eup %5512 }
 0x1eb   : > { %4031 = vmatmul.mubr.msk.f32.vlgmr.msra.gmra.mrb[18].mxu0 %vm6222_vm7, %v5513_v18  ;;  %v1056_v20 = vsel %vm6222_vm7, %v5513_v18, 0.0  ;;  %v1386_v18 = vld [vmem:[#allocation5 + $0x1f0] sm:$0xff] }
 0x1ec   : > { %4881 = vmatpush3.bf16.msra.mxu0 %v4880_v15  ;;  %4033 = vmatprep.mubr.msk.f32.mxu0 %vm5788_vm0, %v5789_v1  ;;  %v1095_v26 = vrot.slane %v1056_v20, 1  ;;  %v1388_v34 = vrot.slane %v1056_v20, 3  ;;  %v1280_v36 = vrot.slane %v1056_v20, 2  ;;  %v1496_v37 = vrot.slane %v1056_v20, 4 }
 0x1ed   : > { %4882 = vmatprep.subr.bf16.mxu0 %v5787_v0  ;;  %v4868_v15 = vpack.c.bf16 %v1273_v11, %v1272_v29  ;;  %v4871_v20 = vpack.c.bf16 %v1275_v17, %v1274_v16  ;;  %v4901_v50 = vpack.c.bf16 %v1387_v19, %v1386_v18  ;;  %v1644_v11 = vld [vmem:[#allocation7 + $0xe0] sm:$0xff]  ;;  %v1616_v18 = vld [vmem:[#allocation7 + $0x8] sm:$0xff] }
 0x1ee   : > { %v5515_v25 = vpop.eup %5514  ;;  %v4951_v13 = vpack.c.bf16 %v1645_v12, %v1644_v11  ;;  %v1615_v17 = vld [vmem:[#allocation7] sm:$0xff] }
 0x1ef   : > { %4034 = vmatmul.mubr.msk.f32.gmra.mrb[20].mxu0 %vm6232_vm10, %v5515_v25  ;;  %v1057_v31 = vsel %vm6232_vm10, %v5515_v25, 0.0  ;;  %v1278_v25 = vld [vmem:[#allocation5 + $0x170] sm:$0xff]  ;;  %v6337_v19 = vpack.c.bf16 %v1616_v18, %v1615_v17 }
 0x1f0   : > { %4884 = vmatpush3.bf16.msra.mxu0 %v4883_v24  ;;  %4036 = vmatprep.mubr.msk.f32.mxu0 %vm5788_vm0, %v5789_v1  ;;  %v1096_v38 = vrot.slane %v1057_v31, 1  ;;  %v1389_v35 = vrot.slane %v1057_v31, 3  ;;  %v1281_v42 = vrot.slane %v1057_v31, 2  ;;  %v1497_v43 = vrot.slane %v1057_v31, 4  ;;  %v1481_v31 = vld [vmem:[#allocation5 + $0x208] sm:$0xff] }
 0x1f1   : > { %4885 = vmatprep.subr.bf16.mxu0 %v5787_v0  ;;  %v4874_v24 = vpack.c.bf16 %v1277_v22, %v1276_v21 }
 0x1f2   : > { %v5517_v44 = vpop.eup %5516  ;;  %v1097_v57 = vsel %vm524_vm2, %v1095_v26, %v1096_v38  ;;  %v6252_v46 = vsel %vm823_vm4, %v1388_v34, %v1389_v35  ;;  %v6255_v58 = vsel %vm712_vm3, %v1280_v36, %v1281_v42  ;;  %v6258_v47 = vsel %vm934_vm1, %v1496_v37, %v1497_v43  ;;  %v1279_v26 = vld [vmem:[#allocation5 + $0x178] sm:$0xff]  ;;  %v1484_v37 = vld [vmem:[#allocation5 + $0x220] sm:$0xff] }
 0x1f3   : > { %3990 = vmatmul.mubr.f32.vlgmr.msra.gmra.mrb[12].mxu1 %v1097_v57  ;;  %4037 = vmatmul.mubr.msk.f32.gmra.mrb[22].mxu0 %vm6245_vm13, %v5517_v44  ;;  %v6264_v48 = vsel %vm6245_vm13, %v5517_v44, 0.0  ;;  %v1483_v34 = vld [vmem:[#allocation5 + $0x218] sm:$0xff]  ;;  %v1489_v44 = vld [vmem:[#allocation5 + $0x248] sm:$0xff] }
 0x1f4   : > { %4857 = vmatpush3.bf16.msra.mxu1 %v4856_v27  ;;  %4887 = vmatpush3.bf16.msra.mxu0 %v4886_v30  ;;  %v1098_v52 = vrot.slane %v6264_v48, 1  ;;  %v1391_v54 = vrot.slane %v6264_v48, 3  ;;  %v1283_v55 = vrot.slane %v6264_v48, 2  ;;  %v1499_v56 = vrot.slane %v6264_v48, 4  ;;  %v1480_v30 = vld [vmem:[#allocation5 + $0x200] sm:$0xff] }
 0x1f5   : > { %3992 = vmatprep.mubr.msk.f32.mxu1 %vm5788_vm0, %v5789_v1  ;;  %4858 = vmatprep.subr.bf16.mxu1 %v5787_v0  ;;  %v4877_v27 = vpack.c.bf16 %v1279_v26, %v1278_v25  ;;  %v4904_v32 = vpack.c.bf16 %v1481_v31, %v1480_v30  ;;  %v4907_v36 = vpack.c.bf16 %v1483_v34, %v1482_v33  ;;  %v1640_v48 = vld [vmem:[#allocation7 + $0xc0] sm:$0xff] }
 0x1f6   : > { %4888 = vmatprep.subr.bf16.mxu0 %v5787_v0  ;;  %v1099_v62 = vsel %vm524_vm2, %v1096_v38, %v1098_v52  ;;  %4112 = vmatprep.mubr.msk.f32.mxu0 %vm5788_vm0, %v5789_v1  ;;  %v1392_v63 = vsel %vm823_vm4, %v1389_v35, %v1391_v54  ;;  %v6283_v2 = vsel %vm712_vm3, %v1281_v42, %v1283_v55  ;;  %v1485_v38 = vld [vmem:[#allocation5 + $0x228] sm:$0xff]  ;;  %v1487_v35 = vld [vmem:[#allocation5 + $0x238] sm:$0xff] }
 0x1f7   : > { %3993 = vmatmul.mubr.f32.gmra.mrb[14].mxu1 %v1099_v62  ;;  %v6288_v3 = vsel %vm934_vm1, %v1497_v43, %v1499_v56  ;;  %v4910_v40 = vpack.c.bf16 %v1485_v38, %v1484_v37  ;;  %v4913_v42 = vpack.c.bf16 %v1487_v35, %v1486_v41  ;;  %v1488_v43 = vld [vmem:[#allocation5 + $0x240] sm:$0xff]  ;;  %v4927_v62 = vpack.c.bf16 %v1633_v61, %v1632_v60 }
 0x1f8   : > { %4860 = vmatpush3.bf16.msra.mxu1 %v4859_v49  ;;  %4890 = vmatpush3.bf16.msra.mxu0 %v4889_v51  ;;  %v4916_v57 = vpack.c.bf16 %v1489_v44, %v1488_v43  ;;  %v1492_v51 = vld [vmem:[#allocation5 + $0x260] sm:$0xff] }
 0x1f9   : > { %3995 = vmatprep.mubr.msk.f32.mxu1 %vm5788_vm0, %v5789_v1  ;;  %4861 = vmatprep.subr.bf16.mxu1 %v5787_v0 }
 0x1fa   : > { %4891 = vmatprep.subr.bf16.mxu0 %v5787_v0 }
 0x1fb   : > { %3996 = vmatmul.mubr.f32.gmra.mrb[16].mxu1 %v1098_v52  ;;  %v1493_v52 = vld [vmem:[#allocation5 + $0x268] sm:$0xff] }
 0x1fc   : > { %4863 = vmatpush3.bf16.msra.mxu1 %v4862_v4  ;;  %4893 = vmatpush3.bf16.msra.mxu0 %v4892_v5  ;;  %v4922_v53 = vpack.c.bf16 %v1493_v52, %v1492_v51  ;;  %v1637_v5 = vld [vmem:[#allocation7 + $0xa8] sm:$0xff] }
 0x1fd   : > { %4864 = vmatprep.subr.bf16.mxu1 %v5787_v0  ;;  %4894 = vmatprep.subr.bf16.mxu0 %v5787_v0 }
 0x1fe   : > { %4071 = vmatprep.mubr.msk.f32.mxu1 %vm5788_vm0, %v5789_v1 }
 0x200   : > { %4866 = vmatpush3.bf16.msra.mxu1 %v4865_v10  ;;  %4896 = vmatpush3.bf16.msra.mxu0 %v4895_v28  ;;  %v1642_v10 = vld [vmem:[#allocation7 + $0xd0] sm:$0xff]  ;;  %v1643_v28 = vld [vmem:[#allocation7 + $0xd8] sm:$0xff] }
 0x201   : > { %4867 = vmatprep.subr.bf16.mxu1 %v5787_v0  ;;  %4897 = vmatprep.subr.bf16.mxu0 %v5787_v0  ;;  %v4947_v29 = vpack.c.bf16 %v1643_v28, %v1642_v10 }
 0x204   : > { %4869 = vmatpush3.bf16.msra.mxu1 %v4868_v15  ;;  %4899 = vmatpush3.bf16.msra.mxu0 %v4898_v45  ;;  %v1646_v15 = vld [vmem:[#allocation7 + $0xf0] sm:$0xff]  ;;  %v1647_v45 = vld [vmem:[#allocation7 + $0xf8] sm:$0xff] }
 0x205   : > { %4870 = vmatprep.subr.bf16.mxu1 %v5787_v0  ;;  %4900 = vmatprep.subr.bf16.mxu0 %v5787_v0  ;;  %v4955_v16 = vpack.c.bf16 %v1647_v45, %v1646_v15 }
 0x208   : > { %4872 = vmatpush3.bf16.msra.mxu1 %v4871_v20  ;;  %4902 = vmatpush3.bf16.msra.mxu0 %v4901_v50 }
 0x209   : > { %4873 = vmatprep.subr.bf16.mxu1 %v5787_v0  ;;  %4928 = vmatprep.subr.bf16.mxu0 %v4927_v62 }
 0x20b   : > { %4113 = vmatmul.mubr.f32.vlgmr.msra.gmra.mrb[24].mxu0 %v6252_v46  ;;  %v1490_v46 = vld [vmem:[#allocation5 + $0x250] sm:$0xff] }
 0x20c   : > { %4875 = vmatpush3.bf16.msra.mxu1 %v4874_v24  ;;  %4115 = vmatprep.mubr.msk.f32.mxu0 %vm5788_vm0, %v5789_v1 }
 0x20d   : > { %4876 = vmatprep.subr.bf16.mxu1 %v5787_v0  ;;  %4930 = vmatpush3.bf16.msra.mxu0 %v4927_v62  ;;  %v3286_v62 = vld [vmem:[%s6582_s7] ss:$0 sm:$0xff] }
 0x20f   : > { %4116 = vmatmul.mubr.f32.gmra.mrb[26].mxu0 %v1392_v63  ;;  %v1634_v63 = vld [vmem:[#allocation7 + $0x90] sm:$0xff] }
 0x210   : > { %4878 = vmatpush3.bf16.msra.mxu1 %v4877_v27  ;;  %4118 = vmatprep.mubr.msk.f32.mxu0 %vm5788_vm0, %v5789_v1 }
 0x211   : > { %4903 = vmatprep.subr.bf16.mxu1 %v5787_v0 }
 0x213   : > { %4072 = vmatmul.mubr.f32.vlgmr.msra.gmra.mrb[18].mxu1 %v6255_v58  ;;  %4119 = vmatmul.mubr.f32.gmra.mrb[28].mxu0 %v1391_v54  ;;  %v1491_v58 = vld [vmem:[#allocation5 + $0x258] sm:$0xff]  ;;  %v1494_v54 = vld [vmem:[#allocation5 + $0x270] sm:$0xff] }
 0x214   : > { %4905 = vmatpush3.bf16.msra.mxu1 %v4904_v32  ;;  %4074 = vmatprep.mubr.msk.f32.mxu1 %vm5788_vm0, %v5789_v1  ;;  %v4919_v49 = vpack.c.bf16 %v1491_v58, %v1490_v46 }
 0x215   : > { %4906 = vmatprep.subr.bf16.mxu1 %v5787_v0 }
 0x217   : > { %4075 = vmatmul.mubr.f32.gmra.mrb[20].mxu1 %v6283_v2  ;;  %v1635_v2 = vld [vmem:[#allocation7 + $0x98] sm:$0xff] }
 0x218   : > { %4908 = vmatpush3.bf16.msra.mxu1 %v4907_v36  ;;  %4077 = vmatprep.mubr.msk.f32.mxu1 %vm5788_vm0, %v5789_v1  ;;  %v4931_v4 = vpack.c.bf16 %v1635_v2, %v1634_v63 }
 0x219   : > { %4909 = vmatprep.subr.bf16.mxu1 %v5787_v0 }
 0x21a   : > { %4932 = vmatprep.subr.bf16.mxu0 %v4931_v4 }
 0x21b   : > { %4078 = vmatmul.mubr.f32.gmra.mrb[22].mxu1 %v1283_v55  ;;  %v1495_v55 = vld [vmem:[#allocation5 + $0x278] sm:$0xff]  ;;  %4934 = vmatpush3.bf16.msra.mxu0 %v4931_v4 }
 0x21c   : > { %4911 = vmatpush3.bf16.msra.mxu1 %v4910_v40  ;;  %4153 = vmatprep.mubr.msk.f32.mxu1 %vm5788_vm0, %v5789_v1  ;;  %v4925_v59 = vpack.c.bf16 %v1495_v55, %v1494_v54 }
 0x21d   : > { %4912 = vmatprep.subr.bf16.mxu1 %v5787_v0 }
 0x220   : > { %4914 = vmatpush3.bf16.msra.mxu1 %v4913_v42 }
 0x221   : > { %4915 = vmatprep.subr.bf16.mxu1 %v5787_v0 }
 0x224   : > { %4917 = vmatpush3.bf16.msra.mxu1 %v4916_v57 }
 0x225   : > { %4918 = vmatprep.subr.bf16.mxu1 %v5787_v0 }
 0x228   : > { %4920 = vmatpush3.bf16.msra.mxu1 %v4919_v49 }
 0x229   : > { %4921 = vmatprep.subr.bf16.mxu1 %v5787_v0 }
 0x22c   : > { %4923 = vmatpush3.bf16.msra.mxu1 %v4922_v53 }
 0x22d   : > { %4924 = vmatprep.subr.bf16.mxu1 %v5787_v0 }
 0x230   : > { %4926 = vmatpush3.bf16.msra.mxu1 %v4925_v59 }
 0x233   : > { %4154 = vmatmul.mubr.f32.vlgmr.msra.gmra.mrb[24].mxu1 %v6258_v47  ;;  %v1636_v47 = vld [vmem:[#allocation7 + $0xa0] sm:$0xff] }
 0x234   : > { %4156 = vmatprep.mubr.msk.f32.mxu1 %vm5788_vm0, %v5789_v1  ;;  %v4935_v6 = vpack.c.bf16 %v1637_v5, %v1636_v47 }
 0x236   : > { %4936 = vmatprep.subr.bf16.mxu0 %v4935_v6 }
 0x237   : > { %4157 = vmatmul.mubr.f32.gmra.mrb[26].mxu1 %v6288_v3  ;;  %4938 = vmatpush3.bf16.msra.mxu0 %v4935_v6  ;;  %v1638_v3 = vld [vmem:[#allocation7 + $0xb0] sm:$0xff] }
 0x238   : > { %4159 = vmatprep.mubr.msk.f32.mxu1 %vm5788_vm0, %v5789_v1  ;;  %v4939_v8 = vpack.c.bf16 %v1639_v7, %v1638_v3 }
 0x23a   : > { %4940 = vmatprep.subr.bf16.mxu0 %v4939_v8 }
 0x23b   : > { %4160 = vmatmul.mubr.f32.gmra.mrb[28].mxu1 %v1499_v56  ;;  %4942 = vmatpush3.bf16.msra.mxu0 %v4939_v8  ;;  %v1641_v56 = vld [vmem:[#allocation7 + $0xc8] sm:$0xff] }
 0x23c   : > { %v4943_v9 = vpack.c.bf16 %v1641_v56, %v1640_v48 }
 0x23e   : > { %4944 = vmatprep.subr.bf16.mxu0 %v4943_v9 }
 0x23f   : > { %4946 = vmatpush3.bf16.msra.mxu0 %v4943_v9 }
 0x240   : > { %4948 = vmatprep.subr.bf16.mxu0 %v4947_v29 }
 0x243   : > { %4950 = vmatpush3.bf16.msra.mxu0 %v4947_v29 }
 0x244   : > { %4952 = vmatprep.subr.bf16.mxu0 %v4951_v13 }
 0x247   : > { %4954 = vmatpush3.bf16.msra.mxu0 %v4951_v13 }
 0x248   : > { %4956 = vmatprep.subr.bf16.mxu0 %v4955_v16 }
 0x24b   : > { %4958 = vmatpush3.bf16.msra.mxu0 %v4955_v16 }
 0x24c   : > { %4960 = vmatprep.subr.bf16.mxu0 %v6337_v19 }
 0x2be   : > { %v1249_v20 = vpop.f32.mrb[18].mxu0 }
 0x2bf   : > { %v4032_v50 = vpop.f32.mrb[19].mxu0 }
 0x2c2   : > { %v1254_v21 = vpop.f32.mrb[20].mxu0 }
 0x2c3   : > { %v4035_v22 = vpop.f32.mrb[21].mxu0 }
 0x2c6   : > { %v1169_v24 = vpop.f32.mrb[12].mxu1  ;;  %v1259_v25 = vpop.f32.mrb[22].mxu0 }
 0x2c7   : > { %v1250_v26 = vadd.f32 %v1249_v20, %v1169_v24  ;;  %v3991_v27 = vpop.f32.mrb[13].mxu1  ;;  %v4038_v30 = vpop.f32.mrb[23].mxu0 }
 0x2ca   : > { %v1174_v31 = vpop.f32.mrb[14].mxu1 }
 0x2cb   : > { %v1255_v32 = vadd.f32 %v1254_v21, %v1174_v31  ;;  %v3994_v33 = vpop.f32.mrb[15].mxu1 }
 0x2cc   : > { %v1618_v33 = vld [vmem:[#allocation7 + $0x18] sm:$0xff] }
 0x2ce   : > { %v1179_v34 = vpop.f32.mrb[16].mxu1 }
 0x2cf   : > { %v1260_v36 = vadd.f32 %v1259_v25, %v1179_v34  ;;  %v3997_v37 = vpop.f32.mrb[17].mxu1 }
 0x2de   : > { %v1462_v38 = vpop.f32.mrb[24].mxu0 }
 0x2df   : > { %v4114_v40 = vpop.f32.mrb[25].mxu0 }
 0x2e2   : > { %v1467_v41 = vpop.f32.mrb[26].mxu0 }
 0x2e3   : > { %v4117_v35 = vpop.f32.mrb[27].mxu0 }
 0x2e6   : > { %v1354_v42 = vpop.f32.mrb[18].mxu1  ;;  %v1472_v43 = vpop.f32.mrb[28].mxu0 }
 0x2e7   : > { %v1368_v44 = vadd.f32 %v1354_v42, %v1250_v26  ;;  %v4073_v57 = vpop.f32.mrb[19].mxu1  ;;  %v4120_v46 = vpop.f32.mrb[29].mxu0 }
 0x2e8   : > { %v1619_v46 = vld [vmem:[#allocation7 + $0x20] sm:$0xff] }
 0x2e9   : > { %v1476_v58 = vadd.f32 %v1462_v38, %v1368_v44 }
 0x2ea   : > { %v1359_v49 = vpop.f32.mrb[20].mxu1 }
 0x2eb   : > { %v1369_v51 = vadd.f32 %v1359_v49, %v1255_v32  ;;  %v4076_v52 = vpop.f32.mrb[21].mxu1  ;;  %v1617_v32 = vld [vmem:[#allocation7 + $0x10] sm:$0xff] }
 0x2ed   : > { %v1477_v53 = vadd.f32 %v1467_v41, %v1369_v51 }
 0x2ee   : > { %v1364_v54 = vpop.f32.mrb[22].mxu1 }
 0x2ef   : > { %v1370_v55 = vadd.f32 %v1364_v54, %v1260_v36  ;;  %v4079_v59 = vpop.f32.mrb[23].mxu1  ;;  %v2158_v54 = vld [vmem:[#allocation8 + $0x80] sm:$0xff] }
 0x2f0   : > { %v2160_v59 = vld [vmem:[#allocation8 + $0x90] sm:$0xff] }
 0x2f1   : > { %v1478_v60 = vadd.f32 %v1472_v43, %v1370_v55  ;;  %v4963_v43 = vpack.c.bf16 %v1618_v33, %v1617_v32  ;;  %v2159_v55 = vld [vmem:[#allocation8 + $0x88] sm:$0xff]  ;;  %v1826_v32 = vld [vmem:[#allocation7 + $0x150] sm:$0xff]  ;;  %v1827_v33 = vld [vmem:[#allocation7 + $0x158] sm:$0xff] }
 0x306   : > { %v1570_v61 = vpop.f32.mrb[24].mxu1 }
 0x307   : > { %v1584_v63 = vadd.f32 %v1570_v61, %v1476_v58  ;;  %v4155_v2 = vpop.f32.mrb[25].mxu1  ;;  %v1620_v58 = vld [vmem:[#allocation7 + $0x28] sm:$0xff]  ;;  %v2161_v61 = vld [vmem:[#allocation8 + $0x98] sm:$0xff] }
 0x308   : > { %v2162_v2 = vld [vmem:[#allocation8 + $0xa0] sm:$0xff] }
 0x309   : > { %v1594_v4 = vadd.f32 %v3286_v62, %v1584_v63  ;;  %v5091_v63 = vpack.c.bf16 %v2161_v61, %v2160_v59  ;;  %v1922_v59 = vld [vmem:[#allocation7 + $0x1a8] sm:$0xff]  ;;  %v1923_v61 = vld [vmem:[#allocation7 + $0x1b0] sm:$0xff] }
 0x30a   : > { %v1575_v47 = vpop.f32.mrb[26].mxu1 }
 0x30b   : > { %5518 = vtanh.f32 %v1594_v4  ;;  %v1585_v5 = vadd.f32 %v1575_v47, %v1477_v53  ;;  %v4158_v6 = vpop.f32.mrb[27].mxu1  ;;  %v2163_v4 = vld [vmem:[#allocation8 + $0xa8] sm:$0xff]  ;;  %v1621_v47 = vld [vmem:[#allocation7 + $0x30] sm:$0xff] }
 0x30c   : > { %v5095_v6 = vpack.c.bf16 %v2163_v4, %v2162_v2  ;;  %v1925_v2 = vld [vmem:[#allocation7 + $0x1c0] sm:$0xff]  ;;  %v1926_v4 = vld [vmem:[#allocation7 + $0x1c8] sm:$0xff] }
 0x30d   : > { %v1595_v3 = vadd.f32 %v3286_v62, %v1585_v5  ;;  %v1622_v5 = vld [vmem:[#allocation7 + $0x38] sm:$0xff] }
 0x30e   : > { %v1580_v7 = vpop.f32.mrb[28].mxu1 }
 0x30f   : > { %5520 = vtanh.f32 %v1595_v3  ;;  %v1586_v8 = vadd.f32 %v1580_v7, %v1478_v60  ;;  %v4161_v48 = vpop.f32.mrb[29].mxu1  ;;  %v5087_v60 = vpack.c.bf16 %v2159_v55, %v2158_v54  ;;  %v4971_v3 = vpack.c.bf16 %v1622_v5, %v1621_v47  ;;  %v1623_v7 = vld [vmem:[#allocation7 + $0x40] sm:$0xff]  ;;  %v1927_v5 = vld [vmem:[#allocation7 + $0x1d0] sm:$0xff] }
 0x310   : > { %v1625_v48 = vld [vmem:[#allocation7 + $0x50] sm:$0xff]  ;;  %v1921_v55 = vld [vmem:[#allocation7 + $0x1a0] sm:$0xff]  ;;  %v5039_v47 = vpack.c.bf16 %v1926_v4, %v1925_v2 }
 0x311   : > { %v1596_v56 = vadd.f32 %v3286_v62, %v1586_v8  ;;  %v4967_v62 = vpack.c.bf16 %v1620_v58, %v1619_v46  ;;  %5088 = vmatprep.subr.bf16.mxu1 %v5087_v60  ;;  %v1624_v8 = vld [vmem:[#allocation7 + $0x48] sm:$0xff]  ;;  %v1919_v58 = vld [vmem:[#allocation7 + $0x190] sm:$0xff] }
 0x312   : > { %5090 = vmatpush3.bf16.msra.mxu1 %v5087_v60  ;;  %v5031_v60 = vpack.c.bf16 %v1922_v59, %v1921_v55  ;;  %v3287_v59 = vld [vmem:[%s6583_s8] ss:$0 sm:$0xff] }
 0x313   : > { %5522 = vtanh.f32 %v1596_v56  ;;  %5092 = vmatprep.subr.bf16.mxu1 %v5091_v63  ;;  %v1626_v56 = vld [vmem:[#allocation7 + $0x58] sm:$0xff] }
 0x315   : > { %v5519_v9 = vpop.eup %5518 }
 0x316   : > { %v1604_v10 = vrot.slane %v5519_v9, 6  ;;  %5094 = vmatpush3.bf16.msra.mxu1 %v5091_v63  ;;  %v4979_v9 = vpack.c.bf16 %v1626_v56, %v1625_v48  ;;  %v2019_v56 = vld [vmem:[#allocation7 + $0x200] sm:$0xff] }
 0x317   : > { %5096 = vmatprep.subr.bf16.mxu1 %v5095_v6 }
 0x318   : > { %v1612_v29 = vsel %vm6222_vm7, %v1604_v10, 0.0 }
 0x319   : > { %v5521_v28 = vpop.eup %5520  ;;  %v1651_v45 = vrot.slane %v1612_v29, 3  ;;  %v1733_v16 = vrot.slane %v1612_v29, 2  ;;  %v1832_v17 = vrot.slane %v1612_v29, 4  ;;  %v1934_v22 = vrot.slane %v1612_v29, 5 }
 0x31a   : > { %v1605_v11 = vrot.slane %v5521_v28, 6  ;;  %v2035_v25 = vrot.slane %v1612_v29, 6  ;;  %5098 = vmatpush3.bf16.msra.mxu1 %v5095_v6  ;;  %v1628_v28 = vld [vmem:[#allocation7 + $0x68] sm:$0xff]  ;;  %v1928_v6 = vld [vmem:[#allocation7 + $0x1d8] sm:$0xff] }
 0x31c   : > { %v1606_v12 = vsel %vm1603_vm14, %v1604_v10, %v1605_v11  ;;  %v1627_v10 = vld [vmem:[#allocation7 + $0x60] sm:$0xff] }
 0x31d   : > { %v5523_v13 = vpop.eup %5522  ;;  %v1613_v15 = vsel %vm6232_vm10, %v1606_v12, 0.0  ;;  %v4983_v29 = vpack.c.bf16 %v1628_v28, %v1627_v10  ;;  %v1630_v12 = vld [vmem:[#allocation7 + $0x78] sm:$0xff]  ;;  %v2021_v28 = vld [vmem:[#allocation7 + $0x210] sm:$0xff] }
 0x31e   : > { %v1607_v18 = vrot.slane %v5523_v13, 6  ;;  %v1652_v20 = vrot.slane %v1613_v15, 3  ;;  %v1734_v50 = vrot.slane %v1613_v15, 2  ;;  %v1833_v21 = vrot.slane %v1613_v15, 4 }
 0x31f   : > { %v1935_v24 = vrot.slane %v1613_v15, 5  ;;  %v2036_v26 = vrot.slane %v1613_v15, 6  ;;  %v1816_v15 = vld [vmem:[#allocation7 + $0x100] sm:$0xff] }
 0x320   : > { %v1608_v27 = vsel %vm1603_vm14, %v1605_v11, %v1607_v18  ;;  %v1653_v30 = vsel %vm823_vm4, %v1651_v45, %v1652_v20  ;;  %v1735_v31 = vsel %vm712_vm3, %v1733_v16, %v1734_v50  ;;  %v6352_v34 = vsel %vm934_vm1, %v1832_v17, %v1833_v21  ;;  %v1629_v11 = vld [vmem:[#allocation7 + $0x70] sm:$0xff]  ;;  %v1817_v45 = vld [vmem:[#allocation7 + $0x108] sm:$0xff]  ;;  %v1819_v18 = vld [vmem:[#allocation7 + $0x118] sm:$0xff] }
 0x321   : > { %v1614_v36 = vsel %vm6245_vm13, %v1608_v27, 0.0  ;;  %4194 = vmatprep.mubr.f32.mxu0 %v1653_v30  ;;  %v6357_v37 = vsel %vm1933_vm15, %v1934_v22, %v1935_v24  ;;  %v6360_v38 = vsel %vm1603_vm14, %v2035_v25, %v2036_v26  ;;  %v4987_v13 = vpack.c.bf16 %v1630_v12, %v1629_v11  ;;  %v1818_v17 = vld [vmem:[#allocation7 + $0x110] sm:$0xff]  ;;  %v1823_v25 = vld [vmem:[#allocation7 + $0x138] sm:$0xff]  ;;  %v1824_v27 = vld [vmem:[#allocation7 + $0x140] sm:$0xff] }
 0x322   : > { %v1654_v40 = vrot.slane %v1614_v36, 3  ;;  %v1736_v41 = vrot.slane %v1614_v36, 2  ;;  %v1835_v35 = vrot.slane %v1614_v36, 4  ;;  %v1937_v42 = vrot.slane %v1614_v36, 5  ;;  %v1825_v30 = vld [vmem:[#allocation7 + $0x148] sm:$0xff]  ;;  %v2023_v12 = vld [vmem:[#allocation7 + $0x220] sm:$0xff] }
 0x323   : > { %v2038_v44 = vrot.slane %v1614_v36, 6  ;;  %v4991_v16 = vpack.c.bf16 %v1817_v45, %v1816_v15  ;;  %v5011_v36 = vpack.c.bf16 %v1827_v33, %v1826_v32  ;;  %v2025_v45 = vld [vmem:[#allocation7 + $0x230] sm:$0xff]  ;;  %v2165_v32 = vld [vmem:[#allocation8 + $0xb8] sm:$0xff] }
 0x324   : > { %v1655_v57 = vsel %vm823_vm4, %v1652_v20, %v1654_v40  ;;  %v1737_v49 = vsel %vm712_vm3, %v1734_v50, %v1736_v41  ;;  %v6365_v51 = vsel %vm934_vm1, %v1833_v21, %v1835_v35  ;;  %v6368_v52 = vsel %vm1933_vm15, %v1935_v24, %v1937_v42  ;;  %v1820_v50 = vld [vmem:[#allocation7 + $0x120] sm:$0xff]  ;;  %v1821_v21 = vld [vmem:[#allocation7 + $0x128] sm:$0xff]  ;;  %v1822_v24 = vld [vmem:[#allocation7 + $0x130] sm:$0xff] }
 0x325   : > { %4195 = vmatmul.mubr.f32.vlgmr.msra.gmra.mrb[30].mxu0 %v1655_v57  ;;  %v6371_v53 = vsel %vm1603_vm14, %v2036_v26, %v2038_v44  ;;  %v4995_v20 = vpack.c.bf16 %v1819_v18, %v1818_v17  ;;  %v4999_v22 = vpack.c.bf16 %v1821_v21, %v1820_v50  ;;  %v5003_v26 = vpack.c.bf16 %v1823_v25, %v1822_v24  ;;  %v1828_v40 = vld [vmem:[#allocation7 + $0x160] sm:$0xff]  ;;  %v1829_v41 = vld [vmem:[#allocation7 + $0x168] sm:$0xff]  ;;  %v1830_v35 = vld [vmem:[#allocation7 + $0x170] sm:$0xff] }
 0x326   : > { %4962 = vmatpush3.bf16.msra.mxu0 %v6337_v19  ;;  %4229 = vmatprep.mubr.f32.mxu0 %v1735_v31  ;;  %v4975_v19 = vpack.c.bf16 %v1624_v8, %v1623_v7  ;;  %v5007_v31 = vpack.c.bf16 %v1825_v30, %v1824_v27  ;;  %v1831_v42 = vld [vmem:[#allocation7 + $0x178] sm:$0xff]  ;;  %v1917_v44 = vld [vmem:[#allocation7 + $0x180] sm:$0xff]  ;;  %v1918_v57 = vld [vmem:[#allocation7 + $0x188] sm:$0xff]  ;;  %vm2457_vm4 = vcmask 1040384  }
 0x327   : > { %4964 = vmatprep.subr.bf16.mxu0 %v4963_v43  ;;  %v5023_v46 = vpack.c.bf16 %v1918_v57, %v1917_v44  ;;  %v1930_v7 = vld [vmem:[#allocation7 + $0x1e8] sm:$0xff]  ;;  %v1931_v8 = vld [vmem:[#allocation7 + $0x1f0] sm:$0xff]  ;;  %v2027_v18 = vld [vmem:[#allocation7 + $0x240] sm:$0xff] }
 0x328   : > { %v2029_v21 = vld [vmem:[#allocation7 + $0x250] sm:$0xff]  ;;  %v2031_v24 = vld [vmem:[#allocation7 + $0x260] sm:$0xff]  ;;  %v2032_v25 = vld [vmem:[#allocation7 + $0x268] sm:$0xff] }
 0x329   : > { %v2034_v27 = vld [vmem:[#allocation7 + $0x278] sm:$0xff]  ;;  %v2172_v57 = vld [vmem:[#allocation8 + $0xf0] sm:$0xff] }
 0x32a   : > { %4966 = vmatpush3.bf16.msra.mxu0 %v4963_v43  ;;  %v5019_v43 = vpack.c.bf16 %v1831_v42, %v1830_v35  ;;  %v2169_v35 = vld [vmem:[#allocation8 + $0xd8] sm:$0xff] }
 0x32b   : > { %4968 = vmatprep.subr.bf16.mxu0 %v4967_v62 }
 0x32e   : > { %4970 = vmatpush3.bf16.msra.mxu0 %v4967_v62  ;;  %v1924_v62 = vld [vmem:[#allocation7 + $0x1b8] sm:$0xff] }
 0x32f   : > { %4972 = vmatprep.subr.bf16.mxu0 %v4971_v3  ;;  %v5035_v63 = vpack.c.bf16 %v1924_v62, %v1923_v61 }
 0x332   : > { %4974 = vmatpush3.bf16.msra.mxu0 %v4971_v3  ;;  %v1929_v3 = vld [vmem:[#allocation7 + $0x1e0] sm:$0xff] }
 0x333   : > { %4976 = vmatprep.subr.bf16.mxu0 %v4975_v19 }
 0x336   : > { %4978 = vmatpush3.bf16.msra.mxu0 %v4975_v19  ;;  %v1932_v19 = vld [vmem:[#allocation7 + $0x1f8] sm:$0xff] }
 0x337   : > { %4980 = vmatprep.subr.bf16.mxu0 %v4979_v9  ;;  %v5051_v48 = vpack.c.bf16 %v1932_v19, %v1931_v8  ;;  %v2143_v19 = vld [vmem:[#allocation8 + $0x10] sm:$0xff] }
 0x33a   : > { %4982 = vmatpush3.bf16.msra.mxu0 %v4979_v9  ;;  %v2020_v9 = vld [vmem:[#allocation7 + $0x208] sm:$0xff] }
 0x33b   : > { %4984 = vmatprep.subr.bf16.mxu0 %v4983_v29  ;;  %v5055_v10 = vpack.c.bf16 %v2020_v9, %v2019_v56 }
 0x33e   : > { %4986 = vmatpush3.bf16.msra.mxu0 %v4983_v29  ;;  %v2022_v29 = vld [vmem:[#allocation7 + $0x218] sm:$0xff] }
 0x33f   : > { %4988 = vmatprep.subr.bf16.mxu0 %v4987_v13  ;;  %v5059_v11 = vpack.c.bf16 %v2022_v29, %v2021_v28 }
 0x342   : > { %4990 = vmatpush3.bf16.msra.mxu0 %v4987_v13  ;;  %v2024_v13 = vld [vmem:[#allocation7 + $0x228] sm:$0xff] }
 0x343   : > { %4992 = vmatprep.subr.bf16.mxu0 %v4991_v16  ;;  %v5063_v15 = vpack.c.bf16 %v2024_v13, %v2023_v12 }
 0x345   : > { %4230 = vmatmul.mubr.f32.vlgmr.msra.gmra.mrb[30].mxu0 %v1737_v49  ;;  %v1920_v49 = vld [vmem:[#allocation7 + $0x198] sm:$0xff] }
 0x346   : > { %4994 = vmatpush3.bf16.msra.mxu0 %v4991_v16  ;;  %4264 = vmatprep.mubr.f32.mxu0 %v6352_v34  ;;  %v5015_v34 = vpack.c.bf16 %v1829_v41, %v1828_v40  ;;  %v5027_v54 = vpack.c.bf16 %v1920_v49, %v1919_v58  ;;  %v2026_v16 = vld [vmem:[#allocation7 + $0x238] sm:$0xff]  ;;  %v2167_v40 = vld [vmem:[#allocation8 + $0xc8] sm:$0xff]  ;;  %v2141_v49 = vld [vmem:[#allocation8] sm:$0xff] }
 0x347   : > { %4996 = vmatprep.subr.bf16.mxu0 %v4995_v20  ;;  %v5067_v17 = vpack.c.bf16 %v2026_v16, %v2025_v45  ;;  %v2145_v45 = vld [vmem:[#allocation8 + $0x20] sm:$0xff]  ;;  %v2146_v16 = vld [vmem:[#allocation8 + $0x28] sm:$0xff] }
 0x34a   : > { %4998 = vmatpush3.bf16.msra.mxu0 %v4995_v20  ;;  %v2028_v20 = vld [vmem:[#allocation7 + $0x248] sm:$0xff] }
 0x34b   : > { %5000 = vmatprep.subr.bf16.mxu0 %v4999_v22  ;;  %v5071_v50 = vpack.c.bf16 %v2028_v20, %v2027_v18 }
 0x34e   : > { %5002 = vmatpush3.bf16.msra.mxu0 %v4999_v22  ;;  %v2030_v22 = vld [vmem:[#allocation7 + $0x258] sm:$0xff] }
 0x34f   : > { %5004 = vmatprep.subr.bf16.mxu0 %v5003_v26 }
 0x352   : > { %5006 = vmatpush3.bf16.msra.mxu0 %v5003_v26  ;;  %v2033_v26 = vld [vmem:[#allocation7 + $0x270] sm:$0xff] }
 0x353   : > { %5008 = vmatprep.subr.bf16.mxu0 %v5007_v31  ;;  %v5083_v30 = vpack.c.bf16 %v2034_v27, %v2033_v26  ;;  %v2148_v26 = vld [vmem:[#allocation8 + $0x38] sm:$0xff] }
 0x356   : > { %5010 = vmatpush3.bf16.msra.mxu0 %v5007_v31  ;;  %v2164_v31 = vld [vmem:[#allocation8 + $0xb0] sm:$0xff] }
 0x357   : > { %5012 = vmatprep.subr.bf16.mxu0 %v5011_v36  ;;  %v5099_v33 = vpack.c.bf16 %v2165_v32, %v2164_v31  ;;  %v2679_v31 = vld [vmem:[#allocation10 + $0xa0] sm:$0xff]  ;;  %v2680_v32 = vld [vmem:[#allocation10 + $0xa8] sm:$0xff] }
 0x359   : > { %5100 = vmatprep.subr.bf16.mxu1 %v5099_v33 }
 0x35a   : > { %5014 = vmatpush3.bf16.msra.mxu0 %v5011_v36  ;;  %5102 = vmatpush3.bf16.msra.mxu1 %v5099_v33  ;;  %v2166_v36 = vld [vmem:[#allocation8 + $0xc0] sm:$0xff] }
 0x35b   : > { %5016 = vmatprep.subr.bf16.mxu0 %v5015_v34  ;;  %v5103_v41 = vpack.c.bf16 %v2167_v40, %v2166_v36  ;;  %v2149_v33 = vld [vmem:[#allocation8 + $0x40] sm:$0xff]  ;;  %v2150_v36 = vld [vmem:[#allocation8 + $0x48] sm:$0xff]  ;;  %v5254_v40 = vpack.c.bf16 %v2680_v32, %v2679_v31  ;;  %v2448_v31 = vld [vmem:[#allocation8 + $0x1b8] sm:$0xff] }
 0x35d   : > { %5104 = vmatprep.subr.bf16.mxu1 %v5103_v41 }
 0x35e   : > { %5018 = vmatpush3.bf16.msra.mxu0 %v5015_v34  ;;  %5106 = vmatpush3.bf16.msra.mxu1 %v5103_v41  ;;  %v2168_v34 = vld [vmem:[#allocation8 + $0xd0] sm:$0xff]  ;;  %v5135_v41 = vpack.c.bf16 %v2150_v36, %v2149_v33  ;;  %v2449_v33 = vld [vmem:[#allocation8 + $0x1c0] sm:$0xff]  ;;  %v2450_v36 = vld [vmem:[#allocation8 + $0x1c8] sm:$0xff] }
 0x35f   : > { %5020 = vmatprep.subr.bf16.mxu0 %v5019_v43  ;;  %v5107_v42 = vpack.c.bf16 %v2169_v35, %v2168_v34  ;;  %v2151_v34 = vld [vmem:[#allocation8 + $0x50] sm:$0xff]  ;;  %v2152_v35 = vld [vmem:[#allocation8 + $0x58] sm:$0xff] }
 0x361   : > { %5108 = vmatprep.subr.bf16.mxu1 %v5107_v42 }
 0x362   : > { %5022 = vmatpush3.bf16.msra.mxu0 %v5019_v43  ;;  %5110 = vmatpush3.bf16.msra.mxu1 %v5107_v42  ;;  %v2170_v43 = vld [vmem:[#allocation8 + $0xe0] sm:$0xff]  ;;  %v5139_v42 = vpack.c.bf16 %v2152_v35, %v2151_v34 }
 0x363   : > { %5024 = vmatprep.subr.bf16.mxu0 %v5023_v46  ;;  %v2453_v35 = vld [vmem:[#allocation8 + $0x1e0] sm:$0xff] }
 0x365   : > { %4265 = vmatmul.mubr.f32.vlgmr.msra.gmra.mrb[30].mxu0 %v6365_v51  ;;  %v5043_v51 = vpack.c.bf16 %v1928_v6, %v1927_v5 }
 0x366   : > { %5026 = vmatpush3.bf16.msra.mxu0 %v5023_v46  ;;  %4299 = vmatprep.mubr.f32.mxu0 %v6357_v37  ;;  %v5047_v37 = vpack.c.bf16 %v1930_v7, %v1929_v3  ;;  %v2173_v46 = vld [vmem:[#allocation8 + $0xf8] sm:$0xff] }
 0x367   : > { %5028 = vmatprep.subr.bf16.mxu0 %v5027_v54  ;;  %v5115_v58 = vpack.c.bf16 %v2173_v46, %v2172_v57  ;;  %v2155_v57 = vld [vmem:[#allocation8 + $0x70] sm:$0xff]  ;;  %v2156_v46 = vld [vmem:[#allocation8 + $0x78] sm:$0xff] }
 0x36a   : > { %5030 = vmatpush3.bf16.msra.mxu0 %v5027_v54  ;;  %v2142_v54 = vld [vmem:[#allocation8 + $0x8] sm:$0xff] }
 0x36b   : > { %5032 = vmatprep.subr.bf16.mxu0 %v5031_v60  ;;  %v5119_v55 = vpack.c.bf16 %v2142_v54, %v2141_v49  ;;  %v2340_v49 = vld [vmem:[#allocation8 + $0x100] sm:$0xff]  ;;  %v2341_v54 = vld [vmem:[#allocation8 + $0x108] sm:$0xff] }
 0x36e   : > { %5034 = vmatpush3.bf16.msra.mxu0 %v5031_v60 }
 0x36f   : > { %5036 = vmatprep.subr.bf16.mxu0 %v5035_v63 }
 0x372   : > { %5038 = vmatpush3.bf16.msra.mxu0 %v5035_v63 }
 0x373   : > { %5040 = vmatprep.subr.bf16.mxu0 %v5039_v47 }
 0x376   : > { %5042 = vmatpush3.bf16.msra.mxu0 %v5039_v47 }
 0x377   : > { %5044 = vmatprep.subr.bf16.mxu0 %v5043_v51 }
 0x37a   : > { %5046 = vmatpush3.bf16.msra.mxu0 %v5043_v51 }
 0x37b   : > { %5048 = vmatprep.subr.bf16.mxu0 %v5047_v37 }
 0x37e   : > { %5050 = vmatpush3.bf16.msra.mxu0 %v5047_v37 }
 0x37f   : > { %5052 = vmatprep.subr.bf16.mxu0 %v5051_v48 }
 0x382   : > { %5054 = vmatpush3.bf16.msra.mxu0 %v5051_v48  ;;  %v2144_v48 = vld [vmem:[#allocation8 + $0x18] sm:$0xff] }
 0x383   : > { %5056 = vmatprep.subr.bf16.mxu0 %v5055_v10 }
 0x385   : > { %4300 = vmatmul.mubr.f32.vlgmr.msra.gmra.mrb[30].mxu0 %v6368_v52  ;;  %v5075_v52 = vpack.c.bf16 %v2030_v22, %v2029_v21  ;;  %v2676_v21 = vld [vmem:[#allocation10 + $0x88] sm:$0xff] }
 0x386   : > { %5058 = vmatpush3.bf16.msra.mxu0 %v5055_v10  ;;  %4334 = vmatprep.mubr.f32.mxu0 %v6360_v38  ;;  %v5079_v38 = vpack.c.bf16 %v2032_v25, %v2031_v24  ;;  %v2677_v24 = vld [vmem:[#allocation10 + $0x90] sm:$0xff]  ;;  %v2678_v25 = vld [vmem:[#allocation10 + $0x98] sm:$0xff] }
 0x387   : > { %5060 = vmatprep.subr.bf16.mxu0 %v5059_v11  ;;  %v5251_v27 = vpack.c.bf16 %v2678_v25, %v2677_v24 }
 0x38a   : > { %5062 = vmatpush3.bf16.msra.mxu0 %v5059_v11 }
 0x38b   : > { %5064 = vmatprep.subr.bf16.mxu0 %v5063_v15 }
 0x38e   : > { %5066 = vmatpush3.bf16.msra.mxu0 %v5063_v15  ;;  %v5123_v15 = vpack.c.bf16 %v2144_v48, %v2143_v19  ;;  %v2347_v19 = vld [vmem:[#allocation8 + $0x138] sm:$0xff]  ;;  %v2348_v48 = vld [vmem:[#allocation8 + $0x140] sm:$0xff] }
 0x38f   : > { %5068 = vmatprep.subr.bf16.mxu0 %v5067_v17 }
 0x392   : > { %5070 = vmatpush3.bf16.msra.mxu0 %v5067_v17 }
 0x393   : > { %5072 = vmatprep.subr.bf16.mxu0 %v5071_v50 }
 0x396   : > { %5074 = vmatpush3.bf16.msra.mxu0 %v5071_v50  ;;  %v2675_v50 = vld [vmem:[#allocation10 + $0x80] sm:$0xff] }
 0x397   : > { %5076 = vmatprep.subr.bf16.mxu0 %v5075_v52  ;;  %v5248_v22 = vpack.c.bf16 %v2676_v21, %v2675_v50  ;;  %v2443_v21 = vld [vmem:[#allocation8 + $0x190] sm:$0xff] }
 0x39a   : > { %5078 = vmatpush3.bf16.msra.mxu0 %v5075_v52  ;;  %v5127_v52 = vpack.c.bf16 %v2146_v16, %v2145_v45  ;;  %v2441_v16 = vld [vmem:[#allocation8 + $0x180] sm:$0xff] }
 0x39b   : > { %5080 = vmatprep.subr.bf16.mxu0 %v5079_v38 }
 0x39e   : > { %5082 = vmatpush3.bf16.msra.mxu0 %v5079_v38  ;;  %v2147_v38 = vld [vmem:[#allocation8 + $0x30] sm:$0xff] }
 0x39f   : > { %5084 = vmatprep.subr.bf16.mxu0 %v5083_v30 }
 0x3a2   : > { %5086 = vmatpush3.bf16.msra.mxu0 %v5083_v30  ;;  %v5131_v30 = vpack.c.bf16 %v2148_v26, %v2147_v38  ;;  %v2445_v38 = vld [vmem:[#allocation8 + $0x1a0] sm:$0xff]  ;;  %v2446_v26 = vld [vmem:[#allocation8 + $0x1a8] sm:$0xff] }
 0x3a3   : > { %5247 = vmatprep.subr.bf16.mxu0 %v5787_v0 }
 0x3a5   : > { %4335 = vmatmul.mubr.f32.vlgmr.msra.gmra.mrb[30].mxu0 %v6371_v53  ;;  %v2171_v53 = vld [vmem:[#allocation8 + $0xe8] sm:$0xff] }
 0x3a6   : > { %4544 = vmatprep.mubr.msk.f32.mxu0 %vm5788_vm0, %v5789_v1  ;;  %v5111_v44 = vpack.c.bf16 %v2171_v53, %v2170_v43  ;;  %5249 = vmatpush3.bf16.msra.mxu0 %v5248_v22  ;;  %v2153_v43 = vld [vmem:[#allocation8 + $0x60] sm:$0xff]  ;;  %v2154_v53 = vld [vmem:[#allocation8 + $0x68] sm:$0xff]  ;;  %v2444_v22 = vld [vmem:[#allocation8 + $0x198] sm:$0xff] }
 0x3a7   : > { %5250 = vmatprep.subr.bf16.mxu0 %v5787_v0  ;;  %v5187_v24 = vpack.c.bf16 %v2444_v22, %v2443_v21  ;;  %v2664_v21 = vld [vmem:[#allocation10 + $0x30] sm:$0xff]  ;;  %v2665_v22 = vld [vmem:[#allocation10 + $0x38] sm:$0xff] }
 0x3a8   : > { %5112 = vmatprep.subr.bf16.mxu1 %v5111_v44 }
 0x3a9   : > { %5114 = vmatpush3.bf16.msra.mxu1 %v5111_v44  ;;  %v5143_v44 = vpack.c.bf16 %v2154_v53, %v2153_v43  ;;  %v2455_v43 = vld [vmem:[#allocation8 + $0x1f0] sm:$0xff]  ;;  %v2456_v53 = vld [vmem:[#allocation8 + $0x1f8] sm:$0xff] }
 0x3aa   : > { %5116 = vmatprep.subr.bf16.mxu1 %v5115_v58  ;;  %5252 = vmatpush3.bf16.msra.mxu0 %v5251_v27  ;;  %v5191_v27 = vpack.c.bf16 %v2446_v26, %v2445_v38  ;;  %v2666_v38 = vld [vmem:[#allocation10 + $0x40] sm:$0xff] }
 0x3ab   : > { %5253 = vmatprep.subr.bf16.mxu0 %v5787_v0 }
 0x3ad   : > { %5118 = vmatpush3.bf16.msra.mxu1 %v5115_v58  ;;  %v5147_v58 = vpack.c.bf16 %v2156_v46, %v2155_v57  ;;  %v2543_v57 = vld [vmem:[#allocation8 + $0x200] sm:$0xff]  ;;  %v2544_v46 = vld [vmem:[#allocation8 + $0x208] sm:$0xff] }
 0x3ae   : > { %5120 = vmatprep.subr.bf16.mxu1 %v5119_v55  ;;  %5255 = vmatpush3.bf16.msra.mxu0 %v5254_v40  ;;  %v2451_v40 = vld [vmem:[#allocation8 + $0x1d0] sm:$0xff] }
 0x3af   : > { %5256 = vmatprep.subr.bf16.mxu0 %v5787_v0 }
 0x478   : > { %v4336_v60 = vpop.f32.mrb[30].mxu0 }
 0x479   : > { %v2127_v61 = vadd.f32 %v4336_v60, %v3287_v59  ;;  %v2108_v62 = vpop.f32.mrb[31].mxu0  ;;  %v2343_v60 = vld [vmem:[#allocation8 + $0x118] sm:$0xff] }
 0x47a   : > { %v2126_v63 = vadd.f32 %v3287_v59, %v2108_v62  ;;  %v2342_v59 = vld [vmem:[#allocation8 + $0x110] sm:$0xff] }
 0x47b   : > { %5524 = vtanh.f32 %v2127_v61 }
 0x47c   : > { %5526 = vtanh.f32 %v2126_v63  ;;  %v5155_v63 = vpack.c.bf16 %v2343_v60, %v2342_v59  ;;  %v2547_v59 = vld [vmem:[#allocation8 + $0x220] sm:$0xff]  ;;  %v2548_v60 = vld [vmem:[#allocation8 + $0x228] sm:$0xff] }
 0x485   : > { %v5525_v2 = vpop.eup %5524 }
 0x486   : > { %v5527_v4 = vpop.eup %5526  ;;  %v6386_v47 = vrot.slane %v5525_v2, 4  ;;  %v2344_v2 = vld [vmem:[#allocation8 + $0x120] sm:$0xff] }
 0x487   : > { %v2132_v5 = vrot.slane %v5527_v4, 4  ;;  %v2345_v4 = vld [vmem:[#allocation8 + $0x128] sm:$0xff] }
 0x488   : > { %v6391_v6 = vsel %vm6245_vm13, %v6386_v47, 0.0 }
 0x489   : > { %v6395_v51 = vsel %vm934_vm1, %v2132_v5, %v6386_v47  ;;  %v6399_v3 = vsel %vm6222_vm7, %v2132_v5, 0.0  ;;  %v2180_v8 = vrot.slane %v6391_v6, 5  ;;  %v2461_v11 = vrot.slane %v6391_v6, 7 }
 0x48a   : > { %v6404_v7 = vsel %vm6232_vm10, %v6395_v51, 0.0  ;;  %v2177_v37 = vrot.slane %v6399_v3, 5  ;;  %v2259_v9 = vrot.slane %v6399_v3, 4  ;;  %v2458_v28 = vrot.slane %v6399_v3, 7 }
 0x48b   : > { %v2178_v56 = vrot.slane %v6404_v7, 5  ;;  %v2260_v10 = vrot.slane %v6404_v7, 4  ;;  %v2459_v29 = vrot.slane %v6404_v7, 7  ;;  %v2356_v61 = vrot.slane %v6399_v3, 6 }
 0x48c   : > { %v2357_v62 = vrot.slane %v6404_v7, 6 }
 0x48d   : > { %v2179_v12 = vsel %vm1933_vm15, %v2177_v37, %v2178_v56  ;;  %v2181_v13 = vsel %vm1933_vm15, %v2178_v56, %v2180_v8  ;;  %v6417_v17 = vsel %vm2457_vm4, %v2458_v28, %v2459_v29  ;;  %v6420_v18 = vsel %vm2457_vm4, %v2459_v29, %v2461_v11  ;;  %v2346_v8 = vld [vmem:[#allocation8 + $0x130] sm:$0xff]  ;;  %v2349_v56 = vld [vmem:[#allocation8 + $0x148] sm:$0xff]  ;;  %v2351_v29 = vld [vmem:[#allocation8 + $0x158] sm:$0xff] }
 0x48e   : > { %4369 = vmatprep.mubr.f32.mxu1 %v2179_v12  ;;  %v2261_v20 = vsel %vm934_vm1, %v2259_v9, %v2260_v10  ;;  %v2358_v5 = vsel %vm1603_vm14, %v2356_v61, %v2357_v62  ;;  %v5159_v37 = vpack.c.bf16 %v2345_v4, %v2344_v2  ;;  %v5163_v3 = vpack.c.bf16 %v2347_v19, %v2346_v8  ;;  %v2350_v28 = vld [vmem:[#allocation8 + $0x150] sm:$0xff]  ;;  %v2353_v11 = vld [vmem:[#allocation8 + $0x168] sm:$0xff]  ;;  %v2551_v4 = vld [vmem:[#allocation8 + $0x240] sm:$0xff] }
 0x48f   : > { %4370 = vmatmul.mubr.f32.vlgmr.msra.gmra.mrb[30].mxu1 %v2181_v13  ;;  %v5167_v9 = vpack.c.bf16 %v2349_v56, %v2348_v48  ;;  %v5171_v7 = vpack.c.bf16 %v2351_v29, %v2350_v28  ;;  %v2354_v13 = vld [vmem:[#allocation8 + $0x170] sm:$0xff]  ;;  %v5223_v61 = vpack.c.bf16 %v2548_v60, %v2547_v59  ;;  %v2554_v19 = vld [vmem:[#allocation8 + $0x258] sm:$0xff]  ;;  %v2556_v48 = vld [vmem:[#allocation8 + $0x268] sm:$0xff] }
 0x490   : > { %5122 = vmatpush3.bf16.msra.mxu1 %v5119_v55  ;;  %4404 = vmatprep.mubr.f32.mxu1 %v2261_v20  ;;  %v5151_v55 = vpack.c.bf16 %v2341_v54, %v2340_v49  ;;  %v2442_v20 = vld [vmem:[#allocation8 + $0x188] sm:$0xff]  ;;  %v2545_v49 = vld [vmem:[#allocation8 + $0x210] sm:$0xff]  ;;  %v2546_v54 = vld [vmem:[#allocation8 + $0x218] sm:$0xff] }
 0x491   : > { %5124 = vmatprep.subr.bf16.mxu1 %v5123_v15  ;;  %v5183_v50 = vpack.c.bf16 %v2442_v20, %v2441_v16  ;;  %v2553_v8 = vld [vmem:[#allocation8 + $0x250] sm:$0xff]  ;;  %v2658_v29 = vld [vmem:[#allocation10] sm:$0xff] }
 0x492   : > { %v2557_v56 = vld [vmem:[#allocation8 + $0x270] sm:$0xff] }
 0x493   : > { %v2681_v20 = vld [vmem:[#allocation10 + $0xb0] sm:$0xff] }
 0x494   : > { %5126 = vmatpush3.bf16.msra.mxu1 %v5123_v15  ;;  %v2355_v15 = vld [vmem:[#allocation8 + $0x178] sm:$0xff] }
 0x495   : > { %5128 = vmatprep.subr.bf16.mxu1 %v5127_v52  ;;  %v5179_v45 = vpack.c.bf16 %v2355_v15, %v2354_v13  ;;  %v2662_v15 = vld [vmem:[#allocation10 + $0x20] sm:$0xff] }
 0x498   : > { %5130 = vmatpush3.bf16.msra.mxu1 %v5127_v52  ;;  %v2359_v52 = vrot.slane %v6391_v6, 6  ;;  %v5199_v6 = vpack.c.bf16 %v2450_v36, %v2449_v33  ;;  %v2668_v33 = vld [vmem:[#allocation10 + $0x50] sm:$0xff] }
 0x499   : > { %5132 = vmatprep.subr.bf16.mxu1 %v5131_v30 }
 0x49a   : > { %v2360_v25 = vsel %vm1603_vm14, %v2357_v62, %v2359_v52  ;;  %v2549_v62 = vld [vmem:[#allocation8 + $0x230] sm:$0xff]  ;;  %v5281_v52 = vpack.c.bf16 %v2665_v22, %v2664_v21 }
 0x49c   : > { %5134 = vmatpush3.bf16.msra.mxu1 %v5131_v30  ;;  %v2447_v30 = vld [vmem:[#allocation8 + $0x1b0] sm:$0xff] }
 0x49d   : > { %5136 = vmatprep.subr.bf16.mxu1 %v5135_v41  ;;  %v5195_v32 = vpack.c.bf16 %v2448_v31, %v2447_v30  ;;  %v2685_v31 = vld [vmem:[#allocation10 + $0xd0] sm:$0xff] }
 0x4a0   : > { %5138 = vmatpush3.bf16.msra.mxu1 %v5135_v41  ;;  %v2452_v41 = vld [vmem:[#allocation8 + $0x1d8] sm:$0xff] }
 0x4a1   : > { %5140 = vmatprep.subr.bf16.mxu1 %v5139_v42  ;;  %v5203_v34 = vpack.c.bf16 %v2452_v41, %v2451_v40  ;;  %v2687_v41 = vld [vmem:[#allocation10 + $0xe0] sm:$0xff] }
 0x4a4   : > { %5142 = vmatpush3.bf16.msra.mxu1 %v5139_v42  ;;  %v2454_v42 = vld [vmem:[#allocation8 + $0x1e8] sm:$0xff] }
 0x4a5   : > { %5144 = vmatprep.subr.bf16.mxu1 %v5143_v44 }
 0x4a8   : > { %5146 = vmatpush3.bf16.msra.mxu1 %v5143_v44  ;;  %v5211_v44 = vpack.c.bf16 %v2456_v53, %v2455_v43  ;;  %v2689_v53 = vld [vmem:[#allocation10 + $0xf0] sm:$0xff] }
 0x4a9   : > { %5148 = vmatprep.subr.bf16.mxu1 %v5147_v58 }
 0x4ac   : > { %5150 = vmatpush3.bf16.msra.mxu1 %v5147_v58  ;;  %v5215_v58 = vpack.c.bf16 %v2544_v46, %v2543_v57  ;;  %v2672_v57 = vld [vmem:[#allocation10 + $0x70] sm:$0xff] }
 0x4ad   : > { %5152 = vmatprep.subr.bf16.mxu1 %v5151_v55 }
 0x4af   : > { %4405 = vmatmul.mubr.f32.vlgmr.msra.gmra.mrb[30].mxu1 %v2260_v10  ;;  %v2352_v10 = vld [vmem:[#allocation8 + $0x160] sm:$0xff] }
 0x4b0   : > { %5154 = vmatpush3.bf16.msra.mxu1 %v5151_v55  ;;  %4439 = vmatprep.mubr.f32.mxu1 %v2358_v5  ;;  %v5175_v12 = vpack.c.bf16 %v2353_v11, %v2352_v10  ;;  %v5219_v55 = vpack.c.bf16 %v2546_v54, %v2545_v49  ;;  %v2552_v5 = vld [vmem:[#allocation8 + $0x248] sm:$0xff]  ;;  %v2660_v11 = vld [vmem:[#allocation10 + $0x10] sm:$0xff]  ;;  %v3290_v54 = vld [vmem:[%s6584_s9] ss:$0 sm:$0xff] }
 0x4b1   : > { %5156 = vmatprep.subr.bf16.mxu1 %v5155_v63 }
 0x4b4   : > { %5158 = vmatpush3.bf16.msra.mxu1 %v5155_v63  ;;  %v2550_v63 = vld [vmem:[#allocation8 + $0x238] sm:$0xff] }
 0x4b5   : > { %5160 = vmatprep.subr.bf16.mxu1 %v5159_v37  ;;  %v5227_v2 = vpack.c.bf16 %v2550_v63, %v2549_v62  ;;  %v2842_v63 = vld [vmem:[#allocation10 + $0x100] sm:$0xff] }
 0x4b8   : > { %5162 = vmatpush3.bf16.msra.mxu1 %v5159_v37  ;;  %v5231_v37 = vpack.c.bf16 %v2552_v5, %v2551_v4 }
 0x4b9   : > { %5164 = vmatprep.subr.bf16.mxu1 %v5163_v3 }
 0x4bc   : > { %5166 = vmatpush3.bf16.msra.mxu1 %v5163_v3  ;;  %v2555_v3 = vld [vmem:[#allocation8 + $0x260] sm:$0xff] }
 0x4bd   : > { %5168 = vmatprep.subr.bf16.mxu1 %v5167_v9 }
 0x4c0   : > { %5170 = vmatpush3.bf16.msra.mxu1 %v5167_v9  ;;  %v2558_v9 = vld [vmem:[#allocation8 + $0x278] sm:$0xff] }
 0x4c1   : > { %5172 = vmatprep.subr.bf16.mxu1 %v5171_v7  ;;  %v5243_v28 = vpack.c.bf16 %v2558_v9, %v2557_v56 }
 0x4c4   : > { %5174 = vmatpush3.bf16.msra.mxu1 %v5171_v7  ;;  %v2659_v7 = vld [vmem:[#allocation10 + $0x8] sm:$0xff] }
 0x4c5   : > { %5176 = vmatprep.subr.bf16.mxu1 %v5175_v12  ;;  %v5272_v10 = vpack.c.bf16 %v2659_v7, %v2658_v29 }
 0x4c8   : > { %5178 = vmatpush3.bf16.msra.mxu1 %v5175_v12  ;;  %v2661_v12 = vld [vmem:[#allocation10 + $0x18] sm:$0xff] }
 0x4c9   : > { %5180 = vmatprep.subr.bf16.mxu1 %v5179_v45  ;;  %v5275_v13 = vpack.c.bf16 %v2661_v12, %v2660_v11 }
 0x4cc   : > { %5182 = vmatpush3.bf16.msra.mxu1 %v5179_v45  ;;  %v2663_v45 = vld [vmem:[#allocation10 + $0x28] sm:$0xff] }
 0x4cd   : > { %5184 = vmatprep.subr.bf16.mxu1 %v5183_v50  ;;  %v5278_v16 = vpack.c.bf16 %v2663_v45, %v2662_v15  ;;  %v2845_v45 = vld [vmem:[#allocation10 + $0x118] sm:$0xff] }
 0x4ce   : > { %v5299_v22 = vpack.c.bf16 %v2845_v45, %v2844_v39  ;;  %v3035_v45 = vld [vmem:[#allocation10 + $0x260] sm:$0xff] }
 0x4cf   : > { %4440 = vmatmul.mubr.f32.vlgmr.msra.gmra.mrb[30].mxu1 %v2360_v25  ;;  %v2684_v25 = vld [vmem:[#allocation10 + $0xc8] sm:$0xff] }
 0x4d0   : > { %5186 = vmatpush3.bf16.msra.mxu1 %v5183_v50  ;;  %4474 = vmatprep.mubr.f32.mxu1 %v6417_v17  ;;  %v5207_v17 = vpack.c.bf16 %v2454_v42, %v2453_v35  ;;  %v2682_v50 = vld [vmem:[#allocation10 + $0xb8] sm:$0xff]  ;;  %v2670_v35 = vld [vmem:[#allocation10 + $0x60] sm:$0xff] }
 0x4d1   : > { %5188 = vmatprep.subr.bf16.mxu1 %v5187_v24 }
 0x4d4   : > { %5190 = vmatpush3.bf16.msra.mxu1 %v5187_v24  ;;  %v2683_v24 = vld [vmem:[#allocation10 + $0xc0] sm:$0xff] }
 0x4d5   : > { %5192 = vmatprep.subr.bf16.mxu1 %v5191_v27  ;;  %v5260_v26 = vpack.c.bf16 %v2684_v25, %v2683_v24  ;;  %v2846_v24 = vld [vmem:[#allocation10 + $0x120] sm:$0xff]  ;;  %v2847_v25 = vld [vmem:[#allocation10 + $0x128] sm:$0xff] }
 0x4d8   : > { %5194 = vmatpush3.bf16.msra.mxu1 %v5191_v27  ;;  %v2667_v27 = vld [vmem:[#allocation10 + $0x48] sm:$0xff] }
 0x4d9   : > { %5196 = vmatprep.subr.bf16.mxu1 %v5195_v32  ;;  %v5284_v30 = vpack.c.bf16 %v2667_v27, %v2666_v38  ;;  %v2934_v38 = vld [vmem:[#allocation10 + $0x1a0] sm:$0xff]  ;;  %v5302_v27 = vpack.c.bf16 %v2847_v25, %v2846_v24 }
 0x4dc   : > { %5198 = vmatpush3.bf16.msra.mxu1 %v5195_v32  ;;  %v2686_v32 = vld [vmem:[#allocation10 + $0xd8] sm:$0xff] }
 0x4dd   : > { %5200 = vmatprep.subr.bf16.mxu1 %v5199_v6  ;;  %v5263_v36 = vpack.c.bf16 %v2686_v32, %v2685_v31  ;;  %v2848_v31 = vld [vmem:[#allocation10 + $0x130] sm:$0xff]  ;;  %v2849_v32 = vld [vmem:[#allocation10 + $0x138] sm:$0xff] }
 0x4e0   : > { %5202 = vmatpush3.bf16.msra.mxu1 %v5199_v6  ;;  %v2669_v6 = vld [vmem:[#allocation10 + $0x58] sm:$0xff] }
 0x4e1   : > { %5204 = vmatprep.subr.bf16.mxu1 %v5203_v34  ;;  %v5287_v40 = vpack.c.bf16 %v2669_v6, %v2668_v33  ;;  %v2936_v33 = vld [vmem:[#allocation10 + $0x1b0] sm:$0xff]  ;;  %v5305_v6 = vpack.c.bf16 %v2849_v32, %v2848_v31 }
 0x4e4   : > { %5206 = vmatpush3.bf16.msra.mxu1 %v5203_v34  ;;  %v2688_v34 = vld [vmem:[#allocation10 + $0xe8] sm:$0xff] }
 0x4e5   : > { %5208 = vmatprep.subr.bf16.mxu1 %v5207_v17  ;;  %v5266_v42 = vpack.c.bf16 %v2688_v34, %v2687_v41  ;;  %v2850_v41 = vld [vmem:[#allocation10 + $0x140] sm:$0xff]  ;;  %v2851_v34 = vld [vmem:[#allocation10 + $0x148] sm:$0xff] }
 0x4e8   : > { %5210 = vmatpush3.bf16.msra.mxu1 %v5207_v17  ;;  %v2671_v17 = vld [vmem:[#allocation10 + $0x68] sm:$0xff] }
 0x4e9   : > { %5212 = vmatprep.subr.bf16.mxu1 %v5211_v44  ;;  %v5290_v43 = vpack.c.bf16 %v2671_v17, %v2670_v35  ;;  %v2938_v35 = vld [vmem:[#allocation10 + $0x1c0] sm:$0xff]  ;;  %v5308_v17 = vpack.c.bf16 %v2851_v34, %v2850_v41 }
 0x4ec   : > { %5214 = vmatpush3.bf16.msra.mxu1 %v5211_v44  ;;  %v2690_v44 = vld [vmem:[#allocation10 + $0xf8] sm:$0xff] }
 0x4ed   : > { %5216 = vmatprep.subr.bf16.mxu1 %v5215_v58  ;;  %v5269_v46 = vpack.c.bf16 %v2690_v44, %v2689_v53  ;;  %v2852_v53 = vld [vmem:[#allocation10 + $0x150] sm:$0xff]  ;;  %v2853_v44 = vld [vmem:[#allocation10 + $0x158] sm:$0xff] }
 0x4ef   : > { %4475 = vmatmul.mubr.f32.vlgmr.msra.gmra.mrb[30].mxu1 %v6420_v18  ;;  %v5235_v18 = vpack.c.bf16 %v2554_v19, %v2553_v8  ;;  %v2931_v8 = vld [vmem:[#allocation10 + $0x188] sm:$0xff] }
 0x4f0   : > { %5218 = vmatpush3.bf16.msra.mxu1 %v5215_v58  ;;  %4509 = vmatprep.mubr.msk.f32.mxu1 %vm6232_vm10, %v6395_v51  ;;  %v5239_v51 = vpack.c.bf16 %v2556_v48, %v2555_v3  ;;  %v2673_v58 = vld [vmem:[#allocation10 + $0x78] sm:$0xff] }
 0x4f1   : > { %5220 = vmatprep.subr.bf16.mxu1 %v5219_v55  ;;  %v5293_v49 = vpack.c.bf16 %v2673_v58, %v2672_v57  ;;  %v2940_v57 = vld [vmem:[#allocation10 + $0x1d0] sm:$0xff]  ;;  %v5311_v58 = vpack.c.bf16 %v2853_v44, %v2852_v53 }
 0x4f4   : > { %5222 = vmatpush3.bf16.msra.mxu1 %v5219_v55 }
 0x4f5   : > { %5224 = vmatprep.subr.bf16.mxu1 %v5223_v61 }
 0x4f8   : > { %5226 = vmatpush3.bf16.msra.mxu1 %v5223_v61 }
 0x4f9   : > { %5228 = vmatprep.subr.bf16.mxu1 %v5227_v2 }
 0x4fc   : > { %5230 = vmatpush3.bf16.msra.mxu1 %v5227_v2  ;;  %v2843_v2 = vld [vmem:[#allocation10 + $0x108] sm:$0xff] }
 0x4fd   : > { %5232 = vmatprep.subr.bf16.mxu1 %v5231_v37  ;;  %v5296_v3 = vpack.c.bf16 %v2843_v2, %v2842_v63  ;;  %v2856_v63 = vld [vmem:[#allocation10 + $0x170] sm:$0xff]  ;;  %v2857_v2 = vld [vmem:[#allocation10 + $0x178] sm:$0xff] }
 0x500   : > { %5234 = vmatpush3.bf16.msra.mxu1 %v5231_v37  ;;  %v2930_v37 = vld [vmem:[#allocation10 + $0x180] sm:$0xff] }
 0x501   : > { %5236 = vmatprep.subr.bf16.mxu1 %v5235_v18  ;;  %v5320_v9 = vpack.c.bf16 %v2931_v8, %v2930_v37  ;;  %v5317_v37 = vpack.c.bf16 %v2857_v2, %v2856_v63 }
 0x504   : > { %5238 = vmatpush3.bf16.msra.mxu1 %v5235_v18 }
 0x505   : > { %5240 = vmatprep.subr.bf16.mxu1 %v5239_v51 }
 0x508   : > { %5242 = vmatpush3.bf16.msra.mxu1 %v5239_v51 }
 0x509   : > { %5244 = vmatprep.subr.bf16.mxu1 %v5243_v28 }
 0x50c   : > { %5246 = vmatpush3.bf16.msra.mxu1 %v5243_v28 }
 0x50d   : > { %5271 = vmatprep.subr.bf16.mxu1 %v5787_v0 }
 0x50f   : > { %4510 = vmatmul.mubr.msk.f32.vlgmr.msra.gmra.mrb[30].mxu1 %vm6245_vm13, %v6386_v47  ;;  %v5257_v47 = vpack.c.bf16 %v2682_v50, %v2681_v20  ;;  %v2933_v20 = vld [vmem:[#allocation10 + $0x198] sm:$0xff] }
 0x510   : > { %5273 = vmatpush3.bf16.msra.mxu1 %v5272_v10  ;;  %4579 = vmatprep.mubr.msk.f32.mxu1 %vm5788_vm0, %v5789_v1 }
 0x511   : > { %5274 = vmatprep.subr.bf16.mxu1 %v5787_v0  ;;  %5258 = vmatpush3.bf16.msra.mxu0 %v5257_v47 }
 0x512   : > { %5259 = vmatprep.subr.bf16.mxu0 %v5787_v0 }
 0x514   : > { %5276 = vmatpush3.bf16.msra.mxu1 %v5275_v13 }
 0x515   : > { %5277 = vmatprep.subr.bf16.mxu1 %v5787_v0  ;;  %5261 = vmatpush3.bf16.msra.mxu0 %v5260_v26  ;;  %v2935_v26 = vld [vmem:[#allocation10 + $0x1a8] sm:$0xff] }
 0x516   : > { %5262 = vmatprep.subr.bf16.mxu0 %v5787_v0 }
 0x518   : > { %5279 = vmatpush3.bf16.msra.mxu1 %v5278_v16  ;;  %v2932_v16 = vld [vmem:[#allocation10 + $0x190] sm:$0xff] }
 0x519   : > { %5280 = vmatprep.subr.bf16.mxu1 %v5787_v0  ;;  %5264 = vmatpush3.bf16.msra.mxu0 %v5263_v36  ;;  %v2937_v36 = vld [vmem:[#allocation10 + $0x1b8] sm:$0xff] }
 0x51a   : > { %5265 = vmatprep.subr.bf16.mxu0 %v5787_v0 }
 0x51c   : > { %5282 = vmatpush3.bf16.msra.mxu1 %v5281_v52  ;;  %v5323_v52 = vpack.c.bf16 %v2933_v20, %v2932_v16  ;;  %v3036_v16 = vld [vmem:[#allocation10 + $0x268] sm:$0xff] }
 0x51d   : > { %5283 = vmatprep.subr.bf16.mxu1 %v5787_v0  ;;  %5267 = vmatpush3.bf16.msra.mxu0 %v5266_v42  ;;  %v2939_v42 = vld [vmem:[#allocation10 + $0x1c8] sm:$0xff]  ;;  %v5362_v20 = vpack.c.bf16 %v3036_v16, %v3035_v45 }
 0x51e   : > { %5268 = vmatprep.subr.bf16.mxu0 %v5787_v0 }
 0x520   : > { %5285 = vmatpush3.bf16.msra.mxu1 %v5284_v30  ;;  %v5326_v30 = vpack.c.bf16 %v2935_v26, %v2934_v38 }
 0x521   : > { %5286 = vmatprep.subr.bf16.mxu1 %v5787_v0  ;;  %5270 = vmatpush3.bf16.msra.mxu0 %v5269_v46  ;;  %v2941_v46 = vld [vmem:[#allocation10 + $0x1d8] sm:$0xff] }
 0x522   : > { %5295 = vmatprep.subr.bf16.mxu0 %v5787_v0 }
 0x524   : > { %5288 = vmatpush3.bf16.msra.mxu1 %v5287_v40  ;;  %v5329_v40 = vpack.c.bf16 %v2937_v36, %v2936_v33 }
 0x525   : > { %5289 = vmatprep.subr.bf16.mxu1 %v5787_v0 }
 0x528   : > { %5291 = vmatpush3.bf16.msra.mxu1 %v5290_v43  ;;  %v5332_v43 = vpack.c.bf16 %v2939_v42, %v2938_v35 }
 0x529   : > { %5292 = vmatprep.subr.bf16.mxu1 %v5787_v0 }
 0x52c   : > { %5294 = vmatpush3.bf16.msra.mxu1 %v5293_v49  ;;  %v5335_v49 = vpack.c.bf16 %v2941_v46, %v2940_v57 }
 0x52d   : > { %5319 = vmatprep.subr.bf16.mxu1 %v5787_v0 }
 0x5e2   : > { %v4511_v55 = vpop.f32.mrb[30].mxu1 }
 0x5e3   : > { %v2644_v59 = vadd.f32 %v4511_v55, %v3290_v54  ;;  %v2625_v60 = vpop.f32.mrb[31].mxu1  ;;  %v2855_v55 = vld [vmem:[#allocation10 + $0x168] sm:$0xff] }
 0x5e4   : > { %v2643_v61 = vadd.f32 %v3290_v54, %v2625_v60  ;;  %v2854_v54 = vld [vmem:[#allocation10 + $0x160] sm:$0xff]  ;;  %v2943_v60 = vld [vmem:[#allocation10 + $0x1e8] sm:$0xff] }
 0x5e5   : > { %5528 = vtanh.f32 %v2644_v59  ;;  %v2942_v59 = vld [vmem:[#allocation10 + $0x1e0] sm:$0xff] }
 0x5e6   : > { %5530 = vtanh.f32 %v2643_v61  ;;  %v5314_v61 = vpack.c.bf16 %v2855_v55, %v2854_v54 }
 0x5ef   : > { %v5529_v62 = vpop.eup %5528 }
 0x5f0   : > { %v5531_v4 = vpop.eup %5530  ;;  %v2650_v5 = vrot.slane %v5529_v62, 2  ;;  %v5338_v62 = vpack.c.bf16 %v2943_v60, %v2942_v59 }
 0x5f1   : > { %v2649_v19 = vrot.slane %v5531_v4, 2  ;;  %v2944_v4 = vld [vmem:[#allocation10 + $0x1f0] sm:$0xff] }
 0x5f2   : > { %v2657_v18 = vsel %vm6245_vm13, %v2650_v5, 0.0 }
 0x5f3   : > { %v2948_v48 = vrot.slane %v2657_v18, 1  ;;  %v6465_v51 = vsel %vm712_vm3, %v2649_v19, %v2650_v5  ;;  %v2655_v56 = vsel %vm6222_vm7, %v2649_v19, 0.0  ;;  %v3040_v28 = vrot.slane %v2657_v18, 2  ;;  %v2945_v5 = vld [vmem:[#allocation10 + $0x1f8] sm:$0xff]  ;;  %v3023_v19 = vld [vmem:[#allocation10 + $0x200] sm:$0xff]  ;;  %v3024_v18 = vld [vmem:[#allocation10 + $0x208] sm:$0xff] }
 0x5f4   : > { %v2656_v29 = vsel %vm6232_vm10, %v6465_v51, 0.0  ;;  %v2693_v7 = vrot.slane %v2655_v56, 7  ;;  %v2767_v10 = vrot.slane %v2655_v56, 6  ;;  %v5341_v8 = vpack.c.bf16 %v2945_v5, %v2944_v4  ;;  %v3026_v56 = vld [vmem:[#allocation10 + $0x218] sm:$0xff] }
 0x5f5   : > { %v2694_v11 = vrot.slane %v2656_v29, 7  ;;  %v2768_v12 = vrot.slane %v2656_v29, 6  ;;  %v2947_v13 = vrot.slane %v2656_v29, 1  ;;  %v3039_v15 = vrot.slane %v2656_v29, 2  ;;  %v3028_v29 = vld [vmem:[#allocation10 + $0x228] sm:$0xff] }
 0x5f7   : > { %v2695_v50 = vsel %vm2457_vm4, %v2693_v7, %v2694_v11  ;;  %v2769_v14 = vsel %vm1603_vm14, %v2767_v10, %v2768_v12  ;;  %v6475_v21 = vsel %vm524_vm2, %v2947_v13, %v2948_v48  ;;  %v6478_v47 = vsel %vm712_vm3, %v3039_v15, %v3040_v28  ;;  %v3025_v48 = vld [vmem:[#allocation10 + $0x210] sm:$0xff]  ;;  %v3027_v28 = vld [vmem:[#allocation10 + $0x220] sm:$0xff]  ;;  %v3030_v11 = vld [vmem:[#allocation10 + $0x238] sm:$0xff] }
 0x5f8   : > { %4545 = vmatmul.mubr.f32.vlgmr.msra.gmra.mrb[32].mxu0 %v2695_v50  ;;  %4580 = vmatmul.mubr.f32.vlgmr.msra.gmra.mrb[32].mxu1 %v2769_v14  ;;  %v5350_v7 = vpack.c.bf16 %v3028_v29, %v3027_v28  ;;  %v3029_v10 = vld [vmem:[#allocation10 + $0x230] sm:$0xff]  ;;  %v3032_v12 = vld [vmem:[#allocation10 + $0x248] sm:$0xff]  ;;  %v3034_v13 = vld [vmem:[#allocation10 + $0x258] sm:$0xff] }
 0x5f9   : > { %5297 = vmatpush3.bf16.msra.mxu0 %v5296_v3  ;;  %5321 = vmatpush3.bf16.msra.mxu1 %v5320_v9  ;;  %v5344_v3 = vpack.c.bf16 %v3024_v18, %v3023_v19  ;;  %v5347_v9 = vpack.c.bf16 %v3026_v56, %v3025_v48  ;;  %v5353_v23 = vpack.c.bf16 %v3030_v11, %v3029_v10  ;;  %v3037_v50 = vld [vmem:[#allocation10 + $0x270] sm:$0xff]  ;;  %v3038_v14 = vld [vmem:[#allocation10 + $0x278] sm:$0xff] }
 0x5fa   : > { %5298 = vmatprep.subr.bf16.mxu0 %v5787_v0  ;;  %5322 = vmatprep.subr.bf16.mxu1 %v5787_v0 }
 0x5fb   : > { %4614 = vmatprep.mubr.msk.f32.mxu0 %vm5788_vm0, %v5789_v1  ;;  %4649 = vmatprep.mubr.msk.f32.mxu1 %vm5788_vm0, %v5789_v1 }
 0x5fd   : > { %5300 = vmatpush3.bf16.msra.mxu0 %v5299_v22  ;;  %5324 = vmatpush3.bf16.msra.mxu1 %v5323_v52 }
 0x5fe   : > { %5301 = vmatprep.subr.bf16.mxu0 %v5787_v0  ;;  %5325 = vmatprep.subr.bf16.mxu1 %v5787_v0 }
 0x601   : > { %5303 = vmatpush3.bf16.msra.mxu0 %v5302_v27  ;;  %5327 = vmatpush3.bf16.msra.mxu1 %v5326_v30 }
 0x602   : > { %5304 = vmatprep.subr.bf16.mxu0 %v5787_v0  ;;  %5328 = vmatprep.subr.bf16.mxu1 %v5787_v0 }
 0x605   : > { %5306 = vmatpush3.bf16.msra.mxu0 %v5305_v6  ;;  %5330 = vmatpush3.bf16.msra.mxu1 %v5329_v40 }
 0x606   : > { %5307 = vmatprep.subr.bf16.mxu0 %v5787_v0  ;;  %5331 = vmatprep.subr.bf16.mxu1 %v5787_v0 }
 0x609   : > { %5309 = vmatpush3.bf16.msra.mxu0 %v5308_v17  ;;  %5333 = vmatpush3.bf16.msra.mxu1 %v5332_v43 }
 0x60a   : > { %5310 = vmatprep.subr.bf16.mxu0 %v5787_v0  ;;  %5334 = vmatprep.subr.bf16.mxu1 %v5787_v0 }
 0x60d   : > { %5312 = vmatpush3.bf16.msra.mxu0 %v5311_v58  ;;  %5336 = vmatpush3.bf16.msra.mxu1 %v5335_v49 }
 0x60e   : > { %5313 = vmatprep.subr.bf16.mxu0 %v5787_v0  ;;  %5337 = vmatprep.subr.bf16.mxu1 %v5787_v0 }
 0x611   : > { %5315 = vmatpush3.bf16.msra.mxu0 %v5314_v61  ;;  %5339 = vmatpush3.bf16.msra.mxu1 %v5338_v62 }
 0x612   : > { %5316 = vmatprep.subr.bf16.mxu0 %v5787_v0  ;;  %5340 = vmatprep.subr.bf16.mxu1 %v5787_v0 }
 0x615   : > { %5318 = vmatpush3.bf16.msra.mxu0 %v5317_v37  ;;  %5342 = vmatpush3.bf16.msra.mxu1 %v5341_v8 }
 0x616   : > { %5343 = vmatprep.subr.bf16.mxu0 %v5787_v0 }
 0x618   : > { %4615 = vmatmul.mubr.msk.f32.vlgmr.msra.gmra.mrb[34].mxu0 %vm6232_vm10, %v6465_v51  ;;  %4650 = vmatmul.mubr.f32.vlgmr.msra.gmra.mrb[34].mxu1 %v6475_v21  ;;  %v3031_v51 = vld [vmem:[#allocation10 + $0x240] sm:$0xff]  ;;  %v5365_v21 = vpack.c.bf16 %v3038_v14, %v3037_v50 }
 0x619   : > { %5345 = vmatpush3.bf16.msra.mxu0 %v5344_v3  ;;  %4684 = vmatprep.mubr.msk.f32.mxu0 %vm5788_vm0, %v5789_v1  ;;  %v5356_v39 = vpack.c.bf16 %v3032_v12, %v3031_v51  ;;  %v3033_v1 = vld [vmem:[#allocation10 + $0x250] sm:$0xff] }
 0x61a   : > { %5346 = vmatprep.subr.bf16.mxu0 %v5787_v0  ;;  %v5359_v15 = vpack.c.bf16 %v3034_v13, %v3033_v1 }
 0x61d   : > { %5348 = vmatpush3.bf16.msra.mxu0 %v5347_v9 }
 0x61e   : > { %5349 = vmatprep.subr.bf16.mxu0 %v5787_v0 }
 0x621   : > { %5351 = vmatpush3.bf16.msra.mxu0 %v5350_v7 }
 0x622   : > { %5352 = vmatprep.subr.bf16.mxu0 %v5787_v0 }
 0x625   : > { %5354 = vmatpush3.bf16.msra.mxu0 %v5353_v23 }
 0x626   : > { %5355 = vmatprep.subr.bf16.mxu0 %v5787_v0 }
 0x629   : > { %5357 = vmatpush3.bf16.msra.mxu0 %v5356_v39 }
 0x62a   : > { %5358 = vmatprep.subr.bf16.mxu0 %v5787_v0 }
 0x62d   : > { %5360 = vmatpush3.bf16.msra.mxu0 %v5359_v15 }
 0x62e   : > { %5361 = vmatprep.subr.bf16.mxu0 %v5787_v0 }
 0x631   : > { %5363 = vmatpush3.bf16.msra.mxu0 %v5362_v20 }
 0x632   : > { %5364 = vmatprep.subr.bf16.mxu0 %v5787_v0 }
 0x635   : > { %5366 = vmatpush3.bf16.msra.mxu0 %v5365_v21 }
 0x638   : > { %4685 = vmatmul.mubr.f32.vlgmr.msra.gmra.mrb[36].mxu0 %v6478_v47  ;;  %v3292_v47 = vld [vmem:[%s6632_s17] ss:$0 sm:$0xff] }
 0x6cb   : > { %v2763_v22 = vpop.f32.mrb[32].mxu0  ;;  %v2837_v52 = vpop.f32.mrb[32].mxu1 }
 0x6cc   : > { %v2838_v24 = vadd.f32 %v2837_v52, %v2763_v22  ;;  %v4546_v25 = vpop.f32.mrb[33].mxu0  ;;  %v4581_v38 = vpop.f32.mrb[33].mxu1 }
 0x6eb   : > { %v2924_v26 = vpop.f32.mrb[34].mxu0  ;;  %v3017_v27 = vpop.f32.mrb[34].mxu1 }
 0x6ec   : > { %v2928_v30 = vadd.f32 %v2924_v26, %v2838_v24  ;;  %v4616_v31 = vpop.f32.mrb[35].mxu0  ;;  %v4651_v32 = vpop.f32.mrb[35].mxu1 }
 0x6ee   : > { %v3021_v33 = vadd.f32 %v3017_v27, %v2928_v30 }
 0x70b   : > { %v3109_v0 = vpop.f32.mrb[36].mxu0 }
 0x70c   : > { %v3113_v36 = vadd.f32 %v3109_v0, %v3021_v33  ;;  %v4686_v6 = vpop.f32.mrb[37].mxu0 }
 0x70e   : > { %v3121_v40 = vadd.f32 %v3292_v47, %v3113_v36 }
 0x710   : > { %3122 = vst [vmem:[%s466_s15] sm:$0xff] %v3121_v40 }
 0x711   : > { %5685 = shalt.err (!%p5682_p7)
}
 0x712   : > { %s5686_s26 = scalar_lea.hbm %s6522_s25, 128  ;;  %s5690_s27 = scalar_lea.hbm %s6634_s13, 768 }
 0x713   : > { %p5687_p9 = scmp.ne.s32.totalorder %s6522_s25, %s5686_s26  ;;  %p5691_p3 = scmp.lt.u32.totalorder %s6522_s25, %s6634_s13 }
 0x714   : > { %p5692_p2 = scmp.lt.u32.totalorder %s5690_s27, %s5686_s26  ;;  %p5694_p8 = scmp.lt.u32.totalorder %s5686_s26, %s6522_s25 }
 0x715   : > { %p5688_p11 = pnand %p5687_p9, %p6635_p10 }
 0x716   : > { %p5693_p0 = por %p5692_p2, %p5691_p3 }
 0x717   : > { %p5689_p13 = pneg %p5688_p11 }
 0x718   : > { %p5695_p12 = por %p5694_p8, %p5693_p0 }
 0x71a   : > { %p5696_p1 = pnand %p5695_p12, %p5689_p13 }
 0x71c   : > { %5699 = shalt.err (!%p5696_p1)
}
 0x71d   : > { %5405 = dma.vmem_to_hbm [thread:$0]  (%p6635_p10), %s6524_s2, 128, %s6522_s25, %s3124_s20  }
 0x71e PF: > { %s6636_s17 = sld [smem:[#allocation20_spill]]  ;;  %s6637_s24 = sld [smem:[#allocation16_spill]] }
 0x71f   : > { %s6638_s15 = sld [smem:[#allocation24_spill]] }
 0x724   : > { %p5437_p4 = scmp.ge.s32.totalorder %s6636_s17, 2  ;;  %s3151_s12 = sand.u32 1, %s6637_s24  }
 0x725   : > { %p6639_p5 = scmp.ne.s32.totalorder %s6638_s15, 0  ;;  %s3152_s11 = scalar_lea.sflag [#allocation4], %s3151_s12 }
 0x727   : > { %p5424_p6 = pnand %p5437_p4, %p6639_p5 }
 0x729   : > { %5745 = dma.done.wait (!%p5424_p6), %s3152_s11, 128  }
 0x72a   : > { %5747 = vsyncadd (!%p5424_p6), %s3152_s11, 4294967168  ;;  %s27_s24 = sadd.s32 1, %s6636_s17   ;;  %s6640_s19 = sld [smem:[#allocation17_spill]] }
 0x72b   : > { %p24_p7 = scmp.ge.s32.totalorder %s27_s24, 8   ;;  %s6641_s22 = sld [smem:[#allocation25_spill]] }
 0x72c   : > { %s6642_s20 = sld [smem:[#allocation18_spill]]  ;;  %s6643_s21 = sld [smem:[#allocation19_spill]] }
 0x72d   : > { %s6644_s2 = sld [smem:[#allocation21_spill]]  ;;  %s6645_s23 = sld [smem:[#allocation23_spill]] }
 0x72e   : > { %s6646_s17 = smov %s5754_s18  ;;  %26 = sbr.rel (!%p24_p7) target bundleno = 12 (0xc), region = 141 }
 0x730   : > { %s6647_s18 = smov %s6640_s19 }
 0x731   : > { %s6648_s19 = smov %s6641_s22 }
 0x733   : > { %s6649_s22 = smov %s6644_s2 }
 0x735   :  { %3157 = vsyncpa [#allocation3], 1 }
 0x736   :  { %3159 = vsyncpa [#allocation3 + $0x1], 1 }
 0x737   :  { %3160 = vsyncpa [#allocation6], 1 }
 0x738   :  { %3161 = vsyncpa [#allocation9], 1 }
 0x739   :  { %3162 = vsyncpa [#allocation4], 1 }
 0x73a   :  { %3164 = vsyncpa [#allocation4 + $0x1], 1 }

// kernel: tpu_custom_call.1
= control target key start
LH: loop header
LB: loop body
LE: loop exit
PB: predicated region body
PF: predicated region fallthrough
CT: control target
= control target key end

     0   :  { %s6575_s0 = inlined_call_operand.vmem [shape: f32[2,44,128], index: 0, kind: input, shape index: {}]   ;;  %s6576_s1 = inlined_call_operand.hbm [shape: f32[5,128,128], index: 1, kind: input, shape index: {}]   ;;  %s6577_s2 = inlined_call_operand.hbm [shape: f32[5,128,128], index: 2, kind: input, shape index: {}]   ;;  %s6578_s3 = inlined_call_operand.hbm [shape: f32[5,128,128], index: 3, kind: input, shape index: {}]   ;;  %s6579_s4 = inlined_call_operand.hbm [shape: f32[5,128,128], index: 4, kind: input, shape index: {}]   ;;  %s6580_s5 = inlined_call_operand.hbm [shape: f32[5,128,128], index: 5, kind: input, shape index: {}]   ;;  %s6581_s6 = inlined_call_operand.vmem [shape: f32[1,128], index: 6, kind: input, shape index: {}]   ;;  %s6582_s7 = inlined_call_operand.vmem [shape: f32[1,128], index: 7, kind: input, shape index: {}]   ;;  %s6583_s8 = inlined_call_operand.vmem [shape: f32[1,128], index: 8, kind: input, shape index: {}]   ;;  %s6584_s9 = inlined_call_operand.vmem [shape: f32[1,128], index: 9, kind: input, shape index: {}]   ;;  %s6585_s10 = inlined_call_operand.vmem [shape: f32[1,128], index: 10, kind: input, shape index: {}]   ;;  %s6586_s11 = inlined_call_operand.hbm [shape: f32[2,24,128], index: 11, kind: output, shape index: {}]  }
   0x1   :  { %6603 = sst [smem:[#allocation26_spill]] %s6577_s2 }
   0x2   :  { %6604 = sst [smem:[#allocation27_spill]] %s6585_s10 }
   0x3   :  { %6605 = sst [smem:[#allocation28_spill]] %s6586_s11 }
   0x4   :  { %16 = vsyncpa [#allocation3], 0 }
   0x5   :  { %17 = vsyncpa [#allocation6], 0 }
   0x6   :  { %18 = vsyncpa [#allocation9], 0 }
   0x7   :  { %19 = vsyncpa [#allocation4], 0 }
   0x8   :  { %21 = vsyncpa [#allocation4 + $0x1], 0  ;;  %s5851_s17 = smov 0   ;;  %s5853_s18 = smov 0  }
   0x9   :  { %s5855_s19 = smov 0   ;;  %s5857_s20 = smov 0  }
   0xa   :  { %s5859_s21 = smov 0   ;;  %s5861_s22 = smov 0  }
   0xb   :  { %s5863_s23 = smov 0   ;;  %s5865_s24 = smov 0  }
   0xc LB: > { %6606 = sst [smem:[#allocation16_spill]] %s5750_s17  ;;  %s3263_s25 = sadd.s32 4294967295, %s5778_s24   ;;  %s5778_s24 = sphi %s5865_s24, %s27_s24   ;;  %s5774_s23 = sphi %s5863_s23, %s6645_s23   ;;  %s5770_s22 = sphi %s5861_s22, %s6649_s22   ;;  %s5766_s21 = sphi %s5859_s21, %s6643_s21   ;;  %s5762_s20 = sphi %s5857_s20, %s6642_s20   ;;  %s5758_s19 = sphi %s5855_s19, %s6648_s19   ;;  %s5754_s18 = sphi %s5853_s18, %s6647_s18   ;;  %s5750_s17 = sphi %s5851_s17, %s6646_s17  }
   0xd   : > { %6607 = sst [smem:[#allocation17_spill]] %s5758_s19  ;;  %s3264_s26 = sadd.s32 4294967294, %s5778_s24  }
   0xe   : > { %6608 = sst [smem:[#allocation18_spill]] %s5770_s22  ;;  %s36_s27 = sadd.s32 1, %s5770_s22 }
   0xf   : > { %6609 = sst [smem:[#allocation19_spill]] %s5774_s23  ;;  %s39_s28 = sadd.s32 1, %s5774_s23 }
  0x10   : > { %6610 = sst [smem:[#allocation20_spill]] %s5778_s24  ;;  %p37_p0 = scmp.ge.s32.totalorder %s36_s27, 3 }
  0x11   : > { %s284_s29 = sadd.s32 1, %s5758_s19  ;;  %p294_p1 = scmp.ne.s32.totalorder %s5758_s19, %s5754_s18 }
  0x12   : > { %p295_p2 = scmp.eq.s32.totalorder %s3263_s25, 5  ;;  %s6651_s27 = smov (%p37_p0, %s36_s27), 0 }
  0x13   : > { %6611 = sst [smem:[#allocation21_spill]] %s6651_s27  ;;  %s6653_s28 = smov (!%p37_p0, %s39_s28), %s5774_s23 }
  0x14   : > { %s280_s30 = ssub.s32 %s5770_s22, %s6651_s27  ;;  %p5903_p3 = por %p295_p2, %p294_p1 }
  0x15   : > { %p41_p4 = scmp.ge.s32.totalorder %s6653_s28, 2  ;;  %p300_p5 = scmp.ne.s32.totalorder %s5754_s18, %s5750_s17 }
  0x16   : > { %s6612_s12 = scalar_select %p5903_p3, 1, 0 }
  0x17   : > { %p301_p6 = scmp.eq.s32.totalorder %s3264_s26, 5  ;;  %p3265_p7 = scmp.ge.s32.totalorder %s5778_s24, 1 }
  0x18   : > { %6613 = sst [smem:[#allocation22_spill]] %s6612_s12  ;;  %s6655_s28 = smov (%p41_p4, %s6653_s28), 0 }
  0x19   : > { %6614 = sst [smem:[#allocation23_spill]] %s6655_s28  ;;  %p5912_p8 = por %p301_p6, %p300_p5 }
  0x1a   : > { %p308_p9 = scmp.lt.s32.totalorder %s5778_s24, 7  ;;  %s279_s14 = ssub.s32 %s5774_s23, %s6655_s28 }
  0x1b   : > { %s6615_s13 = scalar_select %p5912_p8, 1, 0 }
  0x1c   : > { %s281_s15 = sor.u32 %s280_s30, %s279_s14  ;;  %p5919_p10 = pnand %p3265_p7, %p308_p9 }
  0x1d   : > { %6616 = sst [smem:[#allocation24_spill]] %s6615_s13  ;;  %p282_p11 = scmp.eq.s32.totalorder %s281_s15, 0 }
  0x1e   : > { %s6617_s16 = scalar_select %p5919_p10, 1, 0 }
  0x1f   : > { %p5923_p12 = scmp.eq.s32.totalorder %s3263_s25, 0  ;;  %p5407_p13 = pneg %p5919_p10 }
  0x20   : > { %s5930_s26 = scalar_select %p282_p11, %s5758_s19, %s284_s29  }
  0x21   : > { %s6618_s27 = scalar_select %p5923_p12, 1, 0 }
  0x22   : > { %6619 = sst [smem:[#allocation25_spill]] %s5930_s26  ;;  %p5934_p0 = pnand %p5923_p12, %p5407_p13 }
  0x23   : > { %s5780_s30 = smov [#allocation5]   ;;  %s5781_s28 = smov [#allocation8]  }
  0x24   : > { %s333_s14 = sshll.u32 %s5780_s30, 4  ;;  %s359_s15 = sshll.u32 %s5781_s28, 4  ;;  %s334_s14 = int_to_ptr.vmem [resolvable:$true] %s333_s14  ;;  %s360_s15 = int_to_ptr.vmem [resolvable:$true] %s359_s15 }
  0x25   : > { %s6621_s2 = sld [smem:[#allocation26_spill]]  ;;  %p5946_p2 = pneg %p5934_p0 }
  0x2b   : > { %s5532_s13 = scalar_lea.hbm %s6621_s2, 10240 }
  0x2c   : > { %p5533_p1 = scmp.ne.s32.totalorder %s6621_s2, %s5532_s13  ;;  %p5539_p6 = scmp.lt.u32.totalorder %s5532_s13, %s6621_s2 }
  0x2e   : > { %p5535_p4 = pnand %p5946_p2, %p5533_p1 }
  0x30   : > { %p5536_p5 = pneg %p5535_p4 }
  0x32   : > { %p5541_p7 = pnand %p5539_p6, %p5536_p5 }
  0x34   : > { %5544 = shalt.err (!%p5541_p7)
}
  0x35   : > { %s5545_s23 = scalar_lea.vmem %s334_s14, 10240  ;;  %p5553_p8 = scmp.lt.s32.totalorder %s334_s14, %s334_s14 }
  0x36   : > { %p5546_p9 = scmp.ne.s32.totalorder %s334_s14, %s5545_s23  ;;  %p5554_p3 = scmp.lt.s32.totalorder %s5545_s23, %s5545_s23 }
  0x38   : > { %p5548_p11 = pnand %p5546_p9, %p5946_p2  ;;  %p5555_p12 = por %p5554_p3, %p5553_p8 }
  0x3a   : > { %p5549_p13 = pneg %p5548_p11 }
  0x3c   : > { %p5556_p10 = pnand %p5555_p12, %p5549_p13 }
  0x3e   : > { %5559 = shalt.err (!%p5556_p10)
}
  0x3f   : > { %s5782_s17 = smov 128   ;;  %s5783_s24 = smov 8  }
  0x40   : > { %5413 = dma.hbm_to_vmem [thread:$0]  (!%p5934_p0), %s6621_s2, 10240, %s334_s14, [#allocation6], %s5782_s17, %s5782_s17, %s5783_s24  }
  0x41   : > { %s5560_s30 = scalar_lea.hbm %s6579_s4, 10240 }
  0x42   : > { %p5561_p3 = scmp.ne.s32.totalorder %s6579_s4, %s5560_s30  ;;  %p5567_p12 = scmp.lt.u32.totalorder %s5560_s30, %s6579_s4 }
  0x44   : > { %p5563_p8 = pnand %p5561_p3, %p5946_p2 }
  0x46   : > { %p5564_p10 = pneg %p5563_p8 }
  0x48   : > { %p5569_p1 = pnand %p5567_p12, %p5564_p10 }
  0x4a   : > { %5572 = shalt.err (!%p5569_p1)
}
  0x4b   : > { %s5573_s28 = scalar_lea.vmem %s360_s15, 10240  ;;  %p5581_p7 = scmp.lt.s32.totalorder %s360_s15, %s360_s15 }
  0x4c   : > { %p5574_p4 = scmp.ne.s32.totalorder %s360_s15, %s5573_s28  ;;  %p5582_p9 = scmp.lt.s32.totalorder %s5573_s28, %s5573_s28 }
  0x4e   : > { %p5576_p5 = pnand %p5574_p4, %p5946_p2  ;;  %p5583_p11 = por %p5582_p9, %p5581_p7 }
  0x50   : > { %p5577_p6 = pneg %p5576_p5 }
  0x52   : > { %p5584_p13 = pnand %p5583_p11, %p5577_p6 }
  0x54   : > { %5587 = shalt.err (!%p5584_p13)
}
  0x55   : > { %5419 = dma.hbm_to_vmem [thread:$0]  (!%p5934_p0), %s6579_s4, 10240, %s360_s15, [#allocation9], %s5782_s17, %s5782_s17, %s5783_s24  }
  0x56   : > { %s5784_s19 = smov [#allocation2]   ;;  %s5785_s13 = smov [#allocation7]  }
  0x57   : > { %s320_s14 = sshll.u32 %s5784_s19, 4  ;;  %s346_s26 = sshll.u32 %s5785_s13, 4  ;;  %s321_s14 = int_to_ptr.vmem [resolvable:$true] %s320_s14  ;;  %s347_s26 = int_to_ptr.vmem [resolvable:$true] %s346_s26 }
  0x58   : > { %s5588_s23 = scalar_lea.hbm %s6576_s1, 10240 }
  0x59   : > { %p5589_p3 = scmp.ne.s32.totalorder %s6576_s1, %s5588_s23  ;;  %p5595_p12 = scmp.lt.u32.totalorder %s5588_s23, %s6576_s1 }
  0x5b   : > { %p5591_p8 = pnand %p5589_p3, %p5946_p2 }
  0x5d   : > { %p5592_p10 = pneg %p5591_p8 }
  0x5f   : > { %p5597_p1 = pnand %p5595_p12, %p5592_p10 }
  0x61   : > { %5600 = shalt.err (!%p5597_p1)
}
  0x62   : > { %s5601_s15 = scalar_lea.vmem %s321_s14, 10240  ;;  %p5609_p7 = scmp.lt.s32.totalorder %s321_s14, %s321_s14 }
  0x63   : > { %p5602_p4 = scmp.ne.s32.totalorder %s321_s14, %s5601_s15  ;;  %p5610_p9 = scmp.lt.s32.totalorder %s5601_s15, %s5601_s15 }
  0x65   : > { %p5604_p5 = pnand %p5602_p4, %p5946_p2  ;;  %p5611_p11 = por %p5610_p9, %p5609_p7 }
  0x67   : > { %p5605_p6 = pneg %p5604_p5 }
  0x69   : > { %p5612_p13 = pnand %p5611_p11, %p5605_p6 }
  0x6b   : > { %5615 = shalt.err (!%p5612_p13)
}
  0x6c   : > { %5410 = dma.hbm_to_vmem [thread:$0]  (!%p5934_p0), %s6576_s1, 10240, %s321_s14, [#allocation3], %s5782_s17, %s5782_s17, %s5783_s24  }
  0x6d   : > { %s5616_s13 = scalar_lea.hbm %s6578_s3, 10240 }
  0x6e   : > { %p5617_p3 = scmp.ne.s32.totalorder %s6578_s3, %s5616_s13  ;;  %p5623_p12 = scmp.lt.u32.totalorder %s5616_s13, %s6578_s3 }
  0x70   : > { %p5619_p8 = pnand %p5617_p3, %p5946_p2 }
  0x72   : > { %p5620_p10 = pneg %p5619_p8 }
  0x74   : > { %p5625_p1 = pnand %p5623_p12, %p5620_p10 }
  0x76   : > { %5628 = shalt.err (!%p5625_p1)
}
  0x77   : > { %s5629_s10 = scalar_lea.vmem %s347_s26, 10240  ;;  %p5637_p7 = scmp.lt.s32.totalorder %s347_s26, %s347_s26 }
  0x78   : > { %p5630_p4 = scmp.ne.s32.totalorder %s347_s26, %s5629_s10  ;;  %p5638_p9 = scmp.lt.s32.totalorder %s5629_s10, %s5629_s10 }
  0x7a   : > { %p5632_p5 = pnand %p5630_p4, %p5946_p2  ;;  %p5639_p11 = por %p5638_p9, %p5637_p7 }
  0x7c   : > { %p5633_p6 = pneg %p5632_p5 }
  0x7e   : > { %p5640_p13 = pnand %p5639_p11, %p5633_p6 }
  0x80   : > { %5643 = shalt.err (!%p5640_p13)
}
  0x81   : > { %5416 = dma.hbm_to_vmem [thread:$0]  (!%p5934_p0), %s6578_s3, 10240, %s347_s26, [#allocation6], %s5782_s17, %s5782_s17, %s5783_s24  }
  0x82   : > { %s5786_s2 = smov [#allocation10]   ;;  %s5644_s13 = scalar_lea.hbm %s6580_s5, 10240 }
  0x83   : > { %s372_s12 = sshll.u32 %s5786_s2, 4  ;;  %p5645_p3 = scmp.ne.s32.totalorder %s6580_s5, %s5644_s13  ;;  %s373_s12 = int_to_ptr.vmem [resolvable:$true] %s372_s12 }
  0x84   : > { %p5651_p12 = scmp.lt.u32.totalorder %s5644_s13, %s6580_s5 }
  0x85   : > { %p5647_p8 = pnand %p5645_p3, %p5946_p2 }
  0x87   : > { %p5648_p10 = pneg %p5647_p8 }
  0x89   : > { %p5653_p1 = pnand %p5651_p12, %p5648_p10 }
  0x8b   : > { %5656 = shalt.err (!%p5653_p1)
}
  0x8c   : > { %s5657_s26 = scalar_lea.vmem %s373_s12, 10240  ;;  %p5665_p7 = scmp.lt.s32.totalorder %s373_s12, %s373_s12 }
  0x8d   : > { %p5658_p4 = scmp.ne.s32.totalorder %s373_s12, %s5657_s26  ;;  %p5666_p9 = scmp.lt.s32.totalorder %s5657_s26, %s5657_s26 }
  0x8f   : > { %p5660_p5 = pnand %p5658_p4, %p5946_p2  ;;  %p5667_p11 = por %p5666_p9, %p5665_p7 }
  0x91   : > { %p5661_p6 = pneg %p5660_p5 }
  0x93   : > { %p5668_p13 = pnand %p5667_p11, %p5661_p6 }
  0x95   : > { %5671 = shalt.err (!%p5668_p13)
}
  0x96   : > { %5422 = dma.hbm_to_vmem [thread:$0]  (!%p5934_p0), %s6580_s5, 10240, %s373_s12, [#allocation9], %s5782_s17, %s5782_s17, %s5783_s24  }
  0x97   : > { %p6623_p3 = scmp.ne.s32.totalorder %s6617_s16, 0 }
  0x98   : > { %p6624_p2 = scmp.ne.s32.totalorder (!%p6623_p3), %s6618_s27, 0 }
  0x99   : > { %411 = sbr.rel (%p6623_p3) target bundleno = 1822 (0x71e), region = 64 }
  0xa0   : > { %5733 = dma.done.wait (%p6624_p2), [#allocation3], 10240  }
  0xa1   : > { %5735 = vsyncadd (%p6624_p2), [#allocation3], 4294957056 }
  0xa2   : > { %5737 = dma.done.wait (%p6624_p2), [#allocation6], 20480  }
  0xa3   : > { %5739 = vsyncadd (%p6624_p2), [#allocation6], 4294946816 }
  0xa4   : > { %5741 = dma.done.wait (%p6624_p2), [#allocation9], 20480  }
  0xa5   : > { %5743 = vsyncadd (%p6624_p2), [#allocation9], 4294946816  ;;  %v5787_v0 = vmov 0.0|0.0   ;;  %p467_p0 = scmp.lt.s32.totalorder %s5766_s21, 1  ;;  %vm5788_vm0 = vmmov 0   ;;  %v5789_v1 = vmov 0.0  }
  0xa6   : > { %4687 = vmatprep.subr.bf16.mxu0 %v5787_v0  ;;  %4711 = vmatprep.subr.bf16.mxu1 %v5787_v0  ;;  %v504_v2 = vld [vmem:[#allocation2 + $0x80] sm:$0xff]  ;;  %v505_v3 = vld [vmem:[#allocation2 + $0x88] sm:$0xff]  ;;  %v506_v7 = vld [vmem:[#allocation2 + $0x90] sm:$0xff]  ;;  %s3280_s24 = sshll.u32 %s5762_s20, 3  ;;  %vm934_vm1 = vcmask 1043456   ;;  %vm524_vm2 = vcmask 1046528  }
  0xa7   : > { %3784 = vmatprep.mubr.msk.f32.mxu0 %vm5788_vm0, %v5789_v1  ;;  %3825 = vmatprep.mubr.msk.f32.mxu1 %vm5788_vm0, %v5789_v1  ;;  %s468_s22 = scalar_select %p467_p0, %s5766_s21, 1  ;;  %v487_v4 = vld [vmem:[#allocation2] sm:$0xff]  ;;  %v4688_v5 = vpack.c.bf16 %v505_v3, %v504_v2  ;;  %v488_v6 = vld [vmem:[#allocation2 + $0x8] sm:$0xff]  ;;  %v507_v8 = vld [vmem:[#allocation2 + $0x98] sm:$0xff]  ;;  %vm712_vm3 = vcmask 1045504   ;;  %vm823_vm4 = vcmask 1044480  }
  0xa8   : > { %v4712_v9 = vpack.c.bf16 %v488_v6, %v487_v4  ;;  %v489_v10 = vld [vmem:[#allocation2 + $0x10] sm:$0xff]  ;;  %v490_v11 = vld [vmem:[#allocation2 + $0x18] sm:$0xff]  ;;  %v4691_v12 = vpack.c.bf16 %v507_v8, %v506_v7  ;;  %v508_v14 = vld [vmem:[#allocation2 + $0xa0] sm:$0xff]  ;;  %s3281_s11 = sadd.s32 4294967288, %s3280_s24  ;;  %vm1603_vm14 = vcmask 1041408   ;;  %vm1933_vm15 = vcmask 1042432  }
  0xa9   : > { %s5383_s27 = smul.u32 48, %s468_s22  ;;  %4689 = vmatpush3.bf16.msra.mxu0 %v4688_v5  ;;  %v4715_v13 = vpack.c.bf16 %v490_v11, %v489_v10  ;;  %v509_v15 = vld [vmem:[#allocation2 + $0xa8] sm:$0xff]  ;;  %v491_v16 = vld [vmem:[#allocation2 + $0x20] sm:$0xff]  ;;  %v510_v20 = vld [vmem:[#allocation2 + $0xb0] sm:$0xff]  ;;  %s464_s26 = sand.u32 1, %s5754_s18  }
  0xaa   : > { %4713 = vmatpush3.bf16.msra.mxu1 %v4712_v9  ;;  %4690 = vmatprep.subr.bf16.mxu0 %v5787_v0  ;;  %v492_v17 = vld [vmem:[#allocation2 + $0x28] sm:$0xff]  ;;  %v4694_v18 = vpack.c.bf16 %v509_v15, %v508_v14  ;;  %v511_v21 = vld [vmem:[#allocation2 + $0xb8] sm:$0xff]  ;;  %v493_v22 = vld [vmem:[#allocation2 + $0x30] sm:$0xff]  ;;  %s5384_s10 = smul.u32 3, %s5766_s21  ;;  %s3278_s14 = sshll.u32 %s464_s26, 3 }
  0xab   : > { %4714 = vmatprep.subr.bf16.mxu1 %v5787_v0  ;;  %s471_s17 = scalar_lea.vmem %s6575_s0, %s5383_s27  ;;  %v4718_v19 = vpack.c.bf16 %v492_v17, %v491_v16  ;;  %v494_v23 = vld [vmem:[#allocation2 + $0x38] sm:$0xff]  ;;  %v4697_v24 = vpack.c.bf16 %v511_v21, %v510_v20  ;;  %v512_v25 = vld [vmem:[#allocation2 + $0xc0] sm:$0xff]  ;;  %v513_v27 = vld [vmem:[#allocation2 + $0xc8] sm:$0xff]  ;;  %s6631_s22 = sld [smem:[#allocation22_spill]] }
  0xac   : > { %s6081_s15 = scalar_lea.vmem %s471_s17, %s3280_s24  ;;  %v4721_v26 = vpack.c.bf16 %v494_v23, %v493_v22  ;;  %v495_v30 = vld [vmem:[#allocation2 + $0x40] sm:$0xff]  ;;  %v496_v31 = vld [vmem:[#allocation2 + $0x48] sm:$0xff]  ;;  %v4700_v34 = vpack.c.bf16 %v513_v27, %v512_v25  ;;  %v514_v37 = vld [vmem:[#allocation2 + $0xd0] sm:$0xff]  ;;  %s3135_s27 = sadd.s32 %s5762_s20, %s5384_s10 }
  0xad   : > { %4692 = vmatpush3.bf16.msra.mxu0 %v4691_v12  ;;  %v6085_v28 = vld [vmem:[%s6081_s15] sm:$0xff]  ;;  %v6088_v29 = vld [vmem:[%s6081_s15 + $0x8] sm:$0xff]  ;;  %v4724_v36 = vpack.c.bf16 %v496_v31, %v495_v30  ;;  %v515_v38 = vld [vmem:[#allocation2 + $0xd8] sm:$0xff]  ;;  %s6632_s17 = sld [smem:[#allocation27_spill]]  ;;  %s3294_s24 = sshll.u32 %s3135_s27, 7 }
  0xae   : > { %4716 = vmatpush3.bf16.msra.mxu1 %v4715_v13  ;;  %4693 = vmatprep.subr.bf16.mxu0 %v5787_v0  ;;  %v935_v32 = vrot.slane %v6085_v28, 4  ;;  %v936_v33 = vrot.slane %v6088_v29, 4  ;;  %v497_v39 = vld [vmem:[#allocation2 + $0x50] sm:$0xff]  ;;  %v498_v40 = vld [vmem:[#allocation2 + $0x58] sm:$0xff]  ;;  %v4703_v41 = vpack.c.bf16 %v515_v38, %v514_v37  ;;  %v516_v43 = vld [vmem:[#allocation2 + $0xe0] sm:$0xff]  ;;  %v525_v60 = vrot.slane %v6085_v28, 1 }
  0xaf   : > { %4717 = vmatprep.subr.bf16.mxu1 %v5787_v0  ;;  %v4727_v42 = vpack.c.bf16 %v498_v40, %v497_v39  ;;  %v517_v44 = vld [vmem:[#allocation2 + $0xe8] sm:$0xff]  ;;  %v6100_v45 = vld [vmem:[%s6081_s15 + $0x10] sm:$0xff]  ;;  %v499_v46 = vld [vmem:[#allocation2 + $0x60] sm:$0xff]  ;;  %v526_v61 = vrot.slane %v6088_v29, 1  ;;  %s6633_s19 = sld [smem:[#allocation28_spill]]  ;;  %s3124_s20 = scalar_lea.sflag [#allocation4], %s464_s26 }
  0xb0   : > { %v6094_v35 = vsel %vm934_vm1, %v935_v32, %v936_v33  ;;  %v500_v47 = vld [vmem:[#allocation2 + $0x68] sm:$0xff]  ;;  %v938_v48 = vrot.slane %v6100_v45, 4  ;;  %v4706_v49 = vpack.c.bf16 %v517_v44, %v516_v43  ;;  %v6105_v50 = vld [vmem:[%s6081_s15 + $0x18] sm:$0xf]  ;;  %v518_v52 = vld [vmem:[#allocation2 + $0xf0] sm:$0xff]  ;;  %v528_v7 = vrot.slane %v6100_v45, 1 }
  0xb1   : > { %4695 = vmatpush3.bf16.msra.mxu0 %v4694_v18  ;;  %v4730_v51 = vpack.c.bf16 %v500_v47, %v499_v46  ;;  %v519_v53 = vld [vmem:[#allocation2 + $0xf8] sm:$0xff]  ;;  %v940_v54 = vrot.slane %v6105_v50, 4  ;;  %v501_v55 = vld [vmem:[#allocation2 + $0x70] sm:$0xff]  ;;  %v696_v63 = vld [vmem:[#allocation2 + $0x100] sm:$0xff]  ;;  %v527_v5 = vsel %vm524_vm2, %v525_v60, %v526_v61  ;;  %v530_v15 = vrot.slane %v6105_v50, 1  ;;  %s466_s15 = scalar_lea.vmem [#allocation11], %s3278_s14 }
  0xb2   : > { %4719 = vmatpush3.bf16.msra.mxu1 %v4718_v19  ;;  %4696 = vmatprep.subr.bf16.mxu0 %v5787_v0  ;;  %v502_v56 = vld [vmem:[#allocation2 + $0x78] sm:$0xff]  ;;  %v6111_v57 = vsel %vm934_vm1, %v936_v33, %v938_v48  ;;  %v4709_v59 = vpack.c.bf16 %v519_v53, %v518_v52  ;;  %v697_v2 = vld [vmem:[#allocation2 + $0x108] sm:$0xff]  ;;  %v807_v3 = vld [vmem:[#allocation2 + $0x180] sm:$0xff]  ;;  %v529_v14 = vsel %vm524_vm2, %v526_v61, %v528_v7  ;;  %v713_v60 = vrot.slane %v6085_v28, 2  ;;  %s3139_s2 = sshll.u32 %s466_s15, 4  ;;  %p6635_p10 = scmp.ne.s32.totalorder %s6631_s22, 0  ;;  %s6524_s2 = int_to_ptr.vmem [resolvable:$true] %s3139_s2 }
  0xb3   : > { %4720 = vmatprep.subr.bf16.mxu1 %v5787_v0  ;;  %v6114_v58 = vsel %vm934_vm1, %v938_v48, %v940_v54  ;;  %v4733_v62 = vpack.c.bf16 %v502_v56, %v501_v55  ;;  %v808_v4 = vld [vmem:[#allocation2 + $0x188] sm:$0xff]  ;;  %v4736_v6 = vpack.c.bf16 %v697_v2, %v696_v63  ;;  %v698_v9 = vld [vmem:[#allocation2 + $0x110] sm:$0xff]  ;;  %v699_v10 = vld [vmem:[#allocation2 + $0x118] sm:$0xff]  ;;  %v531_v22 = vsel %vm524_vm2, %v528_v7, %v530_v15  ;;  %s5672_s21 = scalar_lea.vmem %s6524_s2, 128  ;;  %s5790_s30 = smov [#allocation11]  }
  0xb4   : > { %v4760_v8 = vpack.c.bf16 %v808_v4, %v807_v3  ;;  %v809_v11 = vld [vmem:[#allocation2 + $0x190] sm:$0xff]  ;;  %v810_v12 = vld [vmem:[#allocation2 + $0x198] sm:$0xff]  ;;  %v4739_v13 = vpack.c.bf16 %v699_v10, %v698_v9  ;;  %v700_v17 = vld [vmem:[#allocation2 + $0x120] sm:$0xff]  ;;  %v714_v61 = vrot.slane %v6088_v29, 2  ;;  %v824_v3 = vrot.slane %v6085_v28, 3  ;;  %p5673_p8 = scmp.ne.s32.totalorder %s6524_s2, %s5672_s21  ;;  %s5676_s23 = sshll.u32 %s5790_s30, 4  ;;  %s5677_s23 = int_to_ptr.vmem [resolvable:$false] %s5676_s23 }
  0xb5   : > { %4698 = vmatpush3.bf16.msra.mxu0 %v4697_v24  ;;  %v4763_v16 = vpack.c.bf16 %v810_v12, %v809_v11  ;;  %v701_v18 = vld [vmem:[#allocation2 + $0x128] sm:$0xff]  ;;  %v811_v19 = vld [vmem:[#allocation2 + $0x1a0] sm:$0xff]  ;;  %v702_v24 = vld [vmem:[#allocation2 + $0x130] sm:$0xff]  ;;  %v825_v4 = vrot.slane %v6088_v29, 3  ;;  %v716_v7 = vrot.slane %v6100_v45, 2  ;;  %v718_v12 = vrot.slane %v6105_v50, 2  ;;  %s6634_s13 = smov %s6633_s19  ;;  %s6522_s25 = scalar_lea.hbm %s6633_s19, %s3294_s24 }
  0xb6   : > { %4722 = vmatpush3.bf16.msra.mxu1 %v4721_v26  ;;  %4699 = vmatprep.subr.bf16.mxu0 %v5787_v0  ;;  %v812_v20 = vld [vmem:[#allocation2 + $0x1a8] sm:$0xff]  ;;  %v4742_v21 = vpack.c.bf16 %v701_v18, %v700_v17  ;;  %v703_v25 = vld [vmem:[#allocation2 + $0x138] sm:$0xff]  ;;  %v813_v26 = vld [vmem:[#allocation2 + $0x1b0] sm:$0xff]  ;;  %p5674_p12 = pnand %p5673_p8, %p6635_p10  ;;  %s5678_s28 = scalar_lea.vmem %s5677_s23, 256 }
  0xb7   : > { %4723 = vmatprep.subr.bf16.mxu1 %v5787_v0  ;;  %v4766_v23 = vpack.c.bf16 %v812_v20, %v811_v19  ;;  %v814_v27 = vld [vmem:[#allocation2 + $0x1b8] sm:$0xff]  ;;  %v4745_v30 = vpack.c.bf16 %v703_v25, %v702_v24  ;;  %v704_v32 = vld [vmem:[#allocation2 + $0x140] sm:$0xff]  ;;  %v705_v33 = vld [vmem:[#allocation2 + $0x148] sm:$0xff]  ;;  %p5679_p4 = scmp.lt.s32.totalorder %s6524_s2, %s5677_s23  ;;  %p5680_p5 = scmp.lt.s32.totalorder %s5678_s28, %s5672_s21 }
  0xb8   : > { %v4769_v31 = vpack.c.bf16 %v814_v27, %v813_v26  ;;  %v4748_v37 = vpack.c.bf16 %v705_v33, %v704_v32  ;;  %v706_v39 = vld [vmem:[#allocation2 + $0x150] sm:$0xff]  ;;  %v707_v40 = vld [vmem:[#allocation2 + $0x158] sm:$0xff]  ;;  %v708_v46 = vld [vmem:[#allocation2 + $0x160] sm:$0xff]  ;;  %p5675_p1 = pneg %p5674_p12 }
  0xb9   : > { %4701 = vmatpush3.bf16.msra.mxu0 %v4700_v34  ;;  %v815_v34 = vld [vmem:[#allocation2 + $0x1c0] sm:$0xff]  ;;  %v4751_v43 = vpack.c.bf16 %v707_v40, %v706_v39  ;;  %v709_v47 = vld [vmem:[#allocation2 + $0x168] sm:$0xff]  ;;  %v710_v53 = vld [vmem:[#allocation2 + $0x170] sm:$0xff]  ;;  %p5681_p6 = por %p5680_p5, %p5679_p4 }
  0xba   : > { %4725 = vmatpush3.bf16.msra.mxu1 %v4724_v36  ;;  %4702 = vmatprep.subr.bf16.mxu0 %v5787_v0  ;;  %v816_v36 = vld [vmem:[#allocation2 + $0x1c8] sm:$0xff]  ;;  %v819_v48 = vld [vmem:[#allocation2 + $0x1e0] sm:$0xff]  ;;  %v711_v54 = vld [vmem:[#allocation2 + $0x178] sm:$0xff] }
  0xbb   : > { %4726 = vmatprep.subr.bf16.mxu1 %v5787_v0  ;;  %v4772_v38 = vpack.c.bf16 %v816_v36, %v815_v34  ;;  %v821_v55 = vld [vmem:[#allocation2 + $0x1f0] sm:$0xff]  ;;  %v822_v56 = vld [vmem:[#allocation2 + $0x1f8] sm:$0xff]  ;;  %v918_v63 = vld [vmem:[#allocation2 + $0x200] sm:$0xff]  ;;  %p5682_p7 = pnand %p5681_p6, %p5675_p1 }
  0xbc   : > { %v919_v2 = vld [vmem:[#allocation2 + $0x208] sm:$0xff]  ;;  %v920_v9 = vld [vmem:[#allocation2 + $0x210] sm:$0xff]  ;;  %v921_v10 = vld [vmem:[#allocation2 + $0x218] sm:$0xff] }
  0xbd   : > { %4704 = vmatpush3.bf16.msra.mxu0 %v4703_v41  ;;  %v817_v41 = vld [vmem:[#allocation2 + $0x1d0] sm:$0xff]  ;;  %v4787_v11 = vpack.c.bf16 %v921_v10, %v920_v9  ;;  %v923_v15 = vld [vmem:[#allocation2 + $0x228] sm:$0xff]  ;;  %v925_v20 = vld [vmem:[#allocation2 + $0x238] sm:$0xff] }
  0xbe   : > { %4728 = vmatpush3.bf16.msra.mxu1 %v4727_v42  ;;  %4705 = vmatprep.subr.bf16.mxu0 %v5787_v0  ;;  %v818_v42 = vld [vmem:[#allocation2 + $0x1d8] sm:$0xff]  ;;  %v924_v19 = vld [vmem:[#allocation2 + $0x230] sm:$0xff]  ;;  %v930_v27 = vld [vmem:[#allocation2 + $0x260] sm:$0xff] }
  0xbf   : > { %4729 = vmatprep.subr.bf16.mxu1 %v5787_v0  ;;  %v4775_v44 = vpack.c.bf16 %v818_v42, %v817_v41  ;;  %v928_v24 = vld [vmem:[#allocation2 + $0x250] sm:$0xff]  ;;  %v929_v25 = vld [vmem:[#allocation2 + $0x258] sm:$0xff]  ;;  %v1059_v36 = vld [vmem:[#allocation5] sm:$0xff] }
  0xc0   : > { %v4799_v26 = vpack.c.bf16 %v929_v25, %v928_v24  ;;  %v932_v32 = vld [vmem:[#allocation2 + $0x270] sm:$0xff]  ;;  %v933_v33 = vld [vmem:[#allocation2 + $0x278] sm:$0xff]  ;;  %v1076_v41 = vld [vmem:[#allocation5 + $0x80] sm:$0xff] }
  0xc1   : > { %4707 = vmatpush3.bf16.msra.mxu0 %v4706_v49  ;;  %v820_v49 = vld [vmem:[#allocation2 + $0x1e8] sm:$0xff]  ;;  %v4805_v34 = vpack.c.bf16 %v933_v33, %v932_v32  ;;  %v1062_v40 = vld [vmem:[#allocation5 + $0x18] sm:$0xff] }
  0xc2   : > { %4731 = vmatpush3.bf16.msra.mxu1 %v4730_v51  ;;  %4708 = vmatprep.subr.bf16.mxu0 %v5787_v0  ;;  %v4754_v51 = vpack.c.bf16 %v709_v47, %v708_v46  ;;  %v4778_v52 = vpack.c.bf16 %v820_v49, %v819_v48  ;;  %v1063_v46 = vld [vmem:[#allocation5 + $0x20] sm:$0xff]  ;;  %v1065_v49 = vld [vmem:[#allocation5 + $0x30] sm:$0xff]  ;;  %v1072_v9 = vld [vmem:[#allocation5 + $0x68] sm:$0xff] }
  0xc3   : > { %4732 = vmatprep.subr.bf16.mxu1 %v5787_v0 }
  0xc5   : > { %4710 = vmatpush3.bf16.msra.mxu0 %v4709_v59  ;;  %v4757_v59 = vpack.c.bf16 %v711_v54, %v710_v53  ;;  %v1080_v53 = vld [vmem:[#allocation5 + $0xa0] sm:$0xff]  ;;  %v1081_v54 = vld [vmem:[#allocation5 + $0xa8] sm:$0xff] }
  0xc6   : > { %4734 = vmatpush3.bf16.msra.mxu1 %v4733_v62  ;;  %4735 = vmatprep.subr.bf16.mxu0 %v5787_v0  ;;  %v4781_v62 = vpack.c.bf16 %v822_v56, %v821_v55  ;;  %v1067_v55 = vld [vmem:[#allocation5 + $0x40] sm:$0xff]  ;;  %v4814_v56 = vpack.c.bf16 %v1081_v54, %v1080_v53  ;;  %v478_v54 = vlaneseq }
  0xc7   : > { %4759 = vmatprep.subr.bf16.mxu1 %v5787_v0 }
  0xc8   : > { %3785 = vmatmul.mubr.f32.vlgmr.msra.gmra.mrb[0].mxu0 %v527_v5  ;;  %v715_v5 = vsel %vm712_vm3, %v713_v60, %v714_v61 }
  0xc9   : > { %3826 = vmatmul.mubr.f32.vlgmr.msra.gmra.mrb[0].mxu1 %v6085_v28  ;;  %4737 = vmatpush3.bf16.msra.mxu0 %v4736_v6  ;;  %v4784_v6 = vpack.c.bf16 %v919_v2, %v918_v63  ;;  %v827_v28 = vrot.slane %v6100_v45, 3  ;;  %v1069_v2 = vld [vmem:[#allocation5 + $0x50] sm:$0xff] }
  0xca   : > { %4761 = vmatpush3.bf16.msra.mxu1 %v4760_v8  ;;  %4738 = vmatprep.subr.bf16.mxu0 %v5787_v0  ;;  %v826_v8 = vsel %vm823_vm4, %v824_v3, %v825_v4  ;;  %v1070_v3 = vld [vmem:[#allocation5 + $0x58] sm:$0xff] }
  0xcb   : > { %4762 = vmatprep.subr.bf16.mxu1 %v5787_v0  ;;  %3787 = vmatprep.mubr.msk.f32.mxu0 %vm5788_vm0, %v5789_v1 }
  0xcc   : > { %3788 = vmatmul.mubr.f32.gmra.mrb[2].mxu0 %v529_v14  ;;  %3828 = vmatprep.mubr.msk.f32.mxu1 %vm5788_vm0, %v5789_v1  ;;  %v922_v14 = vld [vmem:[#allocation2 + $0x220] sm:$0xff] }
  0xcd   : > { %4740 = vmatpush3.bf16.msra.mxu0 %v4739_v13  ;;  %3829 = vmatmul.mubr.f32.gmra.mrb[2].mxu1 %v6088_v29  ;;  %v717_v29 = vsel %vm712_vm3, %v714_v61, %v716_v7  ;;  %v828_v13 = vsel %vm823_vm4, %v825_v4, %v827_v28  ;;  %v4790_v17 = vpack.c.bf16 %v923_v15, %v922_v14  ;;  %v1082_v61 = vld [vmem:[#allocation5 + $0xb0] sm:$0xff]  ;;  %v1088_v15 = vld [vmem:[#allocation5 + $0xe0] sm:$0xff] }
  0xce   : > { %4764 = vmatpush3.bf16.msra.mxu1 %v4763_v16  ;;  %4741 = vmatprep.subr.bf16.mxu0 %v5787_v0  ;;  %v719_v16 = vsel %vm712_vm3, %v716_v7, %v718_v12  ;;  %v4847_v4 = vpack.c.bf16 %v1070_v3, %v1069_v2  ;;  %v1071_v7 = vld [vmem:[#allocation5 + $0x60] sm:$0xff] }
  0xcf   : > { %4765 = vmatprep.subr.bf16.mxu1 %v5787_v0  ;;  %3790 = vmatprep.mubr.msk.f32.mxu0 %vm5788_vm0, %v5789_v1  ;;  %v4850_v10 = vpack.c.bf16 %v1072_v9, %v1071_v7 }
  0xd0   : > { %3791 = vmatmul.mubr.f32.gmra.mrb[4].mxu0 %v531_v22  ;;  %3831 = vmatprep.mubr.msk.f32.mxu1 %vm5788_vm0, %v5789_v1  ;;  %v927_v22 = vld [vmem:[#allocation2 + $0x248] sm:$0xff] }
  0xd1   : > { %4743 = vmatpush3.bf16.msra.mxu0 %v4742_v21  ;;  %3832 = vmatmul.mubr.f32.gmra.mrb[4].mxu1 %v6100_v45  ;;  %v829_v45 = vrot.slane %v6105_v50, 3  ;;  %v4793_v50 = vpack.c.bf16 %v925_v20, %v924_v19  ;;  %v926_v21 = vld [vmem:[#allocation2 + $0x240] sm:$0xff] }
  0xd2   : > { %4767 = vmatpush3.bf16.msra.mxu1 %v4766_v23  ;;  %4744 = vmatprep.subr.bf16.mxu0 %v5787_v0  ;;  %v4796_v23 = vpack.c.bf16 %v927_v22, %v926_v21 }
  0xd3   : > { %4768 = vmatprep.subr.bf16.mxu1 %v5787_v0  ;;  %3866 = vmatprep.mubr.msk.f32.mxu0 %vm5788_vm0, %v5789_v1  ;;  %v830_v18 = vsel %vm823_vm4, %v827_v28, %v829_v45  ;;  %v1086_v28 = vld [vmem:[#allocation5 + $0xd0] sm:$0xff]  ;;  %v1089_v45 = vld [vmem:[#allocation5 + $0xe8] sm:$0xff] }
  0xd4   : > { %3907 = vmatprep.mubr.msk.f32.mxu1 %vm5788_vm0, %v5789_v1 }
  0xd5   : > { %4746 = vmatpush3.bf16.msra.mxu0 %v4745_v30  ;;  %v931_v30 = vld [vmem:[#allocation2 + $0x268] sm:$0xff] }
  0xd6   : > { %4770 = vmatpush3.bf16.msra.mxu1 %v4769_v31  ;;  %4747 = vmatprep.subr.bf16.mxu0 %v5787_v0  ;;  %v4802_v31 = vpack.c.bf16 %v931_v30, %v930_v27 }
  0xd7   : > { %4771 = vmatprep.subr.bf16.mxu1 %v5787_v0 }
  0xd9   : > { %4749 = vmatpush3.bf16.msra.mxu0 %v4748_v37  ;;  %v1060_v37 = vld [vmem:[#allocation5 + $0x8] sm:$0xff] }
  0xda   : > { %4773 = vmatpush3.bf16.msra.mxu1 %v4772_v38  ;;  %4750 = vmatprep.subr.bf16.mxu0 %v5787_v0  ;;  %v1061_v38 = vld [vmem:[#allocation5 + $0x10] sm:$0xff]  ;;  %v4832_v39 = vpack.c.bf16 %v1060_v37, %v1059_v36 }
  0xdb   : > { %4774 = vmatprep.subr.bf16.mxu1 %v5787_v0 }
  0xdd   : > { %4752 = vmatpush3.bf16.msra.mxu0 %v4751_v43  ;;  %v1078_v43 = vld [vmem:[#allocation5 + $0x90] sm:$0xff] }
  0xde   : > { %4776 = vmatpush3.bf16.msra.mxu1 %v4775_v44  ;;  %4753 = vmatprep.subr.bf16.mxu0 %v5787_v0  ;;  %v4835_v44 = vpack.c.bf16 %v1062_v40, %v1061_v38 }
  0xdf   : > { %4777 = vmatprep.subr.bf16.mxu1 %v5787_v0 }
  0xe1   : > { %4755 = vmatpush3.bf16.msra.mxu0 %v4754_v51  ;;  %v1066_v51 = vld [vmem:[#allocation5 + $0x38] sm:$0xff] }
  0xe2   : > { %4779 = vmatpush3.bf16.msra.mxu1 %v4778_v52  ;;  %4756 = vmatprep.subr.bf16.mxu0 %v5787_v0  ;;  %v4841_v52 = vpack.c.bf16 %v1066_v51, %v1065_v49 }
  0xe3   : > { %4780 = vmatprep.subr.bf16.mxu1 %v5787_v0 }
  0xe5   : > { %4758 = vmatpush3.bf16.msra.mxu0 %v4757_v59  ;;  %v1068_v59 = vld [vmem:[#allocation5 + $0x48] sm:$0xff] }
  0xe6   : > { %4782 = vmatpush3.bf16.msra.mxu1 %v4781_v62  ;;  %4783 = vmatprep.subr.bf16.mxu0 %v5787_v0  ;;  %v4844_v60 = vpack.c.bf16 %v1068_v59, %v1067_v55  ;;  %v1083_v62 = vld [vmem:[#allocation5 + $0xb8] sm:$0xff] }
  0xe7   : > { %4807 = vmatprep.subr.bf16.mxu1 %v5787_v0  ;;  %v4817_v63 = vpack.c.bf16 %v1083_v62, %v1082_v61  ;;  %v479_v61 = vshrl.u32 %v478_v54, 7 }
  0xe8   : > { %3867 = vmatmul.mubr.f32.vlgmr.msra.gmra.mrb[6].mxu0 %v715_v5  ;;  %v1084_v5 = vld [vmem:[#allocation5 + $0xc0] sm:$0xff] }
  0xe9   : > { %4785 = vmatpush3.bf16.msra.mxu0 %v4784_v6  ;;  %3908 = vmatmul.mubr.f32.vlgmr.msra.gmra.mrb[6].mxu1 %v826_v8  ;;  %v1085_v6 = vld [vmem:[#allocation5 + $0xc8] sm:$0xff] }
  0xea   : > { %3869 = vmatprep.mubr.msk.f32.mxu0 %vm5788_vm0, %v5789_v1  ;;  %4786 = vmatprep.subr.bf16.mxu0 %v5787_v0  ;;  %v4820_v8 = vpack.c.bf16 %v1085_v6, %v1084_v5  ;;  %v480_v6 = vadd.s32 8, %v479_v61 }
  0xeb   : > { %3910 = vmatprep.mubr.msk.f32.mxu1 %vm5788_vm0, %v5789_v1 }
  0xec   : > { %3870 = vmatmul.mubr.f32.gmra.mrb[8].mxu0 %v717_v29  ;;  %v1087_v29 = vld [vmem:[#allocation5 + $0xd8] sm:$0xff] }
  0xed   : > { %4788 = vmatpush3.bf16.msra.mxu0 %v4787_v11  ;;  %3911 = vmatmul.mubr.f32.gmra.mrb[8].mxu1 %v828_v13  ;;  %v1073_v11 = vld [vmem:[#allocation5 + $0x70] sm:$0xff]  ;;  %v4823_v12 = vpack.c.bf16 %v1087_v29, %v1086_v28  ;;  %v1074_v13 = vld [vmem:[#allocation5 + $0x78] sm:$0xff]  ;;  %v1372_v28 = vld [vmem:[#allocation5 + $0x180] sm:$0xff] }
  0xee   : > { %3872 = vmatprep.mubr.msk.f32.mxu0 %vm5788_vm0, %v5789_v1  ;;  %4789 = vmatprep.subr.bf16.mxu0 %v5787_v0  ;;  %v4853_v14 = vpack.c.bf16 %v1074_v13, %v1073_v11  ;;  %v1373_v29 = vld [vmem:[#allocation5 + $0x188] sm:$0xff] }
  0xef   : > { %3913 = vmatprep.mubr.msk.f32.mxu1 %vm5788_vm0, %v5789_v1 }
  0xf0   : > { %3873 = vmatmul.mubr.f32.gmra.mrb[10].mxu0 %v719_v16  ;;  %v4826_v16 = vpack.c.bf16 %v1089_v45, %v1088_v15  ;;  %v4880_v15 = vpack.c.bf16 %v1373_v29, %v1372_v28  ;;  %v1374_v45 = vld [vmem:[#allocation5 + $0x190] sm:$0xff]  ;;  %v1272_v29 = vld [vmem:[#allocation5 + $0x140] sm:$0xff] }
  0xf1   : > { %4791 = vmatpush3.bf16.msra.mxu0 %v4790_v17  ;;  %3914 = vmatmul.mubr.f32.gmra.mrb[10].mxu1 %v830_v18  ;;  %v1090_v17 = vld [vmem:[#allocation5 + $0xf0] sm:$0xff]  ;;  %v1091_v18 = vld [vmem:[#allocation5 + $0xf8] sm:$0xff] }
  0xf2   : > { %4792 = vmatprep.subr.bf16.mxu0 %v5787_v0  ;;  %3948 = vmatprep.mubr.msk.f32.mxu0 %vm5788_vm0, %v5789_v1  ;;  %v4829_v19 = vpack.c.bf16 %v1091_v18, %v1090_v17 }
  0xf3   : > { %3989 = vmatprep.mubr.msk.f32.mxu1 %vm5788_vm0, %v5789_v1 }
  0xf5   : > { %4794 = vmatpush3.bf16.msra.mxu0 %v4793_v50 }
  0xf6   : > { %4795 = vmatprep.subr.bf16.mxu0 %v5787_v0 }
  0xf9   : > { %4797 = vmatpush3.bf16.msra.mxu0 %v4796_v23 }
  0xfa   : > { %4798 = vmatprep.subr.bf16.mxu0 %v5787_v0 }
  0xfd   : > { %4800 = vmatpush3.bf16.msra.mxu0 %v4799_v26 }
  0xfe   : > { %4801 = vmatprep.subr.bf16.mxu0 %v5787_v0 }
 0x101   : > { %4803 = vmatpush3.bf16.msra.mxu0 %v4802_v31 }
 0x102   : > { %4804 = vmatprep.subr.bf16.mxu0 %v5787_v0 }
 0x105   : > { %4806 = vmatpush3.bf16.msra.mxu0 %v4805_v34 }
 0x106   : > { %4831 = vmatprep.subr.bf16.mxu0 %v5787_v0 }
 0x108   : > { %3949 = vmatmul.mubr.f32.vlgmr.msra.gmra.mrb[12].mxu0 %v6094_v35  ;;  %v1077_v35 = vld [vmem:[#allocation5 + $0x88] sm:$0xff] }
 0x109   : > { %3951 = vmatprep.mubr.msk.f32.mxu0 %vm5788_vm0, %v5789_v1  ;;  %v4808_v42 = vpack.c.bf16 %v1077_v35, %v1076_v41  ;;  %4833 = vmatpush3.bf16.msra.mxu0 %v4832_v39 }
 0x10a   : > { %4834 = vmatprep.subr.bf16.mxu0 %v5787_v0 }
 0x10b   : > { %4809 = vmatpush3.bf16.msra.mxu1 %v4808_v42 }
 0x10c   : > { %3952 = vmatmul.mubr.f32.gmra.mrb[14].mxu0 %v6111_v57  ;;  %v1079_v57 = vld [vmem:[#allocation5 + $0x98] sm:$0xff]  ;;  %4810 = vmatprep.subr.bf16.mxu1 %v5787_v0 }
 0x10d   : > { %3954 = vmatprep.mubr.msk.f32.mxu0 %vm5788_vm0, %v5789_v1  ;;  %v4811_v47 = vpack.c.bf16 %v1079_v57, %v1078_v43  ;;  %4836 = vmatpush3.bf16.msra.mxu0 %v4835_v44 }
 0x10e   : > { %4837 = vmatprep.subr.bf16.mxu0 %v5787_v0 }
 0x10f   : > { %4812 = vmatpush3.bf16.msra.mxu1 %v4811_v47 }
 0x110   : > { %3955 = vmatmul.mubr.f32.gmra.mrb[16].mxu0 %v6114_v58  ;;  %v1064_v58 = vld [vmem:[#allocation5 + $0x28] sm:$0xff]  ;;  %4813 = vmatprep.subr.bf16.mxu1 %v5787_v0 }
 0x111   : > { %4030 = vmatprep.mubr.msk.f32.mxu0 %vm5788_vm0, %v5789_v1  ;;  %v4838_v48 = vpack.c.bf16 %v1064_v58, %v1063_v46 }
 0x113   : > { %4839 = vmatpush3.bf16.msra.mxu0 %v4838_v48  ;;  %4815 = vmatpush3.bf16.msra.mxu1 %v4814_v56  ;;  %v3282_v56 = vld [vmem:[%s6581_s6] ss:$0 sm:$0xff] }
 0x114   : > { %4840 = vmatprep.subr.bf16.mxu0 %v5787_v0  ;;  %4816 = vmatprep.subr.bf16.mxu1 %v5787_v0 }
 0x117   : > { %4842 = vmatpush3.bf16.msra.mxu0 %v4841_v52  ;;  %4818 = vmatpush3.bf16.msra.mxu1 %v4817_v63  ;;  %v483_v63 = vstv %s3281_s11 }
 0x118   : > { %4843 = vmatprep.subr.bf16.mxu0 %v5787_v0  ;;  %4819 = vmatprep.subr.bf16.mxu1 %v5787_v0  ;;  %v484_v5 = vadd.s32 %v483_v63, %v479_v61  ;;  %v485_v11 = vadd.s32 %v483_v63, %v480_v6  ;;  %v1270_v6 = vld [vmem:[#allocation5 + $0x130] sm:$0xff] }
 0x11a   : > { %vm1041_vm5 = vcmp.ge.s32.totalorder %v484_v5, 0  ;;  %vm1044_vm6 = vcmp.lt.s32.totalorder %v484_v5, 24  ;;  %vm1042_vm8 = vcmp.ge.s32.totalorder %v485_v11, 0  ;;  %vm1045_vm9 = vcmp.lt.s32.totalorder %v485_v11, 24  ;;  %v1273_v11 = vld [vmem:[#allocation5 + $0x148] sm:$0xff] }
 0x11b   : > { %4845 = vmatpush3.bf16.msra.mxu0 %v4844_v60  ;;  %4821 = vmatpush3.bf16.msra.mxu1 %v4820_v8  ;;  %vm6222_vm7 = vmand %vm1041_vm5, %vm1044_vm6 }
 0x11c   : > { %4846 = vmatprep.subr.bf16.mxu0 %v5787_v0  ;;  %4822 = vmatprep.subr.bf16.mxu1 %v5787_v0  ;;  %vm6232_vm10 = vmand %vm1042_vm8, %vm1045_vm9 }
 0x11f   : > { %4848 = vmatpush3.bf16.msra.mxu0 %v4847_v4  ;;  %4824 = vmatpush3.bf16.msra.mxu1 %v4823_v12  ;;  %v481_v12 = vadd.s32 16, %v479_v61  ;;  %v1381_v61 = vld [vmem:[#allocation5 + $0x1c8] sm:$0xff] }
 0x120   : > { %4849 = vmatprep.subr.bf16.mxu0 %v5787_v0  ;;  %4825 = vmatprep.subr.bf16.mxu1 %v5787_v0 }
 0x121   : > { %v486_v17 = vadd.s32 %v483_v63, %v481_v12  ;;  %v1384_v12 = vld [vmem:[#allocation5 + $0x1e0] sm:$0xff] }
 0x123   : > { %4851 = vmatpush3.bf16.msra.mxu0 %v4850_v10  ;;  %4827 = vmatpush3.bf16.msra.mxu1 %v4826_v16  ;;  %v1375_v16 = vld [vmem:[#allocation5 + $0x198] sm:$0xff]  ;;  %vm1043_vm11 = vcmp.ge.s32.totalorder %v486_v17, 0  ;;  %vm1046_vm12 = vcmp.lt.s32.totalorder %v486_v17, 24 }
 0x124   : > { %4852 = vmatprep.subr.bf16.mxu0 %v5787_v0  ;;  %4828 = vmatprep.subr.bf16.mxu1 %v5787_v0  ;;  %vm6245_vm13 = vmand %vm1043_vm11, %vm1046_vm12  ;;  %v1275_v17 = vld [vmem:[#allocation5 + $0x158] sm:$0xff] }
 0x127   : > { %4854 = vmatpush3.bf16.msra.mxu0 %v4853_v14  ;;  %4830 = vmatpush3.bf16.msra.mxu1 %v4829_v19  ;;  %v1264_v19 = vld [vmem:[#allocation5 + $0x100] sm:$0xff] }
 0x128   : > { %4879 = vmatprep.subr.bf16.mxu0 %v5787_v0  ;;  %4855 = vmatprep.subr.bf16.mxu1 %v5787_v0 }
 0x19b   : > { %v601_v20 = vpop.f32.mrb[0].mxu0 }
 0x19c   : > { %v3786_v50 = vpop.f32.mrb[1].mxu0  ;;  %v681_v21 = vpop.f32.mrb[0].mxu1 }
 0x19d   : > { %v682_v22 = vadd.f32 %v681_v21, %v601_v20  ;;  %v3827_v23 = vpop.f32.mrb[1].mxu1  ;;  %v1265_v50 = vld [vmem:[#allocation5 + $0x108] sm:$0xff]  ;;  %v1376_v21 = vld [vmem:[#allocation5 + $0x1a0] sm:$0xff] }
 0x19f   : > { %v606_v24 = vpop.f32.mrb[2].mxu0 }
 0x1a0   : > { %v3789_v25 = vpop.f32.mrb[3].mxu0  ;;  %v686_v26 = vpop.f32.mrb[2].mxu1 }
 0x1a1   : > { %v687_v27 = vadd.f32 %v686_v26, %v606_v24  ;;  %v3830_v30 = vpop.f32.mrb[3].mxu1  ;;  %v4883_v24 = vpack.c.bf16 %v1375_v16, %v1374_v45  ;;  %v1274_v16 = vld [vmem:[#allocation5 + $0x150] sm:$0xff] }
 0x1a3   : > { %v611_v31 = vpop.f32.mrb[4].mxu0 }
 0x1a4   : > { %v3792_v32 = vpop.f32.mrb[5].mxu0  ;;  %v691_v33 = vpop.f32.mrb[4].mxu1 }
 0x1a5   : > { %v692_v34 = vadd.f32 %v691_v33, %v611_v31  ;;  %v3833_v36 = vpop.f32.mrb[5].mxu1  ;;  %v1266_v32 = vld [vmem:[#allocation5 + $0x110] sm:$0xff]  ;;  %v1267_v33 = vld [vmem:[#allocation5 + $0x118] sm:$0xff] }
 0x1bb   : > { %v789_v37 = vpop.f32.mrb[6].mxu0 }
 0x1bc   : > { %v803_v38 = vadd.f32 %v789_v37, %v682_v22  ;;  %v3868_v39 = vpop.f32.mrb[7].mxu0  ;;  %v900_v40 = vpop.f32.mrb[6].mxu1  ;;  %v1377_v22 = vld [vmem:[#allocation5 + $0x1a8] sm:$0xff] }
 0x1bd   : > { %v3909_v41 = vpop.f32.mrb[7].mxu1  ;;  %v4886_v30 = vpack.c.bf16 %v1377_v22, %v1376_v21  ;;  %v1276_v21 = vld [vmem:[#allocation5 + $0x160] sm:$0xff]  ;;  %v1277_v22 = vld [vmem:[#allocation5 + $0x168] sm:$0xff]  ;;  %v2844_v39 = vld [vmem:[#allocation10 + $0x110] sm:$0xff] }
 0x1be   : > { %v914_v35 = vadd.f32 %v900_v40, %v803_v38  ;;  %v1378_v40 = vld [vmem:[#allocation5 + $0x1b0] sm:$0xff]  ;;  %v1379_v41 = vld [vmem:[#allocation5 + $0x1b8] sm:$0xff] }
 0x1bf   : > { %v794_v42 = vpop.f32.mrb[8].mxu0 }
 0x1c0   : > { %v804_v43 = vadd.f32 %v794_v42, %v687_v27  ;;  %v905_v44 = vpop.f32.mrb[8].mxu1  ;;  %v3871_v57 = vpop.f32.mrb[9].mxu0  ;;  %v4856_v27 = vpack.c.bf16 %v1265_v50, %v1264_v19  ;;  %v1387_v19 = vld [vmem:[#allocation5 + $0x1f8] sm:$0xff] }
 0x1c1   : > { %v3912_v46 = vpop.f32.mrb[9].mxu1 }
 0x1c2   : > { %v915_v58 = vadd.f32 %v905_v44, %v804_v43 }
 0x1c3   : > { %v799_v47 = vpop.f32.mrb[10].mxu0 }
 0x1c4   : > { %v805_v48 = vadd.f32 %v799_v47, %v692_v34  ;;  %v910_v49 = vpop.f32.mrb[10].mxu1  ;;  %v3874_v51 = vpop.f32.mrb[11].mxu0 }
 0x1c5   : > { %v3915_v52 = vpop.f32.mrb[11].mxu1  ;;  %v4889_v51 = vpack.c.bf16 %v1379_v41, %v1378_v40  ;;  %v1486_v41 = vld [vmem:[#allocation5 + $0x230] sm:$0xff] }
 0x1c6   : > { %v916_v53 = vadd.f32 %v910_v49, %v805_v48  ;;  %v4859_v49 = vpack.c.bf16 %v1267_v33, %v1266_v32  ;;  %v1482_v33 = vld [vmem:[#allocation5 + $0x210] sm:$0xff] }
 0x1db   : > { %v1011_v55 = vpop.f32.mrb[12].mxu0 }
 0x1dc   : > { %v1025_v59 = vadd.f32 %v1011_v55, %v914_v35  ;;  %v3950_v60 = vpop.f32.mrb[13].mxu0 }
 0x1dd   : > { %v1380_v60 = vld [vmem:[#allocation5 + $0x1c0] sm:$0xff] }
 0x1de   : > { %v1035_v62 = vadd.f32 %v3282_v56, %v1025_v59  ;;  %v1269_v59 = vld [vmem:[#allocation5 + $0x128] sm:$0xff]  ;;  %v4892_v5 = vpack.c.bf16 %v1381_v61, %v1380_v60  ;;  %v1632_v60 = vld [vmem:[#allocation7 + $0x80] sm:$0xff] }
 0x1df   : > { %v1016_v2 = vpop.f32.mrb[14].mxu0  ;;  %v1633_v61 = vld [vmem:[#allocation7 + $0x88] sm:$0xff] }
 0x1e0   : > { %5512 = vtanh.f32 %v1035_v62  ;;  %v1026_v3 = vadd.f32 %v1016_v2, %v915_v58  ;;  %v3953_v4 = vpop.f32.mrb[15].mxu0 }
 0x1e2   : > { %v1036_v7 = vadd.f32 %v3282_v56, %v1026_v3 }
 0x1e3   : > { %v1021_v8 = vpop.f32.mrb[16].mxu0 }
 0x1e4   : > { %5514 = vtanh.f32 %v1036_v7  ;;  %v1027_v9 = vadd.f32 %v1021_v8, %v916_v53  ;;  %v3956_v10 = vpop.f32.mrb[17].mxu0  ;;  %v1268_v53 = vld [vmem:[#allocation5 + $0x120] sm:$0xff]  ;;  %v1271_v7 = vld [vmem:[#allocation5 + $0x138] sm:$0xff]  ;;  %v1382_v8 = vld [vmem:[#allocation5 + $0x1d0] sm:$0xff] }
 0x1e5   : > { %v4862_v4 = vpack.c.bf16 %v1269_v59, %v1268_v53  ;;  %v4865_v10 = vpack.c.bf16 %v1271_v7, %v1270_v6  ;;  %v1639_v7 = vld [vmem:[#allocation7 + $0xb8] sm:$0xff] }
 0x1e6   : > { %v1037_v13 = vadd.f32 %v3282_v56, %v1027_v9  ;;  %v1383_v9 = vld [vmem:[#allocation5 + $0x1d8] sm:$0xff] }
 0x1e7   : > { %v4895_v28 = vpack.c.bf16 %v1383_v9, %v1382_v8 }
 0x1e8   : > { %5516 = vtanh.f32 %v1037_v13  ;;  %v1385_v13 = vld [vmem:[#allocation5 + $0x1e8] sm:$0xff] }
 0x1e9   : > { %v4898_v45 = vpack.c.bf16 %v1385_v13, %v1384_v12  ;;  %v1645_v12 = vld [vmem:[#allocation7 + $0xe8] sm:$0xff] }
 0x1ea   : > { %v5513_v18 = vpop.eup %5512 }
 0x1eb   : > { %4031 = vmatmul.mubr.msk.f32.vlgmr.msra.gmra.mrb[18].mxu0 %vm6222_vm7, %v5513_v18  ;;  %v1056_v20 = vsel %vm6222_vm7, %v5513_v18, 0.0  ;;  %v1386_v18 = vld [vmem:[#allocation5 + $0x1f0] sm:$0xff] }
 0x1ec   : > { %4881 = vmatpush3.bf16.msra.mxu0 %v4880_v15  ;;  %4033 = vmatprep.mubr.msk.f32.mxu0 %vm5788_vm0, %v5789_v1  ;;  %v1095_v26 = vrot.slane %v1056_v20, 1  ;;  %v1388_v34 = vrot.slane %v1056_v20, 3  ;;  %v1280_v36 = vrot.slane %v1056_v20, 2  ;;  %v1496_v37 = vrot.slane %v1056_v20, 4 }
 0x1ed   : > { %4882 = vmatprep.subr.bf16.mxu0 %v5787_v0  ;;  %v4868_v15 = vpack.c.bf16 %v1273_v11, %v1272_v29  ;;  %v4871_v20 = vpack.c.bf16 %v1275_v17, %v1274_v16  ;;  %v4901_v50 = vpack.c.bf16 %v1387_v19, %v1386_v18  ;;  %v1644_v11 = vld [vmem:[#allocation7 + $0xe0] sm:$0xff]  ;;  %v1616_v18 = vld [vmem:[#allocation7 + $0x8] sm:$0xff] }
 0x1ee   : > { %v5515_v25 = vpop.eup %5514  ;;  %v4951_v13 = vpack.c.bf16 %v1645_v12, %v1644_v11  ;;  %v1615_v17 = vld [vmem:[#allocation7] sm:$0xff] }
 0x1ef   : > { %4034 = vmatmul.mubr.msk.f32.gmra.mrb[20].mxu0 %vm6232_vm10, %v5515_v25  ;;  %v1057_v31 = vsel %vm6232_vm10, %v5515_v25, 0.0  ;;  %v1278_v25 = vld [vmem:[#allocation5 + $0x170] sm:$0xff]  ;;  %v6337_v19 = vpack.c.bf16 %v1616_v18, %v1615_v17 }
 0x1f0   : > { %4884 = vmatpush3.bf16.msra.mxu0 %v4883_v24  ;;  %4036 = vmatprep.mubr.msk.f32.mxu0 %vm5788_vm0, %v5789_v1  ;;  %v1096_v38 = vrot.slane %v1057_v31, 1  ;;  %v1389_v35 = vrot.slane %v1057_v31, 3  ;;  %v1281_v42 = vrot.slane %v1057_v31, 2  ;;  %v1497_v43 = vrot.slane %v1057_v31, 4  ;;  %v1481_v31 = vld [vmem:[#allocation5 + $0x208] sm:$0xff] }
 0x1f1   : > { %4885 = vmatprep.subr.bf16.mxu0 %v5787_v0  ;;  %v4874_v24 = vpack.c.bf16 %v1277_v22, %v1276_v21 }
 0x1f2   : > { %v5517_v44 = vpop.eup %5516  ;;  %v1097_v57 = vsel %vm524_vm2, %v1095_v26, %v1096_v38  ;;  %v6252_v46 = vsel %vm823_vm4, %v1388_v34, %v1389_v35  ;;  %v6255_v58 = vsel %vm712_vm3, %v1280_v36, %v1281_v42  ;;  %v6258_v47 = vsel %vm934_vm1, %v1496_v37, %v1497_v43  ;;  %v1279_v26 = vld [vmem:[#allocation5 + $0x178] sm:$0xff]  ;;  %v1484_v37 = vld [vmem:[#allocation5 + $0x220] sm:$0xff] }
 0x1f3   : > { %3990 = vmatmul.mubr.f32.vlgmr.msra.gmra.mrb[12].mxu1 %v1097_v57  ;;  %4037 = vmatmul.mubr.msk.f32.gmra.mrb[22].mxu0 %vm6245_vm13, %v5517_v44  ;;  %v6264_v48 = vsel %vm6245_vm13, %v5517_v44, 0.0  ;;  %v1483_v34 = vld [vmem:[#allocation5 + $0x218] sm:$0xff]  ;;  %v1489_v44 = vld [vmem:[#allocation5 + $0x248] sm:$0xff] }
 0x1f4   : > { %4857 = vmatpush3.bf16.msra.mxu1 %v4856_v27  ;;  %4887 = vmatpush3.bf16.msra.mxu0 %v4886_v30  ;;  %v1098_v52 = vrot.slane %v6264_v48, 1  ;;  %v1391_v54 = vrot.slane %v6264_v48, 3  ;;  %v1283_v55 = vrot.slane %v6264_v48, 2  ;;  %v1499_v56 = vrot.slane %v6264_v48, 4  ;;  %v1480_v30 = vld [vmem:[#allocation5 + $0x200] sm:$0xff] }
 0x1f5   : > { %3992 = vmatprep.mubr.msk.f32.mxu1 %vm5788_vm0, %v5789_v1  ;;  %4858 = vmatprep.subr.bf16.mxu1 %v5787_v0  ;;  %v4877_v27 = vpack.c.bf16 %v1279_v26, %v1278_v25  ;;  %v4904_v32 = vpack.c.bf16 %v1481_v31, %v1480_v30  ;;  %v4907_v36 = vpack.c.bf16 %v1483_v34, %v1482_v33  ;;  %v1640_v48 = vld [vmem:[#allocation7 + $0xc0] sm:$0xff] }
 0x1f6   : > { %4888 = vmatprep.subr.bf16.mxu0 %v5787_v0  ;;  %v1099_v62 = vsel %vm524_vm2, %v1096_v38, %v1098_v52  ;;  %4112 = vmatprep.mubr.msk.f32.mxu0 %vm5788_vm0, %v5789_v1  ;;  %v1392_v63 = vsel %vm823_vm4, %v1389_v35, %v1391_v54  ;;  %v6283_v2 = vsel %vm712_vm3, %v1281_v42, %v1283_v55  ;;  %v1485_v38 = vld [vmem:[#allocation5 + $0x228] sm:$0xff]  ;;  %v1487_v35 = vld [vmem:[#allocation5 + $0x238] sm:$0xff] }
 0x1f7   : > { %3993 = vmatmul.mubr.f32.gmra.mrb[14].mxu1 %v1099_v62  ;;  %v6288_v3 = vsel %vm934_vm1, %v1497_v43, %v1499_v56  ;;  %v4910_v40 = vpack.c.bf16 %v1485_v38, %v1484_v37  ;;  %v4913_v42 = vpack.c.bf16 %v1487_v35, %v1486_v41  ;;  %v1488_v43 = vld [vmem:[#allocation5 + $0x240] sm:$0xff]  ;;  %v4927_v62 = vpack.c.bf16 %v1633_v61, %v1632_v60 }
 0x1f8   : > { %4860 = vmatpush3.bf16.msra.mxu1 %v4859_v49  ;;  %4890 = vmatpush3.bf16.msra.mxu0 %v4889_v51  ;;  %v4916_v57 = vpack.c.bf16 %v1489_v44, %v1488_v43  ;;  %v1492_v51 = vld [vmem:[#allocation5 + $0x260] sm:$0xff] }
 0x1f9   : > { %3995 = vmatprep.mubr.msk.f32.mxu1 %vm5788_vm0, %v5789_v1  ;;  %4861 = vmatprep.subr.bf16.mxu1 %v5787_v0 }
 0x1fa   : > { %4891 = vmatprep.subr.bf16.mxu0 %v5787_v0 }
 0x1fb   : > { %3996 = vmatmul.mubr.f32.gmra.mrb[16].mxu1 %v1098_v52  ;;  %v1493_v52 = vld [vmem:[#allocation5 + $0x268] sm:$0xff] }
 0x1fc   : > { %4863 = vmatpush3.bf16.msra.mxu1 %v4862_v4  ;;  %4893 = vmatpush3.bf16.msra.mxu0 %v4892_v5  ;;  %v4922_v53 = vpack.c.bf16 %v1493_v52, %v1492_v51  ;;  %v1637_v5 = vld [vmem:[#allocation7 + $0xa8] sm:$0xff] }
 0x1fd   : > { %4864 = vmatprep.subr.bf16.mxu1 %v5787_v0  ;;  %4894 = vmatprep.subr.bf16.mxu0 %v5787_v0 }
 0x1fe   : > { %4071 = vmatprep.mubr.msk.f32.mxu1 %vm5788_vm0, %v5789_v1 }
 0x200   : > { %4866 = vmatpush3.bf16.msra.mxu1 %v4865_v10  ;;  %4896 = vmatpush3.bf16.msra.mxu0 %v4895_v28  ;;  %v1642_v10 = vld [vmem:[#allocation7 + $0xd0] sm:$0xff]  ;;  %v1643_v28 = vld [vmem:[#allocation7 + $0xd8] sm:$0xff] }
 0x201   : > { %4867 = vmatprep.subr.bf16.mxu1 %v5787_v0  ;;  %4897 = vmatprep.subr.bf16.mxu0 %v5787_v0  ;;  %v4947_v29 = vpack.c.bf16 %v1643_v28, %v1642_v10 }
 0x204   : > { %4869 = vmatpush3.bf16.msra.mxu1 %v4868_v15  ;;  %4899 = vmatpush3.bf16.msra.mxu0 %v4898_v45  ;;  %v1646_v15 = vld [vmem:[#allocation7 + $0xf0] sm:$0xff]  ;;  %v1647_v45 = vld [vmem:[#allocation7 + $0xf8] sm:$0xff] }
 0x205   : > { %4870 = vmatprep.subr.bf16.mxu1 %v5787_v0  ;;  %4900 = vmatprep.subr.bf16.mxu0 %v5787_v0  ;;  %v4955_v16 = vpack.c.bf16 %v1647_v45, %v1646_v15 }
 0x208   : > { %4872 = vmatpush3.bf16.msra.mxu1 %v4871_v20  ;;  %4902 = vmatpush3.bf16.msra.mxu0 %v4901_v50 }
 0x209   : > { %4873 = vmatprep.subr.bf16.mxu1 %v5787_v0  ;;  %4928 = vmatprep.subr.bf16.mxu0 %v4927_v62 }
 0x20b   : > { %4113 = vmatmul.mubr.f32.vlgmr.msra.gmra.mrb[24].mxu0 %v6252_v46  ;;  %v1490_v46 = vld [vmem:[#allocation5 + $0x250] sm:$0xff] }
 0x20c   : > { %4875 = vmatpush3.bf16.msra.mxu1 %v4874_v24  ;;  %4115 = vmatprep.mubr.msk.f32.mxu0 %vm5788_vm0, %v5789_v1 }
 0x20d   : > { %4876 = vmatprep.subr.bf16.mxu1 %v5787_v0  ;;  %4930 = vmatpush3.bf16.msra.mxu0 %v4927_v62  ;;  %v3286_v62 = vld [vmem:[%s6582_s7] ss:$0 sm:$0xff] }
 0x20f   : > { %4116 = vmatmul.mubr.f32.gmra.mrb[26].mxu0 %v1392_v63  ;;  %v1634_v63 = vld [vmem:[#allocation7 + $0x90] sm:$0xff] }
 0x210   : > { %4878 = vmatpush3.bf16.msra.mxu1 %v4877_v27  ;;  %4118 = vmatprep.mubr.msk.f32.mxu0 %vm5788_vm0, %v5789_v1 }
 0x211   : > { %4903 = vmatprep.subr.bf16.mxu1 %v5787_v0 }
 0x213   : > { %4072 = vmatmul.mubr.f32.vlgmr.msra.gmra.mrb[18].mxu1 %v6255_v58  ;;  %4119 = vmatmul.mubr.f32.gmra.mrb[28].mxu0 %v1391_v54  ;;  %v1491_v58 = vld [vmem:[#allocation5 + $0x258] sm:$0xff]  ;;  %v1494_v54 = vld [vmem:[#allocation5 + $0x270] sm:$0xff] }
 0x214   : > { %4905 = vmatpush3.bf16.msra.mxu1 %v4904_v32  ;;  %4074 = vmatprep.mubr.msk.f32.mxu1 %vm5788_vm0, %v5789_v1  ;;  %v4919_v49 = vpack.c.bf16 %v1491_v58, %v1490_v46 }
 0x215   : > { %4906 = vmatprep.subr.bf16.mxu1 %v5787_v0 }
 0x217   : > { %4075 = vmatmul.mubr.f32.gmra.mrb[20].mxu1 %v6283_v2  ;;  %v1635_v2 = vld [vmem:[#allocation7 + $0x98] sm:$0xff] }
 0x218   : > { %4908 = vmatpush3.bf16.msra.mxu1 %v4907_v36  ;;  %4077 = vmatprep.mubr.msk.f32.mxu1 %vm5788_vm0, %v5789_v1  ;;  %v4931_v4 = vpack.c.bf16 %v1635_v2, %v1634_v63 }
 0x219   : > { %4909 = vmatprep.subr.bf16.mxu1 %v5787_v0 }
 0x21a   : > { %4932 = vmatprep.subr.bf16.mxu0 %v4931_v4 }
 0x21b   : > { %4078 = vmatmul.mubr.f32.gmra.mrb[22].mxu1 %v1283_v55  ;;  %v1495_v55 = vld [vmem:[#allocation5 + $0x278] sm:$0xff]  ;;  %4934 = vmatpush3.bf16.msra.mxu0 %v4931_v4 }
 0x21c   : > { %4911 = vmatpush3.bf16.msra.mxu1 %v4910_v40  ;;  %4153 = vmatprep.mubr.msk.f32.mxu1 %vm5788_vm0, %v5789_v1  ;;  %v4925_v59 = vpack.c.bf16 %v1495_v55, %v1494_v54 }
 0x21d   : > { %4912 = vmatprep.subr.bf16.mxu1 %v5787_v0 }
 0x220   : > { %4914 = vmatpush3.bf16.msra.mxu1 %v4913_v42 }
 0x221   : > { %4915 = vmatprep.subr.bf16.mxu1 %v5787_v0 }
 0x224   : > { %4917 = vmatpush3.bf16.msra.mxu1 %v4916_v57 }
 0x225   : > { %4918 = vmatprep.subr.bf16.mxu1 %v5787_v0 }
 0x228   : > { %4920 = vmatpush3.bf16.msra.mxu1 %v4919_v49 }
 0x229   : > { %4921 = vmatprep.subr.bf16.mxu1 %v5787_v0 }
 0x22c   : > { %4923 = vmatpush3.bf16.msra.mxu1 %v4922_v53 }
 0x22d   : > { %4924 = vmatprep.subr.bf16.mxu1 %v5787_v0 }
 0x230   : > { %4926 = vmatpush3.bf16.msra.mxu1 %v4925_v59 }
 0x233   : > { %4154 = vmatmul.mubr.f32.vlgmr.msra.gmra.mrb[24].mxu1 %v6258_v47  ;;  %v1636_v47 = vld [vmem:[#allocation7 + $0xa0] sm:$0xff] }
 0x234   : > { %4156 = vmatprep.mubr.msk.f32.mxu1 %vm5788_vm0, %v5789_v1  ;;  %v4935_v6 = vpack.c.bf16 %v1637_v5, %v1636_v47 }
 0x236   : > { %4936 = vmatprep.subr.bf16.mxu0 %v4935_v6 }
 0x237   : > { %4157 = vmatmul.mubr.f32.gmra.mrb[26].mxu1 %v6288_v3  ;;  %4938 = vmatpush3.bf16.msra.mxu0 %v4935_v6  ;;  %v1638_v3 = vld [vmem:[#allocation7 + $0xb0] sm:$0xff] }
 0x238   : > { %4159 = vmatprep.mubr.msk.f32.mxu1 %vm5788_vm0, %v5789_v1  ;;  %v4939_v8 = vpack.c.bf16 %v1639_v7, %v1638_v3 }
 0x23a   : > { %4940 = vmatprep.subr.bf16.mxu0 %v4939_v8 }
 0x23b   : > { %4160 = vmatmul.mubr.f32.gmra.mrb[28].mxu1 %v1499_v56  ;;  %4942 = vmatpush3.bf16.msra.mxu0 %v4939_v8  ;;  %v1641_v56 = vld [vmem:[#allocation7 + $0xc8] sm:$0xff] }
 0x23c   : > { %v4943_v9 = vpack.c.bf16 %v1641_v56, %v1640_v48 }
 0x23e   : > { %4944 = vmatprep.subr.bf16.mxu0 %v4943_v9 }
 0x23f   : > { %4946 = vmatpush3.bf16.msra.mxu0 %v4943_v9 }
 0x240   : > { %4948 = vmatprep.subr.bf16.mxu0 %v4947_v29 }
 0x243   : > { %4950 = vmatpush3.bf16.msra.mxu0 %v4947_v29 }
 0x244   : > { %4952 = vmatprep.subr.bf16.mxu0 %v4951_v13 }
 0x247   : > { %4954 = vmatpush3.bf16.msra.mxu0 %v4951_v13 }
 0x248   : > { %4956 = vmatprep.subr.bf16.mxu0 %v4955_v16 }
 0x24b   : > { %4958 = vmatpush3.bf16.msra.mxu0 %v4955_v16 }
 0x24c   : > { %4960 = vmatprep.subr.bf16.mxu0 %v6337_v19 }
 0x2be   : > { %v1249_v20 = vpop.f32.mrb[18].mxu0 }
 0x2bf   : > { %v4032_v50 = vpop.f32.mrb[19].mxu0 }
 0x2c2   : > { %v1254_v21 = vpop.f32.mrb[20].mxu0 }
 0x2c3   : > { %v4035_v22 = vpop.f32.mrb[21].mxu0 }
 0x2c6   : > { %v1169_v24 = vpop.f32.mrb[12].mxu1  ;;  %v1259_v25 = vpop.f32.mrb[22].mxu0 }
 0x2c7   : > { %v1250_v26 = vadd.f32 %v1249_v20, %v1169_v24  ;;  %v3991_v27 = vpop.f32.mrb[13].mxu1  ;;  %v4038_v30 = vpop.f32.mrb[23].mxu0 }
 0x2ca   : > { %v1174_v31 = vpop.f32.mrb[14].mxu1 }
 0x2cb   : > { %v1255_v32 = vadd.f32 %v1254_v21, %v1174_v31  ;;  %v3994_v33 = vpop.f32.mrb[15].mxu1 }
 0x2cc   : > { %v1618_v33 = vld [vmem:[#allocation7 + $0x18] sm:$0xff] }
 0x2ce   : > { %v1179_v34 = vpop.f32.mrb[16].mxu1 }
 0x2cf   : > { %v1260_v36 = vadd.f32 %v1259_v25, %v1179_v34  ;;  %v3997_v37 = vpop.f32.mrb[17].mxu1 }
 0x2de   : > { %v1462_v38 = vpop.f32.mrb[24].mxu0 }
 0x2df   : > { %v4114_v40 = vpop.f32.mrb[25].mxu0 }
 0x2e2   : > { %v1467_v41 = vpop.f32.mrb[26].mxu0 }
 0x2e3   : > { %v4117_v35 = vpop.f32.mrb[27].mxu0 }
 0x2e6   : > { %v1354_v42 = vpop.f32.mrb[18].mxu1  ;;  %v1472_v43 = vpop.f32.mrb[28].mxu0 }
 0x2e7   : > { %v1368_v44 = vadd.f32 %v1354_v42, %v1250_v26  ;;  %v4073_v57 = vpop.f32.mrb[19].mxu1  ;;  %v4120_v46 = vpop.f32.mrb[29].mxu0 }
 0x2e8   : > { %v1619_v46 = vld [vmem:[#allocation7 + $0x20] sm:$0xff] }
 0x2e9   : > { %v1476_v58 = vadd.f32 %v1462_v38, %v1368_v44 }
 0x2ea   : > { %v1359_v49 = vpop.f32.mrb[20].mxu1 }
 0x2eb   : > { %v1369_v51 = vadd.f32 %v1359_v49, %v1255_v32  ;;  %v4076_v52 = vpop.f32.mrb[21].mxu1  ;;  %v1617_v32 = vld [vmem:[#allocation7 + $0x10] sm:$0xff] }
 0x2ed   : > { %v1477_v53 = vadd.f32 %v1467_v41, %v1369_v51 }
 0x2ee   : > { %v1364_v54 = vpop.f32.mrb[22].mxu1 }
 0x2ef   : > { %v1370_v55 = vadd.f32 %v1364_v54, %v1260_v36  ;;  %v4079_v59 = vpop.f32.mrb[23].mxu1  ;;  %v2158_v54 = vld [vmem:[#allocation8 + $0x80] sm:$0xff] }
 0x2f0   : > { %v2160_v59 = vld [vmem:[#allocation8 + $0x90] sm:$0xff] }
 0x2f1   : > { %v1478_v60 = vadd.f32 %v1472_v43, %v1370_v55  ;;  %v4963_v43 = vpack.c.bf16 %v1618_v33, %v1617_v32  ;;  %v2159_v55 = vld [vmem:[#allocation8 + $0x88] sm:$0xff]  ;;  %v1826_v32 = vld [vmem:[#allocation7 + $0x150] sm:$0xff]  ;;  %v1827_v33 = vld [vmem:[#allocation7 + $0x158] sm:$0xff] }
 0x306   : > { %v1570_v61 = vpop.f32.mrb[24].mxu1 }
 0x307   : > { %v1584_v63 = vadd.f32 %v1570_v61, %v1476_v58  ;;  %v4155_v2 = vpop.f32.mrb[25].mxu1  ;;  %v1620_v58 = vld [vmem:[#allocation7 + $0x28] sm:$0xff]  ;;  %v2161_v61 = vld [vmem:[#allocation8 + $0x98] sm:$0xff] }
 0x308   : > { %v2162_v2 = vld [vmem:[#allocation8 + $0xa0] sm:$0xff] }
 0x309   : > { %v1594_v4 = vadd.f32 %v3286_v62, %v1584_v63  ;;  %v5091_v63 = vpack.c.bf16 %v2161_v61, %v2160_v59  ;;  %v1922_v59 = vld [vmem:[#allocation7 + $0x1a8] sm:$0xff]  ;;  %v1923_v61 = vld [vmem:[#allocation7 + $0x1b0] sm:$0xff] }
 0x30a   : > { %v1575_v47 = vpop.f32.mrb[26].mxu1 }
 0x30b   : > { %5518 = vtanh.f32 %v1594_v4  ;;  %v1585_v5 = vadd.f32 %v1575_v47, %v1477_v53  ;;  %v4158_v6 = vpop.f32.mrb[27].mxu1  ;;  %v2163_v4 = vld [vmem:[#allocation8 + $0xa8] sm:$0xff]  ;;  %v1621_v47 = vld [vmem:[#allocation7 + $0x30] sm:$0xff] }
 0x30c   : > { %v5095_v6 = vpack.c.bf16 %v2163_v4, %v2162_v2  ;;  %v1925_v2 = vld [vmem:[#allocation7 + $0x1c0] sm:$0xff]  ;;  %v1926_v4 = vld [vmem:[#allocation7 + $0x1c8] sm:$0xff] }
 0x30d   : > { %v1595_v3 = vadd.f32 %v3286_v62, %v1585_v5  ;;  %v1622_v5 = vld [vmem:[#allocation7 + $0x38] sm:$0xff] }
 0x30e   : > { %v1580_v7 = vpop.f32.mrb[28].mxu1 }
 0x30f   : > { %5520 = vtanh.f32 %v1595_v3  ;;  %v1586_v8 = vadd.f32 %v1580_v7, %v1478_v60  ;;  %v4161_v48 = vpop.f32.mrb[29].mxu1  ;;  %v5087_v60 = vpack.c.bf16 %v2159_v55, %v2158_v54  ;;  %v4971_v3 = vpack.c.bf16 %v1622_v5, %v1621_v47  ;;  %v1623_v7 = vld [vmem:[#allocation7 + $0x40] sm:$0xff]  ;;  %v1927_v5 = vld [vmem:[#allocation7 + $0x1d0] sm:$0xff] }
 0x310   : > { %v1625_v48 = vld [vmem:[#allocation7 + $0x50] sm:$0xff]  ;;  %v1921_v55 = vld [vmem:[#allocation7 + $0x1a0] sm:$0xff]  ;;  %v5039_v47 = vpack.c.bf16 %v1926_v4, %v1925_v2 }
 0x311   : > { %v1596_v56 = vadd.f32 %v3286_v62, %v1586_v8  ;;  %v4967_v62 = vpack.c.bf16 %v1620_v58, %v1619_v46  ;;  %5088 = vmatprep.subr.bf16.mxu1 %v5087_v60  ;;  %v1624_v8 = vld [vmem:[#allocation7 + $0x48] sm:$0xff]  ;;  %v1919_v58 = vld [vmem:[#allocation7 + $0x190] sm:$0xff] }
 0x312   : > { %5090 = vmatpush3.bf16.msra.mxu1 %v5087_v60  ;;  %v5031_v60 = vpack.c.bf16 %v1922_v59, %v1921_v55  ;;  %v3287_v59 = vld [vmem:[%s6583_s8] ss:$0 sm:$0xff] }
 0x313   : > { %5522 = vtanh.f32 %v1596_v56  ;;  %5092 = vmatprep.subr.bf16.mxu1 %v5091_v63  ;;  %v1626_v56 = vld [vmem:[#allocation7 + $0x58] sm:$0xff] }
 0x315   : > { %v5519_v9 = vpop.eup %5518 }
 0x316   : > { %v1604_v10 = vrot.slane %v5519_v9, 6  ;;  %5094 = vmatpush3.bf16.msra.mxu1 %v5091_v63  ;;  %v4979_v9 = vpack.c.bf16 %v1626_v56, %v1625_v48  ;;  %v2019_v56 = vld [vmem:[#allocation7 + $0x200] sm:$0xff] }
 0x317   : > { %5096 = vmatprep.subr.bf16.mxu1 %v5095_v6 }
 0x318   : > { %v1612_v29 = vsel %vm6222_vm7, %v1604_v10, 0.0 }
 0x319   : > { %v5521_v28 = vpop.eup %5520  ;;  %v1651_v45 = vrot.slane %v1612_v29, 3  ;;  %v1733_v16 = vrot.slane %v1612_v29, 2  ;;  %v1832_v17 = vrot.slane %v1612_v29, 4  ;;  %v1934_v22 = vrot.slane %v1612_v29, 5 }
 0x31a   : > { %v1605_v11 = vrot.slane %v5521_v28, 6  ;;  %v2035_v25 = vrot.slane %v1612_v29, 6  ;;  %5098 = vmatpush3.bf16.msra.mxu1 %v5095_v6  ;;  %v1628_v28 = vld [vmem:[#allocation7 + $0x68] sm:$0xff]  ;;  %v1928_v6 = vld [vmem:[#allocation7 + $0x1d8] sm:$0xff] }
 0x31c   : > { %v1606_v12 = vsel %vm1603_vm14, %v1604_v10, %v1605_v11  ;;  %v1627_v10 = vld [vmem:[#allocation7 + $0x60] sm:$0xff] }
 0x31d   : > { %v5523_v13 = vpop.eup %5522  ;;  %v1613_v15 = vsel %vm6232_vm10, %v1606_v12, 0.0  ;;  %v4983_v29 = vpack.c.bf16 %v1628_v28, %v1627_v10  ;;  %v1630_v12 = vld [vmem:[#allocation7 + $0x78] sm:$0xff]  ;;  %v2021_v28 = vld [vmem:[#allocation7 + $0x210] sm:$0xff] }
 0x31e   : > { %v1607_v18 = vrot.slane %v5523_v13, 6  ;;  %v1652_v20 = vrot.slane %v1613_v15, 3  ;;  %v1734_v50 = vrot.slane %v1613_v15, 2  ;;  %v1833_v21 = vrot.slane %v1613_v15, 4 }
 0x31f   : > { %v1935_v24 = vrot.slane %v1613_v15, 5  ;;  %v2036_v26 = vrot.slane %v1613_v15, 6  ;;  %v1816_v15 = vld [vmem:[#allocation7 + $0x100] sm:$0xff] }
 0x320   : > { %v1608_v27 = vsel %vm1603_vm14, %v1605_v11, %v1607_v18  ;;  %v1653_v30 = vsel %vm823_vm4, %v1651_v45, %v1652_v20  ;;  %v1735_v31 = vsel %vm712_vm3, %v1733_v16, %v1734_v50  ;;  %v6352_v34 = vsel %vm934_vm1, %v1832_v17, %v1833_v21  ;;  %v1629_v11 = vld [vmem:[#allocation7 + $0x70] sm:$0xff]  ;;  %v1817_v45 = vld [vmem:[#allocation7 + $0x108] sm:$0xff]  ;;  %v1819_v18 = vld [vmem:[#allocation7 + $0x118] sm:$0xff] }
 0x321   : > { %v1614_v36 = vsel %vm6245_vm13, %v1608_v27, 0.0  ;;  %4194 = vmatprep.mubr.f32.mxu0 %v1653_v30  ;;  %v6357_v37 = vsel %vm1933_vm15, %v1934_v22, %v1935_v24  ;;  %v6360_v38 = vsel %vm1603_vm14, %v2035_v25, %v2036_v26  ;;  %v4987_v13 = vpack.c.bf16 %v1630_v12, %v1629_v11  ;;  %v1818_v17 = vld [vmem:[#allocation7 + $0x110] sm:$0xff]  ;;  %v1823_v25 = vld [vmem:[#allocation7 + $0x138] sm:$0xff]  ;;  %v1824_v27 = vld [vmem:[#allocation7 + $0x140] sm:$0xff] }
 0x322   : > { %v1654_v40 = vrot.slane %v1614_v36, 3  ;;  %v1736_v41 = vrot.slane %v1614_v36, 2  ;;  %v1835_v35 = vrot.slane %v1614_v36, 4  ;;  %v1937_v42 = vrot.slane %v1614_v36, 5  ;;  %v1825_v30 = vld [vmem:[#allocation7 + $0x148] sm:$0xff]  ;;  %v2023_v12 = vld [vmem:[#allocation7 + $0x220] sm:$0xff] }
 0x323   : > { %v2038_v44 = vrot.slane %v1614_v36, 6  ;;  %v4991_v16 = vpack.c.bf16 %v1817_v45, %v1816_v15  ;;  %v5011_v36 = vpack.c.bf16 %v1827_v33, %v1826_v32  ;;  %v2025_v45 = vld [vmem:[#allocation7 + $0x230] sm:$0xff]  ;;  %v2165_v32 = vld [vmem:[#allocation8 + $0xb8] sm:$0xff] }
 0x324   : > { %v1655_v57 = vsel %vm823_vm4, %v1652_v20, %v1654_v40  ;;  %v1737_v49 = vsel %vm712_vm3, %v1734_v50, %v1736_v41  ;;  %v6365_v51 = vsel %vm934_vm1, %v1833_v21, %v1835_v35  ;;  %v6368_v52 = vsel %vm1933_vm15, %v1935_v24, %v1937_v42  ;;  %v1820_v50 = vld [vmem:[#allocation7 + $0x120] sm:$0xff]  ;;  %v1821_v21 = vld [vmem:[#allocation7 + $0x128] sm:$0xff]  ;;  %v1822_v24 = vld [vmem:[#allocation7 + $0x130] sm:$0xff] }
 0x325   : > { %4195 = vmatmul.mubr.f32.vlgmr.msra.gmra.mrb[30].mxu0 %v1655_v57  ;;  %v6371_v53 = vsel %vm1603_vm14, %v2036_v26, %v2038_v44  ;;  %v4995_v20 = vpack.c.bf16 %v1819_v18, %v1818_v17  ;;  %v4999_v22 = vpack.c.bf16 %v1821_v21, %v1820_v50  ;;  %v5003_v26 = vpack.c.bf16 %v1823_v25, %v1822_v24  ;;  %v1828_v40 = vld [vmem:[#allocation7 + $0x160] sm:$0xff]  ;;  %v1829_v41 = vld [vmem:[#allocation7 + $0x168] sm:$0xff]  ;;  %v1830_v35 = vld [vmem:[#allocation7 + $0x170] sm:$0xff] }
 0x326   : > { %4962 = vmatpush3.bf16.msra.mxu0 %v6337_v19  ;;  %4229 = vmatprep.mubr.f32.mxu0 %v1735_v31  ;;  %v4975_v19 = vpack.c.bf16 %v1624_v8, %v1623_v7  ;;  %v5007_v31 = vpack.c.bf16 %v1825_v30, %v1824_v27  ;;  %v1831_v42 = vld [vmem:[#allocation7 + $0x178] sm:$0xff]  ;;  %v1917_v44 = vld [vmem:[#allocation7 + $0x180] sm:$0xff]  ;;  %v1918_v57 = vld [vmem:[#allocation7 + $0x188] sm:$0xff]  ;;  %vm2457_vm4 = vcmask 1040384  }
 0x327   : > { %4964 = vmatprep.subr.bf16.mxu0 %v4963_v43  ;;  %v5023_v46 = vpack.c.bf16 %v1918_v57, %v1917_v44  ;;  %v1930_v7 = vld [vmem:[#allocation7 + $0x1e8] sm:$0xff]  ;;  %v1931_v8 = vld [vmem:[#allocation7 + $0x1f0] sm:$0xff]  ;;  %v2027_v18 = vld [vmem:[#allocation7 + $0x240] sm:$0xff] }
 0x328   : > { %v2029_v21 = vld [vmem:[#allocation7 + $0x250] sm:$0xff]  ;;  %v2031_v24 = vld [vmem:[#allocation7 + $0x260] sm:$0xff]  ;;  %v2032_v25 = vld [vmem:[#allocation7 + $0x268] sm:$0xff] }
 0x329   : > { %v2034_v27 = vld [vmem:[#allocation7 + $0x278] sm:$0xff]  ;;  %v2172_v57 = vld [vmem:[#allocation8 + $0xf0] sm:$0xff] }
 0x32a   : > { %4966 = vmatpush3.bf16.msra.mxu0 %v4963_v43  ;;  %v5019_v43 = vpack.c.bf16 %v1831_v42, %v1830_v35  ;;  %v2169_v35 = vld [vmem:[#allocation8 + $0xd8] sm:$0xff] }
 0x32b   : > { %4968 = vmatprep.subr.bf16.mxu0 %v4967_v62 }
 0x32e   : > { %4970 = vmatpush3.bf16.msra.mxu0 %v4967_v62  ;;  %v1924_v62 = vld [vmem:[#allocation7 + $0x1b8] sm:$0xff] }
 0x32f   : > { %4972 = vmatprep.subr.bf16.mxu0 %v4971_v3  ;;  %v5035_v63 = vpack.c.bf16 %v1924_v62, %v1923_v61 }
 0x332   : > { %4974 = vmatpush3.bf16.msra.mxu0 %v4971_v3  ;;  %v1929_v3 = vld [vmem:[#allocation7 + $0x1e0] sm:$0xff] }
 0x333   : > { %4976 = vmatprep.subr.bf16.mxu0 %v4975_v19 }
 0x336   : > { %4978 = vmatpush3.bf16.msra.mxu0 %v4975_v19  ;;  %v1932_v19 = vld [vmem:[#allocation7 + $0x1f8] sm:$0xff] }
 0x337   : > { %4980 = vmatprep.subr.bf16.mxu0 %v4979_v9  ;;  %v5051_v48 = vpack.c.bf16 %v1932_v19, %v1931_v8  ;;  %v2143_v19 = vld [vmem:[#allocation8 + $0x10] sm:$0xff] }
 0x33a   : > { %4982 = vmatpush3.bf16.msra.mxu0 %v4979_v9  ;;  %v2020_v9 = vld [vmem:[#allocation7 + $0x208] sm:$0xff] }
 0x33b   : > { %4984 = vmatprep.subr.bf16.mxu0 %v4983_v29  ;;  %v5055_v10 = vpack.c.bf16 %v2020_v9, %v2019_v56 }
 0x33e   : > { %4986 = vmatpush3.bf16.msra.mxu0 %v4983_v29  ;;  %v2022_v29 = vld [vmem:[#allocation7 + $0x218] sm:$0xff] }
 0x33f   : > { %4988 = vmatprep.subr.bf16.mxu0 %v4987_v13  ;;  %v5059_v11 = vpack.c.bf16 %v2022_v29, %v2021_v28 }
 0x342   : > { %4990 = vmatpush3.bf16.msra.mxu0 %v4987_v13  ;;  %v2024_v13 = vld [vmem:[#allocation7 + $0x228] sm:$0xff] }
 0x343   : > { %4992 = vmatprep.subr.bf16.mxu0 %v4991_v16  ;;  %v5063_v15 = vpack.c.bf16 %v2024_v13, %v2023_v12 }
 0x345   : > { %4230 = vmatmul.mubr.f32.vlgmr.msra.gmra.mrb[30].mxu0 %v1737_v49  ;;  %v1920_v49 = vld [vmem:[#allocation7 + $0x198] sm:$0xff] }
 0x346   : > { %4994 = vmatpush3.bf16.msra.mxu0 %v4991_v16  ;;  %4264 = vmatprep.mubr.f32.mxu0 %v6352_v34  ;;  %v5015_v34 = vpack.c.bf16 %v1829_v41, %v1828_v40  ;;  %v5027_v54 = vpack.c.bf16 %v1920_v49, %v1919_v58  ;;  %v2026_v16 = vld [vmem:[#allocation7 + $0x238] sm:$0xff]  ;;  %v2167_v40 = vld [vmem:[#allocation8 + $0xc8] sm:$0xff]  ;;  %v2141_v49 = vld [vmem:[#allocation8] sm:$0xff] }
 0x347   : > { %4996 = vmatprep.subr.bf16.mxu0 %v4995_v20  ;;  %v5067_v17 = vpack.c.bf16 %v2026_v16, %v2025_v45  ;;  %v2145_v45 = vld [vmem:[#allocation8 + $0x20] sm:$0xff]  ;;  %v2146_v16 = vld [vmem:[#allocation8 + $0x28] sm:$0xff] }
 0x34a   : > { %4998 = vmatpush3.bf16.msra.mxu0 %v4995_v20  ;;  %v2028_v20 = vld [vmem:[#allocation7 + $0x248] sm:$0xff] }
 0x34b   : > { %5000 = vmatprep.subr.bf16.mxu0 %v4999_v22  ;;  %v5071_v50 = vpack.c.bf16 %v2028_v20, %v2027_v18 }
 0x34e   : > { %5002 = vmatpush3.bf16.msra.mxu0 %v4999_v22  ;;  %v2030_v22 = vld [vmem:[#allocation7 + $0x258] sm:$0xff] }
 0x34f   : > { %5004 = vmatprep.subr.bf16.mxu0 %v5003_v26 }
 0x352   : > { %5006 = vmatpush3.bf16.msra.mxu0 %v5003_v26  ;;  %v2033_v26 = vld [vmem:[#allocation7 + $0x270] sm:$0xff] }
 0x353   : > { %5008 = vmatprep.subr.bf16.mxu0 %v5007_v31  ;;  %v5083_v30 = vpack.c.bf16 %v2034_v27, %v2033_v26  ;;  %v2148_v26 = vld [vmem:[#allocation8 + $0x38] sm:$0xff] }
 0x356   : > { %5010 = vmatpush3.bf16.msra.mxu0 %v5007_v31  ;;  %v2164_v31 = vld [vmem:[#allocation8 + $0xb0] sm:$0xff] }
 0x357   : > { %5012 = vmatprep.subr.bf16.mxu0 %v5011_v36  ;;  %v5099_v33 = vpack.c.bf16 %v2165_v32, %v2164_v31  ;;  %v2679_v31 = vld [vmem:[#allocation10 + $0xa0] sm:$0xff]  ;;  %v2680_v32 = vld [vmem:[#allocation10 + $0xa8] sm:$0xff] }
 0x359   : > { %5100 = vmatprep.subr.bf16.mxu1 %v5099_v33 }
 0x35a   : > { %5014 = vmatpush3.bf16.msra.mxu0 %v5011_v36  ;;  %5102 = vmatpush3.bf16.msra.mxu1 %v5099_v33  ;;  %v2166_v36 = vld [vmem:[#allocation8 + $0xc0] sm:$0xff] }
 0x35b   : > { %5016 = vmatprep.subr.bf16.mxu0 %v5015_v34  ;;  %v5103_v41 = vpack.c.bf16 %v2167_v40, %v2166_v36  ;;  %v2149_v33 = vld [vmem:[#allocation8 + $0x40] sm:$0xff]  ;;  %v2150_v36 = vld [vmem:[#allocation8 + $0x48] sm:$0xff]  ;;  %v5254_v40 = vpack.c.bf16 %v2680_v32, %v2679_v31  ;;  %v2448_v31 = vld [vmem:[#allocation8 + $0x1b8] sm:$0xff] }
 0x35d   : > { %5104 = vmatprep.subr.bf16.mxu1 %v5103_v41 }
 0x35e   : > { %5018 = vmatpush3.bf16.msra.mxu0 %v5015_v34  ;;  %5106 = vmatpush3.bf16.msra.mxu1 %v5103_v41  ;;  %v2168_v34 = vld [vmem:[#allocation8 + $0xd0] sm:$0xff]  ;;  %v5135_v41 = vpack.c.bf16 %v2150_v36, %v2149_v33  ;;  %v2449_v33 = vld [vmem:[#allocation8 + $0x1c0] sm:$0xff]  ;;  %v2450_v36 = vld [vmem:[#allocation8 + $0x1c8] sm:$0xff] }
 0x35f   : > { %5020 = vmatprep.subr.bf16.mxu0 %v5019_v43  ;;  %v5107_v42 = vpack.c.bf16 %v2169_v35, %v2168_v34  ;;  %v2151_v34 = vld [vmem:[#allocation8 + $0x50] sm:$0xff]  ;;  %v2152_v35 = vld [vmem:[#allocation8 + $0x58] sm:$0xff] }
 0x361   : > { %5108 = vmatprep.subr.bf16.mxu1 %v5107_v42 }
 0x362   : > { %5022 = vmatpush3.bf16.msra.mxu0 %v5019_v43  ;;  %5110 = vmatpush3.bf16.msra.mxu1 %v5107_v42  ;;  %v2170_v43 = vld [vmem:[#allocation8 + $0xe0] sm:$0xff]  ;;  %v5139_v42 = vpack.c.bf16 %v2152_v35, %v2151_v34 }
 0x363   : > { %5024 = vmatprep.subr.bf16.mxu0 %v5023_v46  ;;  %v2453_v35 = vld [vmem:[#allocation8 + $0x1e0] sm:$0xff] }
 0x365   : > { %4265 = vmatmul.mubr.f32.vlgmr.msra.gmra.mrb[30].mxu0 %v6365_v51  ;;  %v5043_v51 = vpack.c.bf16 %v1928_v6, %v1927_v5 }
 0x366   : > { %5026 = vmatpush3.bf16.msra.mxu0 %v5023_v46  ;;  %4299 = vmatprep.mubr.f32.mxu0 %v6357_v37  ;;  %v5047_v37 = vpack.c.bf16 %v1930_v7, %v1929_v3  ;;  %v2173_v46 = vld [vmem:[#allocation8 + $0xf8] sm:$0xff] }
 0x367   : > { %5028 = vmatprep.subr.bf16.mxu0 %v5027_v54  ;;  %v5115_v58 = vpack.c.bf16 %v2173_v46, %v2172_v57  ;;  %v2155_v57 = vld [vmem:[#allocation8 + $0x70] sm:$0xff]  ;;  %v2156_v46 = vld [vmem:[#allocation8 + $0x78] sm:$0xff] }
 0x36a   : > { %5030 = vmatpush3.bf16.msra.mxu0 %v5027_v54  ;;  %v2142_v54 = vld [vmem:[#allocation8 + $0x8] sm:$0xff] }
 0x36b   : > { %5032 = vmatprep.subr.bf16.mxu0 %v5031_v60  ;;  %v5119_v55 = vpack.c.bf16 %v2142_v54, %v2141_v49  ;;  %v2340_v49 = vld [vmem:[#allocation8 + $0x100] sm:$0xff]  ;;  %v2341_v54 = vld [vmem:[#allocation8 + $0x108] sm:$0xff] }
 0x36e   : > { %5034 = vmatpush3.bf16.msra.mxu0 %v5031_v60 }
 0x36f   : > { %5036 = vmatprep.subr.bf16.mxu0 %v5035_v63 }
 0x372   : > { %5038 = vmatpush3.bf16.msra.mxu0 %v5035_v63 }
 0x373   : > { %5040 = vmatprep.subr.bf16.mxu0 %v5039_v47 }
 0x376   : > { %5042 = vmatpush3.bf16.msra.mxu0 %v5039_v47 }
 0x377   : > { %5044 = vmatprep.subr.bf16.mxu0 %v5043_v51 }
 0x37a   : > { %5046 = vmatpush3.bf16.msra.mxu0 %v5043_v51 }
 0x37b   : > { %5048 = vmatprep.subr.bf16.mxu0 %v5047_v37 }
 0x37e   : > { %5050 = vmatpush3.bf16.msra.mxu0 %v5047_v37 }
 0x37f   : > { %5052 = vmatprep.subr.bf16.mxu0 %v5051_v48 }
 0x382   : > { %5054 = vmatpush3.bf16.msra.mxu0 %v5051_v48  ;;  %v2144_v48 = vld [vmem:[#allocation8 + $0x18] sm:$0xff] }
 0x383   : > { %5056 = vmatprep.subr.bf16.mxu0 %v5055_v10 }
 0x385   : > { %4300 = vmatmul.mubr.f32.vlgmr.msra.gmra.mrb[30].mxu0 %v6368_v52  ;;  %v5075_v52 = vpack.c.bf16 %v2030_v22, %v2029_v21  ;;  %v2676_v21 = vld [vmem:[#allocation10 + $0x88] sm:$0xff] }
 0x386   : > { %5058 = vmatpush3.bf16.msra.mxu0 %v5055_v10  ;;  %4334 = vmatprep.mubr.f32.mxu0 %v6360_v38  ;;  %v5079_v38 = vpack.c.bf16 %v2032_v25, %v2031_v24  ;;  %v2677_v24 = vld [vmem:[#allocation10 + $0x90] sm:$0xff]  ;;  %v2678_v25 = vld [vmem:[#allocation10 + $0x98] sm:$0xff] }
 0x387   : > { %5060 = vmatprep.subr.bf16.mxu0 %v5059_v11  ;;  %v5251_v27 = vpack.c.bf16 %v2678_v25, %v2677_v24 }
 0x38a   : > { %5062 = vmatpush3.bf16.msra.mxu0 %v5059_v11 }
 0x38b   : > { %5064 = vmatprep.subr.bf16.mxu0 %v5063_v15 }
 0x38e   : > { %5066 = vmatpush3.bf16.msra.mxu0 %v5063_v15  ;;  %v5123_v15 = vpack.c.bf16 %v2144_v48, %v2143_v19  ;;  %v2347_v19 = vld [vmem:[#allocation8 + $0x138] sm:$0xff]  ;;  %v2348_v48 = vld [vmem:[#allocation8 + $0x140] sm:$0xff] }
 0x38f   : > { %5068 = vmatprep.subr.bf16.mxu0 %v5067_v17 }
 0x392   : > { %5070 = vmatpush3.bf16.msra.mxu0 %v5067_v17 }
 0x393   : > { %5072 = vmatprep.subr.bf16.mxu0 %v5071_v50 }
 0x396   : > { %5074 = vmatpush3.bf16.msra.mxu0 %v5071_v50  ;;  %v2675_v50 = vld [vmem:[#allocation10 + $0x80] sm:$0xff] }
 0x397   : > { %5076 = vmatprep.subr.bf16.mxu0 %v5075_v52  ;;  %v5248_v22 = vpack.c.bf16 %v2676_v21, %v2675_v50  ;;  %v2443_v21 = vld [vmem:[#allocation8 + $0x190] sm:$0xff] }
 0x39a   : > { %5078 = vmatpush3.bf16.msra.mxu0 %v5075_v52  ;;  %v5127_v52 = vpack.c.bf16 %v2146_v16, %v2145_v45  ;;  %v2441_v16 = vld [vmem:[#allocation8 + $0x180] sm:$0xff] }
 0x39b   : > { %5080 = vmatprep.subr.bf16.mxu0 %v5079_v38 }
 0x39e   : > { %5082 = vmatpush3.bf16.msra.mxu0 %v5079_v38  ;;  %v2147_v38 = vld [vmem:[#allocation8 + $0x30] sm:$0xff] }
 0x39f   : > { %5084 = vmatprep.subr.bf16.mxu0 %v5083_v30 }
 0x3a2   : > { %5086 = vmatpush3.bf16.msra.mxu0 %v5083_v30  ;;  %v5131_v30 = vpack.c.bf16 %v2148_v26, %v2147_v38  ;;  %v2445_v38 = vld [vmem:[#allocation8 + $0x1a0] sm:$0xff]  ;;  %v2446_v26 = vld [vmem:[#allocation8 + $0x1a8] sm:$0xff] }
 0x3a3   : > { %5247 = vmatprep.subr.bf16.mxu0 %v5787_v0 }
 0x3a5   : > { %4335 = vmatmul.mubr.f32.vlgmr.msra.gmra.mrb[30].mxu0 %v6371_v53  ;;  %v2171_v53 = vld [vmem:[#allocation8 + $0xe8] sm:$0xff] }
 0x3a6   : > { %4544 = vmatprep.mubr.msk.f32.mxu0 %vm5788_vm0, %v5789_v1  ;;  %v5111_v44 = vpack.c.bf16 %v2171_v53, %v2170_v43  ;;  %5249 = vmatpush3.bf16.msra.mxu0 %v5248_v22  ;;  %v2153_v43 = vld [vmem:[#allocation8 + $0x60] sm:$0xff]  ;;  %v2154_v53 = vld [vmem:[#allocation8 + $0x68] sm:$0xff]  ;;  %v2444_v22 = vld [vmem:[#allocation8 + $0x198] sm:$0xff] }
 0x3a7   : > { %5250 = vmatprep.subr.bf16.mxu0 %v5787_v0  ;;  %v5187_v24 = vpack.c.bf16 %v2444_v22, %v2443_v21  ;;  %v2664_v21 = vld [vmem:[#allocation10 + $0x30] sm:$0xff]  ;;  %v2665_v22 = vld [vmem:[#allocation10 + $0x38] sm:$0xff] }
 0x3a8   : > { %5112 = vmatprep.subr.bf16.mxu1 %v5111_v44 }
 0x3a9   : > { %5114 = vmatpush3.bf16.msra.mxu1 %v5111_v44  ;;  %v5143_v44 = vpack.c.bf16 %v2154_v53, %v2153_v43  ;;  %v2455_v43 = vld [vmem:[#allocation8 + $0x1f0] sm:$0xff]  ;;  %v2456_v53 = vld [vmem:[#allocation8 + $0x1f8] sm:$0xff] }
 0x3aa   : > { %5116 = vmatprep.subr.bf16.mxu1 %v5115_v58  ;;  %5252 = vmatpush3.bf16.msra.mxu0 %v5251_v27  ;;  %v5191_v27 = vpack.c.bf16 %v2446_v26, %v2445_v38  ;;  %v2666_v38 = vld [vmem:[#allocation10 + $0x40] sm:$0xff] }
 0x3ab   : > { %5253 = vmatprep.subr.bf16.mxu0 %v5787_v0 }
 0x3ad   : > { %5118 = vmatpush3.bf16.msra.mxu1 %v5115_v58  ;;  %v5147_v58 = vpack.c.bf16 %v2156_v46, %v2155_v57  ;;  %v2543_v57 = vld [vmem:[#allocation8 + $0x200] sm:$0xff]  ;;  %v2544_v46 = vld [vmem:[#allocation8 + $0x208] sm:$0xff] }
 0x3ae   : > { %5120 = vmatprep.subr.bf16.mxu1 %v5119_v55  ;;  %5255 = vmatpush3.bf16.msra.mxu0 %v5254_v40  ;;  %v2451_v40 = vld [vmem:[#allocation8 + $0x1d0] sm:$0xff] }
 0x3af   : > { %5256 = vmatprep.subr.bf16.mxu0 %v5787_v0 }
 0x478   : > { %v4336_v60 = vpop.f32.mrb[30].mxu0 }
 0x479   : > { %v2127_v61 = vadd.f32 %v4336_v60, %v3287_v59  ;;  %v2108_v62 = vpop.f32.mrb[31].mxu0  ;;  %v2343_v60 = vld [vmem:[#allocation8 + $0x118] sm:$0xff] }
 0x47a   : > { %v2126_v63 = vadd.f32 %v3287_v59, %v2108_v62  ;;  %v2342_v59 = vld [vmem:[#allocation8 + $0x110] sm:$0xff] }
 0x47b   : > { %5524 = vtanh.f32 %v2127_v61 }
 0x47c   : > { %5526 = vtanh.f32 %v2126_v63  ;;  %v5155_v63 = vpack.c.bf16 %v2343_v60, %v2342_v59  ;;  %v2547_v59 = vld [vmem:[#allocation8 + $0x220] sm:$0xff]  ;;  %v2548_v60 = vld [vmem:[#allocation8 + $0x228] sm:$0xff] }
 0x485   : > { %v5525_v2 = vpop.eup %5524 }
 0x486   : > { %v5527_v4 = vpop.eup %5526  ;;  %v6386_v47 = vrot.slane %v5525_v2, 4  ;;  %v2344_v2 = vld [vmem:[#allocation8 + $0x120] sm:$0xff] }
 0x487   : > { %v2132_v5 = vrot.slane %v5527_v4, 4  ;;  %v2345_v4 = vld [vmem:[#allocation8 + $0x128] sm:$0xff] }
 0x488   : > { %v6391_v6 = vsel %vm6245_vm13, %v6386_v47, 0.0 }
 0x489   : > { %v6395_v51 = vsel %vm934_vm1, %v2132_v5, %v6386_v47  ;;  %v6399_v3 = vsel %vm6222_vm7, %v2132_v5, 0.0  ;;  %v2180_v8 = vrot.slane %v6391_v6, 5  ;;  %v2461_v11 = vrot.slane %v6391_v6, 7 }
 0x48a   : > { %v6404_v7 = vsel %vm6232_vm10, %v6395_v51, 0.0  ;;  %v2177_v37 = vrot.slane %v6399_v3, 5  ;;  %v2259_v9 = vrot.slane %v6399_v3, 4  ;;  %v2458_v28 = vrot.slane %v6399_v3, 7 }
 0x48b   : > { %v2178_v56 = vrot.slane %v6404_v7, 5  ;;  %v2260_v10 = vrot.slane %v6404_v7, 4  ;;  %v2459_v29 = vrot.slane %v6404_v7, 7  ;;  %v2356_v61 = vrot.slane %v6399_v3, 6 }
 0x48c   : > { %v2357_v62 = vrot.slane %v6404_v7, 6 }
 0x48d   : > { %v2179_v12 = vsel %vm1933_vm15, %v2177_v37, %v2178_v56  ;;  %v2181_v13 = vsel %vm1933_vm15, %v2178_v56, %v2180_v8  ;;  %v6417_v17 = vsel %vm2457_vm4, %v2458_v28, %v2459_v29  ;;  %v6420_v18 = vsel %vm2457_vm4, %v2459_v29, %v2461_v11  ;;  %v2346_v8 = vld [vmem:[#allocation8 + $0x130] sm:$0xff]  ;;  %v2349_v56 = vld [vmem:[#allocation8 + $0x148] sm:$0xff]  ;;  %v2351_v29 = vld [vmem:[#allocation8 + $0x158] sm:$0xff] }
 0x48e   : > { %4369 = vmatprep.mubr.f32.mxu1 %v2179_v12  ;;  %v2261_v20 = vsel %vm934_vm1, %v2259_v9, %v2260_v10  ;;  %v2358_v5 = vsel %vm1603_vm14, %v2356_v61, %v2357_v62  ;;  %v5159_v37 = vpack.c.bf16 %v2345_v4, %v2344_v2  ;;  %v5163_v3 = vpack.c.bf16 %v2347_v19, %v2346_v8  ;;  %v2350_v28 = vld [vmem:[#allocation8 + $0x150] sm:$0xff]  ;;  %v2353_v11 = vld [vmem:[#allocation8 + $0x168] sm:$0xff]  ;;  %v2551_v4 = vld [vmem:[#allocation8 + $0x240] sm:$0xff] }
 0x48f   : > { %4370 = vmatmul.mubr.f32.vlgmr.msra.gmra.mrb[30].mxu1 %v2181_v13  ;;  %v5167_v9 = vpack.c.bf16 %v2349_v56, %v2348_v48  ;;  %v5171_v7 = vpack.c.bf16 %v2351_v29, %v2350_v28  ;;  %v2354_v13 = vld [vmem:[#allocation8 + $0x170] sm:$0xff]  ;;  %v5223_v61 = vpack.c.bf16 %v2548_v60, %v2547_v59  ;;  %v2554_v19 = vld [vmem:[#allocation8 + $0x258] sm:$0xff]  ;;  %v2556_v48 = vld [vmem:[#allocation8 + $0x268] sm:$0xff] }
 0x490   : > { %5122 = vmatpush3.bf16.msra.mxu1 %v5119_v55  ;;  %4404 = vmatprep.mubr.f32.mxu1 %v2261_v20  ;;  %v5151_v55 = vpack.c.bf16 %v2341_v54, %v2340_v49  ;;  %v2442_v20 = vld [vmem:[#allocation8 + $0x188] sm:$0xff]  ;;  %v2545_v49 = vld [vmem:[#allocation8 + $0x210] sm:$0xff]  ;;  %v2546_v54 = vld [vmem:[#allocation8 + $0x218] sm:$0xff] }
 0x491   : > { %5124 = vmatprep.subr.bf16.mxu1 %v5123_v15  ;;  %v5183_v50 = vpack.c.bf16 %v2442_v20, %v2441_v16  ;;  %v2553_v8 = vld [vmem:[#allocation8 + $0x250] sm:$0xff]  ;;  %v2658_v29 = vld [vmem:[#allocation10] sm:$0xff] }
 0x492   : > { %v2557_v56 = vld [vmem:[#allocation8 + $0x270] sm:$0xff] }
 0x493   : > { %v2681_v20 = vld [vmem:[#allocation10 + $0xb0] sm:$0xff] }
 0x494   : > { %5126 = vmatpush3.bf16.msra.mxu1 %v5123_v15  ;;  %v2355_v15 = vld [vmem:[#allocation8 + $0x178] sm:$0xff] }
 0x495   : > { %5128 = vmatprep.subr.bf16.mxu1 %v5127_v52  ;;  %v5179_v45 = vpack.c.bf16 %v2355_v15, %v2354_v13  ;;  %v2662_v15 = vld [vmem:[#allocation10 + $0x20] sm:$0xff] }
 0x498   : > { %5130 = vmatpush3.bf16.msra.mxu1 %v5127_v52  ;;  %v2359_v52 = vrot.slane %v6391_v6, 6  ;;  %v5199_v6 = vpack.c.bf16 %v2450_v36, %v2449_v33  ;;  %v2668_v33 = vld [vmem:[#allocation10 + $0x50] sm:$0xff] }
 0x499   : > { %5132 = vmatprep.subr.bf16.mxu1 %v5131_v30 }
 0x49a   : > { %v2360_v25 = vsel %vm1603_vm14, %v2357_v62, %v2359_v52  ;;  %v2549_v62 = vld [vmem:[#allocation8 + $0x230] sm:$0xff]  ;;  %v5281_v52 = vpack.c.bf16 %v2665_v22, %v2664_v21 }
 0x49c   : > { %5134 = vmatpush3.bf16.msra.mxu1 %v5131_v30  ;;  %v2447_v30 = vld [vmem:[#allocation8 + $0x1b0] sm:$0xff] }
 0x49d   : > { %5136 = vmatprep.subr.bf16.mxu1 %v5135_v41  ;;  %v5195_v32 = vpack.c.bf16 %v2448_v31, %v2447_v30  ;;  %v2685_v31 = vld [vmem:[#allocation10 + $0xd0] sm:$0xff] }
 0x4a0   : > { %5138 = vmatpush3.bf16.msra.mxu1 %v5135_v41  ;;  %v2452_v41 = vld [vmem:[#allocation8 + $0x1d8] sm:$0xff] }
 0x4a1   : > { %5140 = vmatprep.subr.bf16.mxu1 %v5139_v42  ;;  %v5203_v34 = vpack.c.bf16 %v2452_v41, %v2451_v40  ;;  %v2687_v41 = vld [vmem:[#allocation10 + $0xe0] sm:$0xff] }
 0x4a4   : > { %5142 = vmatpush3.bf16.msra.mxu1 %v5139_v42  ;;  %v2454_v42 = vld [vmem:[#allocation8 + $0x1e8] sm:$0xff] }
 0x4a5   : > { %5144 = vmatprep.subr.bf16.mxu1 %v5143_v44 }
 0x4a8   : > { %5146 = vmatpush3.bf16.msra.mxu1 %v5143_v44  ;;  %v5211_v44 = vpack.c.bf16 %v2456_v53, %v2455_v43  ;;  %v2689_v53 = vld [vmem:[#allocation10 + $0xf0] sm:$0xff] }
 0x4a9   : > { %5148 = vmatprep.subr.bf16.mxu1 %v5147_v58 }
 0x4ac   : > { %5150 = vmatpush3.bf16.msra.mxu1 %v5147_v58  ;;  %v5215_v58 = vpack.c.bf16 %v2544_v46, %v2543_v57  ;;  %v2672_v57 = vld [vmem:[#allocation10 + $0x70] sm:$0xff] }
 0x4ad   : > { %5152 = vmatprep.subr.bf16.mxu1 %v5151_v55 }
 0x4af   : > { %4405 = vmatmul.mubr.f32.vlgmr.msra.gmra.mrb[30].mxu1 %v2260_v10  ;;  %v2352_v10 = vld [vmem:[#allocation8 + $0x160] sm:$0xff] }
 0x4b0   : > { %5154 = vmatpush3.bf16.msra.mxu1 %v5151_v55  ;;  %4439 = vmatprep.mubr.f32.mxu1 %v2358_v5  ;;  %v5175_v12 = vpack.c.bf16 %v2353_v11, %v2352_v10  ;;  %v5219_v55 = vpack.c.bf16 %v2546_v54, %v2545_v49  ;;  %v2552_v5 = vld [vmem:[#allocation8 + $0x248] sm:$0xff]  ;;  %v2660_v11 = vld [vmem:[#allocation10 + $0x10] sm:$0xff]  ;;  %v3290_v54 = vld [vmem:[%s6584_s9] ss:$0 sm:$0xff] }
 0x4b1   : > { %5156 = vmatprep.subr.bf16.mxu1 %v5155_v63 }
 0x4b4   : > { %5158 = vmatpush3.bf16.msra.mxu1 %v5155_v63  ;;  %v2550_v63 = vld [vmem:[#allocation8 + $0x238] sm:$0xff] }
 0x4b5   : > { %5160 = vmatprep.subr.bf16.mxu1 %v5159_v37  ;;  %v5227_v2 = vpack.c.bf16 %v2550_v63, %v2549_v62  ;;  %v2842_v63 = vld [vmem:[#allocation10 + $0x100] sm:$0xff] }
 0x4b8   : > { %5162 = vmatpush3.bf16.msra.mxu1 %v5159_v37  ;;  %v5231_v37 = vpack.c.bf16 %v2552_v5, %v2551_v4 }
 0x4b9   : > { %5164 = vmatprep.subr.bf16.mxu1 %v5163_v3 }
 0x4bc   : > { %5166 = vmatpush3.bf16.msra.mxu1 %v5163_v3  ;;  %v2555_v3 = vld [vmem:[#allocation8 + $0x260] sm:$0xff] }
 0x4bd   : > { %5168 = vmatprep.subr.bf16.mxu1 %v5167_v9 }
 0x4c0   : > { %5170 = vmatpush3.bf16.msra.mxu1 %v5167_v9  ;;  %v2558_v9 = vld [vmem:[#allocation8 + $0x278] sm:$0xff] }
 0x4c1   : > { %5172 = vmatprep.subr.bf16.mxu1 %v5171_v7  ;;  %v5243_v28 = vpack.c.bf16 %v2558_v9, %v2557_v56 }
 0x4c4   : > { %5174 = vmatpush3.bf16.msra.mxu1 %v5171_v7  ;;  %v2659_v7 = vld [vmem:[#allocation10 + $0x8] sm:$0xff] }
 0x4c5   : > { %5176 = vmatprep.subr.bf16.mxu1 %v5175_v12  ;;  %v5272_v10 = vpack.c.bf16 %v2659_v7, %v2658_v29 }
 0x4c8   : > { %5178 = vmatpush3.bf16.msra.mxu1 %v5175_v12  ;;  %v2661_v12 = vld [vmem:[#allocation10 + $0x18] sm:$0xff] }
 0x4c9   : > { %5180 = vmatprep.subr.bf16.mxu1 %v5179_v45  ;;  %v5275_v13 = vpack.c.bf16 %v2661_v12, %v2660_v11 }
 0x4cc   : > { %5182 = vmatpush3.bf16.msra.mxu1 %v5179_v45  ;;  %v2663_v45 = vld [vmem:[#allocation10 + $0x28] sm:$0xff] }
 0x4cd   : > { %5184 = vmatprep.subr.bf16.mxu1 %v5183_v50  ;;  %v5278_v16 = vpack.c.bf16 %v2663_v45, %v2662_v15  ;;  %v2845_v45 = vld [vmem:[#allocation10 + $0x118] sm:$0xff] }
 0x4ce   : > { %v5299_v22 = vpack.c.bf16 %v2845_v45, %v2844_v39  ;;  %v3035_v45 = vld [vmem:[#allocation10 + $0x260] sm:$0xff] }
 0x4cf   : > { %4440 = vmatmul.mubr.f32.vlgmr.msra.gmra.mrb[30].mxu1 %v2360_v25  ;;  %v2684_v25 = vld [vmem:[#allocation10 + $0xc8] sm:$0xff] }
 0x4d0   : > { %5186 = vmatpush3.bf16.msra.mxu1 %v5183_v50  ;;  %4474 = vmatprep.mubr.f32.mxu1 %v6417_v17  ;;  %v5207_v17 = vpack.c.bf16 %v2454_v42, %v2453_v35  ;;  %v2682_v50 = vld [vmem:[#allocation10 + $0xb8] sm:$0xff]  ;;  %v2670_v35 = vld [vmem:[#allocation10 + $0x60] sm:$0xff] }
 0x4d1   : > { %5188 = vmatprep.subr.bf16.mxu1 %v5187_v24 }
 0x4d4   : > { %5190 = vmatpush3.bf16.msra.mxu1 %v5187_v24  ;;  %v2683_v24 = vld [vmem:[#allocation10 + $0xc0] sm:$0xff] }
 0x4d5   : > { %5192 = vmatprep.subr.bf16.mxu1 %v5191_v27  ;;  %v5260_v26 = vpack.c.bf16 %v2684_v25, %v2683_v24  ;;  %v2846_v24 = vld [vmem:[#allocation10 + $0x120] sm:$0xff]  ;;  %v2847_v25 = vld [vmem:[#allocation10 + $0x128] sm:$0xff] }
 0x4d8   : > { %5194 = vmatpush3.bf16.msra.mxu1 %v5191_v27  ;;  %v2667_v27 = vld [vmem:[#allocation10 + $0x48] sm:$0xff] }
 0x4d9   : > { %5196 = vmatprep.subr.bf16.mxu1 %v5195_v32  ;;  %v5284_v30 = vpack.c.bf16 %v2667_v27, %v2666_v38  ;;  %v2934_v38 = vld [vmem:[#allocation10 + $0x1a0] sm:$0xff]  ;;  %v5302_v27 = vpack.c.bf16 %v2847_v25, %v2846_v24 }
 0x4dc   : > { %5198 = vmatpush3.bf16.msra.mxu1 %v5195_v32  ;;  %v2686_v32 = vld [vmem:[#allocation10 + $0xd8] sm:$0xff] }
 0x4dd   : > { %5200 = vmatprep.subr.bf16.mxu1 %v5199_v6  ;;  %v5263_v36 = vpack.c.bf16 %v2686_v32, %v2685_v31  ;;  %v2848_v31 = vld [vmem:[#allocation10 + $0x130] sm:$0xff]  ;;  %v2849_v32 = vld [vmem:[#allocation10 + $0x138] sm:$0xff] }
 0x4e0   : > { %5202 = vmatpush3.bf16.msra.mxu1 %v5199_v6  ;;  %v2669_v6 = vld [vmem:[#allocation10 + $0x58] sm:$0xff] }
 0x4e1   : > { %5204 = vmatprep.subr.bf16.mxu1 %v5203_v34  ;;  %v5287_v40 = vpack.c.bf16 %v2669_v6, %v2668_v33  ;;  %v2936_v33 = vld [vmem:[#allocation10 + $0x1b0] sm:$0xff]  ;;  %v5305_v6 = vpack.c.bf16 %v2849_v32, %v2848_v31 }
 0x4e4   : > { %5206 = vmatpush3.bf16.msra.mxu1 %v5203_v34  ;;  %v2688_v34 = vld [vmem:[#allocation10 + $0xe8] sm:$0xff] }
 0x4e5   : > { %5208 = vmatprep.subr.bf16.mxu1 %v5207_v17  ;;  %v5266_v42 = vpack.c.bf16 %v2688_v34, %v2687_v41  ;;  %v2850_v41 = vld [vmem:[#allocation10 + $0x140] sm:$0xff]  ;;  %v2851_v34 = vld [vmem:[#allocation10 + $0x148] sm:$0xff] }
 0x4e8   : > { %5210 = vmatpush3.bf16.msra.mxu1 %v5207_v17  ;;  %v2671_v17 = vld [vmem:[#allocation10 + $0x68] sm:$0xff] }
 0x4e9   : > { %5212 = vmatprep.subr.bf16.mxu1 %v5211_v44  ;;  %v5290_v43 = vpack.c.bf16 %v2671_v17, %v2670_v35  ;;  %v2938_v35 = vld [vmem:[#allocation10 + $0x1c0] sm:$0xff]  ;;  %v5308_v17 = vpack.c.bf16 %v2851_v34, %v2850_v41 }
 0x4ec   : > { %5214 = vmatpush3.bf16.msra.mxu1 %v5211_v44  ;;  %v2690_v44 = vld [vmem:[#allocation10 + $0xf8] sm:$0xff] }
 0x4ed   : > { %5216 = vmatprep.subr.bf16.mxu1 %v5215_v58  ;;  %v5269_v46 = vpack.c.bf16 %v2690_v44, %v2689_v53  ;;  %v2852_v53 = vld [vmem:[#allocation10 + $0x150] sm:$0xff]  ;;  %v2853_v44 = vld [vmem:[#allocation10 + $0x158] sm:$0xff] }
 0x4ef   : > { %4475 = vmatmul.mubr.f32.vlgmr.msra.gmra.mrb[30].mxu1 %v6420_v18  ;;  %v5235_v18 = vpack.c.bf16 %v2554_v19, %v2553_v8  ;;  %v2931_v8 = vld [vmem:[#allocation10 + $0x188] sm:$0xff] }
 0x4f0   : > { %5218 = vmatpush3.bf16.msra.mxu1 %v5215_v58  ;;  %4509 = vmatprep.mubr.msk.f32.mxu1 %vm6232_vm10, %v6395_v51  ;;  %v5239_v51 = vpack.c.bf16 %v2556_v48, %v2555_v3  ;;  %v2673_v58 = vld [vmem:[#allocation10 + $0x78] sm:$0xff] }
 0x4f1   : > { %5220 = vmatprep.subr.bf16.mxu1 %v5219_v55  ;;  %v5293_v49 = vpack.c.bf16 %v2673_v58, %v2672_v57  ;;  %v2940_v57 = vld [vmem:[#allocation10 + $0x1d0] sm:$0xff]  ;;  %v5311_v58 = vpack.c.bf16 %v2853_v44, %v2852_v53 }
 0x4f4   : > { %5222 = vmatpush3.bf16.msra.mxu1 %v5219_v55 }
 0x4f5   : > { %5224 = vmatprep.subr.bf16.mxu1 %v5223_v61 }
 0x4f8   : > { %5226 = vmatpush3.bf16.msra.mxu1 %v5223_v61 }
 0x4f9   : > { %5228 = vmatprep.subr.bf16.mxu1 %v5227_v2 }
 0x4fc   : > { %5230 = vmatpush3.bf16.msra.mxu1 %v5227_v2  ;;  %v2843_v2 = vld [vmem:[#allocation10 + $0x108] sm:$0xff] }
 0x4fd   : > { %5232 = vmatprep.subr.bf16.mxu1 %v5231_v37  ;;  %v5296_v3 = vpack.c.bf16 %v2843_v2, %v2842_v63  ;;  %v2856_v63 = vld [vmem:[#allocation10 + $0x170] sm:$0xff]  ;;  %v2857_v2 = vld [vmem:[#allocation10 + $0x178] sm:$0xff] }
 0x500   : > { %5234 = vmatpush3.bf16.msra.mxu1 %v5231_v37  ;;  %v2930_v37 = vld [vmem:[#allocation10 + $0x180] sm:$0xff] }
 0x501   : > { %5236 = vmatprep.subr.bf16.mxu1 %v5235_v18  ;;  %v5320_v9 = vpack.c.bf16 %v2931_v8, %v2930_v37  ;;  %v5317_v37 = vpack.c.bf16 %v2857_v2, %v2856_v63 }
 0x504   : > { %5238 = vmatpush3.bf16.msra.mxu1 %v5235_v18 }
 0x505   : > { %5240 = vmatprep.subr.bf16.mxu1 %v5239_v51 }
 0x508   : > { %5242 = vmatpush3.bf16.msra.mxu1 %v5239_v51 }
 0x509   : > { %5244 = vmatprep.subr.bf16.mxu1 %v5243_v28 }
 0x50c   : > { %5246 = vmatpush3.bf16.msra.mxu1 %v5243_v28 }
 0x50d   : > { %5271 = vmatprep.subr.bf16.mxu1 %v5787_v0 }
 0x50f   : > { %4510 = vmatmul.mubr.msk.f32.vlgmr.msra.gmra.mrb[30].mxu1 %vm6245_vm13, %v6386_v47  ;;  %v5257_v47 = vpack.c.bf16 %v2682_v50, %v2681_v20  ;;  %v2933_v20 = vld [vmem:[#allocation10 + $0x198] sm:$0xff] }
 0x510   : > { %5273 = vmatpush3.bf16.msra.mxu1 %v5272_v10  ;;  %4579 = vmatprep.mubr.msk.f32.mxu1 %vm5788_vm0, %v5789_v1 }
 0x511   : > { %5274 = vmatprep.subr.bf16.mxu1 %v5787_v0  ;;  %5258 = vmatpush3.bf16.msra.mxu0 %v5257_v47 }
 0x512   : > { %5259 = vmatprep.subr.bf16.mxu0 %v5787_v0 }
 0x514   : > { %5276 = vmatpush3.bf16.msra.mxu1 %v5275_v13 }
 0x515   : > { %5277 = vmatprep.subr.bf16.mxu1 %v5787_v0  ;;  %5261 = vmatpush3.bf16.msra.mxu0 %v5260_v26  ;;  %v2935_v26 = vld [vmem:[#allocation10 + $0x1a8] sm:$0xff] }
 0x516   : > { %5262 = vmatprep.subr.bf16.mxu0 %v5787_v0 }
 0x518   : > { %5279 = vmatpush3.bf16.msra.mxu1 %v5278_v16  ;;  %v2932_v16 = vld [vmem:[#allocation10 + $0x190] sm:$0xff] }
 0x519   : > { %5280 = vmatprep.subr.bf16.mxu1 %v5787_v0  ;;  %5264 = vmatpush3.bf16.msra.mxu0 %v5263_v36  ;;  %v2937_v36 = vld [vmem:[#allocation10 + $0x1b8] sm:$0xff] }
 0x51a   : > { %5265 = vmatprep.subr.bf16.mxu0 %v5787_v0 }
 0x51c   : > { %5282 = vmatpush3.bf16.msra.mxu1 %v5281_v52  ;;  %v5323_v52 = vpack.c.bf16 %v2933_v20, %v2932_v16  ;;  %v3036_v16 = vld [vmem:[#allocation10 + $0x268] sm:$0xff] }
 0x51d   : > { %5283 = vmatprep.subr.bf16.mxu1 %v5787_v0  ;;  %5267 = vmatpush3.bf16.msra.mxu0 %v5266_v42  ;;  %v2939_v42 = vld [vmem:[#allocation10 + $0x1c8] sm:$0xff]  ;;  %v5362_v20 = vpack.c.bf16 %v3036_v16, %v3035_v45 }
 0x51e   : > { %5268 = vmatprep.subr.bf16.mxu0 %v5787_v0 }
 0x520   : > { %5285 = vmatpush3.bf16.msra.mxu1 %v5284_v30  ;;  %v5326_v30 = vpack.c.bf16 %v2935_v26, %v2934_v38 }
 0x521   : > { %5286 = vmatprep.subr.bf16.mxu1 %v5787_v0  ;;  %5270 = vmatpush3.bf16.msra.mxu0 %v5269_v46  ;;  %v2941_v46 = vld [vmem:[#allocation10 + $0x1d8] sm:$0xff] }
 0x522   : > { %5295 = vmatprep.subr.bf16.mxu0 %v5787_v0 }
 0x524   : > { %5288 = vmatpush3.bf16.msra.mxu1 %v5287_v40  ;;  %v5329_v40 = vpack.c.bf16 %v2937_v36, %v2936_v33 }
 0x525   : > { %5289 = vmatprep.subr.bf16.mxu1 %v5787_v0 }
 0x528   : > { %5291 = vmatpush3.bf16.msra.mxu1 %v5290_v43  ;;  %v5332_v43 = vpack.c.bf16 %v2939_v42, %v2938_v35 }
 0x529   : > { %5292 = vmatprep.subr.bf16.mxu1 %v5787_v0 }
 0x52c   : > { %5294 = vmatpush3.bf16.msra.mxu1 %v5293_v49  ;;  %v5335_v49 = vpack.c.bf16 %v2941_v46, %v2940_v57 }
 0x52d   : > { %5319 = vmatprep.subr.bf16.mxu1 %v5787_v0 }
 0x5e2   : > { %v4511_v55 = vpop.f32.mrb[30].mxu1 }
 0x5e3   : > { %v2644_v59 = vadd.f32 %v4511_v55, %v3290_v54  ;;  %v2625_v60 = vpop.f32.mrb[31].mxu1  ;;  %v2855_v55 = vld [vmem:[#allocation10 + $0x168] sm:$0xff] }
 0x5e4   : > { %v2643_v61 = vadd.f32 %v3290_v54, %v2625_v60  ;;  %v2854_v54 = vld [vmem:[#allocation10 + $0x160] sm:$0xff]  ;;  %v2943_v60 = vld [vmem:[#allocation10 + $0x1e8] sm:$0xff] }
 0x5e5   : > { %5528 = vtanh.f32 %v2644_v59  ;;  %v2942_v59 = vld [vmem:[#allocation10 + $0x1e0] sm:$0xff] }
 0x5e6   : > { %5530 = vtanh.f32 %v2643_v61  ;;  %v5314_v61 = vpack.c.bf16 %v2855_v55, %v2854_v54 }
 0x5ef   : > { %v5529_v62 = vpop.eup %5528 }
 0x5f0   : > { %v5531_v4 = vpop.eup %5530  ;;  %v2650_v5 = vrot.slane %v5529_v62, 2  ;;  %v5338_v62 = vpack.c.bf16 %v2943_v60, %v2942_v59 }
 0x5f1   : > { %v2649_v19 = vrot.slane %v5531_v4, 2  ;;  %v2944_v4 = vld [vmem:[#allocation10 + $0x1f0] sm:$0xff] }
 0x5f2   : > { %v2657_v18 = vsel %vm6245_vm13, %v2650_v5, 0.0 }
 0x5f3   : > { %v2948_v48 = vrot.slane %v2657_v18, 1  ;;  %v6465_v51 = vsel %vm712_vm3, %v2649_v19, %v2650_v5  ;;  %v2655_v56 = vsel %vm6222_vm7, %v2649_v19, 0.0  ;;  %v3040_v28 = vrot.slane %v2657_v18, 2  ;;  %v2945_v5 = vld [vmem:[#allocation10 + $0x1f8] sm:$0xff]  ;;  %v3023_v19 = vld [vmem:[#allocation10 + $0x200] sm:$0xff]  ;;  %v3024_v18 = vld [vmem:[#allocation10 + $0x208] sm:$0xff] }
 0x5f4   : > { %v2656_v29 = vsel %vm6232_vm10, %v6465_v51, 0.0  ;;  %v2693_v7 = vrot.slane %v2655_v56, 7  ;;  %v2767_v10 = vrot.slane %v2655_v56, 6  ;;  %v5341_v8 = vpack.c.bf16 %v2945_v5, %v2944_v4  ;;  %v3026_v56 = vld [vmem:[#allocation10 + $0x218] sm:$0xff] }
 0x5f5   : > { %v2694_v11 = vrot.slane %v2656_v29, 7  ;;  %v2768_v12 = vrot.slane %v2656_v29, 6  ;;  %v2947_v13 = vrot.slane %v2656_v29, 1  ;;  %v3039_v15 = vrot.slane %v2656_v29, 2  ;;  %v3028_v29 = vld [vmem:[#allocation10 + $0x228] sm:$0xff] }
 0x5f7   : > { %v2695_v50 = vsel %vm2457_vm4, %v2693_v7, %v2694_v11  ;;  %v2769_v14 = vsel %vm1603_vm14, %v2767_v10, %v2768_v12  ;;  %v6475_v21 = vsel %vm524_vm2, %v2947_v13, %v2948_v48  ;;  %v6478_v47 = vsel %vm712_vm3, %v3039_v15, %v3040_v28  ;;  %v3025_v48 = vld [vmem:[#allocation10 + $0x210] sm:$0xff]  ;;  %v3027_v28 = vld [vmem:[#allocation10 + $0x220] sm:$0xff]  ;;  %v3030_v11 = vld [vmem:[#allocation10 + $0x238] sm:$0xff] }
 0x5f8   : > { %4545 = vmatmul.mubr.f32.vlgmr.msra.gmra.mrb[32].mxu0 %v2695_v50  ;;  %4580 = vmatmul.mubr.f32.vlgmr.msra.gmra.mrb[32].mxu1 %v2769_v14  ;;  %v5350_v7 = vpack.c.bf16 %v3028_v29, %v3027_v28  ;;  %v3029_v10 = vld [vmem:[#allocation10 + $0x230] sm:$0xff]  ;;  %v3032_v12 = vld [vmem:[#allocation10 + $0x248] sm:$0xff]  ;;  %v3034_v13 = vld [vmem:[#allocation10 + $0x258] sm:$0xff] }
 0x5f9   : > { %5297 = vmatpush3.bf16.msra.mxu0 %v5296_v3  ;;  %5321 = vmatpush3.bf16.msra.mxu1 %v5320_v9  ;;  %v5344_v3 = vpack.c.bf16 %v3024_v18, %v3023_v19  ;;  %v5347_v9 = vpack.c.bf16 %v3026_v56, %v3025_v48  ;;  %v5353_v23 = vpack.c.bf16 %v3030_v11, %v3029_v10  ;;  %v3037_v50 = vld [vmem:[#allocation10 + $0x270] sm:$0xff]  ;;  %v3038_v14 = vld [vmem:[#allocation10 + $0x278] sm:$0xff] }
 0x5fa   : > { %5298 = vmatprep.subr.bf16.mxu0 %v5787_v0  ;;  %5322 = vmatprep.subr.bf16.mxu1 %v5787_v0 }
 0x5fb   : > { %4614 = vmatprep.mubr.msk.f32.mxu0 %vm5788_vm0, %v5789_v1  ;;  %4649 = vmatprep.mubr.msk.f32.mxu1 %vm5788_vm0, %v5789_v1 }
 0x5fd   : > { %5300 = vmatpush3.bf16.msra.mxu0 %v5299_v22  ;;  %5324 = vmatpush3.bf16.msra.mxu1 %v5323_v52 }
 0x5fe   : > { %5301 = vmatprep.subr.bf16.mxu0 %v5787_v0  ;;  %5325 = vmatprep.subr.bf16.mxu1 %v5787_v0 }
 0x601   : > { %5303 = vmatpush3.bf16.msra.mxu0 %v5302_v27  ;;  %5327 = vmatpush3.bf16.msra.mxu1 %v5326_v30 }
 0x602   : > { %5304 = vmatprep.subr.bf16.mxu0 %v5787_v0  ;;  %5328 = vmatprep.subr.bf16.mxu1 %v5787_v0 }
 0x605   : > { %5306 = vmatpush3.bf16.msra.mxu0 %v5305_v6  ;;  %5330 = vmatpush3.bf16.msra.mxu1 %v5329_v40 }
 0x606   : > { %5307 = vmatprep.subr.bf16.mxu0 %v5787_v0  ;;  %5331 = vmatprep.subr.bf16.mxu1 %v5787_v0 }
 0x609   : > { %5309 = vmatpush3.bf16.msra.mxu0 %v5308_v17  ;;  %5333 = vmatpush3.bf16.msra.mxu1 %v5332_v43 }
 0x60a   : > { %5310 = vmatprep.subr.bf16.mxu0 %v5787_v0  ;;  %5334 = vmatprep.subr.bf16.mxu1 %v5787_v0 }
 0x60d   : > { %5312 = vmatpush3.bf16.msra.mxu0 %v5311_v58  ;;  %5336 = vmatpush3.bf16.msra.mxu1 %v5335_v49 }
 0x60e   : > { %5313 = vmatprep.subr.bf16.mxu0 %v5787_v0  ;;  %5337 = vmatprep.subr.bf16.mxu1 %v5787_v0 }
 0x611   : > { %5315 = vmatpush3.bf16.msra.mxu0 %v5314_v61  ;;  %5339 = vmatpush3.bf16.msra.mxu1 %v5338_v62 }
 0x612   : > { %5316 = vmatprep.subr.bf16.mxu0 %v5787_v0  ;;  %5340 = vmatprep.subr.bf16.mxu1 %v5787_v0 }
 0x615   : > { %5318 = vmatpush3.bf16.msra.mxu0 %v5317_v37  ;;  %5342 = vmatpush3.bf16.msra.mxu1 %v5341_v8 }
 0x616   : > { %5343 = vmatprep.subr.bf16.mxu0 %v5787_v0 }
 0x618   : > { %4615 = vmatmul.mubr.msk.f32.vlgmr.msra.gmra.mrb[34].mxu0 %vm6232_vm10, %v6465_v51  ;;  %4650 = vmatmul.mubr.f32.vlgmr.msra.gmra.mrb[34].mxu1 %v6475_v21  ;;  %v3031_v51 = vld [vmem:[#allocation10 + $0x240] sm:$0xff]  ;;  %v5365_v21 = vpack.c.bf16 %v3038_v14, %v3037_v50 }
 0x619   : > { %5345 = vmatpush3.bf16.msra.mxu0 %v5344_v3  ;;  %4684 = vmatprep.mubr.msk.f32.mxu0 %vm5788_vm0, %v5789_v1  ;;  %v5356_v39 = vpack.c.bf16 %v3032_v12, %v3031_v51  ;;  %v3033_v1 = vld [vmem:[#allocation10 + $0x250] sm:$0xff] }
 0x61a   : > { %5346 = vmatprep.subr.bf16.mxu0 %v5787_v0  ;;  %v5359_v15 = vpack.c.bf16 %v3034_v13, %v3033_v1 }
 0x61d   : > { %5348 = vmatpush3.bf16.msra.mxu0 %v5347_v9 }
 0x61e   : > { %5349 = vmatprep.subr.bf16.mxu0 %v5787_v0 }
 0x621   : > { %5351 = vmatpush3.bf16.msra.mxu0 %v5350_v7 }
 0x622   : > { %5352 = vmatprep.subr.bf16.mxu0 %v5787_v0 }
 0x625   : > { %5354 = vmatpush3.bf16.msra.mxu0 %v5353_v23 }
 0x626   : > { %5355 = vmatprep.subr.bf16.mxu0 %v5787_v0 }
 0x629   : > { %5357 = vmatpush3.bf16.msra.mxu0 %v5356_v39 }
 0x62a   : > { %5358 = vmatprep.subr.bf16.mxu0 %v5787_v0 }
 0x62d   : > { %5360 = vmatpush3.bf16.msra.mxu0 %v5359_v15 }
 0x62e   : > { %5361 = vmatprep.subr.bf16.mxu0 %v5787_v0 }
 0x631   : > { %5363 = vmatpush3.bf16.msra.mxu0 %v5362_v20 }
 0x632   : > { %5364 = vmatprep.subr.bf16.mxu0 %v5787_v0 }
 0x635   : > { %5366 = vmatpush3.bf16.msra.mxu0 %v5365_v21 }
 0x638   : > { %4685 = vmatmul.mubr.f32.vlgmr.msra.gmra.mrb[36].mxu0 %v6478_v47  ;;  %v3292_v47 = vld [vmem:[%s6632_s17] ss:$0 sm:$0xff] }
 0x6cb   : > { %v2763_v22 = vpop.f32.mrb[32].mxu0  ;;  %v2837_v52 = vpop.f32.mrb[32].mxu1 }
 0x6cc   : > { %v2838_v24 = vadd.f32 %v2837_v52, %v2763_v22  ;;  %v4546_v25 = vpop.f32.mrb[33].mxu0  ;;  %v4581_v38 = vpop.f32.mrb[33].mxu1 }
 0x6eb   : > { %v2924_v26 = vpop.f32.mrb[34].mxu0  ;;  %v3017_v27 = vpop.f32.mrb[34].mxu1 }
 0x6ec   : > { %v2928_v30 = vadd.f32 %v2924_v26, %v2838_v24  ;;  %v4616_v31 = vpop.f32.mrb[35].mxu0  ;;  %v4651_v32 = vpop.f32.mrb[35].mxu1 }
 0x6ee   : > { %v3021_v33 = vadd.f32 %v3017_v27, %v2928_v30 }
 0x70b   : > { %v3109_v0 = vpop.f32.mrb[36].mxu0 }
 0x70c   : > { %v3113_v36 = vadd.f32 %v3109_v0, %v3021_v33  ;;  %v4686_v6 = vpop.f32.mrb[37].mxu0 }
 0x70e   : > { %v3121_v40 = vadd.f32 %v3292_v47, %v3113_v36 }
 0x710   : > { %3122 = vst [vmem:[%s466_s15] sm:$0xff] %v3121_v40 }
 0x711   : > { %5685 = shalt.err (!%p5682_p7)
}
 0x712   : > { %s5686_s26 = scalar_lea.hbm %s6522_s25, 128  ;;  %s5690_s27 = scalar_lea.hbm %s6634_s13, 768 }
 0x713   : > { %p5687_p9 = scmp.ne.s32.totalorder %s6522_s25, %s5686_s26  ;;  %p5691_p3 = scmp.lt.u32.totalorder %s6522_s25, %s6634_s13 }
 0x714   : > { %p5692_p2 = scmp.lt.u32.totalorder %s5690_s27, %s5686_s26  ;;  %p5694_p8 = scmp.lt.u32.totalorder %s5686_s26, %s6522_s25 }
 0x715   : > { %p5688_p11 = pnand %p5687_p9, %p6635_p10 }
 0x716   : > { %p5693_p0 = por %p5692_p2, %p5691_p3 }
 0x717   : > { %p5689_p13 = pneg %p5688_p11 }
 0x718   : > { %p5695_p12 = por %p5694_p8, %p5693_p0 }
 0x71a   : > { %p5696_p1 = pnand %p5695_p12, %p5689_p13 }
 0x71c   : > { %5699 = shalt.err (!%p5696_p1)
}
 0x71d   : > { %5405 = dma.vmem_to_hbm [thread:$0]  (%p6635_p10), %s6524_s2, 128, %s6522_s25, %s3124_s20  }
 0x71e PF: > { %s6636_s17 = sld [smem:[#allocation20_spill]]  ;;  %s6637_s24 = sld [smem:[#allocation16_spill]] }
 0x71f   : > { %s6638_s15 = sld [smem:[#allocation24_spill]] }
 0x724   : > { %p5437_p4 = scmp.ge.s32.totalorder %s6636_s17, 2  ;;  %s3151_s12 = sand.u32 1, %s6637_s24  }
 0x725   : > { %p6639_p5 = scmp.ne.s32.totalorder %s6638_s15, 0  ;;  %s3152_s11 = scalar_lea.sflag [#allocation4], %s3151_s12 }
 0x727   : > { %p5424_p6 = pnand %p5437_p4, %p6639_p5 }
 0x729   : > { %5745 = dma.done.wait (!%p5424_p6), %s3152_s11, 128  }
 0x72a   : > { %5747 = vsyncadd (!%p5424_p6), %s3152_s11, 4294967168  ;;  %s27_s24 = sadd.s32 1, %s6636_s17   ;;  %s6640_s19 = sld [smem:[#allocation17_spill]] }
 0x72b   : > { %p24_p7 = scmp.ge.s32.totalorder %s27_s24, 8   ;;  %s6641_s22 = sld [smem:[#allocation25_spill]] }
 0x72c   : > { %s6642_s20 = sld [smem:[#allocation18_spill]]  ;;  %s6643_s21 = sld [smem:[#allocation19_spill]] }
 0x72d   : > { %s6644_s2 = sld [smem:[#allocation21_spill]]  ;;  %s6645_s23 = sld [smem:[#allocation23_spill]] }
 0x72e   : > { %s6646_s17 = smov %s5754_s18  ;;  %26 = sbr.rel (!%p24_p7) target bundleno = 12 (0xc), region = 141 }
 0x730   : > { %s6647_s18 = smov %s6640_s19 }
 0x731   : > { %s6648_s19 = smov %s6641_s22 }
 0x733   : > { %s6649_s22 = smov %s6644_s2 }
 0x735   :  { %3157 = vsyncpa [#allocation3], 1 }
 0x736   :  { %3159 = vsyncpa [#allocation3 + $0x1], 1 }
 0x737   :  { %3160 = vsyncpa [#allocation6], 1 }
 0x738   :  { %3161 = vsyncpa [#allocation9], 1 }
 0x739   :  { %3162 = vsyncpa [#allocation4], 1 }
 0x73a   :  { %3164 = vsyncpa [#allocation4 + $0x1], 1 }

</bundles_post_ra>
